<compile_context>
chip_gen: v7x
topology: tpu7x:2x2x1
jax: 0.10.0
libtpu: 0.0.40
codegen_flags: <defaults>
</compile_context>

<pallas_src>
import jax
import jax.numpy as jnp
from jax.experimental import pallas as pl
from jax.experimental.pallas import tpu as pltpu

B, H, W = 2, 8, 8
C = 64                     # n_channels
NF = B * H * W             # flattened rows = 128 -> full MXU M dimension
N_BLOCKS = 3               # residual blocks
N_BODY = 1 + 2 * N_BLOCKS  # 7 conv(+BN) layers in the body
NEG_SLOPE = 0.01           # nn.LeakyReLU default
BN_EPS = 1e-5


def _leaky_relu(x):
    return jnp.where(x > 0, x, NEG_SLOPE * x)


def dueling_dqn_kernel(x_ref, board_ref, mask_ref, wbody_ref, bbody_ref,
                       wg_ref, bg_ref, wheads_ref, bheads_ref, q_ref):
    xf = x_ref[...]                                   # (NF, C) f32

    def conv3x3(inp, layer):
        # 3x3 "same" conv as one (NF, 9C) @ (9C, C) MXU matmul.
        # Tap k has (dy, dx) = (k//3 - 1, k%3 - 1);
        # rolled[r] = inp[r + dy*W + dx]  =>  roll shift = -(dy*W + dx) mod NF.
        # Only the +-1 shifts need true sublane rotates (computed once);
        # the +-W = +-8 row rolls are whole f32 sublane-group moves.
        srcs = {-1: pltpu.roll(inp, 1, axis=0),       # dx = -1
                0: inp,                               # dx =  0
                1: pltpu.roll(inp, NF - 1, axis=0)}   # dx = +1
        cols = []
        for dy in (-1, 0, 1):
            sh = (-dy * W) % NF                       # 8, 0, 120
            for dx in (-1, 0, 1):
                t = srcs[dx] if sh == 0 else pltpu.roll(srcs[dx], sh, axis=0)
                cols.append(t.astype(jnp.bfloat16))   # bf16 per tap (36-vreg patch)
        patch = jnp.concatenate(cols, axis=-1)        # (NF, 9C) bf16
        patch = patch * mask_ref[...]                 # single fused edge/batch mask
        out = jnp.dot(patch, wbody_ref[layer],
                      preferred_element_type=jnp.float32)   # (NF, C) f32
        return out + bbody_ref[layer][None, :]

    # ---- body: ConvBlock(3->C) + N_BLOCKS residual blocks (BN folded) ----
    feat = _leaky_relu(conv3x3(xf, 0))
    for blk in range(N_BLOCKS):
        y = _leaky_relu(conv3x3(feat, 1 + 2 * blk))   # conv_block_1 (leaky_relu)
        y = conv3x3(y, 2 + 2 * blk)                   # conv_block_2 (Identity)
        feat = _leaky_relu(feat + y)

    # ---- global features: AdaptiveMaxPool2d(1) + 1x1 ConvBlock (ReLU) ----
    featB = feat.reshape(B, H * W, C)                 # (B, HW, C)
    gmax = jnp.max(featB, axis=1)                     # (B, C)
    gf = jnp.dot(gmax, wg_ref[...], preferred_element_type=jnp.float32)
    gf = jnp.maximum(gf + bg_ref[...], 0.0)           # (B, C)

    # ---- heads (1x1 convs with bias) ----
    wv = wheads_ref[0][None, :]                       # value-head weight
    wa_f = wheads_ref[1]                              # advantage weight (features)
    wa_g = wheads_ref[2][None, :]                     # advantage weight (global)
    bv = bheads_ref[0]
    ba = bheads_ref[1]

    V = jnp.sum(gf * wv, axis=-1, keepdims=True) + bv         # (B, 1)
    a_g = jnp.sum(gf * wa_g, axis=-1, keepdims=True) + ba     # (B, 1)
    a_f = jnp.sum(featB * wa_f, axis=-1)                      # (B, HW)
    A = a_f + a_g                                             # (B, HW)

    # ---- dueling combination with empty-space masking ----
    board = board_ref[...]                            # (B, HW)
    empty = board == 0.0
    A = jnp.where(empty, A, 0.0)

    n_empty = jnp.sum(empty.astype(jnp.float32), axis=-1, keepdims=True)
    avg_adv = jnp.sum(A, axis=-1, keepdims=True) / jnp.maximum(n_empty, 1.0)

    raw_q = jnp.tanh((V - avg_adv) + A)               # (B, HW)
    q_ref[...] = jnp.where(empty, raw_q, -jnp.inf)


def _build_patch_mask():
    # Combined (NF, 9C) bf16 0/1 mask implementing the conv's zero padding
    # (and preventing cross-batch wraparound bleed).  Zeros/ones are exact
    # in bf16, so a bf16 mask multiply is numerically identical to f32.
    r = jnp.arange(NF, dtype=jnp.int32)
    wpos = r % W
    hpos = (r // W) % H
    cols = []
    for dy in (-1, 0, 1):
        for dx in (-1, 0, 1):
            ok = jnp.ones((NF,), dtype=bool)
            if dy < 0:
                ok = ok & (hpos > 0)
            if dy > 0:
                ok = ok & (hpos < H - 1)
            if dx < 0:
                ok = ok & (wpos > 0)
            if dx > 0:
                ok = ok & (wpos < W - 1)
            cols.append(jnp.broadcast_to(ok[:, None], (NF, C)))
    return jnp.concatenate(cols, axis=-1).astype(jnp.bfloat16)   # (NF, 9C)


def _fold_bn(w, gamma, beta, mean, var):
    # w: (..., Cout); fold eval-mode BatchNorm into conv weight + bias.
    scale = gamma / jnp.sqrt(var + BN_EPS)
    return w * scale, beta - mean * scale


def init_params(key):
    keys = iter(jax.random.split(key, 64))

    def conv_w(cin, cout, k):
        return 0.08 * jax.random.normal(next(keys), (k, k, cin, cout), jnp.float32)

    def bn(c):
        gamma = 1.0 + 0.1 * jax.random.normal(next(keys), (c,), jnp.float32)
        beta = 0.05 * jax.random.normal(next(keys), (c,), jnp.float32)
        mean = 0.05 * jax.random.normal(next(keys), (c,), jnp.float32)
        var = 1.0 + 0.2 * jax.random.uniform(next(keys), (c,), jnp.float32)
        return gamma, beta, mean, var

    w_body, b_body = [], []
    # body conv 0: Cin=3, zero-padded to C so all body layers share one stack
    w0 = conv_w(3, C, 3)
    w0 = jnp.pad(w0, ((0, 0), (0, 0), (0, C - 3), (0, 0)))
    w0f, b0f = _fold_bn(w0, *bn(C))
    w_body.append(w0f); b_body.append(b0f)
    for _ in range(2 * N_BLOCKS):
        wl = conv_w(C, C, 3)
        wlf, blf = _fold_bn(wl, *bn(C))
        w_body.append(wlf); b_body.append(blf)
    # pack as im2col weights: (layer, tap*Cin, Cout); bf16 MXU operands
    w_body = jnp.stack(w_body).reshape(N_BODY, 9 * C, C).astype(jnp.bfloat16)
    b_body = jnp.stack(b_body)                            # (7, C) f32

    # global-feature 1x1 ConvBlock (conv no-bias + BN + ReLU)
    wg = 0.08 * jax.random.normal(next(keys), (C, C), jnp.float32)
    wg, bg = _fold_bn(wg, *bn(C))
    bg = bg[None, :]                                      # (1, C)

    # heads: plain 1x1 convs with bias
    wv = 0.1 * jax.random.normal(next(keys), (C,), jnp.float32)
    bv = 0.1 * jax.random.normal(next(keys), (), jnp.float32)
    wa = 0.1 * jax.random.normal(next(keys), (2 * C,), jnp.float32)
    ba = 0.1 * jax.random.normal(next(keys), (), jnp.float32)
    w_heads = jnp.stack([wv, wa[:C], wa[C:]])             # (3, C)
    b_heads = jnp.stack([bv, ba])                         # (2,)
    return w_body, b_body, wg, bg, w_heads, b_heads


def dueling_dqn(state_nchw, params):
    w_body, b_body, wg, bg, w_heads, b_heads = params
    # NCHW -> NHWC, pad the 3 input channels up to C, flatten to (B*H*W, C).
    x = jnp.transpose(state_nchw, (0, 2, 3, 1)).astype(jnp.float32)
    x = jnp.pad(x, ((0, 0), (0, 0), (0, 0), (0, C - x.shape[-1])))
    x_flat = x.reshape(NF, C)
    # board plane (channel 0), flattened per batch row
    board = state_nchw[:, 0, :, :].astype(jnp.float32).reshape(B, H * W)
    patch_mask = _build_patch_mask()                      # (NF, 9C) bf16

    vmem = pl.BlockSpec(memory_space=pltpu.MemorySpace.VMEM)
    smem = pl.BlockSpec(memory_space=pltpu.MemorySpace.SMEM)
    q_flat = pl.pallas_call(
        dueling_dqn_kernel,
        out_shape=jax.ShapeDtypeStruct((B, H * W), jnp.float32),
        in_specs=[vmem, vmem, vmem, vmem, vmem, vmem, vmem, vmem, smem],
        out_specs=vmem,
        # honest estimate: 7 x (2*128*576*64) ~= 66 MFLOP, ~0.7 MB traffic
        cost_estimate=pl.CostEstimate(
            flops=66_100_000, transcendentals=128, bytes_accessed=730_000),
    )(x_flat, board, patch_mask, w_body, b_body, wg, bg, w_heads, b_heads)
    return q_flat.reshape(B, H, W)


if __name__ == "__main__":
    key = jax.random.PRNGKey(0)
    kp, kb, kx = jax.random.split(key, 3)
    params = init_params(kp)

    # state_tensor: (B, 3, H, W) NCHW; channel 0 is the board (some exact zeros)
    board = jax.random.randint(kb, (B, 1, H, W), 0, 3).astype(jnp.float32)
    other = jax.random.normal(kx, (B, 2, H, W), jnp.float32)
    state = jnp.concatenate([board, other], axis=1)

    q = dueling_dqn(state, params)
    jax.block_until_ready(q)
    assert q.shape == (B, H, W) and q.dtype == jnp.float32
    print("KERNEL_OK")
</pallas_src>

<mosaic_0001>
module attributes {stable_mosaic.version = 11 : i64} {
  func.func @dueling_dqn_kernel(%arg0: memref<128x64xf32, #tpu.memory_space<vmem>>, %arg1: memref<2x64xf32, #tpu.memory_space<vmem>>, %arg2: memref<128x576xbf16, #tpu.memory_space<vmem>>, %arg3: memref<7x576x64xbf16, #tpu.memory_space<vmem>>, %arg4: memref<7x64xf32, #tpu.memory_space<vmem>>, %arg5: memref<64x64xf32, #tpu.memory_space<vmem>>, %arg6: memref<1x64xf32, #tpu.memory_space<vmem>>, %arg7: memref<3x64xf32, #tpu.memory_space<vmem>>, %arg8: memref<2xf32, #tpu.memory_space<smem>>, %arg9: memref<2x64xf32, #tpu.memory_space<vmem>>) attributes {dimension_semantics = [], scalar_prefetch = 0 : i64, scratch_operands = 0 : i64, tpu.core_type = #tpu.core_type<tc>} {
    %c0 = arith.constant 0 : index
    %c0_0 = arith.constant 0 : index
    %0 = vector.load %arg0[%c0, %c0_0] : memref<128x64xf32, #tpu.memory_space<vmem>>, vector<128x64xf32>
    %c1_i32 = arith.constant 1 : i32
    %1 = tpu.dynamic_rotate %0 by %c1_i32 dim 0 : vector<128x64xf32>, i32 -> vector<128x64xf32>
    %c127_i32 = arith.constant 127 : i32
    %2 = tpu.dynamic_rotate %0 by %c127_i32 dim 0 : vector<128x64xf32>, i32 -> vector<128x64xf32>
    %c8_i32 = arith.constant 8 : i32
    %3 = tpu.dynamic_rotate %1 by %c8_i32 dim 0 : vector<128x64xf32>, i32 -> vector<128x64xf32>
    %4 = arith.truncf %3 : vector<128x64xf32> to vector<128x64xbf16>
    %c8_i32_1 = arith.constant 8 : i32
    %5 = tpu.dynamic_rotate %0 by %c8_i32_1 dim 0 : vector<128x64xf32>, i32 -> vector<128x64xf32>
    %6 = arith.truncf %5 : vector<128x64xf32> to vector<128x64xbf16>
    %c8_i32_2 = arith.constant 8 : i32
    %7 = tpu.dynamic_rotate %2 by %c8_i32_2 dim 0 : vector<128x64xf32>, i32 -> vector<128x64xf32>
    %8 = arith.truncf %7 : vector<128x64xf32> to vector<128x64xbf16>
    %9 = arith.truncf %1 : vector<128x64xf32> to vector<128x64xbf16>
    %10 = arith.truncf %0 : vector<128x64xf32> to vector<128x64xbf16>
    %11 = arith.truncf %2 : vector<128x64xf32> to vector<128x64xbf16>
    %c120_i32 = arith.constant 120 : i32
    %12 = tpu.dynamic_rotate %1 by %c120_i32 dim 0 : vector<128x64xf32>, i32 -> vector<128x64xf32>
    %13 = arith.truncf %12 : vector<128x64xf32> to vector<128x64xbf16>
    %c120_i32_3 = arith.constant 120 : i32
    %14 = tpu.dynamic_rotate %0 by %c120_i32_3 dim 0 : vector<128x64xf32>, i32 -> vector<128x64xf32>
    %15 = arith.truncf %14 : vector<128x64xf32> to vector<128x64xbf16>
    %c120_i32_4 = arith.constant 120 : i32
    %16 = tpu.dynamic_rotate %2 by %c120_i32_4 dim 0 : vector<128x64xf32>, i32 -> vector<128x64xf32>
    %17 = arith.truncf %16 : vector<128x64xf32> to vector<128x64xbf16>
    %18 = tpu.concatenate %4, %6, %8, %9, %10, %11, %13, %15, %17 in 1 : vector<128x64xbf16>, vector<128x64xbf16>, vector<128x64xbf16>, vector<128x64xbf16>, vector<128x64xbf16>, vector<128x64xbf16>, vector<128x64xbf16>, vector<128x64xbf16>, vector<128x64xbf16> -> vector<128x576xbf16>
    %c0_5 = arith.constant 0 : index
    %c0_6 = arith.constant 0 : index
    %19 = vector.load %arg2[%c0_5, %c0_6] : memref<128x576xbf16, #tpu.memory_space<vmem>>, vector<128x576xbf16>
    %20 = arith.mulf %18, %19 : vector<128x576xbf16>
    %c0_7 = arith.constant 0 : index
    %c0_8 = arith.constant 0 : index
    %c0_9 = arith.constant 0 : index
    %21 = vector.load %arg3[%c0_7, %c0_8, %c0_9] : memref<7x576x64xbf16, #tpu.memory_space<vmem>>, vector<1x576x64xbf16>
    %22 = vector.shape_cast %21 : vector<1x576x64xbf16> to vector<576x64xbf16>
    %cst = arith.constant dense<0.000000e+00> : vector<128x64xf32>
    %23 = tpu.matmul %20, %22, %cst {dimension_numbers = #tpu.dot_dimension_numbers<[1], [0], [0], [1], [0, 0, 1, 1], [], []>} : vector<128x576xbf16>, vector<576x64xbf16>, vector<128x64xf32> -> vector<128x64xf32>
    %c0_10 = arith.constant 0 : index
    %c0_11 = arith.constant 0 : index
    %24 = vector.load %arg4[%c0_10, %c0_11] : memref<7x64xf32, #tpu.memory_space<vmem>>, vector<1x64xf32>
    %25 = vector.shape_cast %24 : vector<1x64xf32> to vector<64xf32>
    %26 = vector.shape_cast %25 : vector<64xf32> to vector<1x64xf32>
    %27 = vector.broadcast %26 : vector<1x64xf32> to vector<128x64xf32>
    %28 = arith.addf %23, %27 : vector<128x64xf32>
    %cst_12 = arith.constant 0.000000e+00 : f32
    %29 = vector.broadcast %cst_12 : f32 to vector<128x64xf32>
    %30 = arith.cmpf ogt, %28, %29 : vector<128x64xf32>
    %cst_13 = arith.constant 0.00999999977 : f32
    %31 = vector.broadcast %cst_13 : f32 to vector<128x64xf32>
    %32 = arith.mulf %31, %28 : vector<128x64xf32>
    %33 = arith.select %30, %28, %32 : vector<128x64xi1>, vector<128x64xf32>
    %c1_i32_14 = arith.constant 1 : i32
    %34 = tpu.dynamic_rotate %33 by %c1_i32_14 dim 0 : vector<128x64xf32>, i32 -> vector<128x64xf32>
    %c127_i32_15 = arith.constant 127 : i32
    %35 = tpu.dynamic_rotate %33 by %c127_i32_15 dim 0 : vector<128x64xf32>, i32 -> vector<128x64xf32>
    %c8_i32_16 = arith.constant 8 : i32
    %36 = tpu.dynamic_rotate %34 by %c8_i32_16 dim 0 : vector<128x64xf32>, i32 -> vector<128x64xf32>
    %37 = arith.truncf %36 : vector<128x64xf32> to vector<128x64xbf16>
    %c8_i32_17 = arith.constant 8 : i32
    %38 = tpu.dynamic_rotate %33 by %c8_i32_17 dim 0 : vector<128x64xf32>, i32 -> vector<128x64xf32>
    %39 = arith.truncf %38 : vector<128x64xf32> to vector<128x64xbf16>
    %c8_i32_18 = arith.constant 8 : i32
    %40 = tpu.dynamic_rotate %35 by %c8_i32_18 dim 0 : vector<128x64xf32>, i32 -> vector<128x64xf32>
    %41 = arith.truncf %40 : vector<128x64xf32> to vector<128x64xbf16>
    %42 = arith.truncf %34 : vector<128x64xf32> to vector<128x64xbf16>
    %43 = arith.truncf %33 : vector<128x64xf32> to vector<128x64xbf16>
    %44 = arith.truncf %35 : vector<128x64xf32> to vector<128x64xbf16>
    %c120_i32_19 = arith.constant 120 : i32
    %45 = tpu.dynamic_rotate %34 by %c120_i32_19 dim 0 : vector<128x64xf32>, i32 -> vector<128x64xf32>
    %46 = arith.truncf %45 : vector<128x64xf32> to vector<128x64xbf16>
    %c120_i32_20 = arith.constant 120 : i32
    %47 = tpu.dynamic_rotate %33 by %c120_i32_20 dim 0 : vector<128x64xf32>, i32 -> vector<128x64xf32>
    %48 = arith.truncf %47 : vector<128x64xf32> to vector<128x64xbf16>
    %c120_i32_21 = arith.constant 120 : i32
    %49 = tpu.dynamic_rotate %35 by %c120_i32_21 dim 0 : vector<128x64xf32>, i32 -> vector<128x64xf32>
    %50 = arith.truncf %49 : vector<128x64xf32> to vector<128x64xbf16>
    %51 = tpu.concatenate %37, %39, %41, %42, %43, %44, %46, %48, %50 in 1 : vector<128x64xbf16>, vector<128x64xbf16>, vector<128x64xbf16>, vector<128x64xbf16>, vector<128x64xbf16>, vector<128x64xbf16>, vector<128x64xbf16>, vector<128x64xbf16>, vector<128x64xbf16> -> vector<128x576xbf16>
    %c0_22 = arith.constant 0 : index
    %c0_23 = arith.constant 0 : index
    %52 = vector.load %arg2[%c0_22, %c0_23] : memref<128x576xbf16, #tpu.memory_space<vmem>>, vector<128x576xbf16>
    %53 = arith.mulf %51, %52 : vector<128x576xbf16>
    %c1 = arith.constant 1 : index
    %c0_24 = arith.constant 0 : index
    %c0_25 = arith.constant 0 : index
    %54 = vector.load %arg3[%c1, %c0_24, %c0_25] : memref<7x576x64xbf16, #tpu.memory_space<vmem>>, vector<1x576x64xbf16>
    %55 = vector.shape_cast %54 : vector<1x576x64xbf16> to vector<576x64xbf16>
    %cst_26 = arith.constant dense<0.000000e+00> : vector<128x64xf32>
    %56 = tpu.matmul %53, %55, %cst_26 {dimension_numbers = #tpu.dot_dimension_numbers<[1], [0], [0], [1], [0, 0, 1, 1], [], []>} : vector<128x576xbf16>, vector<576x64xbf16>, vector<128x64xf32> -> vector<128x64xf32>
    %c1_27 = arith.constant 1 : index
    %c0_28 = arith.constant 0 : index
    %57 = vector.load %arg4[%c1_27, %c0_28] : memref<7x64xf32, #tpu.memory_space<vmem>>, vector<1x64xf32>
    %58 = vector.shape_cast %57 : vector<1x64xf32> to vector<64xf32>
    %59 = vector.shape_cast %58 : vector<64xf32> to vector<1x64xf32>
    %60 = vector.broadcast %59 : vector<1x64xf32> to vector<128x64xf32>
    %61 = arith.addf %56, %60 : vector<128x64xf32>
    %cst_29 = arith.constant 0.000000e+00 : f32
    %62 = vector.broadcast %cst_29 : f32 to vector<128x64xf32>
    %63 = arith.cmpf ogt, %61, %62 : vector<128x64xf32>
    %cst_30 = arith.constant 0.00999999977 : f32
    %64 = vector.broadcast %cst_30 : f32 to vector<128x64xf32>
    %65 = arith.mulf %64, %61 : vector<128x64xf32>
    %66 = arith.select %63, %61, %65 : vector<128x64xi1>, vector<128x64xf32>
    %c1_i32_31 = arith.constant 1 : i32
    %67 = tpu.dynamic_rotate %66 by %c1_i32_31 dim 0 : vector<128x64xf32>, i32 -> vector<128x64xf32>
    %c127_i32_32 = arith.constant 127 : i32
    %68 = tpu.dynamic_rotate %66 by %c127_i32_32 dim 0 : vector<128x64xf32>, i32 -> vector<128x64xf32>
    %c8_i32_33 = arith.constant 8 : i32
    %69 = tpu.dynamic_rotate %67 by %c8_i32_33 dim 0 : vector<128x64xf32>, i32 -> vector<128x64xf32>
    %70 = arith.truncf %69 : vector<128x64xf32> to vector<128x64xbf16>
    %c8_i32_34 = arith.constant 8 : i32
    %71 = tpu.dynamic_rotate %66 by %c8_i32_34 dim 0 : vector<128x64xf32>, i32 -> vector<128x64xf32>
    %72 = arith.truncf %71 : vector<128x64xf32> to vector<128x64xbf16>
    %c8_i32_35 = arith.constant 8 : i32
    %73 = tpu.dynamic_rotate %68 by %c8_i32_35 dim 0 : vector<128x64xf32>, i32 -> vector<128x64xf32>
    %74 = arith.truncf %73 : vector<128x64xf32> to vector<128x64xbf16>
    %75 = arith.truncf %67 : vector<128x64xf32> to vector<128x64xbf16>
    %76 = arith.truncf %66 : vector<128x64xf32> to vector<128x64xbf16>
    %77 = arith.truncf %68 : vector<128x64xf32> to vector<128x64xbf16>
    %c120_i32_36 = arith.constant 120 : i32
    %78 = tpu.dynamic_rotate %67 by %c120_i32_36 dim 0 : vector<128x64xf32>, i32 -> vector<128x64xf32>
    %79 = arith.truncf %78 : vector<128x64xf32> to vector<128x64xbf16>
    %c120_i32_37 = arith.constant 120 : i32
    %80 = tpu.dynamic_rotate %66 by %c120_i32_37 dim 0 : vector<128x64xf32>, i32 -> vector<128x64xf32>
    %81 = arith.truncf %80 : vector<128x64xf32> to vector<128x64xbf16>
    %c120_i32_38 = arith.constant 120 : i32
    %82 = tpu.dynamic_rotate %68 by %c120_i32_38 dim 0 : vector<128x64xf32>, i32 -> vector<128x64xf32>
    %83 = arith.truncf %82 : vector<128x64xf32> to vector<128x64xbf16>
    %84 = tpu.concatenate %70, %72, %74, %75, %76, %77, %79, %81, %83 in 1 : vector<128x64xbf16>, vector<128x64xbf16>, vector<128x64xbf16>, vector<128x64xbf16>, vector<128x64xbf16>, vector<128x64xbf16>, vector<128x64xbf16>, vector<128x64xbf16>, vector<128x64xbf16> -> vector<128x576xbf16>
    %c0_39 = arith.constant 0 : index
    %c0_40 = arith.constant 0 : index
    %85 = vector.load %arg2[%c0_39, %c0_40] : memref<128x576xbf16, #tpu.memory_space<vmem>>, vector<128x576xbf16>
    %86 = arith.mulf %84, %85 : vector<128x576xbf16>
    %c2 = arith.constant 2 : index
    %c0_41 = arith.constant 0 : index
    %c0_42 = arith.constant 0 : index
    %87 = vector.load %arg3[%c2, %c0_41, %c0_42] : memref<7x576x64xbf16, #tpu.memory_space<vmem>>, vector<1x576x64xbf16>
    %88 = vector.shape_cast %87 : vector<1x576x64xbf16> to vector<576x64xbf16>
    %cst_43 = arith.constant dense<0.000000e+00> : vector<128x64xf32>
    %89 = tpu.matmul %86, %88, %cst_43 {dimension_numbers = #tpu.dot_dimension_numbers<[1], [0], [0], [1], [0, 0, 1, 1], [], []>} : vector<128x576xbf16>, vector<576x64xbf16>, vector<128x64xf32> -> vector<128x64xf32>
    %c2_44 = arith.constant 2 : index
    %c0_45 = arith.constant 0 : index
    %90 = vector.load %arg4[%c2_44, %c0_45] : memref<7x64xf32, #tpu.memory_space<vmem>>, vector<1x64xf32>
    %91 = vector.shape_cast %90 : vector<1x64xf32> to vector<64xf32>
    %92 = vector.shape_cast %91 : vector<64xf32> to vector<1x64xf32>
    %93 = vector.broadcast %92 : vector<1x64xf32> to vector<128x64xf32>
    %94 = arith.addf %89, %93 : vector<128x64xf32>
    %95 = arith.addf %33, %94 : vector<128x64xf32>
    %cst_46 = arith.constant 0.000000e+00 : f32
    %96 = vector.broadcast %cst_46 : f32 to vector<128x64xf32>
    %97 = arith.cmpf ogt, %95, %96 : vector<128x64xf32>
    %cst_47 = arith.constant 0.00999999977 : f32
    %98 = vector.broadcast %cst_47 : f32 to vector<128x64xf32>
    %99 = arith.mulf %98, %95 : vector<128x64xf32>
    %100 = arith.select %97, %95, %99 : vector<128x64xi1>, vector<128x64xf32>
    %c1_i32_48 = arith.constant 1 : i32
    %101 = tpu.dynamic_rotate %100 by %c1_i32_48 dim 0 : vector<128x64xf32>, i32 -> vector<128x64xf32>
    %c127_i32_49 = arith.constant 127 : i32
    %102 = tpu.dynamic_rotate %100 by %c127_i32_49 dim 0 : vector<128x64xf32>, i32 -> vector<128x64xf32>
    %c8_i32_50 = arith.constant 8 : i32
    %103 = tpu.dynamic_rotate %101 by %c8_i32_50 dim 0 : vector<128x64xf32>, i32 -> vector<128x64xf32>
    %104 = arith.truncf %103 : vector<128x64xf32> to vector<128x64xbf16>
    %c8_i32_51 = arith.constant 8 : i32
    %105 = tpu.dynamic_rotate %100 by %c8_i32_51 dim 0 : vector<128x64xf32>, i32 -> vector<128x64xf32>
    %106 = arith.truncf %105 : vector<128x64xf32> to vector<128x64xbf16>
    %c8_i32_52 = arith.constant 8 : i32
    %107 = tpu.dynamic_rotate %102 by %c8_i32_52 dim 0 : vector<128x64xf32>, i32 -> vector<128x64xf32>
    %108 = arith.truncf %107 : vector<128x64xf32> to vector<128x64xbf16>
    %109 = arith.truncf %101 : vector<128x64xf32> to vector<128x64xbf16>
    %110 = arith.truncf %100 : vector<128x64xf32> to vector<128x64xbf16>
    %111 = arith.truncf %102 : vector<128x64xf32> to vector<128x64xbf16>
    %c120_i32_53 = arith.constant 120 : i32
    %112 = tpu.dynamic_rotate %101 by %c120_i32_53 dim 0 : vector<128x64xf32>, i32 -> vector<128x64xf32>
    %113 = arith.truncf %112 : vector<128x64xf32> to vector<128x64xbf16>
    %c120_i32_54 = arith.constant 120 : i32
    %114 = tpu.dynamic_rotate %100 by %c120_i32_54 dim 0 : vector<128x64xf32>, i32 -> vector<128x64xf32>
    %115 = arith.truncf %114 : vector<128x64xf32> to vector<128x64xbf16>
    %c120_i32_55 = arith.constant 120 : i32
    %116 = tpu.dynamic_rotate %102 by %c120_i32_55 dim 0 : vector<128x64xf32>, i32 -> vector<128x64xf32>
    %117 = arith.truncf %116 : vector<128x64xf32> to vector<128x64xbf16>
    %118 = tpu.concatenate %104, %106, %108, %109, %110, %111, %113, %115, %117 in 1 : vector<128x64xbf16>, vector<128x64xbf16>, vector<128x64xbf16>, vector<128x64xbf16>, vector<128x64xbf16>, vector<128x64xbf16>, vector<128x64xbf16>, vector<128x64xbf16>, vector<128x64xbf16> -> vector<128x576xbf16>
    %c0_56 = arith.constant 0 : index
    %c0_57 = arith.constant 0 : index
    %119 = vector.load %arg2[%c0_56, %c0_57] : memref<128x576xbf16, #tpu.memory_space<vmem>>, vector<128x576xbf16>
    %120 = arith.mulf %118, %119 : vector<128x576xbf16>
    %c3 = arith.constant 3 : index
    %c0_58 = arith.constant 0 : index
    %c0_59 = arith.constant 0 : index
    %121 = vector.load %arg3[%c3, %c0_58, %c0_59] : memref<7x576x64xbf16, #tpu.memory_space<vmem>>, vector<1x576x64xbf16>
    %122 = vector.shape_cast %121 : vector<1x576x64xbf16> to vector<576x64xbf16>
    %cst_60 = arith.constant dense<0.000000e+00> : vector<128x64xf32>
    %123 = tpu.matmul %120, %122, %cst_60 {dimension_numbers = #tpu.dot_dimension_numbers<[1], [0], [0], [1], [0, 0, 1, 1], [], []>} : vector<128x576xbf16>, vector<576x64xbf16>, vector<128x64xf32> -> vector<128x64xf32>
    %c3_61 = arith.constant 3 : index
    %c0_62 = arith.constant 0 : index
    %124 = vector.load %arg4[%c3_61, %c0_62] : memref<7x64xf32, #tpu.memory_space<vmem>>, vector<1x64xf32>
    %125 = vector.shape_cast %124 : vector<1x64xf32> to vector<64xf32>
    %126 = vector.shape_cast %125 : vector<64xf32> to vector<1x64xf32>
    %127 = vector.broadcast %126 : vector<1x64xf32> to vector<128x64xf32>
    %128 = arith.addf %123, %127 : vector<128x64xf32>
    %cst_63 = arith.constant 0.000000e+00 : f32
    %129 = vector.broadcast %cst_63 : f32 to vector<128x64xf32>
    %130 = arith.cmpf ogt, %128, %129 : vector<128x64xf32>
    %cst_64 = arith.constant 0.00999999977 : f32
    %131 = vector.broadcast %cst_64 : f32 to vector<128x64xf32>
    %132 = arith.mulf %131, %128 : vector<128x64xf32>
    %133 = arith.select %130, %128, %132 : vector<128x64xi1>, vector<128x64xf32>
    %c1_i32_65 = arith.constant 1 : i32
    %134 = tpu.dynamic_rotate %133 by %c1_i32_65 dim 0 : vector<128x64xf32>, i32 -> vector<128x64xf32>
    %c127_i32_66 = arith.constant 127 : i32
    %135 = tpu.dynamic_rotate %133 by %c127_i32_66 dim 0 : vector<128x64xf32>, i32 -> vector<128x64xf32>
    %c8_i32_67 = arith.constant 8 : i32
    %136 = tpu.dynamic_rotate %134 by %c8_i32_67 dim 0 : vector<128x64xf32>, i32 -> vector<128x64xf32>
    %137 = arith.truncf %136 : vector<128x64xf32> to vector<128x64xbf16>
    %c8_i32_68 = arith.constant 8 : i32
    %138 = tpu.dynamic_rotate %133 by %c8_i32_68 dim 0 : vector<128x64xf32>, i32 -> vector<128x64xf32>
    %139 = arith.truncf %138 : vector<128x64xf32> to vector<128x64xbf16>
    %c8_i32_69 = arith.constant 8 : i32
    %140 = tpu.dynamic_rotate %135 by %c8_i32_69 dim 0 : vector<128x64xf32>, i32 -> vector<128x64xf32>
    %141 = arith.truncf %140 : vector<128x64xf32> to vector<128x64xbf16>
    %142 = arith.truncf %134 : vector<128x64xf32> to vector<128x64xbf16>
    %143 = arith.truncf %133 : vector<128x64xf32> to vector<128x64xbf16>
    %144 = arith.truncf %135 : vector<128x64xf32> to vector<128x64xbf16>
    %c120_i32_70 = arith.constant 120 : i32
    %145 = tpu.dynamic_rotate %134 by %c120_i32_70 dim 0 : vector<128x64xf32>, i32 -> vector<128x64xf32>
    %146 = arith.truncf %145 : vector<128x64xf32> to vector<128x64xbf16>
    %c120_i32_71 = arith.constant 120 : i32
    %147 = tpu.dynamic_rotate %133 by %c120_i32_71 dim 0 : vector<128x64xf32>, i32 -> vector<128x64xf32>
    %148 = arith.truncf %147 : vector<128x64xf32> to vector<128x64xbf16>
    %c120_i32_72 = arith.constant 120 : i32
    %149 = tpu.dynamic_rotate %135 by %c120_i32_72 dim 0 : vector<128x64xf32>, i32 -> vector<128x64xf32>
    %150 = arith.truncf %149 : vector<128x64xf32> to vector<128x64xbf16>
    %151 = tpu.concatenate %137, %139, %141, %142, %143, %144, %146, %148, %150 in 1 : vector<128x64xbf16>, vector<128x64xbf16>, vector<128x64xbf16>, vector<128x64xbf16>, vector<128x64xbf16>, vector<128x64xbf16>, vector<128x64xbf16>, vector<128x64xbf16>, vector<128x64xbf16> -> vector<128x576xbf16>
    %c0_73 = arith.constant 0 : index
    %c0_74 = arith.constant 0 : index
    %152 = vector.load %arg2[%c0_73, %c0_74] : memref<128x576xbf16, #tpu.memory_space<vmem>>, vector<128x576xbf16>
    %153 = arith.mulf %151, %152 : vector<128x576xbf16>
    %c4 = arith.constant 4 : index
    %c0_75 = arith.constant 0 : index
    %c0_76 = arith.constant 0 : index
    %154 = vector.load %arg3[%c4, %c0_75, %c0_76] : memref<7x576x64xbf16, #tpu.memory_space<vmem>>, vector<1x576x64xbf16>
    %155 = vector.shape_cast %154 : vector<1x576x64xbf16> to vector<576x64xbf16>
    %cst_77 = arith.constant dense<0.000000e+00> : vector<128x64xf32>
    %156 = tpu.matmul %153, %155, %cst_77 {dimension_numbers = #tpu.dot_dimension_numbers<[1], [0], [0], [1], [0, 0, 1, 1], [], []>} : vector<128x576xbf16>, vector<576x64xbf16>, vector<128x64xf32> -> vector<128x64xf32>
    %c4_78 = arith.constant 4 : index
    %c0_79 = arith.constant 0 : index
    %157 = vector.load %arg4[%c4_78, %c0_79] : memref<7x64xf32, #tpu.memory_space<vmem>>, vector<1x64xf32>
    %158 = vector.shape_cast %157 : vector<1x64xf32> to vector<64xf32>
    %159 = vector.shape_cast %158 : vector<64xf32> to vector<1x64xf32>
    %160 = vector.broadcast %159 : vector<1x64xf32> to vector<128x64xf32>
    %161 = arith.addf %156, %160 : vector<128x64xf32>
    %162 = arith.addf %100, %161 : vector<128x64xf32>
    %cst_80 = arith.constant 0.000000e+00 : f32
    %163 = vector.broadcast %cst_80 : f32 to vector<128x64xf32>
    %164 = arith.cmpf ogt, %162, %163 : vector<128x64xf32>
    %cst_81 = arith.constant 0.00999999977 : f32
    %165 = vector.broadcast %cst_81 : f32 to vector<128x64xf32>
    %166 = arith.mulf %165, %162 : vector<128x64xf32>
    %167 = arith.select %164, %162, %166 : vector<128x64xi1>, vector<128x64xf32>
    %c1_i32_82 = arith.constant 1 : i32
    %168 = tpu.dynamic_rotate %167 by %c1_i32_82 dim 0 : vector<128x64xf32>, i32 -> vector<128x64xf32>
    %c127_i32_83 = arith.constant 127 : i32
    %169 = tpu.dynamic_rotate %167 by %c127_i32_83 dim 0 : vector<128x64xf32>, i32 -> vector<128x64xf32>
    %c8_i32_84 = arith.constant 8 : i32
    %170 = tpu.dynamic_rotate %168 by %c8_i32_84 dim 0 : vector<128x64xf32>, i32 -> vector<128x64xf32>
    %171 = arith.truncf %170 : vector<128x64xf32> to vector<128x64xbf16>
    %c8_i32_85 = arith.constant 8 : i32
    %172 = tpu.dynamic_rotate %167 by %c8_i32_85 dim 0 : vector<128x64xf32>, i32 -> vector<128x64xf32>
    %173 = arith.truncf %172 : vector<128x64xf32> to vector<128x64xbf16>
    %c8_i32_86 = arith.constant 8 : i32
    %174 = tpu.dynamic_rotate %169 by %c8_i32_86 dim 0 : vector<128x64xf32>, i32 -> vector<128x64xf32>
    %175 = arith.truncf %174 : vector<128x64xf32> to vector<128x64xbf16>
    %176 = arith.truncf %168 : vector<128x64xf32> to vector<128x64xbf16>
    %177 = arith.truncf %167 : vector<128x64xf32> to vector<128x64xbf16>
    %178 = arith.truncf %169 : vector<128x64xf32> to vector<128x64xbf16>
    %c120_i32_87 = arith.constant 120 : i32
    %179 = tpu.dynamic_rotate %168 by %c120_i32_87 dim 0 : vector<128x64xf32>, i32 -> vector<128x64xf32>
    %180 = arith.truncf %179 : vector<128x64xf32> to vector<128x64xbf16>
    %c120_i32_88 = arith.constant 120 : i32
    %181 = tpu.dynamic_rotate %167 by %c120_i32_88 dim 0 : vector<128x64xf32>, i32 -> vector<128x64xf32>
    %182 = arith.truncf %181 : vector<128x64xf32> to vector<128x64xbf16>
    %c120_i32_89 = arith.constant 120 : i32
    %183 = tpu.dynamic_rotate %169 by %c120_i32_89 dim 0 : vector<128x64xf32>, i32 -> vector<128x64xf32>
    %184 = arith.truncf %183 : vector<128x64xf32> to vector<128x64xbf16>
    %185 = tpu.concatenate %171, %173, %175, %176, %177, %178, %180, %182, %184 in 1 : vector<128x64xbf16>, vector<128x64xbf16>, vector<128x64xbf16>, vector<128x64xbf16>, vector<128x64xbf16>, vector<128x64xbf16>, vector<128x64xbf16>, vector<128x64xbf16>, vector<128x64xbf16> -> vector<128x576xbf16>
    %c0_90 = arith.constant 0 : index
    %c0_91 = arith.constant 0 : index
    %186 = vector.load %arg2[%c0_90, %c0_91] : memref<128x576xbf16, #tpu.memory_space<vmem>>, vector<128x576xbf16>
    %187 = arith.mulf %185, %186 : vector<128x576xbf16>
    %c5 = arith.constant 5 : index
    %c0_92 = arith.constant 0 : index
    %c0_93 = arith.constant 0 : index
    %188 = vector.load %arg3[%c5, %c0_92, %c0_93] : memref<7x576x64xbf16, #tpu.memory_space<vmem>>, vector<1x576x64xbf16>
    %189 = vector.shape_cast %188 : vector<1x576x64xbf16> to vector<576x64xbf16>
    %cst_94 = arith.constant dense<0.000000e+00> : vector<128x64xf32>
    %190 = tpu.matmul %187, %189, %cst_94 {dimension_numbers = #tpu.dot_dimension_numbers<[1], [0], [0], [1], [0, 0, 1, 1], [], []>} : vector<128x576xbf16>, vector<576x64xbf16>, vector<128x64xf32> -> vector<128x64xf32>
    %c5_95 = arith.constant 5 : index
    %c0_96 = arith.constant 0 : index
    %191 = vector.load %arg4[%c5_95, %c0_96] : memref<7x64xf32, #tpu.memory_space<vmem>>, vector<1x64xf32>
    %192 = vector.shape_cast %191 : vector<1x64xf32> to vector<64xf32>
    %193 = vector.shape_cast %192 : vector<64xf32> to vector<1x64xf32>
    %194 = vector.broadcast %193 : vector<1x64xf32> to vector<128x64xf32>
    %195 = arith.addf %190, %194 : vector<128x64xf32>
    %cst_97 = arith.constant 0.000000e+00 : f32
    %196 = vector.broadcast %cst_97 : f32 to vector<128x64xf32>
    %197 = arith.cmpf ogt, %195, %196 : vector<128x64xf32>
    %cst_98 = arith.constant 0.00999999977 : f32
    %198 = vector.broadcast %cst_98 : f32 to vector<128x64xf32>
    %199 = arith.mulf %198, %195 : vector<128x64xf32>
    %200 = arith.select %197, %195, %199 : vector<128x64xi1>, vector<128x64xf32>
    %c1_i32_99 = arith.constant 1 : i32
    %201 = tpu.dynamic_rotate %200 by %c1_i32_99 dim 0 : vector<128x64xf32>, i32 -> vector<128x64xf32>
    %c127_i32_100 = arith.constant 127 : i32
    %202 = tpu.dynamic_rotate %200 by %c127_i32_100 dim 0 : vector<128x64xf32>, i32 -> vector<128x64xf32>
    %c8_i32_101 = arith.constant 8 : i32
    %203 = tpu.dynamic_rotate %201 by %c8_i32_101 dim 0 : vector<128x64xf32>, i32 -> vector<128x64xf32>
    %204 = arith.truncf %203 : vector<128x64xf32> to vector<128x64xbf16>
    %c8_i32_102 = arith.constant 8 : i32
    %205 = tpu.dynamic_rotate %200 by %c8_i32_102 dim 0 : vector<128x64xf32>, i32 -> vector<128x64xf32>
    %206 = arith.truncf %205 : vector<128x64xf32> to vector<128x64xbf16>
    %c8_i32_103 = arith.constant 8 : i32
    %207 = tpu.dynamic_rotate %202 by %c8_i32_103 dim 0 : vector<128x64xf32>, i32 -> vector<128x64xf32>
    %208 = arith.truncf %207 : vector<128x64xf32> to vector<128x64xbf16>
    %209 = arith.truncf %201 : vector<128x64xf32> to vector<128x64xbf16>
    %210 = arith.truncf %200 : vector<128x64xf32> to vector<128x64xbf16>
    %211 = arith.truncf %202 : vector<128x64xf32> to vector<128x64xbf16>
    %c120_i32_104 = arith.constant 120 : i32
    %212 = tpu.dynamic_rotate %201 by %c120_i32_104 dim 0 : vector<128x64xf32>, i32 -> vector<128x64xf32>
    %213 = arith.truncf %212 : vector<128x64xf32> to vector<128x64xbf16>
    %c120_i32_105 = arith.constant 120 : i32
    %214 = tpu.dynamic_rotate %200 by %c120_i32_105 dim 0 : vector<128x64xf32>, i32 -> vector<128x64xf32>
    %215 = arith.truncf %214 : vector<128x64xf32> to vector<128x64xbf16>
    %c120_i32_106 = arith.constant 120 : i32
    %216 = tpu.dynamic_rotate %202 by %c120_i32_106 dim 0 : vector<128x64xf32>, i32 -> vector<128x64xf32>
    %217 = arith.truncf %216 : vector<128x64xf32> to vector<128x64xbf16>
    %218 = tpu.concatenate %204, %206, %208, %209, %210, %211, %213, %215, %217 in 1 : vector<128x64xbf16>, vector<128x64xbf16>, vector<128x64xbf16>, vector<128x64xbf16>, vector<128x64xbf16>, vector<128x64xbf16>, vector<128x64xbf16>, vector<128x64xbf16>, vector<128x64xbf16> -> vector<128x576xbf16>
    %c0_107 = arith.constant 0 : index
    %c0_108 = arith.constant 0 : index
    %219 = vector.load %arg2[%c0_107, %c0_108] : memref<128x576xbf16, #tpu.memory_space<vmem>>, vector<128x576xbf16>
    %220 = arith.mulf %218, %219 : vector<128x576xbf16>
    %c6 = arith.constant 6 : index
    %c0_109 = arith.constant 0 : index
    %c0_110 = arith.constant 0 : index
    %221 = vector.load %arg3[%c6, %c0_109, %c0_110] : memref<7x576x64xbf16, #tpu.memory_space<vmem>>, vector<1x576x64xbf16>
    %222 = vector.shape_cast %221 : vector<1x576x64xbf16> to vector<576x64xbf16>
    %cst_111 = arith.constant dense<0.000000e+00> : vector<128x64xf32>
    %223 = tpu.matmul %220, %222, %cst_111 {dimension_numbers = #tpu.dot_dimension_numbers<[1], [0], [0], [1], [0, 0, 1, 1], [], []>} : vector<128x576xbf16>, vector<576x64xbf16>, vector<128x64xf32> -> vector<128x64xf32>
    %c6_112 = arith.constant 6 : index
    %c0_113 = arith.constant 0 : index
    %224 = vector.load %arg4[%c6_112, %c0_113] : memref<7x64xf32, #tpu.memory_space<vmem>>, vector<1x64xf32>
    %225 = vector.shape_cast %224 : vector<1x64xf32> to vector<64xf32>
    %226 = vector.shape_cast %225 : vector<64xf32> to vector<1x64xf32>
    %227 = vector.broadcast %226 : vector<1x64xf32> to vector<128x64xf32>
    %228 = arith.addf %223, %227 : vector<128x64xf32>
    %229 = arith.addf %167, %228 : vector<128x64xf32>
    %cst_114 = arith.constant 0.000000e+00 : f32
    %230 = vector.broadcast %cst_114 : f32 to vector<128x64xf32>
    %231 = arith.cmpf ogt, %229, %230 : vector<128x64xf32>
    %cst_115 = arith.constant 0.00999999977 : f32
    %232 = vector.broadcast %cst_115 : f32 to vector<128x64xf32>
    %233 = arith.mulf %232, %229 : vector<128x64xf32>
    %234 = arith.select %231, %229, %233 : vector<128x64xi1>, vector<128x64xf32>
    %235 = vector.shape_cast %234 : vector<128x64xf32> to vector<2x64x64xf32>
    %cst_116 = arith.constant dense<0xFF800000> : vector<2x64xf32>
    %236 = vector.multi_reduction <maximumf>, %235, %cst_116 [1] : vector<2x64x64xf32> to vector<2x64xf32>
    %c0_117 = arith.constant 0 : index
    %c0_118 = arith.constant 0 : index
    %237 = vector.load %arg5[%c0_117, %c0_118] : memref<64x64xf32, #tpu.memory_space<vmem>>, vector<64x64xf32>
    %cst_119 = arith.constant dense<0.000000e+00> : vector<2x64xf32>
    %238 = tpu.matmul %236, %237, %cst_119 {dimension_numbers = #tpu.dot_dimension_numbers<[1], [0], [0], [1], [0, 0, 1, 1], [], []>} : vector<2x64xf32>, vector<64x64xf32>, vector<2x64xf32> -> vector<2x64xf32>
    %c0_120 = arith.constant 0 : index
    %c0_121 = arith.constant 0 : index
    %239 = vector.load %arg6[%c0_120, %c0_121] : memref<1x64xf32, #tpu.memory_space<vmem>>, vector<1x64xf32>
    %240 = vector.broadcast %239 : vector<1x64xf32> to vector<2x64xf32>
    %241 = arith.addf %238, %240 : vector<2x64xf32>
    %cst_122 = arith.constant 0.000000e+00 : f32
    %242 = vector.broadcast %cst_122 : f32 to vector<2x64xf32>
    %243 = arith.maximumf %241, %242 : vector<2x64xf32>
    %c0_123 = arith.constant 0 : index
    %c0_124 = arith.constant 0 : index
    %244 = vector.load %arg7[%c0_123, %c0_124] : memref<3x64xf32, #tpu.memory_space<vmem>>, vector<1x64xf32>
    %245 = vector.shape_cast %244 : vector<1x64xf32> to vector<64xf32>
    %246 = vector.shape_cast %245 : vector<64xf32> to vector<1x64xf32>
    %c1_125 = arith.constant 1 : index
    %c0_126 = arith.constant 0 : index
    %247 = vector.load %arg7[%c1_125, %c0_126] : memref<3x64xf32, #tpu.memory_space<vmem>>, vector<1x64xf32>
    %248 = vector.shape_cast %247 : vector<1x64xf32> to vector<64xf32>
    %c2_127 = arith.constant 2 : index
    %c0_128 = arith.constant 0 : index
    %249 = vector.load %arg7[%c2_127, %c0_128] : memref<3x64xf32, #tpu.memory_space<vmem>>, vector<1x64xf32>
    %250 = vector.shape_cast %249 : vector<1x64xf32> to vector<64xf32>
    %251 = vector.shape_cast %250 : vector<64xf32> to vector<1x64xf32>
    %c0_129 = arith.constant 0 : index
    %252 = memref.load %arg8[%c0_129] : memref<2xf32, #tpu.memory_space<smem>>
    %c1_130 = arith.constant 1 : index
    %253 = memref.load %arg8[%c1_130] : memref<2xf32, #tpu.memory_space<smem>>
    %254 = vector.broadcast %246 : vector<1x64xf32> to vector<2x64xf32>
    %255 = arith.mulf %243, %254 : vector<2x64xf32>
    %cst_131 = arith.constant dense<0.000000e+00> : vector<2xf32>
    %256 = vector.multi_reduction <add>, %255, %cst_131 [1] : vector<2x64xf32> to vector<2xf32>
    %257 = vector.shape_cast %256 : vector<2xf32> to vector<2x1xf32>
    %258 = vector.broadcast %252 : f32 to vector<2x1xf32>
    %259 = arith.addf %257, %258 : vector<2x1xf32>
    %260 = vector.broadcast %251 : vector<1x64xf32> to vector<2x64xf32>
    %261 = arith.mulf %243, %260 : vector<2x64xf32>
    %cst_132 = arith.constant dense<0.000000e+00> : vector<2xf32>
    %262 = vector.multi_reduction <add>, %261, %cst_132 [1] : vector<2x64xf32> to vector<2xf32>
    %263 = vector.shape_cast %262 : vector<2xf32> to vector<2x1xf32>
    %264 = vector.broadcast %253 : f32 to vector<2x1xf32>
    %265 = arith.addf %263, %264 : vector<2x1xf32>
    %266 = vector.shape_cast %248 : vector<64xf32> to vector<1x1x64xf32>
    %267 = vector.broadcast %266 : vector<1x1x64xf32> to vector<2x64x64xf32>
    %268 = arith.mulf %235, %267 : vector<2x64x64xf32>
    %cst_133 = arith.constant dense<0.000000e+00> : vector<2x64xf32>
    %269 = vector.multi_reduction <add>, %268, %cst_133 [2] : vector<2x64x64xf32> to vector<2x64xf32>
    %270 = vector.broadcast %265 : vector<2x1xf32> to vector<2x64xf32>
    %271 = arith.addf %269, %270 : vector<2x64xf32>
    %c0_134 = arith.constant 0 : index
    %c0_135 = arith.constant 0 : index
    %272 = vector.load %arg1[%c0_134, %c0_135] : memref<2x64xf32, #tpu.memory_space<vmem>>, vector<2x64xf32>
    %cst_136 = arith.constant 0.000000e+00 : f32
    %273 = vector.broadcast %cst_136 : f32 to vector<2x64xf32>
    %274 = arith.cmpf oeq, %272, %273 : vector<2x64xf32>
    %cst_137 = arith.constant 0.000000e+00 : f32
    %275 = vector.broadcast %cst_137 : f32 to vector<2x64xf32>
    %276 = arith.select %274, %271, %275 : vector<2x64xi1>, vector<2x64xf32>
    %277 = arith.extui %274 : vector<2x64xi1> to vector<2x64xi32>
    %278 = arith.sitofp %277 : vector<2x64xi32> to vector<2x64xf32>
    %cst_138 = arith.constant dense<0.000000e+00> : vector<2xf32>
    %279 = vector.multi_reduction <add>, %278, %cst_138 [1] : vector<2x64xf32> to vector<2xf32>
    %280 = vector.shape_cast %279 : vector<2xf32> to vector<2x1xf32>
    %cst_139 = arith.constant dense<0.000000e+00> : vector<2xf32>
    %281 = vector.multi_reduction <add>, %276, %cst_139 [1] : vector<2x64xf32> to vector<2xf32>
    %282 = vector.shape_cast %281 : vector<2xf32> to vector<2x1xf32>
    %cst_140 = arith.constant 1.000000e+00 : f32
    %283 = vector.broadcast %cst_140 : f32 to vector<2x1xf32>
    %284 = arith.maximumf %280, %283 : vector<2x1xf32>
    %285 = arith.divf %282, %284 : vector<2x1xf32>
    %286 = arith.subf %259, %285 : vector<2x1xf32>
    %287 = vector.broadcast %286 : vector<2x1xf32> to vector<2x64xf32>
    %288 = arith.addf %287, %276 : vector<2x64xf32>
    %289 = math.tanh %288 : vector<2x64xf32>
    %cst_141 = arith.constant 0xFF800000 : f32
    %290 = vector.broadcast %cst_141 : f32 to vector<2x64xf32>
    %291 = arith.select %274, %289, %290 : vector<2x64xi1>, vector<2x64xf32>
    %c0_142 = arith.constant 0 : index
    %c0_143 = arith.constant 0 : index
    %292 = vector.load %arg9[%c0_142, %c0_143] : memref<2x64xf32, #tpu.memory_space<vmem>>, vector<2x64xf32>
    tpu.vector_store %arg9[%c0_142, %c0_143], %291 {strides = array<i32>} : memref<2x64xf32, #tpu.memory_space<vmem>>, vector<2x64xf32>,
    return
  }
}

</mosaic_0001>

<bundles_post_ra>
// kernel: tpu_custom_call.1
= control target key start
LH: loop header
LB: loop body
LE: loop exit
PB: predicated region body
PF: predicated region fallthrough
CT: control target
= control target key end

     0   :  { %14 = vsyncpa [#allocation4], 0  ;;  %s15718_s0 = inlined_call_operand.vmem [shape: f32[128,64], index: 0, kind: input, shape index: {}]   ;;  %s15719_s1 = inlined_call_operand.vmem [shape: f32[2,64], index: 1, kind: input, shape index: {}]   ;;  %s15720_s2 = inlined_call_operand.vmem [shape: bf16[128,576], index: 2, kind: input, shape index: {}]   ;;  %s15721_s3 = inlined_call_operand.vmem [shape: bf16[7,576,64], index: 3, kind: input, shape index: {}]   ;;  %s15722_s4 = inlined_call_operand.vmem [shape: f32[7,64], index: 4, kind: input, shape index: {}]   ;;  %s15723_s5 = inlined_call_operand.vmem [shape: f32[64,64], index: 5, kind: input, shape index: {}]   ;;  %s15724_s6 = inlined_call_operand.vmem [shape: f32[1,64], index: 6, kind: input, shape index: {}]   ;;  %s15725_s7 = inlined_call_operand.vmem [shape: f32[3,64], index: 7, kind: input, shape index: {}]   ;;  %s15726_s8 = inlined_call_operand.vmem [shape: f32[2], index: 8, kind: input, shape index: {}]   ;;  %s15727_s9 = inlined_call_operand.hbm [shape: f32[2,64], index: 9, kind: output, shape index: {}]  }
   0x1   :  { %15 = vsyncpa [#allocation3], 0  ;;  %s38_s11 = sshll.u32 %s15726_s8, 4  ;;  %s39_s11 = int_to_ptr.vmem [resolvable:$true] %s38_s11 }
   0x2   :  { %s10210_s12 = scalar_lea.vmem %s39_s11, 16  ;;  %p10215_p1 = scmp.lt.s32.totalorder %s39_s11, %s39_s11 }
   0x3   :  { %p10211_p0 = scmp.ne.s32.totalorder %s39_s11, %s10210_s12  ;;  %p10216_p2 = scmp.lt.s32.totalorder %s10210_s12, %s10210_s12 }
   0x5   :  { %p10217_p3 = por %p10216_p2, %p10215_p1 }
   0x7   :  { %p10218_p4 = pnand %p10217_p3, %p10211_p0 }
   0x9   :  { %10221 = shalt.err (!%p10218_p4)
}
   0xa   :  { %s10248_s13 = smov [#allocation2]  }
   0xb   :  { %41 = dma.vmem_to_smem %s39_s11, 16, %s10248_s13, [#allocation4]  }
   0xc   :  { %10244 = dma.done.wait [#allocation4], 16  }
   0xd   :  { %10245 = vsyncadd [#allocation4], 4294967280 }
   0xe   :  { %45 = sfence }
   0xf   :  { %v10311_v0 = vld [vmem:[%s15718_s0] sm:$0xff]  ;;  %v10316_v1 = vld [vmem:[%s15718_s0 + $0x8] sm:$0xff]  ;;  %v10321_v2 = vld [vmem:[%s15718_s0 + $0x70] sm:$0xff]  ;;  %v15728_v3 = vlaneseq  ;;  %s10249_s19 = smov 64   ;;  %vm251_vm2 = vcmask 523264  }
  0x10   :  { %v10326_v4 = vld [vmem:[%s15718_s0 + $0x78] sm:$0xff]  ;;  %v63_v5 = vrot.slane %v10311_v0, 7  ;;  %v64_v6 = vrot.slane %v10316_v1, 7  ;;  %v77_v7 = vrot.slane %v10321_v2, 7  ;;  %v10334_v8 = vld [vmem:[%s15718_s0 + $0x10] sm:$0xff]  ;;  %v10348_v12 = vld [vmem:[%s15718_s0 + $0x20] sm:$0xff] }
  0x11   :  { %v10339_v9 = vld [vmem:[%s15718_s0 + $0x18] sm:$0xff]  ;;  %v78_v10 = vrot.slane %v10326_v4, 7  ;;  %v10343_v11 = vshrl.u32 %v15728_v3, 7  ;;  %v65_v13 = vrot.slane %v10334_v8, 7  ;;  %v10355_v15 = vld [vmem:[%s15718_s0 + $0x28] sm:$0xff]  ;;  %v67_v16 = vrot.slane %v10348_v12, 7 }
  0x12   :  { %v66_v14 = vrot.slane %v10339_v9, 7  ;;  %v10361_v17 = vld [vmem:[%s15718_s0 + $0x30] sm:$0xff]  ;;  %v68_v18 = vrot.slane %v10355_v15, 7  ;;  %v10387_v24 = vld [vmem:[%s15718_s0 + $0x38] sm:$0xff]  ;;  %v10404_v29 = vld [vmem:[%s15718_s0 + $0x40] sm:$0xff]  ;;  %v139_v36 = vpack.c.bf16 %v10311_v0, %v10326_v4  ;;  %v140_v41 = vpack.c.bf16 %v10334_v8, %v10316_v1 }
  0x13   :  { %vm81_vm0 = vcmp.lt.s32.totalorder %v10343_v11, 1  ;;  %v69_v19 = vrot.slane %v10361_v17, 7  ;;  %v10409_v30 = vld [vmem:[%s15718_s0 + $0x48] sm:$0xff]  ;;  %v10420_v34 = vld [vmem:[%s15718_s0 + $0x50] sm:$0xff]  ;;  %v9659_v35 = vld [vmem:[%s15721_s3 + $0x40] sm:$0xff]   ;;  %v70_v38 = vrot.slane %v10387_v24, 7  ;;  %v141_v58 = vpack.c.bf16 %v10348_v12, %v10339_v9 }
  0x14   :  { %v10370_v20 = vsel %vm81_vm0, %v77_v7, %v78_v10  ;;  %v10374_v21 = vsel %vm81_vm0, %v63_v5, %v64_v6  ;;  %v10378_v22 = vsel %vm81_vm0, %v78_v10, %v63_v5  ;;  %v10382_v23 = vsel %vm81_vm0, %v66_v14, %v67_v16  ;;  %v9660_v40 = vld [vmem:[%s15721_s3] sm:$0xff]   ;;  %v10449_v44 = vld [vmem:[%s15718_s0 + $0x58] sm:$0xff]  ;;  %8453 = vmatprep.subr.bf16.mxu0 %v9659_v35  ;;  %v9661_v45 = vld [vmem:[%s15721_s3 + $0x48] sm:$0xff]  }
  0x15   :  { %v155_v26 = vpack.c.bf16 %v10374_v21, %v10378_v22  ;;  %v10395_v27 = vsel %vm81_vm0, %v65_v13, %v66_v14  ;;  %v10399_v28 = vsel %vm81_vm0, %v64_v6, %v65_v13  ;;  %v10430_v37 = vsel %vm81_vm0, %v67_v16, %v68_v18  ;;  %v9662_v46 = vld [vmem:[%s15721_s3 + $0x8] sm:$0xff]   ;;  %8454 = vmatpush3.bf16.msra.mxu0 %v9660_v40  ;;  %v10466_v52 = vld [vmem:[%s15718_s0 + $0x60] sm:$0xff]  ;;  %v9663_v57 = vld [vmem:[%s15721_s3 + $0x50] sm:$0xff]  }
  0x16   :  { %v156_v32 = vpack.c.bf16 %v10395_v27, %v10399_v28  ;;  %v10435_v39 = vsel %vm81_vm0, %v68_v18, %v69_v19  ;;  %v99_v43 = vrot.slane %v10316_v1, 1  ;;  %v100_v47 = vrot.slane %v10334_v8, 1  ;;  %8455 = vmatprep.subr.bf16.mxu0 %v9661_v45  ;;  %v10496_v62 = vld [vmem:[%s15718_s0 + $0x68] sm:$0xff]  ;;  %v9664_v13 = vld [vmem:[%s15721_s3 + $0x10] sm:$0xff]   ;;  %v9666_v40 = vld [vmem:[%s15721_s3 + $0x18] sm:$0xff]  }
  0x17   :  { %211 = vrot.lane.b32.xlu0 %v155_v26, %s10249_s19  ;;  %vm114_vm1 = vcmp.lt.s32.totalorder %v10343_v11, 7  ;;  %v71_v48 = vrot.slane %v10404_v29, 7  ;;  %v72_v49 = vrot.slane %v10409_v30, 7  ;;  %v98_v50 = vrot.slane %v10311_v0, 1  ;;  %v9665_v26 = vld [vmem:[%s15721_s3 + $0x58] sm:$0xff]  }
  0x18   :  { %213 = vrot.lane.b32.xlu1 %v156_v32, %s10249_s19  ;;  %v101_v51 = vrot.slane %v10339_v9, 1  ;;  %v157_v53 = vpack.c.bf16 %v10430_v37, %v10382_v23  ;;  %v10473_v54 = vsel %vm81_vm0, %v69_v19, %v70_v38  ;;  %v73_v56 = vrot.slane %v10420_v34, 7 }
  0x19   :  { %v10477_v55 = vsel %vm81_vm0, %v70_v38, %v71_v48  ;;  %v10488_v59 = vsel %vm114_vm1, %v99_v43, %v100_v47  ;;  %v102_v61 = vrot.slane %v10348_v12, 1  ;;  %v10500_v63 = vsel %vm81_vm0, %v71_v48, %v72_v49  ;;  %8456 = vmatpush3.bf16.msra.mxu0 %v9662_v46 }
  0x1a   :  { %v10504_v5 = vsel %vm114_vm1, %v100_v47, %v101_v51  ;;  %v74_v6 = vrot.slane %v10449_v44, 7  ;;  %v10509_v10 = vsel %vm81_vm0, %v72_v49, %v73_v56  ;;  %v158_v14 = vpack.c.bf16 %v10473_v54, %v10435_v39  ;;  %8457 = vmatprep.subr.bf16.mxu0 %v9663_v57  ;;  %v9667_v47 = vld [vmem:[%s15721_s3 + $0xc0] sm:$0xff]  }
  0x1b   :  { %187 = vrot.lane.b32.xlu0 %v139_v36, %s10249_s19  ;;  %v10518_v16 = vpack.c.bf16 %v10504_v5, %v10488_v59  ;;  %v103_v19 = vrot.slane %v10355_v15, 1  ;;  %v10531_v32 = vsel %vm114_vm1, %v98_v50, %v99_v43  ;;  %v104_v35 = vrot.slane %v10361_v17, 1  ;;  %v9668_v57 = vld [vmem:[%s15721_s3 + $0x80] sm:$0xff]   ;;  %8517 = vmatprep.subr.bf16.mxu1 %v9667_v47 }
  0x1c   :  { %189 = vrot.lane.b32.xlu1 %v140_v41, %s10249_s19  ;;  %v75_v36 = vrot.slane %v10466_v52, 7  ;;  %v76_v38 = vrot.slane %v10496_v62, 7  ;;  %v142_v41 = vpack.c.bf16 %v10361_v17, %v10355_v15  ;;  %v10544_v45 = vsel %vm114_vm1, %v101_v51, %v102_v61  ;;  %8518 = vmatpush3.bf16.msra.mxu1 %v9668_v57  ;;  %v9673_v57 = vld [vmem:[%s15721_s3 + $0x68] sm:$0xff]  }
  0x1d   :  { %v10548_v43 = vsel %vm114_vm1, %v102_v61, %v103_v19  ;;  %v105_v46 = vrot.slane %v10387_v24, 1  ;;  %v10556_v48 = vsel %vm81_vm0, %v73_v56, %v74_v6  ;;  %8458 = vmatpush3.bf16.msra.mxu0 %v9664_v13  ;;  %v9669_v61 = vld [vmem:[%s15721_s3 + $0x60] sm:$0xff]   ;;  %v107_v3 = vrot.slane %v10409_v30, 1 }
  0x1e   :  { %v10560_v49 = vpack.c.bf16 %v10548_v43, %v10544_v45  ;;  %v10564_v51 = vsel %vm81_vm0, %v74_v6, %v75_v36  ;;  %8459 = vmatprep.subr.bf16.mxu0 %v9665_v26  ;;  %v10580_v6 = vsel %vm114_vm1, %v103_v19, %v104_v35  ;;  %v10584_v13 = vsel %vm81_vm0, %v75_v36, %v76_v38 }
  0x1f   :  { %215 = vrot.lane.b32.xlu0 %v157_v53, %s10249_s19  ;;  %v106_v53 = vrot.slane %v10404_v29, 1  ;;  %v10594_v26 = vsel %vm81_vm0, %v76_v38, %v77_v7  ;;  %v159_v19 = vpack.c.bf16 %v10500_v63, %v10477_v55  ;;  %v143_v36 = vpack.c.bf16 %v10404_v29, %v10387_v24  ;;  %v9671_v38 = vld [vmem:[%s15721_s3 + $0xc8] sm:$0xff]  }
  0x20   :  { %191 = vrot.lane.b32.xlu1 %v141_v58, %s10249_s19  ;;  %v171_v58 = vpack.c.bf16 %v10488_v59, %v10531_v32  ;;  %v10588_v59 = vsel %vm114_vm1, %v104_v35, %v105_v46  ;;  %v108_v56 = vrot.slane %v10420_v34, 1  ;;  %v109_v18 = vrot.slane %v10449_v44, 1  ;;  %v9672_v7 = vld [vmem:[%s15721_s3 + $0x88] sm:$0xff]   ;;  %8519 = vmatprep.subr.bf16.mxu1 %v9671_v38  ;;  %v9675_v38 = vld [vmem:[%s15721_s3 + $0xd0] sm:$0xff]  }
  0x21   :  { %v10606_v35 = vpack.c.bf16 %v10588_v59, %v10580_v6  ;;  %8460 = vmatpush3.bf16.msra.mxu0 %v9666_v40  ;;  %v110_v60 = vrot.slane %v10466_v52, 1  ;;  %v111_v42 = vrot.slane %v10496_v62, 1  ;;  %v112_v31 = vrot.slane %v10321_v2, 1  ;;  %8520 = vmatpush3.bf16.msra.mxu1 %v9672_v7  ;;  %v9679_v7 = vld [vmem:[%s15721_s3 + $0xd8] sm:$0xff]  }
  0x22   :  { %8461 = vmatprep.subr.bf16.mxu0 %v9669_v61  ;;  %v10630_v40 = vsel %vm114_vm1, %v107_v3, %v108_v56  ;;  %v10634_v47 = vsel %vm114_vm1, %v106_v53, %v107_v3  ;;  %v10638_v33 = vsel %vm114_vm1, %v108_v56, %v109_v18  ;;  %8521 = vmatprep.subr.bf16.mxu1 %v9675_v38  ;;  %v9680_v38 = vld [vmem:[%s15721_s3 + $0x98] sm:$0xff]  }
  0x23   :  { %217 = vrot.lane.b32.xlu0 %v158_v14, %s10249_s19  ;;  %v9670_v14 = vld [vmem:[%s15721_s3 + $0x20] sm:$0xff]   ;;  %v10652_v3 = vpack.c.bf16 %v10638_v33, %v10630_v40  ;;  %v10659_v56 = vsel %vm114_vm1, %v109_v18, %v110_v60 }
  0x24   :  { %193 = vrot.lane.b32.xlu1 %v142_v41, %s10249_s19  ;;  %v10615_v41 = vsel %vm114_vm1, %v105_v46, %v106_v53  ;;  %v113_v46 = vrot.slane %v10326_v4, 1  ;;  %v9674_v53 = vld [vmem:[%s15721_s3 + $0x28] sm:$0xff]  }
  0x25   :  { %v10648_v61 = vpack.c.bf16 %v10634_v47, %v10615_v41  ;;  %8462 = vmatpush3.bf16.msra.mxu0 %v9670_v14 }
  0x26   :  { %v10684_v25 = vsel %vm114_vm1, %v113_v46, %v98_v50  ;;  %8463 = vmatprep.subr.bf16.mxu0 %v9673_v57  ;;  %v9677_v50 = vld [vmem:[%s15721_s3 + $0x70] sm:$0xff]   ;;  %v173_v57 = vpack.c.bf16 %v10580_v6, %v10548_v43  ;;  %v145_v43 = vpack.c.bf16 %v10466_v52, %v10449_v44  ;;  %v174_v6 = vpack.c.bf16 %v10615_v41, %v10588_v59  ;;  %v9693_v59 = vld [vmem:[%s15721_s3 + $0xe8] sm:$0xff]  }
  0x27   :  { %235 = vrot.lane.b32.xlu0 %v171_v58, %s10249_s19  ;;  %v172_v58 = vpack.c.bf16 %v10544_v45, %v10504_v5  ;;  %v10667_v5 = vsel %vm114_vm1, %v110_v60, %v111_v42  ;;  %v10671_v45 = vsel %vm114_vm1, %v112_v31, %v113_v46  ;;  %v160_v60 = vpack.c.bf16 %v10556_v48, %v10509_v10  ;;  %v9678_v46 = vld [vmem:[%s15721_s3 + $0x30] sm:$0xff]  }
  0x28   :  { %219 = vrot.lane.b32.xlu1 %v159_v19, %s10249_s19  ;;  %v10663_v19 = vsel %vm114_vm1, %v111_v42, %v112_v31  ;;  %v10678_v18 = vpack.c.bf16 %v10667_v5, %v10659_v56  ;;  %v9676_v31 = vld [vmem:[%s15721_s3 + $0x90] sm:$0xff]   ;;  %v10701_v14 = vpack.c.bf16 %v10531_v32, %v10684_v25  ;;  %v165_v32 = vpack.c.bf16 %v10355_v15, %v10348_v12 }
  0x29   :  { %v10688_v42 = vpack.c.bf16 %v10671_v45, %v10663_v19  ;;  %8464 = vmatpush3.bf16.msra.mxu0 %v9674_v53  ;;  %8522 = vmatpush3.bf16.msra.mxu1 %v9676_v31  ;;  %v9681_v53 = vld [vmem:[%s15721_s3 + $0x78] sm:$0xff]   ;;  %v161_v31 = vpack.c.bf16 %v10584_v13, %v10564_v51  ;;  %v146_v41 = vpack.c.bf16 %v10321_v2, %v10496_v62 }
  0x2a   :  { %8465 = vmatprep.subr.bf16.mxu0 %v9677_v50  ;;  %8523 = vmatprep.subr.bf16.mxu1 %v9679_v7  ;;  %v9682_v50 = vld [vmem:[%s15721_s3 + $0x38] sm:$0xff]   ;;  %v9691_v7 = vld [vmem:[%s15721_s3 + $0xa0] sm:$0xff]  }
  0x2b   :  { %195 = vrot.lane.b32.xlu0 %v143_v36, %s10249_s19  ;;  %v144_v36 = vpack.c.bf16 %v10420_v34, %v10409_v30 }
  0x2c   :  { %237 = vrot.lane.b32.xlu1 %v172_v58, %s10249_s19  ;;  %v166_v58 = vpack.c.bf16 %v10387_v24, %v10361_v17  ;;  %v9735_v24 = vld [vmem:[%s15720_s2 + $0xa8] ss:$20 sps:$4 sm:$0xff]  }
  0x2d   :  { %8466 = vmatpush3.bf16.msra.mxu0 %v9678_v46  ;;  %8524 = vmatpush3.bf16.msra.mxu1 %v9680_v38  ;;  %v9692_v46 = vld [vmem:[%s15721_s3 + $0x100] sm:$0xff]   ;;  %v9697_v38 = vld [vmem:[%s15721_s3 + $0xa8] sm:$0xff]  }
  0x2e   :  { %8467 = vmatprep.subr.bf16.mxu0 %v9681_v53  ;;  %v9698_v53 = vld [vmem:[%s15721_s3 + $0xf0] sm:$0xff]  }
  0x2f   :  { %221 = vrot.lane.b32.xlu0 %v160_v60, %s10249_s19  ;;  %v9683_v60 = vld [vmem:[%s15721_s3 + $0xe0] sm:$0xff]  }
  0x30   :  { %197 = vrot.lane.b32.xlu1 %v144_v36, %s10249_s19  ;;  %8525 = vmatprep.subr.bf16.mxu1 %v9683_v60  ;;  %v167_v36 = vpack.c.bf16 %v10409_v30, %v10404_v29  ;;  %v168_v60 = vpack.c.bf16 %v10449_v44, %v10420_v34  ;;  %v9740_v30 = vld [vmem:[%s15720_s2 + $0xd0] ss:$20 sps:$4 sm:$0xff]   ;;  %v9741_v34 = vld [vmem:[%s15720_s2 + $0xf8] ss:$20 sps:$4 sm:$0xff]  }
  0x31   :  { %8468 = vmatpush3.bf16.msra.mxu0 %v9682_v50  ;;  %8526 = vmatpush3.bf16.msra.mxu1 %v9691_v7  ;;  %v176_v50 = vpack.c.bf16 %v10659_v56, %v10638_v33  ;;  %v178_v33 = vpack.c.bf16 %v10684_v25, %v10671_v45  ;;  %v169_v56 = vpack.c.bf16 %v10496_v62, %v10466_v52  ;;  %v9688_v25 = vld [vmem:[%s15720_s2 + $0x4] ss:$20 sps:$4 sm:$0xff]   ;;  %v9686_v7 = vld [vmem:[%s15720_s2] ss:$20 sps:$4 sm:$0xff]  }
  0x32   :  { %9442 = vmatprep.subr.bf16.mxu0 %v9692_v46  ;;  %8527 = vmatprep.subr.bf16.mxu1 %v9693_v59  ;;  %v9743_v52 = vld [vmem:[%s15720_s2 + $0x120] ss:$20 sps:$4 sm:$0xff]  }
  0x33   :  { %239 = vrot.lane.b32.xlu0 %v173_v57, %s10249_s19  ;;  %v162_v57 = vpack.c.bf16 %v10370_v20, %v10594_v26 }
  0x34   :  { %223 = vrot.lane.b32.xlu1 %v161_v31, %s10249_s19  ;;  %v175_v31 = vpack.c.bf16 %v10630_v40, %v10634_v47  ;;  %v9705_v40 = vld [vmem:[%s15721_s3 + $0xf8] sm:$0xff]  }
  0x35   :  { %8528 = vmatpush3.bf16.msra.mxu1 %v9697_v38  ;;  %v9712_v47 = vld [vmem:[%s15721_s3 + $0xb8] sm:$0xff]  }
  0x36   :  { %8529 = vmatprep.subr.bf16.mxu1 %v9698_v53 }
  0x37   :  { %199 = vrot.lane.b32.xlu0 %v145_v43, %s10249_s19  ;;  %v9704_v43 = vld [vmem:[%s15721_s3 + $0xb0] sm:$0xff]  }
  0x38   :  { %241 = vrot.lane.b32.xlu1 %v174_v6, %s10249_s19  ;;  %v177_v6 = vpack.c.bf16 %v10663_v19, %v10667_v5  ;;  %v170_v19 = vpack.c.bf16 %v10326_v4, %v10321_v2  ;;  %v9684_v5 = vld [vmem:[%s15720_s2 + $0x2c] ss:$20 sps:$4 sm:$0xff]  }
  0x39   :  { %8530 = vmatpush3.bf16.msra.mxu1 %v9704_v43 }
  0x3a   :  { %8531 = vmatprep.subr.bf16.mxu1 %v9705_v40 }
  0x3b   :  { %225 = vrot.lane.b32.xlu0 %v162_v57, %s10249_s19 }
  0x3c   :  { %201 = vrot.lane.b32.xlu1 %v146_v41, %s10249_s19  ;;  %v9711_v41 = vld [vmem:[%s15720_s2 + $0xc] ss:$20 sps:$4 sm:$0xff]  }
  0x3d   :  { %8532 = vmatpush3.bf16.msra.mxu1 %v9712_v47 }
  0x3f   :  { %243 = vrot.lane.b32.xlu0 %v175_v31, %s10249_s19 }
  0x40   :  { %245 = vrot.lane.b32.xlu1 %v176_v50, %s10249_s19  ;;  %v9715_v50 = vld [vmem:[%s15721_s3 + $0x108] sm:$0xff]  }
  0x43   :  { %247 = vrot.lane.b32.xlu0 %v177_v6, %s10249_s19  ;;  %v15804_v6 = vpack.c.bf16 %v10378_v22, %v10370_v20 }
  0x44   :  { %249 = vrot.lane.b32.xlu1 %v178_v33, %s10249_s19 }
  0x89   :  { %v212_v45 = vpop.permute.xlu0 %211 }
  0x8a   :  { %v214_v57 = vpop.permute.xlu1 %213  ;;  %v286_v59 = vsel %vm251_vm2, %v10701_v14, %v212_v45  ;;  %v15805_v45 = vpack.c.bf16 %v10399_v28, %v10374_v21  ;;  %v9699_v21 = vld [vmem:[%s15720_s2 + $0x34] ss:$20 sps:$4 sm:$0xff]  }
  0x8b   :  { %v290_v38 = vsel %vm251_vm2, %v10518_v16, %v214_v57  ;;  %v605_v53 = vmul.bf16 %v9688_v25, %v286_v59  ;;  %v9694_v25 = vld [vmem:[%s15720_s2 + $0x28] ss:$20 sps:$4 sm:$0xff]  }
  0x8c   :  { %v610_v43 = vmul.bf16 %v9684_v5, %v290_v38  ;;  %v9695_v5 = vld [vmem:[%s15720_s2 + $0x54] ss:$20 sps:$4 sm:$0xff]  }
  0x8d   :  { %993 = vmatprep.mubr.bf16.mxu0 %v605_v53  ;;  %v188_v31 = vpop.permute.xlu0 %187  ;;  %v9709_v53 = vld [vmem:[%s15720_s2 + $0x8] ss:$20 sps:$4 sm:$0xff]  }
  0x8e   :  { %v10819_v40 = vsel %vm251_vm2, %v15804_v6, %v188_v31  ;;  %v190_v33 = vpop.permute.xlu1 %189  ;;  %v9701_v6 = vld [vmem:[%s15720_s2 + $0x50] ss:$20 sps:$4 sm:$0xff]  }
  0x8f   :  { %v604_v47 = vmul.bf16 %v9686_v7, %v10819_v40  ;;  %v258_v57 = vsel %vm251_vm2, %v15805_v45, %v190_v33  ;;  %v9728_v7 = vld [vmem:[%s15721_s3 + $0x110] sm:$0xff]   ;;  %v15806_v33 = vpack.c.bf16 %v10382_v23, %v10395_v27 }
  0x90   :  { %v607_v20 = vmul.bf16 %v9711_v41, %v258_v57  ;;  %v609_v28 = vmul.bf16 %v9694_v25, %v258_v57  ;;  %v9702_v25 = vld [vmem:[%s15720_s2 + $0x7c] ss:$20 sps:$4 sm:$0xff]  }
  0x91   :  { %994 = vmatmul.mubr.bf16.vlgmr.msra.gmra.mrb[0].mxu0 %v604_v47  ;;  %v216_v22 = vpop.permute.xlu0 %215 }
  0x92   :  { %9443 = vmatpush3.bf16.msra.mxu0 %v9692_v46  ;;  %v192_v59 = vpop.permute.xlu1 %191  ;;  %1001 = vmatprep.mubr.bf16.mxu0 %v610_v43  ;;  %v294_v38 = vsel %vm251_vm2, %v10560_v49, %v216_v22  ;;  %v9739_v46 = vld [vmem:[%s15721_s3 + $0x118] sm:$0xff]   ;;  %v9716_v22 = vld [vmem:[%s15720_s2 + $0x30] ss:$20 sps:$4 sm:$0xff]  }
  0x93   :  { %1090 = vmatprep.mubr.bf16.mxu1 %v607_v20  ;;  %9444 = vmatprep.subr.bf16.mxu0 %v9715_v50  ;;  %v615_v31 = vmul.bf16 %v9695_v5, %v294_v38  ;;  %v262_v47 = vsel %vm251_vm2, %v15806_v33, %v192_v59  ;;  %v9706_v59 = vld [vmem:[%s15720_s2 + $0x5c] ss:$20 sps:$4 sm:$0xff]  }
  0x94   :  { %v612_v57 = vmul.bf16 %v9699_v21, %v262_v47  ;;  %v614_v38 = vmul.bf16 %v9701_v6, %v262_v47  ;;  %v9713_v6 = vld [vmem:[%s15720_s2 + $0xa4] ss:$20 sps:$4 sm:$0xff]  }
  0x95   :  { %v218_v41 = vpop.permute.xlu0 %217 }
  0x96   :  { %v194_v43 = vpop.permute.xlu1 %193  ;;  %9445 = vmatpush3.bf16.msra.mxu0 %v9715_v50  ;;  %v15807_v50 = vpack.c.bf16 %v10316_v1, %v10311_v0  ;;  %v298_v23 = vsel %vm251_vm2, %v10606_v35, %v218_v41 }
  0x97   :  { %9446 = vmatprep.subr.bf16.mxu0 %v9728_v7  ;;  %v620_v1 = vmul.bf16 %v9702_v25, %v298_v23 }
  0x99   :  { %v236_v45 = vpop.permute.xlu0 %235  ;;  %1002 = vmatmul.mubr.bf16.gmra.mrb[4].mxu0 %v609_v28  ;;  %v15808_v28 = vpack.c.bf16 %v10435_v39, %v10430_v37  ;;  %v9725_v39 = vld [vmem:[%s15720_s2 + $0x58] ss:$20 sps:$4 sm:$0xff]  }
  0x9a   :  { %v318_v5 = vsel %vm251_vm2, %v15807_v50, %v236_v45  ;;  %v220_v20 = vpop.permute.xlu1 %219  ;;  %1009 = vmatprep.mubr.bf16.mxu0 %v615_v31  ;;  %9447 = vmatpush3.bf16.msra.mxu0 %v9728_v7  ;;  %v9708_v7 = vld [vmem:[%s15720_s2 + $0x78] ss:$20 sps:$4 sm:$0xff]  }
  0x9b   :  { %v606_v27 = vmul.bf16 %v9709_v53, %v318_v5  ;;  %9448 = vmatprep.subr.bf16.mxu0 %v9739_v46  ;;  %v266_v41 = vsel %vm251_vm2, %v15808_v28, %v194_v43  ;;  %v15809_v53 = vpack.c.bf16 %v10339_v9, %v10334_v8  ;;  %v302_v37 = vsel %vm251_vm2, %v10648_v61, %v220_v20  ;;  %v9717_v8 = vld [vmem:[%s15720_s2 + $0x84] ss:$20 sps:$4 sm:$0xff]   ;;  %v9719_v5 = vld [vmem:[%s15720_s2 + $0xa0] ss:$20 sps:$4 sm:$0xff]  }
  0x9c   :  { %v617_v47 = vmul.bf16 %v9706_v59, %v266_v41  ;;  %v619_v9 = vmul.bf16 %v9708_v7, %v266_v41  ;;  %v625_v45 = vmul.bf16 %v9713_v6, %v302_v37  ;;  %v15810_v20 = vpack.c.bf16 %v10477_v55, %v10473_v54  ;;  %v9729_v59 = vld [vmem:[%s15720_s2 + $0x80] ss:$20 sps:$4 sm:$0xff]   ;;  %v9724_v7 = vld [vmem:[%s15720_s2 + $0xc8] ss:$20 sps:$4 sm:$0xff]  }
  0x9d   :  { %1091 = vmatmul.mubr.bf16.vlgmr.msra.gmra.mrb[0].mxu1 %v606_v27  ;;  %v196_v0 = vpop.permute.xlu0 %195  ;;  %v9720_v27 = vld [vmem:[%s15720_s2 + $0xcc] ss:$20 sps:$4 sm:$0xff]   ;;  %v15811_v28 = vpack.c.bf16 %v10509_v10, %v10500_v63  ;;  %v9730_v63 = vld [vmem:[%s15720_s2 + $0xd4] ss:$20 sps:$4 sm:$0xff]   ;;  %v15812_v37 = vpack.c.bf16 %v10564_v51, %v10556_v48  ;;  %v9736_v48 = vld [vmem:[%s15720_s2 + $0xfc] ss:$20 sps:$4 sm:$0xff]  }
  0x9e   :  { %v238_v21 = vpop.permute.xlu1 %237  ;;  %1098 = vmatprep.mubr.bf16.mxu1 %v612_v57  ;;  %9449 = vmatpush3.bf16.msra.mxu0 %v9739_v46  ;;  %v270_v23 = vsel %vm251_vm2, %v15810_v20, %v196_v0  ;;  %v9722_v54 = vld [vmem:[%s15720_s2 + $0xac] ss:$20 sps:$4 sm:$0xff]  }
  0x9f   :  { %v322_v31 = vsel %vm251_vm2, %v15809_v53, %v238_v21  ;;  %v622_v15 = vmul.bf16 %v9717_v8, %v270_v23  ;;  %v624_v55 = vmul.bf16 %v9719_v5, %v270_v23  ;;  %v9726_v53 = vld [vmem:[%s15720_s2 + $0xf4] ss:$20 sps:$4 sm:$0xff]   ;;  %v9733_v8 = vld [vmem:[%s15720_s2 + $0x11c] ss:$20 sps:$4 sm:$0xff]   ;;  %v15813_v5 = vpack.c.bf16 %v10594_v26, %v10584_v13  ;;  %v9689_v13 = vld [vmem:[%s15720_s2 + $0x124] ss:$20 sps:$4 sm:$0xff]  }
  0xa0   :  { %v611_v33 = vmul.bf16 %v9716_v22, %v322_v31  ;;  %v9742_v23 = vld [vmem:[%s15720_s2 + $0x10] ss:$20 sps:$4 sm:$0xff]  }
  0xa1   :  { %1010 = vmatmul.mubr.bf16.gmra.mrb[8].mxu0 %v614_v38  ;;  %v222_v46 = vpop.permute.xlu0 %221 }
  0xa2   :  { %1017 = vmatprep.mubr.bf16.mxu0 %v620_v1  ;;  %v198_v25 = vpop.permute.xlu1 %197 }
  0xa3   :  { %v274_v41 = vsel %vm251_vm2, %v15811_v28, %v198_v25  ;;  %v9732_v25 = vld [vmem:[%s15720_s2 + $0xf0] ss:$20 sps:$4 sm:$0xff]  }
  0xa4   :  { %v627_v6 = vmul.bf16 %v9722_v54, %v274_v41  ;;  %v629_v10 = vmul.bf16 %v9724_v7, %v274_v41 }
  0xa5   :  { %1099 = vmatmul.mubr.bf16.gmra.mrb[4].mxu1 %v611_v33  ;;  %v240_v43 = vpop.permute.xlu0 %239 }
  0xa6   :  { %v326_v57 = vsel %vm251_vm2, %v165_v32, %v240_v43  ;;  %1106 = vmatprep.mubr.bf16.mxu1 %v617_v47  ;;  %v224_v50 = vpop.permute.xlu1 %223  ;;  %v306_v32 = vsel %vm251_vm2, %v10652_v3, %v222_v46 }
  0xa7   :  { %v616_v22 = vmul.bf16 %v9725_v39, %v326_v57  ;;  %v630_v1 = vmul.bf16 %v9720_v27, %v306_v32  ;;  %v310_v17 = vsel %vm251_vm2, %v10678_v18, %v224_v50  ;;  %v9738_v50 = vld [vmem:[%s15720_s2 + $0x118] ss:$20 sps:$4 sm:$0xff]   ;;  %v9744_v32 = vld [vmem:[%s15720_s2 + $0x60] ss:$20 sps:$4 sm:$0xff]  }
  0xa8   :  { %v635_v46 = vmul.bf16 %v9726_v53, %v310_v17  ;;  %v618_v54 = vmul.bf16 %v9744_v32, %v10606_v35  ;;  %v9748_v35 = vld [vmem:[%s15720_s2 + $0x100] ss:$20 sps:$4 sm:$0xff]  }
  0xa9   :  { %1018 = vmatmul.mubr.bf16.gmra.mrb[12].mxu0 %v619_v9  ;;  %v200_v12 = vpop.permute.xlu0 %199 }
  0xaa   :  { %1025 = vmatprep.mubr.bf16.mxu0 %v625_v45  ;;  %v242_v38 = vpop.permute.xlu1 %241  ;;  %v278_v39 = vsel %vm251_vm2, %v15812_v37, %v200_v12  ;;  %v608_v12 = vmul.bf16 %v9742_v23, %v10518_v16 }
  0xab   :  { %v330_v21 = vsel %vm251_vm2, %v166_v58, %v242_v38  ;;  %v632_v43 = vmul.bf16 %v9730_v63, %v278_v39  ;;  %v634_v51 = vmul.bf16 %v9732_v25, %v278_v39 }
  0xac   :  { %v621_v31 = vmul.bf16 %v9729_v59, %v330_v21 }
  0xad   :  { %1107 = vmatmul.mubr.bf16.gmra.mrb[8].mxu1 %v616_v22  ;;  %v226_v0 = vpop.permute.xlu0 %225 }
  0xae   :  { %1114 = vmatprep.mubr.bf16.mxu1 %v622_v15  ;;  %v202_v33 = vpop.permute.xlu1 %201  ;;  %v314_v29 = vsel %vm251_vm2, %v10688_v42, %v226_v0  ;;  %v9658_v15 = vld [vmem:[%s15720_s2 + $0x38] ss:$20 sps:$4 sm:$0xff]   ;;  %v9746_v0 = vld [vmem:[%s15720_s2 + $0xb0] ss:$20 sps:$4 sm:$0xff]  }
  0xaf   :  { %v640_v45 = vmul.bf16 %v9733_v8, %v314_v29  ;;  %v282_v20 = vsel %vm251_vm2, %v15813_v5, %v202_v33  ;;  %v613_v16 = vmul.bf16 %v9658_v15, %v10560_v49  ;;  %v628_v4 = vmul.bf16 %v9746_v0, %v10652_v3  ;;  %v9747_v49 = vld [vmem:[%s15720_s2 + $0xd8] ss:$20 sps:$4 sm:$0xff]   ;;  %v9750_v29 = vld [vmem:[%s15721_s3 + $0x160] sm:$0xff]  }
  0xb0   :  { %v637_v22 = vmul.bf16 %v9736_v48, %v282_v20  ;;  %8593 = vmatprep.subr.bf16.mxu1 %v9750_v29 }
  0xb1   :  { %1026 = vmatmul.mubr.bf16.gmra.mrb[16].mxu0 %v624_v55  ;;  %v244_v58 = vpop.permute.xlu0 %243  ;;  %v9745_v55 = vld [vmem:[%s15720_s2 + $0x88] ss:$20 sps:$4 sm:$0xff]  }
  0xb2   :  { %1033 = vmatprep.mubr.bf16.mxu0 %v630_v1  ;;  %v334_v47 = vsel %vm251_vm2, %v167_v36, %v244_v58  ;;  %v246_v36 = vpop.permute.xlu1 %245  ;;  %v623_v2 = vmul.bf16 %v9745_v55, %v10648_v61  ;;  %v638_v1 = vmul.bf16 %v9748_v35, %v10688_v42  ;;  %v9749_v61 = vld [vmem:[%s15720_s2 + $0x128] ss:$20 sps:$4 sm:$0xff]   ;;  %v11028_v58 = vld [vmem:[%s15722_s4] ss:$0 sm:$0xff] }
  0xb3   :  { %v626_v9 = vmul.bf16 %v9735_v24, %v334_v47  ;;  %v338_v57 = vsel %vm251_vm2, %v168_v60, %v246_v36  ;;  %v639_v60 = vmul.bf16 %v9738_v50, %v282_v20  ;;  %v643_v3 = vmul.bf16 %v9749_v61, %v10701_v14  ;;  %v9752_v36 = vld [vmem:[%s15721_s3 + $0x168] sm:$0xff]   ;;  %v9757_v35 = vld [vmem:[%s15721_s3 + $0x138] sm:$0xff]   ;;  %v9758_v61 = vld [vmem:[%s15721_s3 + $0x180] sm:$0xff]  }
  0xb4   :  { %v631_v27 = vmul.bf16 %v9740_v30, %v338_v57  ;;  %v9751_v30 = vld [vmem:[%s15721_s3 + $0x120] sm:$0xff]   ;;  %v9753_v20 = vld [vmem:[%s15721_s3 + $0x128] sm:$0xff]  }
  0xb5   :  { %1115 = vmatmul.mubr.bf16.gmra.mrb[12].mxu1 %v621_v31  ;;  %v248_v44 = vpop.permute.xlu0 %247 }
  0xb6   :  { %1122 = vmatprep.mubr.bf16.mxu1 %v627_v6  ;;  %v342_v26 = vsel %vm251_vm2, %v169_v56, %v248_v44  ;;  %v250_v62 = vpop.permute.xlu1 %249  ;;  %v642_v56 = vmul.bf16 %v9689_v13, %v10819_v40  ;;  %8594 = vmatpush3.bf16.msra.mxu1 %v9751_v30  ;;  %v9765_v13 = vld [vmem:[%s15721_s3 + $0x1a0] sm:$0xff]  }
  0xb7   :  { %v636_v59 = vmul.bf16 %v9741_v34, %v342_v26  ;;  %v346_v38 = vsel %vm251_vm2, %v170_v19, %v250_v62  ;;  %v633_v19 = vmul.bf16 %v9747_v49, %v10678_v18  ;;  %8595 = vmatprep.subr.bf16.mxu1 %v9752_v36  ;;  %v9766_v26 = vld [vmem:[%s15721_s3 + $0x1e8] sm:$0xff]   ;;  %v9755_v62 = vld [vmem:[%s15721_s3 + $0x130] sm:$0xff]  }
  0xb8   :  { %v641_v40 = vmul.bf16 %v9743_v52, %v346_v38  ;;  %v9756_v38 = vld [vmem:[%s15721_s3 + $0x178] sm:$0xff]  }
  0xb9   :  { %1034 = vmatmul.mubr.bf16.gmra.mrb[20].mxu0 %v629_v10 }
  0xba   :  { %1041 = vmatprep.mubr.bf16.mxu0 %v635_v46  ;;  %8596 = vmatpush3.bf16.msra.mxu1 %v9753_v20 }
  0xbd   :  { %1123 = vmatmul.mubr.bf16.gmra.mrb[16].mxu1 %v626_v9 }
  0xbe   :  { %1130 = vmatprep.mubr.bf16.mxu1 %v632_v43 }
  0xc1   :  { %1042 = vmatmul.mubr.bf16.gmra.mrb[24].mxu0 %v634_v51 }
  0xc2   :  { %1049 = vmatprep.mubr.bf16.mxu0 %v640_v45 }
  0xc5   :  { %1131 = vmatmul.mubr.bf16.gmra.mrb[20].mxu1 %v631_v27  ;;  %v9754_v27 = vld [vmem:[%s15721_s3 + $0x170] sm:$0xff]  }
  0xc6   :  { %1138 = vmatprep.mubr.bf16.mxu1 %v637_v22  ;;  %v9763_v22 = vld [vmem:[%s15721_s3 + $0x1e0] sm:$0xff]   ;;  %8597 = vmatprep.subr.bf16.mxu1 %v9754_v27 }
  0xc7   :  { %8657 = vmatprep.subr.bf16.mxu0 %v9763_v22  ;;  %8598 = vmatpush3.bf16.msra.mxu1 %v9755_v62 }
  0xc8   :  { %8599 = vmatprep.subr.bf16.mxu1 %v9756_v38 }
  0xc9   :  { %1050 = vmatmul.mubr.bf16.gmra.mrb[28].mxu0 %v639_v60 }
  0xca   :  { %9450 = vmatprep.mubr.msk.bf16.mxu0 %vm251_vm2, %v608_v12 }
  0xcb   :  { %8600 = vmatpush3.bf16.msra.mxu1 %v9757_v35 }
  0xcc   :  { %8601 = vmatprep.subr.bf16.mxu1 %v9758_v61 }
  0xcd   :  { %1139 = vmatmul.mubr.bf16.gmra.mrb[24].mxu1 %v636_v59 }
  0xce   :  { %1146 = vmatprep.mubr.bf16.mxu1 %v642_v56  ;;  %v9767_v56 = vld [vmem:[%s15721_s3 + $0x1a8] sm:$0xff]  }
  0xd1   :  { %9451 = vmatmul.mubr.msk.bf16.vlgmr.msra.gmra.mrb[32].mxu0 %vm251_vm2, %v613_v16 }
  0xd2   :  { %9454 = vmatprep.mubr.msk.bf16.mxu0 %vm251_vm2, %v618_v54  ;;  %8658 = vmatpush3.bf16.msra.mxu0 %v9765_v13  ;;  %v9769_v54 = vld [vmem:[%s15721_s3 + $0x1f0] sm:$0xff]  }
  0xd3   :  { %8659 = vmatprep.subr.bf16.mxu0 %v9766_v26 }
  0xd5   :  { %1147 = vmatmul.mubr.bf16.gmra.mrb[28].mxu1 %v641_v40 }
  0xd6   :  { %8660 = vmatpush3.bf16.msra.mxu0 %v9767_v56 }
  0xd7   :  { %8661 = vmatprep.subr.bf16.mxu0 %v9769_v54 }
  0xd9   :  { %9455 = vmatmul.mubr.msk.bf16.gmra.mrb[36].mxu0 %vm251_vm2, %v623_v2 }
  0xda   :  { %9458 = vmatprep.mubr.msk.bf16.mxu0 %vm251_vm2, %v628_v4 }
  0xe1   :  { %9459 = vmatmul.mubr.msk.bf16.gmra.mrb[40].mxu0 %vm251_vm2, %v633_v19  ;;  %v9771_v19 = vld [vmem:[%s15721_s3 + $0x1b0] sm:$0xff]  }
  0xe2   :  { %9462 = vmatprep.mubr.msk.bf16.mxu0 %vm251_vm2, %v638_v1  ;;  %8662 = vmatpush3.bf16.msra.mxu0 %v9771_v19 }
  0xe9   :  { %9463 = vmatmul.mubr.msk.bf16.gmra.mrb[44].mxu0 %vm251_vm2, %v643_v3 }
 0x164   :  { %v8469_v21 = vpop.f32.mrb[0].mxu0 }
 0x165   :  { %v8470_v7 = vpop.f32.mrb[1].mxu0 }
 0x166   :  { %v8471_v28 = vadd.f32 %v8470_v7, %v8469_v21  ;;  %v8472_v41 = vpop.f32.mrb[2].mxu0 }
 0x167   :  { %v8473_v53 = vpop.f32.mrb[3].mxu0 }
 0x168   :  { %v8474_v18 = vadd.f32 %v8473_v53, %v8472_v41  ;;  %v996_v47 = vadd.f32 %v8471_v28, %v11028_v58 }
 0x16a   :  { %v999_v9 = vadd.f32 %v8474_v18, %v11028_v58 }
 0x16c   :  { %v8475_v31 = vpop.f32.mrb[4].mxu0 }
 0x16d   :  { %v8476_v42 = vpop.f32.mrb[5].mxu0 }
 0x16e   :  { %v8477_v6 = vadd.f32 %v8476_v42, %v8475_v31  ;;  %v8478_v17 = vpop.f32.mrb[6].mxu0  ;;  %v9759_v42 = vld [vmem:[%s15721_s3 + $0x140] sm:$0xff]  }
 0x16f   :  { %v8479_v24 = vpop.f32.mrb[7].mxu0  ;;  %8602 = vmatpush3.bf16.msra.mxu1 %v9759_v42 }
 0x170   :  { %v8480_v63 = vadd.f32 %v8479_v24, %v8478_v17  ;;  %v8533_v14 = vpop.f32.mrb[0].mxu1  ;;  %v1004_v60 = vadd.f32 %v8477_v6, %v11028_v58  ;;  %v9760_v17 = vld [vmem:[%s15721_s3 + $0x188] sm:$0xff]  }
 0x171   :  { %v8534_v10 = vpop.f32.mrb[1].mxu1  ;;  %8603 = vmatprep.subr.bf16.mxu1 %v9760_v17 }
 0x172   :  { %v8535_v33 = vadd.f32 %v8534_v10, %v8533_v14  ;;  %v8536_v46 = vpop.f32.mrb[2].mxu1  ;;  %v1007_v52 = vadd.f32 %v8480_v63, %v11028_v58 }
 0x173   :  { %v8537_v25 = vpop.f32.mrb[3].mxu1 }
 0x174   :  { %v8538_v37 = vadd.f32 %v8537_v25, %v8536_v46  ;;  %v8481_v39 = vpop.f32.mrb[8].mxu0  ;;  %v11031_v8 = vadd.f32 %v8535_v33, %v996_v47  ;;  %v9761_v47 = vld [vmem:[%s15721_s3 + $0x148] sm:$0xff]  }
 0x175   :  { %v8482_v43 = vpop.f32.mrb[9].mxu0  ;;  %8604 = vmatpush3.bf16.msra.mxu1 %v9761_v47 }
 0x176   :  { %v8483_v48 = vadd.f32 %v8482_v43, %v8481_v39  ;;  %v8484_v51 = vpop.f32.mrb[10].mxu0  ;;  %v11043_v45 = vadd.f32 %v8538_v37, %v999_v9  ;;  %v9762_v37 = vld [vmem:[%s15721_s3 + $0x190] sm:$0xff]  }
 0x177   :  { %v8485_v57 = vpop.f32.mrb[11].mxu0  ;;  %8605 = vmatprep.subr.bf16.mxu1 %v9762_v37 }
 0x178   :  { %v8486_v50 = vadd.f32 %v8485_v57, %v8484_v51  ;;  %v8539_v5 = vpop.f32.mrb[4].mxu1  ;;  %v1012_v7 = vadd.f32 %v8483_v48, %v11028_v58  ;;  %v9764_v57 = vld [vmem:[%s15721_s3 + $0x150] sm:$0xff]  }
 0x179   :  { %v8540_v23 = vpop.f32.mrb[5].mxu1  ;;  %8606 = vmatpush3.bf16.msra.mxu1 %v9764_v57 }
 0x17a   :  { %v8541_v34 = vadd.f32 %v8540_v23, %v8539_v5  ;;  %v8542_v44 = vpop.f32.mrb[6].mxu1  ;;  %v1015_v31 = vadd.f32 %v8486_v50, %v11028_v58  ;;  %v9768_v5 = vld [vmem:[%s15721_s3 + $0x198] sm:$0xff]  }
 0x17b   :  { %v8543_v12 = vpop.f32.mrb[7].mxu1  ;;  %8607 = vmatprep.subr.bf16.mxu1 %v9768_v5 }
 0x17c   :  { %v8544_v15 = vadd.f32 %v8543_v12, %v8542_v44  ;;  %v8487_v32 = vpop.f32.mrb[12].mxu0  ;;  %v11061_v59 = vadd.f32 %v8541_v34, %v1004_v60  ;;  %v9770_v60 = vld [vmem:[%s15721_s3 + $0x158] sm:$0xff]  }
 0x17d   :  { %v8488_v16 = vpop.f32.mrb[13].mxu0  ;;  %8608 = vmatpush3.bf16.msra.mxu1 %v9770_v60 }
 0x17e   :  { %v8489_v55 = vadd.f32 %v8488_v16, %v8487_v32  ;;  %v8490_v0 = vpop.f32.mrb[14].mxu0  ;;  %v11076_v40 = vadd.f32 %v8544_v15, %v1007_v52 }
 0x17f   :  { %v8491_v2 = vpop.f32.mrb[15].mxu0 }
 0x180   :  { %v8492_v4 = vadd.f32 %v8491_v2, %v8490_v0  ;;  %v8545_v49 = vpop.f32.mrb[8].mxu1  ;;  %v1020_v43 = vadd.f32 %v8489_v55, %v11028_v58 }
 0x181   :  { %v8546_v1 = vpop.f32.mrb[9].mxu1 }
 0x182   :  { %v8547_v3 = vadd.f32 %v8546_v1, %v8545_v49  ;;  %v8548_v21 = vpop.f32.mrb[10].mxu1  ;;  %v1023_v51 = vadd.f32 %v8492_v4, %v11028_v58 }
 0x183   :  { %v8549_v28 = vpop.f32.mrb[11].mxu1 }
 0x184   :  { %v8550_v41 = vadd.f32 %v8549_v28, %v8548_v21  ;;  %v8493_v53 = vpop.f32.mrb[16].mxu0  ;;  %v11088_v18 = vadd.f32 %v8547_v3, %v1012_v7 }
 0x185   :  { %v8494_v6 = vpop.f32.mrb[17].mxu0 }
 0x186   :  { %v8495_v24 = vadd.f32 %v8494_v6, %v8493_v53  ;;  %v8496_v63 = vpop.f32.mrb[18].mxu0  ;;  %v11097_v14 = vadd.f32 %v8550_v41, %v1015_v31 }
 0x187   :  { %v8497_v10 = vpop.f32.mrb[19].mxu0 }
 0x188   :  { %v8498_v33 = vadd.f32 %v8497_v10, %v8496_v63  ;;  %v8551_v46 = vpop.f32.mrb[12].mxu1  ;;  %v1028_v15 = vadd.f32 %v8495_v24, %v11028_v58 }
 0x189   :  { %v8552_v25 = vpop.f32.mrb[13].mxu1 }
 0x18a   :  { %v8553_v39 = vadd.f32 %v8552_v25, %v8551_v46  ;;  %v8554_v9 = vpop.f32.mrb[14].mxu1  ;;  %v1031_v16 = vadd.f32 %v8498_v33, %v11028_v58 }
 0x18b   :  { %v8555_v29 = vpop.f32.mrb[15].mxu1 }
 0x18c   :  { %v8556_v30 = vadd.f32 %v8555_v29, %v8554_v9  ;;  %v8499_v36 = vpop.f32.mrb[20].mxu0  ;;  %v11106_v48 = vadd.f32 %v8553_v39, %v1020_v43 }
 0x18d   :  { %v8500_v50 = vpop.f32.mrb[21].mxu0 }
 0x18e   :  { %v8501_v20 = vadd.f32 %v8500_v50, %v8499_v36  ;;  %v8502_v23 = vpop.f32.mrb[22].mxu0  ;;  %v11115_v27 = vadd.f32 %v8556_v30, %v1023_v51 }
 0x18f   :  { %v8503_v22 = vpop.f32.mrb[23].mxu0 }
 0x190   :  { %v8504_v34 = vadd.f32 %v8503_v22, %v8502_v23  ;;  %v8557_v44 = vpop.f32.mrb[16].mxu1  ;;  %v1036_v61 = vadd.f32 %v8501_v20, %v11028_v58 }
 0x191   :  { %v8558_v13 = vpop.f32.mrb[17].mxu1 }
 0x192   :  { %v8559_v26 = vadd.f32 %v8558_v13, %v8557_v44  ;;  %v8560_v12 = vpop.f32.mrb[18].mxu1  ;;  %v1039_v41 = vadd.f32 %v8504_v34, %v11028_v58 }
 0x193   :  { %v8561_v32 = vpop.f32.mrb[19].mxu1 }
 0x194   :  { %v8562_v52 = vadd.f32 %v8561_v32, %v8560_v12  ;;  %v8505_v62 = vpop.f32.mrb[24].mxu0  ;;  %v11121_v56 = vadd.f32 %v8559_v26, %v1028_v15 }
 0x195   :  { %v8506_v38 = vpop.f32.mrb[25].mxu0 }
 0x196   :  { %v8507_v54 = vadd.f32 %v8506_v38, %v8505_v62  ;;  %v8508_v55 = vpop.f32.mrb[26].mxu0  ;;  %v11124_v0 = vadd.f32 %v8562_v52, %v1031_v16 }
 0x197   :  { %v8509_v2 = vpop.f32.mrb[27].mxu0 }
 0x198   :  { %v8510_v4 = vadd.f32 %v8509_v2, %v8508_v55  ;;  %v8563_v49 = vpop.f32.mrb[20].mxu1  ;;  %v1044_v33 = vadd.f32 %v8507_v54, %v11028_v58 }
 0x199   :  { %v8564_v35 = vpop.f32.mrb[21].mxu1 }
 0x19a   :  { %v8565_v19 = vadd.f32 %v8564_v35, %v8563_v49  ;;  %v8566_v1 = vpop.f32.mrb[22].mxu1  ;;  %v1047_v37 = vadd.f32 %v8510_v4, %v11028_v58 }
 0x19b   :  { %v8567_v3 = vpop.f32.mrb[23].mxu1 }
 0x19c   :  { %v8568_v21 = vadd.f32 %v8567_v3, %v8566_v1  ;;  %v8511_v7 = vpop.f32.mrb[28].mxu0  ;;  %v11127_v28 = vadd.f32 %v8565_v19, %v1036_v61 }
 0x19d   :  { %v8512_v53 = vpop.f32.mrb[29].mxu0 }
 0x19e   :  { %v8513_v31 = vadd.f32 %v8512_v53, %v8511_v7  ;;  %v8514_v42 = vpop.f32.mrb[30].mxu0  ;;  %v11130_v6 = vadd.f32 %v8568_v21, %v1039_v41 }
 0x19f   :  { %v8515_v17 = vpop.f32.mrb[31].mxu0 }
 0x1a0   :  { %v8516_v24 = vadd.f32 %v8515_v17, %v8514_v42  ;;  %v8569_v63 = vpop.f32.mrb[24].mxu1  ;;  %v1052_v44 = vadd.f32 %v8513_v31, %v11028_v58 }
 0x1a1   :  { %v8570_v10 = vpop.f32.mrb[25].mxu1 }
 0x1a2   :  { %v8571_v46 = vadd.f32 %v8570_v10, %v8569_v63  ;;  %v8572_v47 = vpop.f32.mrb[26].mxu1  ;;  %v1055_v32 = vadd.f32 %v8516_v24, %v11028_v58 }
 0x1a3   :  { %v8573_v25 = vpop.f32.mrb[27].mxu1 }
 0x1a4   :  { %v8574_v39 = vadd.f32 %v8573_v25, %v8572_v47  ;;  %v9452_v9 = vpop.f32.mrb[32].mxu0  ;;  %v11134_v43 = vadd.f32 %v8571_v46, %v1044_v33 }
 0x1a5   :  { %v1198_v29 = vadd.f32 %v9452_v9, %v11061_v59  ;;  %v1189_v30 = vpop.f32.mrb[33].mxu0 }
 0x1a6   :  { %v1190_v36 = vadd.f32 %v1189_v30, %v11031_v8  ;;  %v9453_v51 = vpop.f32.mrb[34].mxu0  ;;  %v11138_v57 = vadd.f32 %v8574_v39, %v1047_v37 }
 0x1a7   :  { %v1270_v50 = vmul.f32 0.01, %v1198_v29  ;;  %v1201_v5 = vadd.f32 %v9453_v51, %v11076_v40  ;;  %v1192_v20 = vpop.f32.mrb[35].mxu0  ;;  %vm1254_vm3 = vcmp.gt.f32.partialorder %v1198_v29, 0.0 }
 0x1a8   :  { %vm1252_vm4 = vcmp.gt.f32.partialorder %v1190_v36, 0.0  ;;  %v1268_v23 = vmul.f32 0.01, %v1190_v36  ;;  %v1193_v22 = vadd.f32 %v1192_v20, %v11043_v45  ;;  %v8575_v34 = vpop.f32.mrb[28].mxu1 }
 0x1a9   :  { %v1271_v60 = vmul.f32 0.01, %v1201_v5  ;;  %v8576_v59 = vpop.f32.mrb[29].mxu1  ;;  %v11145_v15 = vsel %vm1254_vm3, %v1198_v29, %v1270_v50  ;;  %vm1255_vm6 = vcmp.gt.f32.partialorder %v1201_v5, 0.0 }
 0x1aa   :  { %v11143_v13 = vsel %vm1252_vm4, %v1190_v36, %v1268_v23  ;;  %vm1253_vm5 = vcmp.gt.f32.partialorder %v1193_v22, 0.0  ;;  %v1269_v8 = vmul.f32 0.01, %v1193_v22  ;;  %v8577_v26 = vadd.f32 %v8576_v59, %v8575_v34  ;;  %v8578_v12 = vpop.f32.mrb[30].mxu1  ;;  %15815 = vst [vmem:[#allocation9_spill] sm:$0xff] %v11145_v15  ;;  %v9772_v59 = vld [vmem:[%s15721_s3 + $0x1f8] sm:$0xff]  }
 0x1ab   :  { %15814 = vst [vmem:[#allocation8_spill] sm:$0xff] %v11143_v13  ;;  %v8579_v40 = vpop.f32.mrb[31].mxu1  ;;  %v1300_v55 = vrot.slane %v11143_v13, 7  ;;  %v11155_v4 = vsel %vm1255_vm6, %v1201_v5, %v1271_v60  ;;  %v1302_v58 = vrot.slane %v11145_v15, 7  ;;  %8663 = vmatprep.subr.bf16.mxu0 %v9772_v59 }
 0x1ac   :  { %v11148_v52 = vsel %vm1253_vm5, %v1193_v22, %v1269_v8  ;;  %v8580_v45 = vadd.f32 %v8579_v40, %v8578_v12  ;;  %v9456_v62 = vpop.f32.mrb[36].mxu0  ;;  %v11150_v16 = vadd.f32 %v8577_v26, %v1052_v44  ;;  %15817 = vst [vmem:[#allocation11_spill] sm:$0xff] %v11155_v4  ;;  %v1335_v12 = vrot.slane %v11155_v4, 1 }
 0x1ad   :  { %15816 = vst [vmem:[#allocation10_spill] sm:$0xff] %v11148_v52  ;;  %v1214_v38 = vadd.f32 %v9456_v62, %v11106_v48  ;;  %v1205_v54 = vpop.f32.mrb[37].mxu0  ;;  %v1301_v2 = vrot.slane %v11148_v52, 7  ;;  %v1333_v30 = vrot.slane %v11148_v52, 1 }
 0x1ae   :  { %v1206_v49 = vadd.f32 %v1205_v54, %v11088_v18  ;;  %v9457_v35 = vpop.f32.mrb[38].mxu0  ;;  %v11158_v19 = vadd.f32 %v8580_v45, %v1055_v32 }
 0x1af   :  { %v1274_v1 = vmul.f32 0.01, %v1214_v38  ;;  %v1217_v61 = vadd.f32 %v9457_v35, %v11115_v27  ;;  %v1208_v3 = vpop.f32.mrb[39].mxu0  ;;  %v11166_v48 = vsel %vm81_vm0, %v1300_v55, %v1301_v2  ;;  %v11171_v18 = vsel %vm81_vm0, %v1301_v2, %v1302_v58 }
 0x1b0   :  { %vm1256_vm7 = vcmp.gt.f32.partialorder %v1206_v49, 0.0  ;;  %v1272_v21 = vmul.f32 0.01, %v1206_v49  ;;  %v1209_v7 = vadd.f32 %v1208_v3, %v11097_v14  ;;  %vm1258_vm8 = vcmp.gt.f32.partialorder %v1214_v38, 0.0 }
 0x1b1   :  { %vm1259_vm9 = vcmp.gt.f32.partialorder %v1217_v61, 0.0  ;;  %v1275_v41 = vmul.f32 0.01, %v1217_v61  ;;  %v1303_v27 = vrot.slane %v11155_v4, 7  ;;  %v11179_v24 = vsel %vm1258_vm8, %v1214_v38, %v1274_v1 }
 0x1b2   :  { %v11174_v53 = vsel %vm1256_vm7, %v1206_v49, %v1272_v21  ;;  %vm1257_vm10 = vcmp.gt.f32.partialorder %v1209_v7, 0.0  ;;  %v1273_v31 = vmul.f32 0.01, %v1209_v7  ;;  %15819 = vst [vmem:[#allocation13_spill] sm:$0xff] %v11179_v24  ;;  %v1306_v50 = vrot.slane %v11179_v24, 7 }
 0x1b3   :  { %15818 = vst [vmem:[#allocation12_spill] sm:$0xff] %v11174_v53  ;;  %v1304_v17 = vrot.slane %v11174_v53, 7  ;;  %v11181_v14 = vsel %vm1259_vm9, %v1217_v61, %v1275_v41  ;;  %v11188_v47 = vsel %vm81_vm0, %v1302_v58, %v1303_v27  ;;  %v9773_v58 = vld [vmem:[%s15721_s3 + $0x1b8] sm:$0xff]  }
 0x1b4   :  { %15820 = vst [vmem:[#allocation14_spill] sm:$0xff] %v11181_v14  ;;  %v11183_v63 = vsel %vm1257_vm10, %v1209_v7, %v1273_v31  ;;  %v9460_v10 = vpop.f32.mrb[40].mxu0  ;;  %v1307_v5 = vrot.slane %v11181_v14, 7  ;;  %8664 = vmatpush3.bf16.msra.mxu0 %v9773_v58  ;;  %v11265_v31 = vld [vmem:[%s15721_s3 + $0x220] sm:$0xff]  }
 0x1b5   :  { %15821 = vst [vmem:[#allocation15_spill] sm:$0xff] %v11183_v63  ;;  %v1230_v33 = vadd.f32 %v9460_v10, %v11127_v28  ;;  %v1221_v46 = vpop.f32.mrb[41].mxu0  ;;  %v1305_v25 = vrot.slane %v11183_v63, 7  ;;  %v11193_v37 = vsel %vm81_vm0, %v1303_v27, %v1304_v17  ;;  %v1336_v27 = vrot.slane %v11174_v53, 1  ;;  %9466 = vmatprep.subr.bf16.mxu1 %v11265_v31 }
 0x1b6   :  { %v1222_v39 = vadd.f32 %v1221_v46, %v11121_v56  ;;  %v9461_v9 = vpop.f32.mrb[42].mxu0  ;;  %v11233_v62 = vsel %vm81_vm0, %v1306_v50, %v1307_v5 }
 0x1b7   :  { %v1233_v28 = vadd.f32 %v9461_v9, %v11130_v6  ;;  %v1224_v36 = vpop.f32.mrb[43].mxu0  ;;  %v11202_v51 = vsel %vm81_vm0, %v1304_v17, %v1305_v25  ;;  %v1278_v20 = vmul.f32 0.01, %v1230_v33  ;;  %vm1262_vm12 = vcmp.gt.f32.partialorder %v1230_v33, 0.0 }
 0x1b8   :  { %vm1260_vm11 = vcmp.gt.f32.partialorder %v1222_v39, 0.0  ;;  %v1276_v56 = vmul.f32 0.01, %v1222_v39  ;;  %v1225_v23 = vadd.f32 %v1224_v36, %v11124_v0  ;;  %v11209_v22 = vsel %vm81_vm0, %v1305_v25, %v1306_v50  ;;  %v9776_v25 = vld [vmem:[%s15721_s3 + $0x1c0] sm:$0xff]  }
 0x1b9   :  { %v1334_v6 = vrot.slane %v11145_v15, 1  ;;  %v1279_v8 = vmul.f32 0.01, %v1233_v28  ;;  %v11227_v40 = vsel %vm1262_vm12, %v1230_v33, %v1278_v20  ;;  %vm1263_vm14 = vcmp.gt.f32.partialorder %v1233_v28, 0.0  ;;  %v9777_v20 = vld [vmem:[%s15721_s3 + $0x208] sm:$0xff]  }
 0x1ba   :  { %v11212_v34 = vsel %vm1260_vm11, %v1222_v39, %v1276_v56  ;;  %vm1261_vm13 = vcmp.gt.f32.partialorder %v1225_v23, 0.0  ;;  %v1277_v44 = vmul.f32 0.01, %v1225_v23  ;;  %15823 = vst [vmem:[#allocation17_spill] sm:$0xff] %v11227_v40  ;;  %v1310_v33 = vrot.slane %v11227_v40, 7 }
 0x1bb   :  { %15822 = vst [vmem:[#allocation16_spill] sm:$0xff] %v11212_v34  ;;  %v1308_v0 = vrot.slane %v11212_v34, 7  ;;  %v11224_v26 = vsel %vm114_vm1, %v1333_v30, %v1334_v6  ;;  %v11243_v35 = vsel %vm114_vm1, %v1334_v6, %v1335_v12  ;;  %v11255_v21 = vsel %vm1263_vm14, %v1233_v28, %v1279_v8 }
 0x1bc   :  { %v11229_v32 = vsel %vm1261_vm13, %v1225_v23, %v1277_v44  ;;  %v9464_v45 = vpop.f32.mrb[44].mxu0  ;;  %v11253_v3 = vpack.c.bf16 %v11243_v35, %v11224_v26  ;;  %15825 = vst [vmem:[#allocation19_spill] sm:$0xff] %v11255_v21  ;;  %v1311_v36 = vrot.slane %v11255_v21, 7  ;;  %v11299_v59 = vsel %vm114_vm1, %v1335_v12, %v1336_v27 }
 0x1bd   :  { %15824 = vst [vmem:[#allocation18_spill] sm:$0xff] %v11229_v32  ;;  %v1246_v38 = vadd.f32 %v9464_v45, %v11150_v16  ;;  %v1237_v54 = vpop.f32.mrb[45].mxu0  ;;  %v1309_v2 = vrot.slane %v11229_v32, 7  ;;  %v11239_v49 = vsel %vm81_vm0, %v1307_v5, %v1308_v0  ;;  %v1337_v45 = vrot.slane %v11183_v63, 1 }
 0x1be   :  { %v1238_v1 = vadd.f32 %v1237_v54, %v11134_v43  ;;  %v9465_v61 = vpop.f32.mrb[46].mxu0  ;;  %v9774_v43 = vld [vmem:[%s15721_s3 + $0x200] sm:$0xff]   ;;  %v11303_v8 = vsel %vm81_vm0, %v1310_v33, %v1311_v36  ;;  %v9778_v54 = vld [vmem:[%s15721_s3 + $0x1c8] sm:$0xff]   ;;  %v1390_v44 = vpack.c.bf16 %v11202_v51, %v11193_v37 }
 0x1bf   :  { %v1249_v7 = vadd.f32 %v9465_v61, %v11158_v19  ;;  %v1240_v41 = vpop.f32.mrb[47].mxu0  ;;  %vm1266_vm3 = vcmp.gt.f32.partialorder %v1246_v38, 0.0  ;;  %v11271_v46 = vsel %vm81_vm0, %v1308_v0, %v1309_v2  ;;  %8665 = vmatprep.subr.bf16.mxu0 %v9774_v43  ;;  %v1282_v39 = vmul.f32 0.01, %v1246_v38  ;;  %v9779_v61 = vld [vmem:[%s15721_s3 + $0x210] sm:$0xff]  }
 0x1c0   :  { %vm1264_vm15 = vcmp.gt.f32.partialorder %v1238_v1, 0.0  ;;  %v1280_v17 = vmul.f32 0.01, %v1238_v1  ;;  %v1241_v10 = vadd.f32 %v1240_v41, %v11138_v57  ;;  %v11284_v50 = vsel %vm81_vm0, %v1309_v2, %v1310_v33  ;;  %8666 = vmatpush3.bf16.msra.mxu0 %v9776_v25 }
 0x1c1   :  { %vm1267_vm4 = vcmp.gt.f32.partialorder %v1249_v7, 0.0  ;;  %v1283_v19 = vmul.f32 0.01, %v1249_v7  ;;  %8667 = vmatprep.subr.bf16.mxu0 %v9777_v20  ;;  %v1339_v43 = vrot.slane %v11181_v14, 1  ;;  %v1340_v33 = vrot.slane %v11212_v34, 1  ;;  %v9781_v20 = vld [vmem:[%s15721_s3 + $0x218] sm:$0xff]  }
 0x1c2   :  { %v11277_v9 = vsel %vm1264_vm15, %v1238_v1, %v1280_v17  ;;  %vm1265_vm5 = vcmp.gt.f32.partialorder %v1241_v10, 0.0  ;;  %v1281_v57 = vmul.f32 0.01, %v1241_v10  ;;  %v1338_v1 = vrot.slane %v11179_v24, 1 }
 0x1c3   :  { %15826 = vst [vmem:[#allocation20_spill] sm:$0xff] %v11277_v9  ;;  %v11279_v28 = vsel %vm1267_vm4, %v1249_v7, %v1283_v19  ;;  %v1312_v5 = vrot.slane %v11277_v9, 7  ;;  %v11328_v7 = vsel %vm1266_vm3, %v1246_v38, %v1282_v39  ;;  %v1373_v17 = vpack.c.bf16 %v11145_v15, %v11148_v52  ;;  %v9780_v19 = vld [vmem:[%s15721_s3 + $0x1d0] sm:$0xff]  }
 0x1c4   :  { %15827 = vst [vmem:[#allocation21_spill] sm:$0xff] %v11279_v28  ;;  %v11290_v56 = vsel %vm1265_vm5, %v1241_v10, %v1281_v57  ;;  %v1372_v23 = vpack.c.bf16 %v11143_v13, %v11279_v28  ;;  %v1315_v6 = vrot.slane %v11279_v28, 7  ;;  %15829 = vst [vmem:[#allocation23_spill] sm:$0xff] %v11328_v7  ;;  %8668 = vmatpush3.bf16.msra.mxu0 %v9778_v54  ;;  %v1332_v25 = vrot.slane %v11143_v13, 1 }
 0x1c5   :  { %15828 = vst [vmem:[#allocation22_spill] sm:$0xff] %v11290_v56  ;;  %v11307_v0 = vsel %vm81_vm0, %v1311_v36, %v1312_v5  ;;  %v1313_v2 = vrot.slane %v11290_v56, 7  ;;  %v11341_v10 = vsel %vm114_vm1, %v1337_v45, %v1338_v1  ;;  %8669 = vmatprep.subr.bf16.mxu0 %v9779_v61  ;;  %v1314_v36 = vrot.slane %v11328_v7, 7 }
 0x1c6   :  { %1420 = vrot.lane.b32.xlu1 %v1372_v23, %s10249_s19  ;;  %v11318_v12 = vsel %vm81_vm0, %v1315_v6, %v1300_v55  ;;  %v11334_v55 = vsel %vm114_vm1, %v1336_v27, %v1337_v45  ;;  %v11351_v27 = vsel %vm114_vm1, %v1338_v1, %v1339_v43  ;;  %v1389_v23 = vpack.c.bf16 %v11188_v47, %v11171_v18 }
 0x1c7   :  { %v1388_v41 = vpack.c.bf16 %v11166_v48, %v11318_v12  ;;  %v11345_v38 = vpack.c.bf16 %v11334_v55, %v11299_v59  ;;  %v11360_v39 = vsel %vm81_vm0, %v1312_v5, %v1313_v2  ;;  %v11364_v57 = vpack.c.bf16 %v11351_v27, %v11341_v10 }
 0x1c8   :  { %v1374_v45 = vpack.c.bf16 %v11174_v53, %v11155_v4  ;;  %v1355_v5 = vsel %vm114_vm1, %v1339_v43, %v1340_v33  ;;  %v1343_v54 = vrot.slane %v11255_v21, 1  ;;  %8670 = vmatpush3.bf16.msra.mxu0 %v9780_v19  ;;  %v11379_v1 = vsel %vm81_vm0, %v1314_v36, %v1315_v6 }
 0x1c9   :  { %1444 = vrot.lane.b32.xlu0 %v1388_v41, %s10249_s19  ;;  %v11383_v61 = vsel %vm81_vm0, %v1313_v2, %v1314_v36  ;;  %v1342_v41 = vrot.slane %v11227_v40, 1  ;;  %8671 = vmatprep.subr.bf16.mxu0 %v9781_v20  ;;  %v1344_v6 = vrot.slane %v11277_v9, 1  ;;  %v1346_v58 = vrot.slane %v11328_v7, 1  ;;  %v9782_v2 = vld [vmem:[%s15721_s3 + $0x1d8] sm:$0xff]  }
 0x1ca   :  { %1422 = vrot.lane.b32.xlu1 %v1373_v17, %s10249_s19  ;;  %v1341_v17 = vrot.slane %v11229_v32, 1  ;;  %v1347_v19 = vrot.slane %v11279_v28, 1  ;;  %v1362_v16 = vsel %vm114_vm1, %v1332_v25, %v1333_v30  ;;  %v1345_v29 = vrot.slane %v11290_v56, 1 }
 0x1cb   :  { %v1352_v36 = vsel %vm114_vm1, %v1342_v41, %v1343_v54  ;;  %v1351_v30 = vsel %vm114_vm1, %v1343_v54, %v1344_v6  ;;  %v1404_v54 = vpack.c.bf16 %v11224_v26, %v1362_v16  ;;  %v1393_v26 = vpack.c.bf16 %v11303_v8, %v11284_v50 }
 0x1cc   :  { %v1353_v20 = vsel %vm114_vm1, %v1341_v17, %v1342_v41  ;;  %8672 = vmatpush3.bf16.msra.mxu0 %v9782_v2  ;;  %v1375_v41 = vpack.c.bf16 %v11179_v24, %v11183_v63  ;;  %v1349_v2 = vsel %vm114_vm1, %v1345_v29, %v1346_v58  ;;  %v1350_v43 = vsel %vm114_vm1, %v1344_v6, %v1345_v29 }
 0x1cd   :  { %1446 = vrot.lane.b32.xlu0 %v1389_v23, %s10249_s19  ;;  %v1354_v23 = vsel %vm114_vm1, %v1340_v33, %v1341_v17  ;;  %v11413_v60 = vpack.c.bf16 %v1352_v36, %v1353_v20  ;;  %v1348_v33 = vsel %vm114_vm1, %v1346_v58, %v1347_v19  ;;  %v1363_v17 = vsel %vm114_vm1, %v1347_v19, %v1332_v25 }
 0x1ce   :  { %1424 = vrot.lane.b32.xlu1 %v1374_v45, %s10249_s19  ;;  %v11411_v45 = vpack.c.bf16 %v1354_v23, %v1355_v5  ;;  %v11423_v42 = vpack.c.bf16 %v1362_v16, %v1363_v17  ;;  %v1391_v25 = vpack.c.bf16 %v11233_v62, %v11209_v22  ;;  %v11434_v19 = vpack.c.bf16 %v1350_v43, %v1351_v30 }
 0x1cf   :  { %v11436_v28 = vpack.c.bf16 %v1348_v33, %v1349_v2  ;;  %v1405_v58 = vpack.c.bf16 %v11299_v59, %v11243_v35  ;;  %v1376_v29 = vpack.c.bf16 %v11212_v34, %v11181_v14  ;;  %v1377_v6 = vpack.c.bf16 %v11227_v40, %v11229_v32 }
 0x1d0   :  { %v1394_v35 = vpack.c.bf16 %v11360_v39, %v11307_v0  ;;  %v1406_v16 = vpack.c.bf16 %v11341_v10, %v11334_v55  ;;  %v1407_v59 = vpack.c.bf16 %v1355_v5, %v11351_v27  ;;  %v1409_v55 = vpack.c.bf16 %v1351_v30, %v1352_v36 }
 0x1d1   :  { %1448 = vrot.lane.b32.xlu0 %v1390_v44, %s10249_s19  ;;  %v1392_v44 = vpack.c.bf16 %v11271_v46, %v11239_v49  ;;  %v1408_v10 = vpack.c.bf16 %v1353_v20, %v1354_v23  ;;  %v1411_v27 = vpack.c.bf16 %v1363_v17, %v1348_v33  ;;  %v1410_v5 = vpack.c.bf16 %v1349_v2, %v1350_v43  ;;  %v9970_v23 = vld [vmem:[%s15720_s2 + $0x4] ss:$20 sps:$4 sm:$0xff]   ;;  %v9972_v2 = vld [vmem:[%s15720_s2 + $0xc] ss:$20 sps:$4 sm:$0xff]  }
 0x1d2   :  { %1426 = vrot.lane.b32.xlu1 %v1375_v41, %s10249_s19  ;;  %v1378_v41 = vpack.c.bf16 %v11277_v9, %v11255_v21  ;;  %v15831_v43 = vpack.c.bf16 %v11171_v18, %v11166_v48 }
 0x1d5   :  { %1450 = vrot.lane.b32.xlu0 %v1391_v25, %s10249_s19  ;;  %v1379_v25 = vpack.c.bf16 %v11328_v7, %v11290_v56 }
 0x1d6   :  { %1452 = vrot.lane.b32.xlu1 %v1392_v44, %s10249_s19  ;;  %v1395_v44 = vpack.c.bf16 %v11379_v1, %v11383_v61 }
 0x1d9   :  { %1468 = vrot.lane.b32.xlu0 %v1404_v54, %s10249_s19 }
 0x1da   :  { %1470 = vrot.lane.b32.xlu1 %v1405_v58, %s10249_s19  ;;  %v15830_v58 = vpack.c.bf16 %v11318_v12, %v11379_v1  ;;  %v9971_v12 = vld [vmem:[%s15720_s2] ss:$20 sps:$4 sm:$0xff]  }
 0x1dd   :  { %1428 = vrot.lane.b32.xlu0 %v1376_v29, %s10249_s19 }
 0x1de   :  { %1430 = vrot.lane.b32.xlu1 %v1377_v6, %s10249_s19 }
 0x1e1   :  { %1454 = vrot.lane.b32.xlu0 %v1393_v26, %s10249_s19  ;;  %v9783_v26 = vld [vmem:[%s15721_s3 + $0x228] sm:$0xff]  }
 0x1e2   :  { %1456 = vrot.lane.b32.xlu1 %v1394_v35, %s10249_s19 }
 0x1e5   :  { %1472 = vrot.lane.b32.xlu0 %v1406_v16, %s10249_s19  ;;  %v9973_v16 = vld [vmem:[%s15720_s2 + $0x2c] ss:$20 sps:$4 sm:$0xff]  }
 0x1e6   :  { %1474 = vrot.lane.b32.xlu1 %v1407_v59, %s10249_s19 }
 0x1e9   :  { %1432 = vrot.lane.b32.xlu0 %v1378_v41, %s10249_s19  ;;  %v9784_v41 = vld [vmem:[%s15721_s3 + $0x230] sm:$0xff]  }
 0x1ea   :  { %1434 = vrot.lane.b32.xlu1 %v1379_v25, %s10249_s19 }
 0x1ed   :  { %1458 = vrot.lane.b32.xlu0 %v1395_v44, %s10249_s19 }
 0x1ee   :  { %1478 = vrot.lane.b32.xlu1 %v1409_v55, %s10249_s19 }
 0x1f1   :  { %1476 = vrot.lane.b32.xlu0 %v1408_v10, %s10249_s19  ;;  %v9974_v10 = vld [vmem:[%s15720_s2 + $0x28] ss:$20 sps:$4 sm:$0xff]  }
 0x1f2   :  { %1482 = vrot.lane.b32.xlu1 %v1411_v27, %s10249_s19 }
 0x1f5   :  { %1480 = vrot.lane.b32.xlu0 %v1410_v5, %s10249_s19  ;;  %v9975_v5 = vld [vmem:[%s15720_s2 + $0x54] ss:$20 sps:$4 sm:$0xff]  }
 0x238   :  { %v1421_v54 = vpop.permute.xlu1 %1420 }
 0x239   :  { %v11481_v29 = vsel %vm251_vm2, %v15830_v58, %v1421_v54 }
 0x23a   :  { %v1580_v1 = vmul.bf16 %v9971_v12, %v11481_v29  ;;  %v9976_v12 = vld [vmem:[%s15720_s2 + $0x8] ss:$20 sps:$4 sm:$0xff]  }
 0x23b   :  { %v1445_v36 = vpop.permute.xlu0 %1444 }
 0x23c   :  { %v1518_v30 = vsel %vm251_vm2, %v11423_v42, %v1445_v36  ;;  %v1423_v20 = vpop.permute.xlu1 %1422 }
 0x23d   :  { %v1581_v33 = vmul.bf16 %v9970_v23, %v1518_v30  ;;  %v1490_v17 = vsel %vm251_vm2, %v15831_v43, %v1423_v20  ;;  %v1396_v30 = vpack.c.bf16 %v11148_v52, %v11143_v13  ;;  %v15832_v20 = vpack.c.bf16 %v11193_v37, %v11188_v47  ;;  %v9978_v37 = vld [vmem:[%s15720_s2 + $0x50] ss:$20 sps:$4 sm:$0xff]  }
 0x23e   :  { %v1583_v6 = vmul.bf16 %v9972_v2, %v1490_v17  ;;  %v1585_v27 = vmul.bf16 %v9974_v10, %v1490_v17 }
 0x23f   :  { %1970 = vmatprep.mubr.bf16.mxu1 %v1581_v33  ;;  %v1447_v35 = vpop.permute.xlu0 %1446 }
 0x240   :  { %v1522_v48 = vsel %vm251_vm2, %v11253_v3, %v1447_v35  ;;  %v1425_v18 = vpop.permute.xlu1 %1424  ;;  %1971 = vmatmul.mubr.bf16.vlgmr.msra.gmra.mrb[32].mxu1 %v1580_v1  ;;  %2067 = vmatprep.mubr.bf16.mxu0 %v1583_v6  ;;  %v9977_v6 = vld [vmem:[%s15720_s2 + $0x34] ss:$20 sps:$4 sm:$0xff]   ;;  %v9979_v35 = vld [vmem:[%s15720_s2 + $0x7c] ss:$20 sps:$4 sm:$0xff]  }
 0x241   :  { %v1586_v59 = vmul.bf16 %v9973_v16, %v1522_v48  ;;  %9467 = vmatpush3.bf16.msra.mxu1 %v11265_v31  ;;  %v9785_v31 = vld [vmem:[%s15721_s3 + $0x238] sm:$0xff]   ;;  %v1494_v23 = vsel %vm251_vm2, %v15832_v20, %v1425_v18  ;;  %v1397_v16 = vpack.c.bf16 %v11155_v4, %v11145_v15  ;;  %v1398_v20 = vpack.c.bf16 %v11183_v63, %v11174_v53 }
 0x242   :  { %9468 = vmatprep.subr.bf16.mxu1 %v9783_v26  ;;  %v1588_v47 = vmul.bf16 %v9977_v6, %v1494_v23 }
 0x243   :  { %1978 = vmatprep.mubr.bf16.mxu1 %v1586_v59  ;;  %v1449_v25 = vpop.permute.xlu0 %1448 }
 0x244   :  { %v1526_v44 = vsel %vm251_vm2, %v11345_v38, %v1449_v25  ;;  %v1427_v55 = vpop.permute.xlu1 %1426 }
 0x245   :  { %9469 = vmatpush3.bf16.msra.mxu1 %v9783_v26  ;;  %v1591_v54 = vmul.bf16 %v9975_v5, %v1526_v44  ;;  %v1590_v26 = vmul.bf16 %v9978_v37, %v1494_v23 }
 0x246   :  { %9470 = vmatprep.subr.bf16.mxu1 %v9784_v41 }
 0x247   :  { %v1451_v58 = vpop.permute.xlu0 %1450 }
 0x248   :  { %v1453_v36 = vpop.permute.xlu1 %1452  ;;  %1979 = vmatmul.mubr.bf16.gmra.mrb[36].mxu1 %v1585_v27  ;;  %v1530_v43 = vsel %vm251_vm2, %v11364_v57, %v1451_v58 }
 0x249   :  { %1986 = vmatprep.mubr.bf16.mxu1 %v1591_v54  ;;  %9471 = vmatpush3.bf16.msra.mxu1 %v9784_v41  ;;  %v1596_v48 = vmul.bf16 %v9979_v35, %v1530_v43  ;;  %v15833_v41 = vpack.c.bf16 %v11209_v22, %v11202_v51  ;;  %v1534_v27 = vsel %vm251_vm2, %v11411_v45, %v1453_v36  ;;  %v9981_v54 = vld [vmem:[%s15720_s2 + $0x5c] ss:$20 sps:$4 sm:$0xff]   ;;  %v9982_v51 = vld [vmem:[%s15720_s2 + $0x78] ss:$20 sps:$4 sm:$0xff]  }
 0x24a   :  { %9472 = vmatprep.subr.bf16.mxu1 %v9785_v31  ;;  %v15834_v43 = vpack.c.bf16 %v11239_v49, %v11233_v62  ;;  %v9986_v62 = vld [vmem:[%s15720_s2 + $0xa0] ss:$20 sps:$4 sm:$0xff]  }
 0x24b   :  { %v1469_v33 = vpop.permute.xlu0 %1468  ;;  %v1498_v25 = vsel %vm251_vm2, %v15833_v41, %v1427_v55  ;;  %v9983_v55 = vld [vmem:[%s15720_s2 + $0xa4] ss:$20 sps:$4 sm:$0xff]   ;;  %v15835_v41 = vpack.c.bf16 %v11284_v50, %v11271_v46  ;;  %v9991_v50 = vld [vmem:[%s15720_s2 + $0xf4] ss:$20 sps:$4 sm:$0xff]  }
 0x24c   :  { %v1550_v17 = vsel %vm251_vm2, %v1396_v30, %v1469_v33  ;;  %v1471_v2 = vpop.permute.xlu1 %1470  ;;  %v1593_v58 = vmul.bf16 %v9981_v54, %v1498_v25  ;;  %v1595_v22 = vmul.bf16 %v9982_v51, %v1498_v25  ;;  %v1601_v36 = vmul.bf16 %v9983_v55, %v1534_v27  ;;  %v9988_v27 = vld [vmem:[%s15720_s2 + $0x80] ss:$20 sps:$4 sm:$0xff]  }
 0x24d   :  { %v1582_v1 = vmul.bf16 %v9976_v12, %v1550_v17  ;;  %9473 = vmatpush3.bf16.msra.mxu1 %v9785_v31  ;;  %v1554_v59 = vsel %vm251_vm2, %v1397_v16, %v1471_v2  ;;  %v9980_v31 = vld [vmem:[%s15720_s2 + $0x30] ss:$20 sps:$4 sm:$0xff]   ;;  %v9984_v2 = vld [vmem:[%s15720_s2 + $0x58] ss:$20 sps:$4 sm:$0xff]  }
 0x24e   :  { %v1587_v5 = vmul.bf16 %v9980_v31, %v1554_v59 }
 0x24f   :  { %v1429_v18 = vpop.permute.xlu0 %1428  ;;  %2068 = vmatmul.mubr.bf16.vlgmr.msra.gmra.mrb[48].mxu0 %v1582_v1 }
 0x250   :  { %1987 = vmatmul.mubr.bf16.gmra.mrb[40].mxu1 %v1590_v26  ;;  %2075 = vmatprep.mubr.bf16.mxu0 %v1588_v47  ;;  %v1431_v44 = vpop.permute.xlu1 %1430  ;;  %v1502_v17 = vsel %vm251_vm2, %v15834_v43, %v1429_v18  ;;  %v9985_v47 = vld [vmem:[%s15720_s2 + $0x84] ss:$20 sps:$4 sm:$0xff]   ;;  %v9987_v26 = vld [vmem:[%s15720_s2 + $0xcc] ss:$20 sps:$4 sm:$0xff]   ;;  %v1399_v18 = vpack.c.bf16 %v11181_v14, %v11179_v24 }
 0x251   :  { %1994 = vmatprep.mubr.bf16.mxu1 %v1596_v48  ;;  %v1598_v37 = vmul.bf16 %v9985_v47, %v1502_v17  ;;  %v1600_v49 = vmul.bf16 %v9986_v62, %v1502_v17  ;;  %v1506_v25 = vsel %vm251_vm2, %v15835_v41, %v1431_v44  ;;  %v9993_v17 = vld [vmem:[%s15720_s2 + $0xd4] ss:$20 sps:$4 sm:$0xff]   ;;  %v1401_v47 = vpack.c.bf16 %v11255_v21, %v11227_v40 }
 0x252   :  { %v15837_v62 = vpack.c.bf16 %v11383_v61, %v11360_v39  ;;  %v9999_v39 = vld [vmem:[%s15720_s2 + $0x10] ss:$20 sps:$4 sm:$0xff]  }
 0x253   :  { %v1455_v10 = vpop.permute.xlu0 %1454  ;;  %v1584_v61 = vmul.bf16 %v9999_v39, %v11253_v3  ;;  %v9786_v39 = vld [vmem:[%s15721_s3 + $0x280] sm:$0xff]  }
 0x254   :  { %v1457_v23 = vpop.permute.xlu1 %1456  ;;  %v1538_v1 = vsel %vm251_vm2, %v11413_v60, %v1455_v10  ;;  %8733 = vmatprep.subr.bf16.mxu0 %v9786_v39 }
 0x255   :  { %v1606_v35 = vmul.bf16 %v9987_v26, %v1538_v1  ;;  %v1542_v10 = vsel %vm251_vm2, %v11434_v19, %v1457_v23  ;;  %v9996_v26 = vld [vmem:[%s15720_s2 + $0xd0] ss:$20 sps:$4 sm:$0xff]  }
 0x256   :  { %v1611_v44 = vmul.bf16 %v9991_v50, %v1542_v10  ;;  %v10003_v50 = vld [vmem:[%s15720_s2 + $0x60] ss:$20 sps:$4 sm:$0xff]  }
 0x257   :  { %v1473_v30 = vpop.permute.xlu0 %1472  ;;  %2076 = vmatmul.mubr.bf16.gmra.mrb[52].mxu0 %v1587_v5  ;;  %v9989_v5 = vld [vmem:[%s15720_s2 + $0xac] ss:$20 sps:$4 sm:$0xff]  }
 0x258   :  { %1995 = vmatmul.mubr.bf16.gmra.mrb[44].mxu1 %v1595_v22  ;;  %2083 = vmatprep.mubr.bf16.mxu0 %v1593_v58  ;;  %v1558_v33 = vsel %vm251_vm2, %v1398_v20, %v1473_v30  ;;  %v1475_v48 = vpop.permute.xlu1 %1474  ;;  %v1603_v54 = vmul.bf16 %v9989_v5, %v1506_v25  ;;  %v9990_v58 = vld [vmem:[%s15720_s2 + $0xc8] ss:$20 sps:$4 sm:$0xff]   ;;  %v1400_v22 = vpack.c.bf16 %v11229_v32, %v11212_v34  ;;  %v10001_v5 = vld [vmem:[%s15720_s2 + $0x38] ss:$20 sps:$4 sm:$0xff]  }
 0x259   :  { %2002 = vmatprep.mubr.bf16.mxu1 %v1601_v36  ;;  %v1592_v6 = vmul.bf16 %v9984_v2, %v1558_v33  ;;  %v1562_v59 = vsel %vm251_vm2, %v1399_v18, %v1475_v48  ;;  %v1605_v46 = vmul.bf16 %v9990_v58, %v1506_v25  ;;  %v15836_v30 = vpack.c.bf16 %v11307_v0, %v11303_v8  ;;  %v9992_v33 = vld [vmem:[%s15720_s2 + $0xa8] ss:$20 sps:$4 sm:$0xff]   ;;  %v9994_v2 = vld [vmem:[%s15720_s2 + $0xf0] ss:$20 sps:$4 sm:$0xff]  }
 0x25a   :  { %v1597_v31 = vmul.bf16 %v9988_v27, %v1562_v59  ;;  %v9995_v0 = vld [vmem:[%s15720_s2 + $0x11c] ss:$20 sps:$4 sm:$0xff]   ;;  %v1402_v25 = vpack.c.bf16 %v11290_v56, %v11277_v9  ;;  %v10000_v27 = vld [vmem:[%s15720_s2 + $0xf8] ss:$20 sps:$4 sm:$0xff]   ;;  %v1589_v3 = vmul.bf16 %v10001_v5, %v11345_v38 }
 0x25b   :  { %v1433_v12 = vpop.permute.xlu0 %1432  ;;  %v9997_v48 = vld [vmem:[%s15720_s2 + $0xfc] ss:$20 sps:$4 sm:$0xff]  }
 0x25c   :  { %v1435_v55 = vpop.permute.xlu1 %1434  ;;  %v1510_v20 = vsel %vm251_vm2, %v15836_v30, %v1433_v12  ;;  %v10006_v30 = vld [vmem:[%s15720_s2 + $0xb0] ss:$20 sps:$4 sm:$0xff]  }
 0x25d   :  { %v1608_v1 = vmul.bf16 %v9993_v17, %v1510_v20  ;;  %v1610_v8 = vmul.bf16 %v9994_v2, %v1510_v20  ;;  %v1604_v20 = vmul.bf16 %v10006_v30, %v11413_v60  ;;  %v10009_v60 = vld [vmem:[%s15720_s2 + $0x128] ss:$20 sps:$4 sm:$0xff]  }
 0x25e   :  { %v1619_v17 = vmul.bf16 %v10009_v60, %v11423_v42 }
 0x25f   :  { %2084 = vmatmul.mubr.bf16.gmra.mrb[56].mxu0 %v1592_v6  ;;  %v1459_v16 = vpop.permute.xlu0 %1458 }
 0x260   :  { %2003 = vmatmul.mubr.bf16.gmra.mrb[48].mxu1 %v1600_v49  ;;  %2091 = vmatprep.mubr.bf16.mxu0 %v1598_v37  ;;  %v1546_v23 = vsel %vm251_vm2, %v11436_v28, %v1459_v16  ;;  %v1479_v6 = vpop.permute.xlu1 %1478  ;;  %v1514_v49 = vsel %vm251_vm2, %v15837_v62, %v1435_v55  ;;  %v9998_v16 = vld [vmem:[%s15720_s2 + $0x118] ss:$20 sps:$4 sm:$0xff]  }
 0x261   :  { %2010 = vmatprep.mubr.bf16.mxu1 %v1606_v35  ;;  %v1616_v12 = vmul.bf16 %v9995_v0, %v1546_v23  ;;  %v1570_v37 = vsel %vm251_vm2, %v1401_v47, %v1479_v6  ;;  %v1613_v18 = vmul.bf16 %v9997_v48, %v1514_v49  ;;  %v1615_v59 = vmul.bf16 %v9998_v16, %v1514_v49  ;;  %v10007_v23 = vld [vmem:[%s15720_s2 + $0xd8] ss:$20 sps:$4 sm:$0xff]  }
 0x262   :  { %v1607_v35 = vmul.bf16 %v9996_v26, %v1570_v37  ;;  %v11702_v26 = vld [vmem:[%s15722_s4 + $0x1] ss:$0 sm:$0xff] }
 0x263   :  { %v1477_v51 = vpop.permute.xlu0 %1476 }
 0x264   :  { %v1566_v36 = vsel %vm251_vm2, %v1400_v22, %v1477_v51  ;;  %v15838_v51 = vld [vmem:[#allocation21_spill] sm:$0xff] }
 0x265   :  { %v1602_v43 = vmul.bf16 %v9992_v33, %v1566_v36  ;;  %v1403_v22 = vpack.c.bf16 %v15838_v51, %v11328_v7  ;;  %v10005_v36 = vld [vmem:[%s15720_s2 + $0x88] ss:$20 sps:$4 sm:$0xff]   ;;  %v1609_v33 = vmul.bf16 %v10007_v23, %v11434_v19 }
 0x266   :  { %v9803_v23 = vld [vmem:[%s15721_s3 + $0x2c8] sm:$0xff]  }
 0x267   :  { %2092 = vmatmul.mubr.bf16.gmra.mrb[60].mxu0 %v1597_v31  ;;  %v1481_v41 = vpop.permute.xlu0 %1480 }
 0x268   :  { %2011 = vmatmul.mubr.bf16.gmra.mrb[52].mxu1 %v1605_v46  ;;  %2099 = vmatprep.mubr.bf16.mxu0 %v1603_v54  ;;  %v1574_v10 = vsel %vm251_vm2, %v1402_v25, %v1481_v41  ;;  %v10002_v54 = vld [vmem:[%s15720_s2 + $0x124] ss:$20 sps:$4 sm:$0xff]   ;;  %v1483_v46 = vpop.permute.xlu1 %1482  ;;  %v9788_v25 = vld [vmem:[%s15721_s3 + $0x288] sm:$0xff]  }
 0x269   :  { %2018 = vmatprep.mubr.bf16.mxu1 %v1611_v44  ;;  %v1612_v31 = vmul.bf16 %v10000_v27, %v1574_v10  ;;  %v1618_v58 = vmul.bf16 %v10002_v54, %v11481_v29  ;;  %v1594_v44 = vmul.bf16 %v10003_v50, %v11364_v57  ;;  %v1578_v38 = vsel %vm251_vm2, %v1403_v22, %v1483_v46  ;;  %v10004_v29 = vld [vmem:[%s15720_s2 + $0x120] ss:$20 sps:$4 sm:$0xff]   ;;  %v9789_v50 = vld [vmem:[%s15721_s3 + $0x248] sm:$0xff]  }
 0x26a   :  { %v1617_v55 = vmul.bf16 %v10004_v29, %v1578_v38  ;;  %v1599_v57 = vmul.bf16 %v10005_v36, %v11411_v45  ;;  %v10008_v45 = vld [vmem:[%s15720_s2 + $0x100] ss:$20 sps:$4 sm:$0xff]  }
 0x26b   :  { %v9790_v22 = vld [vmem:[%s15721_s3 + $0x290] sm:$0xff]   ;;  %v9799_v38 = vld [vmem:[%s15721_s3 + $0x300] sm:$0xff]  }
 0x26c   :  { %v9801_v29 = vld [vmem:[%s15721_s3 + $0x2c0] sm:$0xff]   ;;  %8797 = vmatprep.subr.bf16.mxu1 %v9799_v38 }
 0x26f   :  { %2100 = vmatmul.mubr.bf16.gmra.mrb[64].mxu0 %v1602_v43  ;;  %v1614_v43 = vmul.bf16 %v10008_v45, %v11436_v28 }
 0x270   :  { %2019 = vmatmul.mubr.bf16.gmra.mrb[56].mxu1 %v1610_v8  ;;  %2107 = vmatprep.mubr.bf16.mxu0 %v1608_v1 }
 0x271   :  { %2026 = vmatprep.mubr.bf16.mxu1 %v1616_v12 }
 0x277   :  { %2108 = vmatmul.mubr.bf16.gmra.mrb[68].mxu0 %v1607_v35 }
 0x278   :  { %2027 = vmatmul.mubr.bf16.gmra.mrb[60].mxu1 %v1615_v59  ;;  %2115 = vmatprep.mubr.bf16.mxu0 %v1613_v18 }
 0x279   :  { %9474 = vmatprep.mubr.msk.bf16.mxu1 %vm251_vm2, %v1584_v61  ;;  %v9787_v61 = vld [vmem:[%s15721_s3 + $0x240] sm:$0xff]  }
 0x27a   :  { %8734 = vmatpush3.bf16.msra.mxu0 %v9787_v61 }
 0x27b   :  { %8735 = vmatprep.subr.bf16.mxu0 %v9788_v25  ;;  %v9796_v25 = vld [vmem:[%s15721_s3 + $0x2a8] sm:$0xff]  }
 0x27e   :  { %8736 = vmatpush3.bf16.msra.mxu0 %v9789_v50 }
 0x27f   :  { %2116 = vmatmul.mubr.bf16.gmra.mrb[72].mxu0 %v1612_v31  ;;  %8737 = vmatprep.subr.bf16.mxu0 %v9790_v22 }
 0x280   :  { %2123 = vmatprep.mubr.bf16.mxu0 %v1618_v58  ;;  %9475 = vmatmul.mubr.msk.bf16.vlgmr.msra.gmra.mrb[64].mxu1 %vm251_vm2, %v1589_v3 }
 0x281   :  { %9478 = vmatprep.mubr.msk.bf16.mxu1 %vm251_vm2, %v1594_v44  ;;  %8798 = vmatpush3.bf16.msra.mxu1 %v9801_v29 }
 0x287   :  { %2124 = vmatmul.mubr.bf16.gmra.mrb[76].mxu0 %v1617_v55  ;;  %v9802_v55 = vld [vmem:[%s15721_s3 + $0x308] sm:$0xff]  }
 0x288   :  { %9479 = vmatmul.mubr.msk.bf16.gmra.mrb[68].mxu1 %vm251_vm2, %v1599_v57  ;;  %8799 = vmatprep.subr.bf16.mxu1 %v9802_v55  ;;  %v9798_v55 = vld [vmem:[%s15721_s3 + $0x2b0] sm:$0xff]  }
 0x289   :  { %9482 = vmatprep.mubr.msk.bf16.mxu1 %vm251_vm2, %v1604_v20  ;;  %v9791_v20 = vld [vmem:[%s15721_s3 + $0x250] sm:$0xff]   ;;  %8800 = vmatpush3.bf16.msra.mxu1 %v9803_v23 }
 0x28a   :  { %8738 = vmatpush3.bf16.msra.mxu0 %v9791_v20 }
 0x290   :  { %9483 = vmatmul.mubr.msk.bf16.gmra.mrb[72].mxu1 %vm251_vm2, %v1609_v33 }
 0x291   :  { %9486 = vmatprep.mubr.msk.bf16.mxu1 %vm251_vm2, %v1614_v43 }
 0x298   :  { %9487 = vmatmul.mubr.msk.bf16.gmra.mrb[76].mxu1 %vm251_vm2, %v1619_v17  ;;  %v9792_v17 = vld [vmem:[%s15721_s3 + $0x298] sm:$0xff]  }
 0x299   :  { %8739 = vmatprep.subr.bf16.mxu0 %v9792_v17 }
 0x313   :  { %v8609_v1 = vpop.f32.mrb[32].mxu1 }
 0x314   :  { %v8610_v19 = vpop.f32.mrb[33].mxu1 }
 0x315   :  { %v8611_v2 = vadd.f32 %v8610_v19, %v8609_v1  ;;  %v8612_v8 = vpop.f32.mrb[34].mxu1  ;;  %v9805_v1 = vld [vmem:[%s15721_s3 + $0x310] sm:$0xff]  }
 0x316   :  { %v8613_v0 = vpop.f32.mrb[35].mxu1  ;;  %8801 = vmatprep.subr.bf16.mxu1 %v9805_v1 }
 0x317   :  { %v8614_v12 = vadd.f32 %v8613_v0, %v8612_v8  ;;  %v1973_v18 = vadd.f32 %v8611_v2, %v11702_v26 }
 0x319   :  { %v1976_v5 = vadd.f32 %v8614_v12, %v11702_v26 }
 0x31b   :  { %v8615_v6 = vpop.f32.mrb[36].mxu1 }
 0x31c   :  { %v8616_v28 = vpop.f32.mrb[37].mxu1 }
 0x31d   :  { %v8617_v47 = vadd.f32 %v8616_v28, %v8615_v6  ;;  %v8618_v37 = vpop.f32.mrb[38].mxu1 }
 0x31e   :  { %v8619_v62 = vpop.f32.mrb[39].mxu1 }
 0x31f   :  { %v8620_v49 = vadd.f32 %v8619_v62, %v8618_v37  ;;  %v1981_v33 = vadd.f32 %v8617_v47, %v11702_v26  ;;  %v9793_v37 = vld [vmem:[%s15721_s3 + $0x258] sm:$0xff]   ;;  %v9807_v62 = vld [vmem:[%s15721_s3 + $0x2d0] sm:$0xff]  }
 0x320   :  { %8740 = vmatpush3.bf16.msra.mxu0 %v9793_v37  ;;  %8802 = vmatpush3.bf16.msra.mxu1 %v9807_v62 }
 0x321   :  { %v1984_v0 = vadd.f32 %v8620_v49, %v11702_v26  ;;  %v9794_v49 = vld [vmem:[%s15721_s3 + $0x2a0] sm:$0xff]  }
 0x322   :  { %v8673_v42 = vpop.f32.mrb[48].mxu0  ;;  %8741 = vmatprep.subr.bf16.mxu0 %v9794_v49 }
 0x323   :  { %v8621_v35 = vpop.f32.mrb[40].mxu1  ;;  %v8674_v48 = vpop.f32.mrb[49].mxu0 }
 0x324   :  { %v8675_v16 = vadd.f32 %v8674_v48, %v8673_v42  ;;  %v8622_v59 = vpop.f32.mrb[41].mxu1  ;;  %v8676_v41 = vpop.f32.mrb[50].mxu0 }
 0x325   :  { %v8623_v10 = vadd.f32 %v8622_v59, %v8621_v35  ;;  %v8624_v27 = vpop.f32.mrb[42].mxu1  ;;  %v8677_v31 = vpop.f32.mrb[51].mxu0 }
 0x326   :  { %v8678_v3 = vadd.f32 %v8677_v31, %v8676_v41  ;;  %v8625_v54 = vpop.f32.mrb[43].mxu1  ;;  %v11715_v58 = vadd.f32 %v8675_v16, %v1973_v18  ;;  %v9795_v16 = vld [vmem:[%s15721_s3 + $0x260] sm:$0xff]  }
 0x327   :  { %v8626_v46 = vadd.f32 %v8625_v54, %v8624_v27  ;;  %v1989_v59 = vadd.f32 %v8623_v10, %v11702_v26  ;;  %8742 = vmatpush3.bf16.msra.mxu0 %v9795_v16  ;;  %v9797_v10 = vld [vmem:[%s15721_s3 + $0x268] sm:$0xff]  }
 0x328   :  { %v11720_v44 = vadd.f32 %v8678_v3, %v1976_v5  ;;  %8743 = vmatprep.subr.bf16.mxu0 %v9796_v25 }
 0x329   :  { %v1992_v3 = vadd.f32 %v8626_v46, %v11702_v26 }
 0x32a   :  { %v8679_v36 = vpop.f32.mrb[52].mxu0 }
 0x32b   :  { %v8627_v57 = vpop.f32.mrb[44].mxu1  ;;  %v8680_v30 = vpop.f32.mrb[53].mxu0  ;;  %8744 = vmatpush3.bf16.msra.mxu0 %v9797_v10 }
 0x32c   :  { %v8681_v45 = vadd.f32 %v8680_v30, %v8679_v36  ;;  %v8628_v43 = vpop.f32.mrb[45].mxu1  ;;  %v8682_v60 = vpop.f32.mrb[54].mxu0  ;;  %v9800_v30 = vld [vmem:[%s15721_s3 + $0x270] sm:$0xff]   ;;  %8745 = vmatprep.subr.bf16.mxu0 %v9798_v55 }
 0x32d   :  { %v8629_v19 = vadd.f32 %v8628_v43, %v8627_v57  ;;  %v8630_v2 = vpop.f32.mrb[46].mxu1  ;;  %v8683_v8 = vpop.f32.mrb[55].mxu0  ;;  %v9804_v43 = vld [vmem:[%s15721_s3 + $0x2b8] sm:$0xff]  }
 0x32e   :  { %v8684_v12 = vadd.f32 %v8683_v8, %v8682_v60  ;;  %v8631_v6 = vpop.f32.mrb[47].mxu1  ;;  %v11748_v28 = vadd.f32 %v8681_v45, %v1981_v33 }
 0x32f   :  { %v8632_v47 = vadd.f32 %v8631_v6, %v8630_v2  ;;  %v1997_v20 = vadd.f32 %v8629_v19, %v11702_v26  ;;  %8746 = vmatpush3.bf16.msra.mxu0 %v9800_v30  ;;  %v9806_v19 = vld [vmem:[%s15721_s3 + $0x278] sm:$0xff]  }
 0x330   :  { %v11756_v42 = vadd.f32 %v8684_v12, %v1984_v0  ;;  %8747 = vmatprep.subr.bf16.mxu0 %v9804_v43 }
 0x331   :  { %v2000_v2 = vadd.f32 %v8632_v47, %v11702_v26 }
 0x332   :  { %v8685_v35 = vpop.f32.mrb[56].mxu0 }
 0x333   :  { %v8633_v48 = vpop.f32.mrb[48].mxu1  ;;  %v8686_v18 = vpop.f32.mrb[57].mxu0  ;;  %8748 = vmatpush3.bf16.msra.mxu0 %v9806_v19 }
 0x334   :  { %v8687_v41 = vadd.f32 %v8686_v18, %v8685_v35  ;;  %v8634_v39 = vpop.f32.mrb[49].mxu1  ;;  %v8688_v61 = vpop.f32.mrb[58].mxu0 }
 0x335   :  { %v8635_v27 = vadd.f32 %v8634_v39, %v8633_v48  ;;  %v8636_v31 = vpop.f32.mrb[50].mxu1  ;;  %v8689_v5 = vpop.f32.mrb[59].mxu0 }
 0x336   :  { %v8690_v54 = vadd.f32 %v8689_v5, %v8688_v61  ;;  %v8637_v50 = vpop.f32.mrb[51].mxu1  ;;  %v11769_v22 = vadd.f32 %v8687_v41, %v1989_v59 }
 0x337   :  { %v8638_v38 = vadd.f32 %v8637_v50, %v8636_v31  ;;  %v2005_v48 = vadd.f32 %v8635_v27, %v11702_v26 }
 0x338   :  { %v11774_v29 = vadd.f32 %v8690_v54, %v1992_v3 }
 0x339   :  { %v2008_v61 = vadd.f32 %v8638_v38, %v11702_v26 }
 0x33a   :  { %v8691_v36 = vpop.f32.mrb[60].mxu0 }
 0x33b   :  { %v8639_v57 = vpop.f32.mrb[52].mxu1  ;;  %v8692_v46 = vpop.f32.mrb[61].mxu0 }
 0x33c   :  { %v8693_v23 = vadd.f32 %v8692_v46, %v8691_v36  ;;  %v8640_v33 = vpop.f32.mrb[53].mxu1  ;;  %v8694_v45 = vpop.f32.mrb[62].mxu0 }
 0x33d   :  { %v8641_v60 = vadd.f32 %v8640_v33, %v8639_v57  ;;  %v8642_v17 = vpop.f32.mrb[54].mxu1  ;;  %v8695_v1 = vpop.f32.mrb[63].mxu0 }
 0x33e   :  { %v8696_v8 = vadd.f32 %v8695_v1, %v8694_v45  ;;  %v8643_v0 = vpop.f32.mrb[55].mxu1  ;;  %v11787_v12 = vadd.f32 %v8693_v23, %v1997_v20 }
 0x33f   :  { %v8644_v6 = vadd.f32 %v8643_v0, %v8642_v17  ;;  %v2013_v27 = vadd.f32 %v8641_v60, %v11702_v26 }
 0x340   :  { %v11792_v37 = vadd.f32 %v8696_v8, %v2000_v2 }
 0x341   :  { %v2016_v38 = vadd.f32 %v8644_v6, %v11702_v26 }
 0x342   :  { %v8697_v62 = vpop.f32.mrb[64].mxu0 }
 0x343   :  { %v8645_v49 = vpop.f32.mrb[56].mxu1  ;;  %v8698_v35 = vpop.f32.mrb[65].mxu0 }
 0x344   :  { %v8699_v47 = vadd.f32 %v8698_v35, %v8697_v62  ;;  %v8646_v18 = vpop.f32.mrb[57].mxu1  ;;  %v8700_v16 = vpop.f32.mrb[66].mxu0 }
 0x345   :  { %v8647_v59 = vadd.f32 %v8646_v18, %v8645_v49  ;;  %v8648_v41 = vpop.f32.mrb[58].mxu1  ;;  %v8701_v39 = vpop.f32.mrb[67].mxu0 }
 0x346   :  { %v8702_v25 = vadd.f32 %v8701_v39, %v8700_v16  ;;  %v8649_v31 = vpop.f32.mrb[59].mxu1  ;;  %v11796_v5 = vadd.f32 %v8699_v47, %v2005_v48 }
 0x347   :  { %v8650_v3 = vadd.f32 %v8649_v31, %v8648_v41  ;;  %v2021_v35 = vadd.f32 %v8647_v59, %v11702_v26 }
 0x348   :  { %v11798_v54 = vadd.f32 %v8702_v25, %v2008_v61 }
 0x349   :  { %v2024_v48 = vadd.f32 %v8650_v3, %v11702_v26 }
 0x34a   :  { %v8703_v50 = vpop.f32.mrb[68].mxu0 }
 0x34b   :  { %v8651_v10 = vpop.f32.mrb[60].mxu1  ;;  %v8704_v55 = vpop.f32.mrb[69].mxu0 }
 0x34c   :  { %v8705_v36 = vadd.f32 %v8704_v55, %v8703_v50  ;;  %v8652_v57 = vpop.f32.mrb[61].mxu1  ;;  %v8706_v46 = vpop.f32.mrb[70].mxu0 }
 0x34d   :  { %v8653_v30 = vadd.f32 %v8652_v57, %v8651_v10  ;;  %v8654_v20 = vpop.f32.mrb[62].mxu1  ;;  %v8707_v23 = vpop.f32.mrb[71].mxu0 }
 0x34e   :  { %v8708_v33 = vadd.f32 %v8707_v23, %v8706_v46  ;;  %v8655_v45 = vpop.f32.mrb[63].mxu1  ;;  %v11802_v43 = vadd.f32 %v8705_v36, %v2013_v27 }
 0x34f   :  { %v8656_v17 = vadd.f32 %v8655_v45, %v8654_v20 }
 0x350   :  { %v11804_v1 = vadd.f32 %v8708_v33, %v2016_v38 }
 0x352   :  { %v8709_v2 = vpop.f32.mrb[72].mxu0 }
 0x353   :  { %v8710_v8 = vpop.f32.mrb[73].mxu0  ;;  %v9476_v0 = vpop.f32.mrb[64].mxu1 }
 0x354   :  { %v8711_v19 = vadd.f32 %v8710_v8, %v8709_v2  ;;  %v2175_v60 = vadd.f32 %v9476_v0, %v11748_v28  ;;  %v8712_v62 = vpop.f32.mrb[74].mxu0  ;;  %v2166_v49 = vpop.f32.mrb[65].mxu1 }
 0x355   :  { %v2167_v6 = vadd.f32 %v2166_v49, %v11715_v58  ;;  %v8713_v47 = vpop.f32.mrb[75].mxu0  ;;  %v9477_v18 = vpop.f32.mrb[66].mxu1  ;;  %v2029_v58 = vadd.f32 %v8653_v30, %v11702_v26 }
 0x356   :  { %vm2231_vm6 = vcmp.gt.f32.partialorder %v2175_v60, 0.0  ;;  %v2247_v16 = vmul.f32 0.01, %v2175_v60  ;;  %v8714_v41 = vadd.f32 %v8713_v47, %v8712_v62  ;;  %v2178_v39 = vadd.f32 %v9477_v18, %v11756_v42  ;;  %v2169_v61 = vpop.f32.mrb[67].mxu1 }
 0x357   :  { %vm2229_vm7 = vcmp.gt.f32.partialorder %v2167_v6, 0.0  ;;  %v2245_v25 = vmul.f32 0.01, %v2167_v6  ;;  %v2170_v28 = vadd.f32 %v2169_v61, %v11720_v44  ;;  %v11812_v31 = vadd.f32 %v8711_v19, %v2021_v35  ;;  %v9813_v35 = vld [vmem:[%s15721_s3 + $0x328] sm:$0xff]  }
 0x358   :  { %v11814_v50 = vsel %vm2231_vm6, %v2175_v60, %v2247_v16  ;;  %vm2232_vm8 = vcmp.gt.f32.partialorder %v2178_v39, 0.0  ;;  %v2248_v59 = vmul.f32 0.01, %v2178_v39  ;;  %v11816_v3 = vadd.f32 %v8714_v41, %v2024_v48 }
 0x359   :  { %v11819_v10 = vsel %vm2229_vm7, %v2167_v6, %v2245_v25  ;;  %vm2230_vm9 = vcmp.gt.f32.partialorder %v2170_v28, 0.0  ;;  %v2032_v42 = vadd.f32 %v8656_v17, %v11702_v26  ;;  %v2279_v55 = vrot.slane %v11814_v50, 7 }
 0x35a   :  { %v11823_v27 = vsel %vm2232_vm8, %v2178_v39, %v2248_v59  ;;  %v2246_v44 = vmul.f32 0.01, %v2170_v28  ;;  %v8715_v36 = vpop.f32.mrb[76].mxu0  ;;  %v2311_v57 = vrot.slane %v11814_v50, 1  ;;  %v2277_v46 = vrot.slane %v11819_v10, 7 }
 0x35b   :  { %v15731_v20 = vrot.slane %v11819_v10, 1  ;;  %v8716_v23 = vpop.f32.mrb[77].mxu0  ;;  %v9480_v38 = vpop.f32.mrb[68].mxu1  ;;  %v2280_v33 = vrot.slane %v11823_v27, 7  ;;  %v2312_v0 = vrot.slane %v11823_v27, 1 }
 0x35c   :  { %v11831_v26 = vsel %vm2230_vm9, %v2170_v28, %v2246_v44  ;;  %v8717_v45 = vadd.f32 %v8716_v23, %v8715_v36  ;;  %v2191_v17 = vadd.f32 %v9480_v38, %v11787_v12  ;;  %v8718_v2 = vpop.f32.mrb[78].mxu0  ;;  %v2182_v8 = vpop.f32.mrb[69].mxu1 }
 0x35d   :  { %v2278_v19 = vrot.slane %v11831_v26, 7  ;;  %v2183_v60 = vadd.f32 %v2182_v8, %v11769_v22  ;;  %v8719_v62 = vpop.f32.mrb[79].mxu0  ;;  %v9481_v49 = vpop.f32.mrb[70].mxu1  ;;  %v2310_v25 = vrot.slane %v11831_v26, 1 }
 0x35e   :  { %vm2235_vm10 = vcmp.gt.f32.partialorder %v2191_v17, 0.0  ;;  %v2251_v48 = vmul.f32 0.01, %v2191_v17  ;;  %v8720_v6 = vadd.f32 %v8719_v62, %v8718_v2  ;;  %v2194_v47 = vadd.f32 %v9481_v49, %v11792_v37  ;;  %v2185_v18 = vpop.f32.mrb[71].mxu1 }
 0x35f   :  { %vm2233_vm11 = vcmp.gt.f32.partialorder %v2183_v60, 0.0  ;;  %v2249_v12 = vmul.f32 0.01, %v2183_v60  ;;  %v2186_v16 = vadd.f32 %v2185_v18, %v11774_v29  ;;  %v2126_v41 = vadd.f32 %v8717_v45, %v2029_v58 }
 0x360   :  { %v11841_v39 = vsel %vm2235_vm10, %v2191_v17, %v2251_v48  ;;  %vm2236_vm12 = vcmp.gt.f32.partialorder %v2194_v47, 0.0  ;;  %v2252_v22 = vmul.f32 0.01, %v2194_v47  ;;  %v11843_v61 = vadd.f32 %v8720_v6, %v2032_v42 }
 0x361   :  { %v2283_v28 = vrot.slane %v11841_v39, 7  ;;  %v11847_v59 = vsel %vm2233_vm11, %v2183_v60, %v2249_v12  ;;  %vm2234_vm13 = vcmp.gt.f32.partialorder %v2186_v16, 0.0  ;;  %v2250_v29 = vmul.f32 0.01, %v2186_v16 }
 0x362   :  { %v2281_v44 = vrot.slane %v11847_v59, 7  ;;  %v11851_v36 = vsel %vm2236_vm12, %v2194_v47, %v2252_v22  ;;  %v15732_v58 = vrot.slane %v11847_v59, 1  ;;  %v11859_v38 = vsel %vm81_vm0, %v2277_v46, %v2278_v19 }
 0x363   :  { %v2284_v23 = vrot.slane %v11851_v36, 7  ;;  %v9484_v42 = vpop.f32.mrb[72].mxu1  ;;  %v11863_v45 = vsel %vm81_vm0, %v2279_v55, %v2280_v33  ;;  %v11865_v17 = vsel %vm2234_vm13, %v2186_v16, %v2250_v29  ;;  %v11870_v60 = vsel %vm81_vm0, %v2278_v19, %v2279_v55 }
 0x364   :  { %v2207_v2 = vadd.f32 %v9484_v42, %v11802_v43  ;;  %v2198_v8 = vpop.f32.mrb[73].mxu1  ;;  %v2282_v48 = vrot.slane %v11865_v17, 7  ;;  %v15843_v7 = vrot.slane %v11841_v39, 1  ;;  %v15846_v51 = vrot.slane %v11847_v59, 1 }
 0x365   :  { %v2199_v6 = vadd.f32 %v2198_v8, %v11796_v5  ;;  %v9485_v47 = vpop.f32.mrb[74].mxu1  ;;  %v11891_v8 = vsel %vm81_vm0, %v2280_v33, %v2281_v44  ;;  %v15848_v21 = vrot.slane %v11851_v36, 1 }
 0x366   :  { %vm2239_vm14 = vcmp.gt.f32.partialorder %v2207_v2, 0.0  ;;  %v2255_v43 = vmul.f32 0.01, %v2207_v2  ;;  %v2210_v12 = vadd.f32 %v9485_v47, %v11804_v1  ;;  %v2201_v16 = vpop.f32.mrb[75].mxu1  ;;  %v11885_v29 = vsel %vm81_vm0, %v2281_v44, %v2282_v48  ;;  %v9812_v1 = vld [vmem:[%s15721_s3 + $0x2e0] sm:$0xff]  }
 0x367   :  { %vm2237_vm15 = vcmp.gt.f32.partialorder %v2199_v6, 0.0  ;;  %v2253_v19 = vmul.f32 0.01, %v2199_v6  ;;  %v2202_v22 = vadd.f32 %v2201_v16, %v11798_v54  ;;  %v9808_v54 = vld [vmem:[%s15721_s3 + $0x318] sm:$0xff]   ;;  %v15849_v32 = vmov %v15848_v21 }
 0x368   :  { %v11887_v5 = vsel %vm2239_vm14, %v2207_v2, %v2255_v43  ;;  %vm2240_vm3 = vcmp.gt.f32.partialorder %v2210_v12, 0.0  ;;  %v2256_v42 = vmul.f32 0.01, %v2210_v12  ;;  %8803 = vmatprep.subr.bf16.mxu1 %v9808_v54  ;;  %v15850_v34 = vmov %v15843_v7 }
 0x369   :  { %v11895_v30 = vsel %vm2237_vm15, %v2199_v6, %v2253_v19  ;;  %vm2238_vm4 = vcmp.gt.f32.partialorder %v2202_v22, 0.0  ;;  %v2254_v55 = vmul.f32 0.01, %v2202_v22  ;;  %v9809_v6 = vld [vmem:[%s15721_s3 + $0x2d8] sm:$0xff]   ;;  %v9810_v19 = vld [vmem:[%s15721_s3 + $0x320] sm:$0xff]   ;;  %v15856_v24 = vrot.slane %v11887_v5, 1 }
 0x36a   :  { %v2285_v43 = vrot.slane %v11895_v30, 7  ;;  %v11902_v16 = vsel %vm2240_vm3, %v2210_v12, %v2256_v42  ;;  %v11918_v42 = vsel %vm81_vm0, %v2283_v28, %v2284_v23  ;;  %8804 = vmatpush3.bf16.msra.mxu1 %v9809_v6  ;;  %v15847_v9 = vrot.slane %v11895_v30, 1 }
 0x36b   :  { %v2288_v44 = vrot.slane %v11902_v16, 7  ;;  %v9488_v62 = vpop.f32.mrb[76].mxu1  ;;  %v11910_v18 = vsel %vm2238_vm4, %v2202_v22, %v2254_v55  ;;  %v11928_v22 = vsel %vm81_vm0, %v2282_v48, %v2283_v28  ;;  %8805 = vmatprep.subr.bf16.mxu1 %v9810_v19  ;;  %v15860_v4 = vrot.slane %v11895_v30, 1 }
 0x36c   :  { %v2223_v2 = vadd.f32 %v9488_v62, %v2126_v41  ;;  %v2214_v49 = vpop.f32.mrb[77].mxu1  ;;  %v2286_v55 = vrot.slane %v11910_v18, 7  ;;  %v2332_v40 = vsel %vm114_vm1, %v15848_v21, %v15847_v9  ;;  %v15851_v21 = vpack.c.bf16 %v11863_v45, %v11870_v60 }
 0x36d   :  { %v2215_v41 = vadd.f32 %v2214_v49, %v11812_v31  ;;  %v9489_v62 = vpop.f32.mrb[78].mxu1  ;;  %v11939_v31 = vld [vmem:[%s15721_s3 + $0x340] sm:$0xff]  }
 0x36e   :  { %vm2243_vm5 = vcmp.gt.f32.partialorder %v2223_v2, 0.0  ;;  %v2259_v54 = vmul.f32 0.01, %v2223_v2  ;;  %v2226_v12 = vadd.f32 %v9489_v62, %v11843_v61  ;;  %v2217_v33 = vpop.f32.mrb[79].mxu1  ;;  %v11948_v62 = vsel %vm81_vm0, %v2285_v43, %v2286_v55  ;;  %9490 = vmatprep.subr.bf16.mxu0 %v11939_v31  ;;  %8806 = vmatpush3.bf16.msra.mxu1 %v9812_v1  ;;  %v9815_v1 = vld [vmem:[%s15721_s3 + $0x330] sm:$0xff]  }
 0x36f   :  { %vm2241_vm6 = vcmp.gt.f32.partialorder %v2215_v41, 0.0  ;;  %v2257_v28 = vmul.f32 0.01, %v2215_v41  ;;  %v2218_v49 = vadd.f32 %v2217_v33, %v11816_v3  ;;  %v11987_v3 = vsel %vm114_vm1, %v2310_v25, %v2311_v57  ;;  %8807 = vmatprep.subr.bf16.mxu1 %v9813_v35 }
 0x370   :  { %v11944_v48 = vsel %vm2243_vm5, %v2223_v2, %v2259_v54  ;;  %vm2244_vm7 = vcmp.gt.f32.partialorder %v2226_v12, 0.0  ;;  %v2260_v6 = vmul.f32 0.01, %v2226_v12  ;;  %v12007_v35 = vsel %vm114_vm1, %v15731_v20, %v2310_v25 }
 0x371   :  { %v2291_v33 = vrot.slane %v11944_v48, 7  ;;  %v11956_v61 = vsel %vm2241_vm6, %v2215_v41, %v2257_v28  ;;  %vm2242_vm8 = vcmp.gt.f32.partialorder %v2218_v49, 0.0  ;;  %v2258_v19 = vmul.f32 0.01, %v2218_v49 }
 0x372   :  { %v2289_v2 = vrot.slane %v11956_v61, 7  ;;  %v11960_v37 = vsel %vm2244_vm7, %v2226_v12, %v2260_v6  ;;  %v11973_v28 = vsel %vm81_vm0, %v2284_v23, %v2285_v43  ;;  %v9814_v23 = vld [vmem:[%s15721_s3 + $0x2e8] sm:$0xff]   ;;  %v12030_v25 = vsel %vm114_vm1, %v2311_v57, %v2312_v0 }
 0x373   :  { %v2292_v47 = vrot.slane %v11960_v37, 7  ;;  %v2349_v41 = vpack.c.bf16 %v11819_v10, %v11960_v37  ;;  %v11975_v12 = vsel %vm2242_vm8, %v2218_v49, %v2258_v19  ;;  %8808 = vmatpush3.bf16.msra.mxu1 %v9814_v23  ;;  %v12034_v6 = vpack.c.bf16 %v12030_v25, %v11987_v3 }
 0x374   :  { %v2290_v43 = vrot.slane %v11975_v12, 7  ;;  %v2322_v49 = vrot.slane %v11975_v12, 1  ;;  %8809 = vmatprep.subr.bf16.mxu1 %v9815_v1  ;;  %v15839_v57 = vrot.slane %v11887_v5, 7  ;;  %v12065_v1 = vsel %vm81_vm0, %v2288_v44, %v2289_v2 }
 0x375   :  { %2397 = vrot.lane.b32.xlu1 %v2349_v41, %s10249_s19  ;;  %v11999_v19 = vsel %vm81_vm0, %v2292_v47, %v2277_v46  ;;  %v12022_v46 = vsel %vm114_vm1, %v2312_v0, %v15732_v58  ;;  %v2355_v9 = vpack.c.bf16 %v11956_v61, %v11902_v16 }
 0x376   :  { %v2365_v41 = vpack.c.bf16 %v11859_v38, %v11999_v19  ;;  %v12049_v0 = vsel %vm81_vm0, %v15839_v57, %v2288_v44  ;;  %v15840_v23 = vmov %v15839_v57  ;;  %v12059_v58 = vsel %vm81_vm0, %v2289_v2, %v2290_v43  ;;  %v9817_v2 = vld [vmem:[%s15721_s3 + $0x338] sm:$0xff]  }
 0x377   :  { %v12055_v20 = vsel %vm81_vm0, %v2286_v55, %v15840_v23  ;;  %15841 = vst [vmem:[#allocation24_spill] sm:$0xff] %v12059_v58  ;;  %v15842_v57 = vpack.c.bf16 %v11814_v50, %v11831_v26  ;;  %v2371_v44 = vpack.c.bf16 %v12059_v58, %v12065_v1  ;;  %v15863_v58 = vrot.slane %v11819_v10, 1 }
 0x378   :  { %2421 = vrot.lane.b32.xlu0 %v2365_v41, %s10249_s19  ;;  %v9816_v41 = vld [vmem:[%s15721_s3 + $0x2f0] sm:$0xff]   ;;  %v2370_v23 = vpack.c.bf16 %v12049_v0, %v12055_v20 }
 0x379   :  { %2399 = vrot.lane.b32.xlu1 %v15842_v57, %s10249_s19  ;;  %v15844_v57 = vrot.slane %v11865_v17, 1  ;;  %8810 = vmatpush3.bf16.msra.mxu1 %v9816_v41  ;;  %v9818_v41 = vld [vmem:[%s15721_s3 + $0x2f8] sm:$0xff]  }
 0x37a   :  { %8811 = vmatprep.subr.bf16.mxu1 %v9817_v2  ;;  %v15852_v2 = vpack.c.bf16 %v11847_v59, %v11823_v27 }
 0x37b   :  { %v2334_v55 = vsel %vm114_vm1, %v15844_v57, %v15843_v7  ;;  %v15845_v56 = vmov %v15844_v57  ;;  %v2333_v7 = vsel %vm114_vm1, %v15850_v34, %v15849_v32  ;;  %v2356_v34 = vpack.c.bf16 %v11944_v48, %v11975_v12 }
 0x37c   :  { %v2335_v54 = vsel %vm114_vm1, %v15846_v51, %v15845_v56  ;;  %v12112_v56 = vpack.c.bf16 %v2333_v7, %v2334_v55  ;;  %v2384_v51 = vpack.c.bf16 %v2332_v40, %v2333_v7  ;;  %2423 = vrot.lane.b32.xlu0 %v15851_v21, %s10249_s19  ;;  %v2293_v32 = vsel %vm81_vm0, %v2291_v33, %v2292_v47 }
 0x37d   :  { %v12110_v57 = vpack.c.bf16 %v2335_v54, %v12022_v46  ;;  %v2383_v63 = vpack.c.bf16 %v2334_v55, %v2335_v54  ;;  %v12126_v54 = vsel %vm81_vm0, %v2290_v43, %v2291_v33  ;;  %v2323_v55 = vrot.slane %v11944_v48, 1  ;;  %2401 = vrot.lane.b32.xlu1 %v15852_v2, %s10249_s19  ;;  %8812 = vmatpush3.bf16.msra.mxu1 %v9818_v41 }
 0x37e   :  { %v2341_v7 = vpack.c.bf16 %v11999_v19, %v2293_v32  ;;  %v2372_v21 = vpack.c.bf16 %v2293_v32, %v12126_v54  ;;  %v15853_v33 = vrot.slane %v11956_v61, 1  ;;  %v15854_v43 = vrot.slane %v11902_v16, 1 }
 0x37f   :  { %v15857_v19 = vmov %v15856_v24  ;;  %v15858_v47 = vrot.slane %v11910_v18, 1  ;;  %v15865_v41 = vrot.slane %v11956_v61, 1 }
 0x380   :  { %v2328_v14 = vsel %vm114_vm1, %v15854_v43, %v15853_v33  ;;  %v15855_v53 = vmov %v15854_v43 }
 0x381   :  { %v2329_v2 = vsel %vm114_vm1, %v15856_v24, %v15855_v53  ;;  %v2330_v32 = vsel %vm114_vm1, %v15858_v47, %v15857_v19  ;;  %v15859_v52 = vmov %v15858_v47  ;;  %v15861_v24 = vpack.c.bf16 %v11885_v29, %v11891_v8 }
 0x382   :  { %v2331_v33 = vsel %vm114_vm1, %v15860_v4, %v15859_v52  ;;  %v2386_v43 = vpack.c.bf16 %v2328_v14, %v2329_v2  ;;  %v12166_v15 = vpack.c.bf16 %v2329_v2, %v2330_v32  ;;  %v15862_v47 = vrot.slane %v11960_v37, 1 }
 0x383   :  { %v12164_v13 = vpack.c.bf16 %v2331_v33, %v2332_v40  ;;  %v2385_v53 = vpack.c.bf16 %v2330_v32, %v2331_v33  ;;  %2425 = vrot.lane.b32.xlu0 %v15861_v24, %s10249_s19  ;;  %v2326_v40 = vsel %vm114_vm1, %v2322_v49, %v2323_v55  ;;  %v2327_v2 = vsel %vm114_vm1, %v15865_v41, %v2322_v49 }
 0x384   :  { %v2325_v19 = vsel %vm114_vm1, %v2323_v55, %v15862_v47  ;;  %v15864_v52 = vmov %v15862_v47  ;;  %v15866_v32 = vpack.c.bf16 %v11841_v39, %v11865_v17  ;;  %v12195_v47 = vpack.c.bf16 %v2327_v2, %v2328_v14 }
 0x385   :  { %v2340_v4 = vsel %vm114_vm1, %v15864_v52, %v15863_v58  ;;  %v12197_v58 = vpack.c.bf16 %v2325_v19, %v2326_v40  ;;  %v2387_v52 = vpack.c.bf16 %v2326_v40, %v2327_v2  ;;  %v2373_v55 = vpack.c.bf16 %v11831_v26, %v11819_v10  ;;  %v10019_v10 = vld [vmem:[%s15720_s2 + $0x7c] ss:$20 sps:$4 sm:$0xff]  }
 0x386   :  { %2403 = vrot.lane.b32.xlu1 %v15866_v32, %s10249_s19  ;;  %v2388_v33 = vpack.c.bf16 %v2340_v4, %v2325_v19  ;;  %v12193_v24 = vpack.c.bf16 %v12007_v35, %v2340_v4  ;;  %v2375_v49 = vpack.c.bf16 %v11865_v17, %v11847_v59  ;;  %v2376_v41 = vpack.c.bf16 %v11851_v36, %v11841_v39  ;;  %v10025_v59 = vld [vmem:[%s15720_s2 + $0x84] ss:$20 sps:$4 sm:$0xff]  }
 0x387   :  { %v2377_v4 = vpack.c.bf16 %v11910_v18, %v11895_v30  ;;  %v15867_v40 = vpack.c.bf16 %v11918_v42, %v11928_v22  ;;  %v15868_v2 = vpack.c.bf16 %v11948_v62, %v11973_v28  ;;  %v15869_v32 = vpack.c.bf16 %v11987_v3, %v12007_v35 }
 0x388   :  { %v15870_v14 = vpack.c.bf16 %v12022_v46, %v12030_v25  ;;  %v15871_v19 = vpack.c.bf16 %v11895_v30, %v11851_v36  ;;  %v10030_v36 = vld [vmem:[%s15720_s2 + $0xc8] ss:$20 sps:$4 sm:$0xff]  }
 0x389   :  { %2427 = vrot.lane.b32.xlu0 %v15867_v40, %s10249_s19  ;;  %v15872_v40 = vpack.c.bf16 %v11887_v5, %v11910_v18  ;;  %v10034_v18 = vld [vmem:[%s15720_s2 + $0xf0] ss:$20 sps:$4 sm:$0xff]  }
 0x38a   :  { %2429 = vrot.lane.b32.xlu1 %v15868_v2, %s10249_s19 }
 0x38d   :  { %2445 = vrot.lane.b32.xlu0 %v15869_v32, %s10249_s19 }
 0x38e   :  { %2447 = vrot.lane.b32.xlu1 %v15870_v14, %s10249_s19  ;;  %v9820_v14 = vld [vmem:[%s15721_s3 + $0x350] sm:$0xff]  }
 0x391   :  { %2405 = vrot.lane.b32.xlu0 %v15871_v19, %s10249_s19 }
 0x392   :  { %2407 = vrot.lane.b32.xlu1 %v15872_v40, %s10249_s19 }
 0x395   :  { %2431 = vrot.lane.b32.xlu0 %v2370_v23, %s10249_s19  ;;  %v10010_v23 = vld [vmem:[%s15720_s2 + $0x4] ss:$20 sps:$4 sm:$0xff]  }
 0x396   :  { %2433 = vrot.lane.b32.xlu1 %v2371_v44, %s10249_s19 }
 0x399   :  { %2449 = vrot.lane.b32.xlu0 %v2383_v63, %s10249_s19 }
 0x39a   :  { %2451 = vrot.lane.b32.xlu1 %v2384_v51, %s10249_s19  ;;  %v15873_v51 = vpack.c.bf16 %v11870_v60, %v11859_v38 }
 0x39d   :  { %2409 = vrot.lane.b32.xlu0 %v2355_v9, %s10249_s19 }
 0x39e   :  { %2411 = vrot.lane.b32.xlu1 %v2356_v34, %s10249_s19  ;;  %v10011_v34 = vld [vmem:[%s15720_s2] ss:$20 sps:$4 sm:$0xff]  }
 0x3a1   :  { %2435 = vrot.lane.b32.xlu0 %v2372_v21, %s10249_s19  ;;  %v10012_v21 = vld [vmem:[%s15720_s2 + $0xc] ss:$20 sps:$4 sm:$0xff]  }
 0x3a2   :  { %2455 = vrot.lane.b32.xlu1 %v2386_v43, %s10249_s19 }
 0x3a5   :  { %2453 = vrot.lane.b32.xlu0 %v2385_v53, %s10249_s19  ;;  %v9819_v53 = vld [vmem:[%s15721_s3 + $0x348] sm:$0xff]  }
 0x3a6   :  { %2459 = vrot.lane.b32.xlu1 %v2388_v33, %s10249_s19 }
 0x3a9   :  { %2457 = vrot.lane.b32.xlu0 %v2387_v52, %s10249_s19  ;;  %v10013_v52 = vld [vmem:[%s15720_s2 + $0x2c] ss:$20 sps:$4 sm:$0xff]  }
 0x3e7   :  { %v2398_v3 = vpop.permute.xlu1 %2397 }
 0x3e8   :  { %v12249_v35 = vsel %vm251_vm2, %v2341_v7, %v2398_v3  ;;  %v10014_v3 = vld [vmem:[%s15720_s2 + $0x28] ss:$20 sps:$4 sm:$0xff]  }
 0x3e9   :  { %v2557_v7 = vmul.bf16 %v10011_v34, %v12249_v35 }
 0x3ea   :  { %v2422_v63 = vpop.permute.xlu0 %2421 }
 0x3eb   :  { %v2495_v46 = vsel %vm251_vm2, %v12193_v24, %v2422_v63  ;;  %v2400_v25 = vpop.permute.xlu1 %2399 }
 0x3ec   :  { %v2558_v44 = vmul.bf16 %v10010_v23, %v2495_v46  ;;  %v2467_v9 = vsel %vm251_vm2, %v15873_v51, %v2400_v25  ;;  %v10015_v46 = vld [vmem:[%s15720_s2 + $0x54] ss:$20 sps:$4 sm:$0xff]   ;;  %v15874_v51 = vpack.c.bf16 %v11891_v8, %v11863_v45 }
 0x3ed   :  { %v2560_v43 = vmul.bf16 %v10012_v21, %v2467_v9  ;;  %v2562_v63 = vmul.bf16 %v10014_v3, %v2467_v9  ;;  %v10017_v45 = vld [vmem:[%s15720_s2 + $0x34] ss:$20 sps:$4 sm:$0xff]  }
 0x3ee   :  { %2947 = vmatprep.mubr.bf16.mxu0 %v2558_v44  ;;  %v2424_v33 = vpop.permute.xlu0 %2423 }
 0x3ef   :  { %v2499_v38 = vsel %vm251_vm2, %v12034_v6, %v2424_v33  ;;  %v2402_v60 = vpop.permute.xlu1 %2401  ;;  %2948 = vmatmul.mubr.bf16.vlgmr.msra.gmra.mrb[80].mxu0 %v2557_v7  ;;  %3044 = vmatprep.mubr.bf16.mxu1 %v2560_v43  ;;  %v10016_v43 = vld [vmem:[%s15720_s2 + $0x8] ss:$20 sps:$4 sm:$0xff]  }
 0x3f0   :  { %v2563_v32 = vmul.bf16 %v10013_v52, %v2499_v38  ;;  %9491 = vmatpush3.bf16.msra.mxu0 %v11939_v31  ;;  %v9821_v31 = vld [vmem:[%s15721_s3 + $0x358] sm:$0xff]   ;;  %v2471_v9 = vsel %vm251_vm2, %v15874_v51, %v2402_v60  ;;  %v10018_v38 = vld [vmem:[%s15720_s2 + $0x50] ss:$20 sps:$4 sm:$0xff]   ;;  %v15875_v52 = vpack.c.bf16 %v11823_v27, %v11814_v50 }
 0x3f1   :  { %9492 = vmatprep.subr.bf16.mxu0 %v9819_v53  ;;  %v2565_v8 = vmul.bf16 %v10017_v45, %v2471_v9  ;;  %v2567_v60 = vmul.bf16 %v10018_v38, %v2471_v9  ;;  %v10021_v50 = vld [vmem:[%s15720_s2 + $0x5c] ss:$20 sps:$4 sm:$0xff]   ;;  %v15877_v9 = vpack.c.bf16 %v11973_v28, %v11918_v42  ;;  %v10026_v42 = vld [vmem:[%s15720_s2 + $0xa0] ss:$20 sps:$4 sm:$0xff]  }
 0x3f2   :  { %2955 = vmatprep.mubr.bf16.mxu0 %v2563_v32 }
 0x3f4   :  { %9493 = vmatpush3.bf16.msra.mxu0 %v9819_v53 }
 0x3f5   :  { %v2426_v19 = vpop.permute.xlu0 %2425  ;;  %9494 = vmatprep.subr.bf16.mxu0 %v9820_v14 }
 0x3f6   :  { %v2503_v2 = vsel %vm251_vm2, %v12110_v57, %v2426_v19 }
 0x3f7   :  { %v2568_v25 = vmul.bf16 %v10015_v46, %v2503_v2  ;;  %2956 = vmatmul.mubr.bf16.gmra.mrb[84].mxu0 %v2562_v63 }
 0x3f8   :  { %v2404_v40 = vpop.permute.xlu1 %2403  ;;  %9495 = vmatpush3.bf16.msra.mxu0 %v9820_v14  ;;  %v15876_v14 = vpack.c.bf16 %v11928_v22, %v11885_v29  ;;  %v10022_v29 = vld [vmem:[%s15720_s2 + $0x78] ss:$20 sps:$4 sm:$0xff]  }
 0x3f9   :  { %2963 = vmatprep.mubr.bf16.mxu0 %v2568_v25  ;;  %9496 = vmatprep.subr.bf16.mxu0 %v9821_v31 }
 0x3fa   :  { %v2475_v19 = vsel %vm251_vm2, %v15876_v14, %v2404_v40  ;;  %v10023_v40 = vld [vmem:[%s15720_s2 + $0xa4] ss:$20 sps:$4 sm:$0xff]  }
 0x3fb   :  { %v2428_v23 = vpop.permute.xlu0 %2427  ;;  %v2570_v27 = vmul.bf16 %v10021_v50, %v2475_v19  ;;  %v2572_v22 = vmul.bf16 %v10022_v29, %v2475_v19 }
 0x3fc   :  { %v2430_v44 = vpop.permute.xlu1 %2429  ;;  %v2507_v7 = vsel %vm251_vm2, %v12112_v56, %v2428_v23  ;;  %9497 = vmatpush3.bf16.msra.mxu0 %v9821_v31  ;;  %v10020_v31 = vld [vmem:[%s15720_s2 + $0x30] ss:$20 sps:$4 sm:$0xff]  }
 0x3fd   :  { %v2573_v26 = vmul.bf16 %v10019_v10, %v2507_v7  ;;  %v2511_v63 = vsel %vm251_vm2, %v12164_v13, %v2430_v44 }
 0x3fe   :  { %v2578_v25 = vmul.bf16 %v10023_v40, %v2511_v63 }
 0x3ff   :  { %v2446_v34 = vpop.permute.xlu0 %2445  ;;  %2964 = vmatmul.mubr.bf16.gmra.mrb[88].mxu0 %v2567_v60  ;;  %v15878_v60 = vpack.c.bf16 %v12055_v20, %v11948_v62  ;;  %v10031_v62 = vld [vmem:[%s15720_s2 + $0xf4] ss:$20 sps:$4 sm:$0xff]  }
 0x400   :  { %v2527_v21 = vsel %vm251_vm2, %v2373_v55, %v2446_v34  ;;  %v2448_v33 = vpop.permute.xlu1 %2447  ;;  %2971 = vmatprep.mubr.bf16.mxu0 %v2573_v26 }
 0x401   :  { %v2559_v53 = vmul.bf16 %v10016_v43, %v2527_v21  ;;  %v2531_v32 = vsel %vm251_vm2, %v15875_v52, %v2448_v33  ;;  %v10024_v43 = vld [vmem:[%s15720_s2 + $0x58] ss:$20 sps:$4 sm:$0xff]  }
 0x402   :  { %v2564_v46 = vmul.bf16 %v10020_v31, %v2531_v32  ;;  %v10029_v32 = vld [vmem:[%s15720_s2 + $0xac] ss:$20 sps:$4 sm:$0xff]  }
 0x403   :  { %v2406_v55 = vpop.permute.xlu0 %2405  ;;  %3045 = vmatmul.mubr.bf16.vlgmr.msra.gmra.mrb[80].mxu1 %v2559_v53 }
 0x404   :  { %3052 = vmatprep.mubr.bf16.mxu1 %v2565_v8  ;;  %v2408_v2 = vpop.permute.xlu1 %2407  ;;  %v2479_v34 = vsel %vm251_vm2, %v15877_v9, %v2406_v55  ;;  %v10028_v55 = vld [vmem:[%s15720_s2 + $0x80] ss:$20 sps:$4 sm:$0xff]  }
 0x405   :  { %v2575_v17 = vmul.bf16 %v10025_v59, %v2479_v34  ;;  %v2577_v28 = vmul.bf16 %v10026_v42, %v2479_v34  ;;  %v2483_v10 = vsel %vm251_vm2, %v15878_v60, %v2408_v2  ;;  %v10037_v34 = vld [vmem:[%s15720_s2 + $0xfc] ss:$20 sps:$4 sm:$0xff]  }
 0x406   :  { %v2580_v39 = vmul.bf16 %v10029_v32, %v2483_v10  ;;  %v2582_v20 = vmul.bf16 %v10030_v36, %v2483_v10  ;;  %v10045_v60 = vld [vmem:[%s15720_s2 + $0x88] ss:$20 sps:$4 sm:$0xff]   ;;  %v10046_v10 = vld [vmem:[%s15720_s2 + $0xb0] ss:$20 sps:$4 sm:$0xff]  }
 0x407   :  { %v2432_v3 = vpop.permute.xlu0 %2431  ;;  %2972 = vmatmul.mubr.bf16.gmra.mrb[92].mxu0 %v2572_v22  ;;  %v15880_v22 = vpack.c.bf16 %v11902_v16, %v11887_v5  ;;  %v10038_v5 = vld [vmem:[%s15720_s2 + $0x118] ss:$20 sps:$4 sm:$0xff]  }
 0x408   :  { %v2434_v44 = vpop.permute.xlu1 %2433  ;;  %2979 = vmatprep.mubr.bf16.mxu0 %v2578_v25  ;;  %v2515_v21 = vsel %vm251_vm2, %v12166_v15, %v2432_v3  ;;  %v15879_v3 = vpack.c.bf16 %v12065_v1, %v12049_v0  ;;  %v10035_v1 = vld [vmem:[%s15720_s2 + $0x11c] ss:$20 sps:$4 sm:$0xff]   ;;  %v15881_v25 = vld [vmem:[#allocation24_spill] sm:$0xff] }
 0x409   :  { %v2519_v26 = vsel %vm251_vm2, %v12195_v47, %v2434_v44 }
 0x40b   :  { %v2450_v23 = vpop.permute.xlu0 %2449  ;;  %3053 = vmatmul.mubr.bf16.gmra.mrb[84].mxu1 %v2564_v46  ;;  %v10032_v46 = vld [vmem:[%s15720_s2 + $0xa8] ss:$20 sps:$4 sm:$0xff]  }
 0x40c   :  { %3060 = vmatprep.mubr.bf16.mxu1 %v2570_v27  ;;  %v2535_v51 = vsel %vm251_vm2, %v2375_v49, %v2450_v23  ;;  %v10027_v49 = vld [vmem:[%s15720_s2 + $0xcc] ss:$20 sps:$4 sm:$0xff]   ;;  %v2452_v45 = vpop.permute.xlu1 %2451  ;;  %v10033_v27 = vld [vmem:[%s15720_s2 + $0xd4] ss:$20 sps:$4 sm:$0xff]   ;;  %v15882_v23 = vpack.c.bf16 %v12126_v54, %v15881_v25  ;;  %v10039_v54 = vld [vmem:[%s15720_s2 + $0x10] ss:$20 sps:$4 sm:$0xff]  }
 0x40d   :  { %v2569_v53 = vmul.bf16 %v10024_v43, %v2535_v51  ;;  %v2583_v33 = vmul.bf16 %v10027_v49, %v2515_v21  ;;  %v2539_v38 = vsel %vm251_vm2, %v2376_v41, %v2452_v45  ;;  %v2588_v41 = vmul.bf16 %v10031_v62, %v2519_v26  ;;  %v10036_v51 = vld [vmem:[%s15720_s2 + $0xd0] ss:$20 sps:$4 sm:$0xff]  }
 0x40e   :  { %v2574_v52 = vmul.bf16 %v10028_v55, %v2539_v38  ;;  %v2561_v43 = vmul.bf16 %v10039_v54, %v12034_v6  ;;  %v10042_v49 = vld [vmem:[%s15720_s2 + $0x124] ss:$20 sps:$4 sm:$0xff]  }
 0x40f   :  { %v2410_v7 = vpop.permute.xlu0 %2409  ;;  %2980 = vmatmul.mubr.bf16.gmra.mrb[96].mxu0 %v2577_v28  ;;  %v10041_v28 = vld [vmem:[%s15720_s2 + $0x38] ss:$20 sps:$4 sm:$0xff]  }
 0x410   :  { %2987 = vmatprep.mubr.bf16.mxu0 %v2583_v33  ;;  %v2412_v19 = vpop.permute.xlu1 %2411  ;;  %v2487_v63 = vsel %vm251_vm2, %v15879_v3, %v2410_v7  ;;  %v2566_v6 = vmul.bf16 %v10041_v28, %v12110_v57  ;;  %v2595_v33 = vmul.bf16 %v10042_v49, %v12249_v35  ;;  %v15884_v57 = vpack.c.bf16 %v11960_v37, %v11944_v48  ;;  %v10044_v35 = vld [vmem:[%s15720_s2 + $0x120] ss:$20 sps:$4 sm:$0xff]   ;;  %v10047_v48 = vld [vmem:[%s15720_s2 + $0xd8] ss:$20 sps:$4 sm:$0xff]  }
 0x411   :  { %v2585_v30 = vmul.bf16 %v10033_v27, %v2487_v63  ;;  %v2587_v0 = vmul.bf16 %v10034_v18, %v2487_v63  ;;  %v2491_v44 = vsel %vm251_vm2, %v15882_v23, %v2412_v19  ;;  %v2581_v37 = vmul.bf16 %v10046_v10, %v12166_v15  ;;  %v10049_v15 = vld [vmem:[%s15720_s2 + $0x128] ss:$20 sps:$4 sm:$0xff]   ;;  %v12478_v63 = vld [vmem:[%s15722_s4 + $0x2] ss:$0 sm:$0xff] }
 0x412   :  { %v2590_v7 = vmul.bf16 %v10037_v34, %v2491_v44  ;;  %v2592_v16 = vmul.bf16 %v10038_v5, %v2491_v44  ;;  %v2586_v26 = vmul.bf16 %v10047_v48, %v12195_v47  ;;  %v9822_v23 = vld [vmem:[%s15721_s3 + $0x3a0] sm:$0xff]   ;;  %v9829_v48 = vld [vmem:[%s15721_s3 + $0x378] sm:$0xff]  }
 0x413   :  { %3061 = vmatmul.mubr.bf16.gmra.mrb[88].mxu1 %v2569_v53  ;;  %v2436_v8 = vpop.permute.xlu0 %2435  ;;  %v15883_v53 = vpack.c.bf16 %v11975_v12, %v11956_v61  ;;  %v10043_v12 = vld [vmem:[%s15720_s2 + $0x60] ss:$20 sps:$4 sm:$0xff]   ;;  %8873 = vmatprep.subr.bf16.mxu1 %v9822_v23 }
 0x414   :  { %3068 = vmatprep.mubr.bf16.mxu1 %v2575_v17  ;;  %v2523_v31 = vsel %vm251_vm2, %v12197_v58, %v2436_v8  ;;  %v2456_v29 = vpop.permute.xlu1 %2455  ;;  %v10040_v17 = vld [vmem:[%s15720_s2 + $0xf8] ss:$20 sps:$4 sm:$0xff]   ;;  %v2571_v45 = vmul.bf16 %v10043_v12, %v12112_v56  ;;  %v2576_v56 = vmul.bf16 %v10045_v60, %v12164_v13  ;;  %v10048_v13 = vld [vmem:[%s15720_s2 + $0x100] ss:$20 sps:$4 sm:$0xff]  }
 0x415   :  { %v2547_v40 = vsel %vm251_vm2, %v15880_v22, %v2456_v29  ;;  %v2591_v55 = vmul.bf16 %v10048_v13, %v12197_v58  ;;  %v9823_v44 = vld [vmem:[%s15721_s3 + $0x360] sm:$0xff]   ;;  %v9827_v12 = vld [vmem:[%s15721_s3 + $0x370] sm:$0xff]   ;;  %v9828_v60 = vld [vmem:[%s15721_s3 + $0x3b8] sm:$0xff]  }
 0x416   :  { %v2584_v9 = vmul.bf16 %v10036_v51, %v2547_v40  ;;  %v9824_v51 = vld [vmem:[%s15721_s3 + $0x3a8] sm:$0xff]   ;;  %8874 = vmatpush3.bf16.msra.mxu1 %v9823_v44 }
 0x417   :  { %v2454_v14 = vpop.permute.xlu0 %2453  ;;  %2988 = vmatmul.mubr.bf16.gmra.mrb[100].mxu0 %v2582_v20  ;;  %8875 = vmatprep.subr.bf16.mxu1 %v9824_v51  ;;  %v9836_v51 = vld [vmem:[%s15721_s3 + $0x390] sm:$0xff]  }
 0x418   :  { %2995 = vmatprep.mubr.bf16.mxu0 %v2588_v41  ;;  %v2543_v2 = vsel %vm251_vm2, %v2377_v4, %v2454_v14  ;;  %v2593_v4 = vmul.bf16 %v10035_v1, %v2523_v31  ;;  %v2460_v61 = vpop.permute.xlu1 %2459 }
 0x419   :  { %v2579_v50 = vmul.bf16 %v10032_v46, %v2543_v2  ;;  %v2555_v8 = vsel %vm251_vm2, %v15884_v57, %v2460_v61 }
 0x41a   :  { %v2594_v38 = vmul.bf16 %v10044_v35, %v2555_v8 }
 0x41b   :  { %3069 = vmatmul.mubr.bf16.gmra.mrb[92].mxu1 %v2574_v52  ;;  %v2458_v21 = vpop.permute.xlu0 %2457  ;;  %v2596_v52 = vmul.bf16 %v10049_v15, %v12193_v24 }
 0x41c   :  { %3076 = vmatprep.mubr.bf16.mxu1 %v2580_v39  ;;  %v2551_v59 = vsel %vm251_vm2, %v15883_v53, %v2458_v21  ;;  %v9835_v21 = vld [vmem:[%s15721_s3 + $0x420] sm:$0xff]  }
 0x41d   :  { %v2589_v42 = vmul.bf16 %v10040_v17, %v2551_v59  ;;  %v9837_v53 = vld [vmem:[%s15721_s3 + $0x3e0] sm:$0xff]   ;;  %v9838_v59 = vld [vmem:[%s15721_s3 + $0x428] sm:$0xff]   ;;  %8937 = vmatprep.subr.bf16.mxu0 %v9835_v21  ;;  %v9840_v21 = vld [vmem:[%s15721_s3 + $0x3d8] sm:$0xff]  }
 0x41f   :  { %2996 = vmatmul.mubr.bf16.gmra.mrb[104].mxu0 %v2587_v0 }
 0x420   :  { %3003 = vmatprep.mubr.bf16.mxu0 %v2593_v4 }
 0x423   :  { %3077 = vmatmul.mubr.bf16.gmra.mrb[96].mxu1 %v2579_v50 }
 0x424   :  { %3084 = vmatprep.mubr.bf16.mxu1 %v2585_v30 }
 0x427   :  { %3004 = vmatmul.mubr.bf16.gmra.mrb[108].mxu0 %v2592_v16  ;;  %v9826_v16 = vld [vmem:[%s15721_s3 + $0x3b0] sm:$0xff]  }
 0x428   :  { %9498 = vmatprep.mubr.msk.bf16.mxu0 %vm251_vm2, %v2561_v43 }
 0x42b   :  { %3085 = vmatmul.mubr.bf16.gmra.mrb[100].mxu1 %v2584_v9 }
 0x42c   :  { %3092 = vmatprep.mubr.bf16.mxu1 %v2590_v7  ;;  %v9825_v7 = vld [vmem:[%s15721_s3 + $0x368] sm:$0xff]  }
 0x42d   :  { %8876 = vmatpush3.bf16.msra.mxu1 %v9825_v7 }
 0x42e   :  { %8877 = vmatprep.subr.bf16.mxu1 %v9826_v16 }
 0x42f   :  { %9499 = vmatmul.mubr.msk.bf16.vlgmr.msra.gmra.mrb[112].mxu0 %vm251_vm2, %v2566_v6 }
 0x430   :  { %9502 = vmatprep.mubr.msk.bf16.mxu0 %vm251_vm2, %v2571_v45  ;;  %8938 = vmatpush3.bf16.msra.mxu0 %v9837_v53  ;;  %v9839_v45 = vld [vmem:[%s15721_s3 + $0x3e8] sm:$0xff]   ;;  %v9842_v53 = vld [vmem:[%s15721_s3 + $0x398] sm:$0xff]  }
 0x431   :  { %8939 = vmatprep.subr.bf16.mxu0 %v9838_v59  ;;  %8878 = vmatpush3.bf16.msra.mxu1 %v9827_v12 }
 0x432   :  { %8879 = vmatprep.subr.bf16.mxu1 %v9828_v60 }
 0x433   :  { %3093 = vmatmul.mubr.bf16.gmra.mrb[104].mxu1 %v2589_v42 }
 0x434   :  { %3100 = vmatprep.mubr.bf16.mxu1 %v2595_v33  ;;  %8940 = vmatpush3.bf16.msra.mxu0 %v9839_v45 }
 0x435   :  { %8880 = vmatpush3.bf16.msra.mxu1 %v9829_v48 }
 0x437   :  { %9503 = vmatmul.mubr.msk.bf16.gmra.mrb[116].mxu0 %vm251_vm2, %v2576_v56  ;;  %v9841_v56 = vld [vmem:[%s15721_s3 + $0x430] sm:$0xff]  }
 0x438   :  { %9506 = vmatprep.mubr.msk.bf16.mxu0 %vm251_vm2, %v2581_v37  ;;  %8941 = vmatprep.subr.bf16.mxu0 %v9841_v56 }
 0x43b   :  { %3101 = vmatmul.mubr.bf16.gmra.mrb[108].mxu1 %v2594_v38 }
 0x43f   :  { %9507 = vmatmul.mubr.msk.bf16.gmra.mrb[120].mxu0 %vm251_vm2, %v2586_v26  ;;  %v9843_v26 = vld [vmem:[%s15721_s3 + $0x3f0] sm:$0xff]  }
 0x440   :  { %9510 = vmatprep.mubr.msk.bf16.mxu0 %vm251_vm2, %v2591_v55  ;;  %v9830_v55 = vld [vmem:[%s15721_s3 + $0x3c0] sm:$0xff]   ;;  %8942 = vmatpush3.bf16.msra.mxu0 %v9843_v26 }
 0x441   :  { %8881 = vmatprep.subr.bf16.mxu1 %v9830_v55 }
 0x447   :  { %9511 = vmatmul.mubr.msk.bf16.gmra.mrb[124].mxu0 %vm251_vm2, %v2596_v52 }
 0x4c2   :  { %v8749_v32 = vpop.f32.mrb[80].mxu0 }
 0x4c3   :  { %v8750_v47 = vpop.f32.mrb[81].mxu0 }
 0x4c4   :  { %v8751_v39 = vadd.f32 %v8750_v47, %v8749_v32  ;;  %v8752_v36 = vpop.f32.mrb[82].mxu0 }
 0x4c5   :  { %v8753_v20 = vpop.f32.mrb[83].mxu0 }
 0x4c6   :  { %v8754_v62 = vadd.f32 %v8753_v20, %v8752_v36  ;;  %v2950_v50 = vadd.f32 %v8751_v39, %v12478_v63 }
 0x4c8   :  { %v2953_v29 = vadd.f32 %v8754_v62, %v12478_v63 }
 0x4ca   :  { %v8755_v41 = vpop.f32.mrb[84].mxu0 }
 0x4cb   :  { %v8756_v58 = vpop.f32.mrb[85].mxu0 }
 0x4cc   :  { %v8757_v14 = vadd.f32 %v8756_v58, %v8755_v41  ;;  %v8758_v19 = vpop.f32.mrb[86].mxu0  ;;  %v9831_v58 = vld [vmem:[%s15721_s3 + $0x380] sm:$0xff]  }
 0x4cd   :  { %v8759_v2 = vpop.f32.mrb[87].mxu0  ;;  %8882 = vmatpush3.bf16.msra.mxu1 %v9831_v58 }
 0x4ce   :  { %v8760_v3 = vadd.f32 %v8759_v2, %v8758_v19  ;;  %v2958_v17 = vadd.f32 %v8757_v14, %v12478_v63 }
 0x4d0   :  { %v2961_v57 = vadd.f32 %v8760_v3, %v12478_v63 }
 0x4d2   :  { %v8761_v31 = vpop.f32.mrb[88].mxu0 }
 0x4d3   :  { %v8762_v30 = vpop.f32.mrb[89].mxu0 }
 0x4d4   :  { %v8763_v0 = vadd.f32 %v8762_v30, %v8761_v31  ;;  %v8764_v1 = vpop.f32.mrb[90].mxu0  ;;  %v9834_v30 = vld [vmem:[%s15721_s3 + $0x3d0] sm:$0xff]  }
 0x4d5   :  { %v8765_v40 = vpop.f32.mrb[91].mxu0 }
 0x4d6   :  { %v8813_v24 = vpop.f32.mrb[80].mxu1  ;;  %v8766_v9 = vadd.f32 %v8765_v40, %v8764_v1  ;;  %v2966_v32 = vadd.f32 %v8763_v0, %v12478_v63 }
 0x4d7   :  { %v8814_v46 = vpop.f32.mrb[81].mxu1 }
 0x4d8   :  { %v8815_v27 = vadd.f32 %v8814_v46, %v8813_v24  ;;  %v8816_v18 = vpop.f32.mrb[82].mxu1  ;;  %v2969_v14 = vadd.f32 %v8766_v9, %v12478_v63  ;;  %v9832_v24 = vld [vmem:[%s15721_s3 + $0x3c8] sm:$0xff]  }
 0x4d9   :  { %v8817_v4 = vpop.f32.mrb[83].mxu1  ;;  %8883 = vmatprep.subr.bf16.mxu1 %v9832_v24 }
 0x4da   :  { %v8818_v22 = vadd.f32 %v8817_v4, %v8816_v18  ;;  %v12482_v25 = vadd.f32 %v8815_v27, %v2950_v50  ;;  %v8767_v54 = vpop.f32.mrb[92].mxu0  ;;  %v9833_v50 = vld [vmem:[%s15721_s3 + $0x388] sm:$0xff]  }
 0x4db   :  { %v8768_v28 = vpop.f32.mrb[93].mxu0  ;;  %8884 = vmatpush3.bf16.msra.mxu1 %v9833_v50 }
 0x4dc   :  { %v12493_v34 = vadd.f32 %v8818_v22, %v2953_v29  ;;  %v8769_v49 = vadd.f32 %v8768_v28, %v8767_v54  ;;  %v8770_v33 = vpop.f32.mrb[94].mxu0  ;;  %8885 = vmatprep.subr.bf16.mxu1 %v9834_v30 }
 0x4dd   :  { %v8771_v35 = vpop.f32.mrb[95].mxu0 }
 0x4de   :  { %v8819_v5 = vpop.f32.mrb[84].mxu1  ;;  %v8772_v10 = vadd.f32 %v8771_v35, %v8770_v33  ;;  %v2974_v1 = vadd.f32 %v8769_v49, %v12478_v63 }
 0x4df   :  { %v8820_v43 = vpop.f32.mrb[85].mxu1  ;;  %8886 = vmatpush3.bf16.msra.mxu1 %v9836_v51 }
 0x4e0   :  { %v8821_v42 = vadd.f32 %v8820_v43, %v8819_v5  ;;  %v8822_v6 = vpop.f32.mrb[86].mxu1  ;;  %v2977_v9 = vadd.f32 %v8772_v10, %v12478_v63  ;;  %8887 = vmatprep.subr.bf16.mxu1 %v9840_v21 }
 0x4e1   :  { %v8823_v61 = vpop.f32.mrb[87].mxu1 }
 0x4e2   :  { %v8824_v8 = vadd.f32 %v8823_v61, %v8822_v6  ;;  %v12518_v38 = vadd.f32 %v8821_v42, %v2958_v17  ;;  %v8773_v15 = vpop.f32.mrb[96].mxu0 }
 0x4e3   :  { %v8774_v39 = vpop.f32.mrb[97].mxu0  ;;  %8888 = vmatpush3.bf16.msra.mxu1 %v9842_v53 }
 0x4e4   :  { %v12526_v37 = vadd.f32 %v8824_v8, %v2961_v57  ;;  %v8775_v20 = vadd.f32 %v8774_v39, %v8773_v15  ;;  %v8776_v62 = vpop.f32.mrb[98].mxu0 }
 0x4e5   :  { %v8777_v2 = vpop.f32.mrb[99].mxu0 }
 0x4e6   :  { %v8825_v13 = vpop.f32.mrb[88].mxu1  ;;  %v8778_v31 = vadd.f32 %v8777_v2, %v8776_v62  ;;  %v2982_v28 = vadd.f32 %v8775_v20, %v12478_v63 }
 0x4e7   :  { %v8826_v52 = vpop.f32.mrb[89].mxu1 }
 0x4e8   :  { %v8827_v47 = vadd.f32 %v8826_v52, %v8825_v13  ;;  %v8828_v36 = vpop.f32.mrb[90].mxu1  ;;  %v2985_v57 = vadd.f32 %v8778_v31, %v12478_v63 }
 0x4e9   :  { %v8829_v41 = vpop.f32.mrb[91].mxu1 }
 0x4ea   :  { %v8830_v19 = vadd.f32 %v8829_v41, %v8828_v36  ;;  %v12542_v3 = vadd.f32 %v8827_v47, %v2966_v32  ;;  %v8779_v18 = vpop.f32.mrb[100].mxu0 }
 0x4eb   :  { %v8780_v29 = vpop.f32.mrb[101].mxu0 }
 0x4ec   :  { %v12547_v46 = vadd.f32 %v8830_v19, %v2969_v14  ;;  %v8781_v40 = vadd.f32 %v8780_v29, %v8779_v18  ;;  %v8782_v23 = vpop.f32.mrb[102].mxu0 }
 0x4ed   :  { %v8783_v5 = vpop.f32.mrb[103].mxu0 }
 0x4ee   :  { %v8831_v27 = vpop.f32.mrb[92].mxu1  ;;  %v8784_v54 = vadd.f32 %v8783_v5, %v8782_v23  ;;  %v2990_v55 = vadd.f32 %v8781_v40, %v12478_v63  ;;  %v15885_v40 = vld [vmem:[#allocation9_spill] sm:$0xff]  ;;  %v15886_v5 = vld [vmem:[#allocation8_spill] sm:$0xff] }
 0x4ef   :  { %v8832_v0 = vpop.f32.mrb[93].mxu1 }
 0x4f0   :  { %v8833_v4 = vadd.f32 %v8832_v0, %v8831_v27  ;;  %v8834_v22 = vpop.f32.mrb[94].mxu1  ;;  %v2993_v20 = vadd.f32 %v8784_v54, %v12478_v63  ;;  %v15887_v54 = vld [vmem:[#allocation11_spill] sm:$0xff] }
 0x4f1   :  { %v8835_v44 = vpop.f32.mrb[95].mxu1 }
 0x4f2   :  { %v8836_v7 = vadd.f32 %v8835_v44, %v8834_v22  ;;  %v12560_v16 = vadd.f32 %v8833_v4, %v2974_v1  ;;  %v8785_v17 = vpop.f32.mrb[104].mxu0 }
 0x4f3   :  { %v8786_v49 = vpop.f32.mrb[105].mxu0 }
 0x4f4   :  { %v12565_v43 = vadd.f32 %v8836_v7, %v2977_v9  ;;  %v8787_v61 = vadd.f32 %v8786_v49, %v8785_v17  ;;  %v8788_v12 = vpop.f32.mrb[106].mxu0 }
 0x4f5   :  { %v8789_v35 = vpop.f32.mrb[107].mxu0 }
 0x4f6   :  { %v8837_v59 = vpop.f32.mrb[96].mxu1  ;;  %v8790_v56 = vadd.f32 %v8789_v35, %v8788_v12  ;;  %v2998_v50 = vadd.f32 %v8787_v61, %v12478_v63 }
 0x4f7   :  { %v8838_v42 = vpop.f32.mrb[97].mxu1 }
 0x4f8   :  { %v8839_v6 = vadd.f32 %v8838_v42, %v8837_v59  ;;  %v8840_v33 = vpop.f32.mrb[98].mxu1  ;;  %v3001_v1 = vadd.f32 %v8790_v56, %v12478_v63  ;;  %v15888_v42 = vld [vmem:[#allocation10_spill] sm:$0xff] }
 0x4f9   :  { %v8841_v45 = vpop.f32.mrb[99].mxu1 }
 0x4fa   :  { %v8842_v8 = vadd.f32 %v8841_v45, %v8840_v33  ;;  %v12572_v60 = vadd.f32 %v8839_v6, %v2982_v28  ;;  %v8791_v26 = vpop.f32.mrb[108].mxu0 }
 0x4fb   :  { %v8792_v52 = vpop.f32.mrb[109].mxu0 }
 0x4fc   :  { %v12574_v10 = vadd.f32 %v8842_v8, %v2985_v57  ;;  %v8793_v47 = vadd.f32 %v8792_v52, %v8791_v26  ;;  %v8794_v39 = vpop.f32.mrb[110].mxu0 }
 0x4fd   :  { %v8795_v41 = vpop.f32.mrb[111].mxu0 }
 0x4fe   :  { %v8843_v48 = vpop.f32.mrb[100].mxu1  ;;  %v8796_v14 = vadd.f32 %v8795_v41, %v8794_v39  ;;  %v3006_v49 = vadd.f32 %v8793_v47, %v12478_v63 }
 0x4ff   :  { %v8844_v13 = vpop.f32.mrb[101].mxu1 }
 0x500   :  { %v8845_v15 = vadd.f32 %v8844_v13, %v8843_v48  ;;  %v8846_v32 = vpop.f32.mrb[102].mxu1 }
 0x501   :  { %v8847_v36 = vpop.f32.mrb[103].mxu1 }
 0x502   :  { %v8848_v62 = vadd.f32 %v8847_v36, %v8846_v32  ;;  %v12578_v58 = vadd.f32 %v8845_v15, %v2990_v55  ;;  %v9500_v31 = vpop.f32.mrb[112].mxu0  ;;  %v15893_v32 = vld [vmem:[#allocation13_spill] sm:$0xff] }
 0x503   :  { %v3152_v30 = vadd.f32 %v9500_v31, %v12518_v38  ;;  %v3143_v0 = vpop.f32.mrb[113].mxu0 }
 0x504   :  { %v12580_v19 = vadd.f32 %v8848_v62, %v2993_v20  ;;  %v3144_v4 = vadd.f32 %v3143_v0, %v12482_v25  ;;  %v9501_v22 = vpop.f32.mrb[114].mxu0 }
 0x505   :  { %v3208_v23 = vadd.f32 %v3152_v30, %v15885_v40  ;;  %v3155_v51 = vadd.f32 %v9501_v22, %v12526_v37  ;;  %v3146_v9 = vpop.f32.mrb[115].mxu0  ;;  %v15896_v30 = vld [vmem:[#allocation15_spill] sm:$0xff] }
 0x506   :  { %v8849_v2 = vpop.f32.mrb[104].mxu1  ;;  %v3206_v21 = vadd.f32 %v3144_v4, %v15886_v5  ;;  %v3147_v38 = vadd.f32 %v3146_v9, %v12493_v34  ;;  %v3009_v34 = vadd.f32 %v8796_v14, %v12478_v63 }
 0x507   :  { %v8850_v24 = vpop.f32.mrb[105].mxu1  ;;  %v3209_v53 = vadd.f32 %v3155_v51, %v15887_v54  ;;  %v3240_v17 = vmul.f32 0.01, %v3208_v23  ;;  %vm3224_vm10 = vcmp.gt.f32.partialorder %v3208_v23, 0.0 }
 0x508   :  { %v8851_v27 = vadd.f32 %v8850_v24, %v8849_v2  ;;  %v8852_v18 = vpop.f32.mrb[106].mxu1  ;;  %vm3222_vm9 = vcmp.gt.f32.partialorder %v3206_v21, 0.0  ;;  %v3238_v25 = vmul.f32 0.01, %v3206_v21  ;;  %v3207_v28 = vadd.f32 %v3147_v38, %v15888_v42  ;;  %v15895_v24 = vld [vmem:[#allocation14_spill] sm:$0xff] }
 0x509   :  { %v8853_v29 = vpop.f32.mrb[107].mxu1  ;;  %vm3225_vm11 = vcmp.gt.f32.partialorder %v3209_v53, 0.0  ;;  %v3241_v6 = vmul.f32 0.01, %v3209_v53  ;;  %v12601_v48 = vsel %vm3224_vm10, %v3208_v23, %v3240_v17 }
 0x50a   :  { %v8854_v44 = vadd.f32 %v8853_v29, %v8852_v18  ;;  %v12588_v7 = vadd.f32 %v8851_v27, %v2998_v50  ;;  %vm3223_vm12 = vcmp.gt.f32.partialorder %v3207_v28, 0.0  ;;  %v3239_v33 = vmul.f32 0.01, %v3207_v28  ;;  %v9504_v12 = vpop.f32.mrb[116].mxu0  ;;  %15890 = vst [vmem:[#allocation9_spill] sm:$0xff] %v12601_v48 }
 0x50b   :  { %v12598_v45 = vsel %vm3222_vm9, %v3206_v21, %v3238_v25  ;;  %v3168_v8 = vadd.f32 %v9504_v12, %v12560_v16  ;;  %v3159_v56 = vpop.f32.mrb[117].mxu0  ;;  %v12603_v26 = vsel %vm3225_vm11, %v3209_v53, %v3241_v6  ;;  %v15894_v16 = vld [vmem:[#allocation12_spill] sm:$0xff]  ;;  %v3272_v50 = vrot.slane %v12601_v48, 7  ;;  %v15903_v12 = vld [vmem:[#allocation17_spill] sm:$0xff] }
 0x50c   :  { %v12593_v59 = vadd.f32 %v8854_v44, %v3001_v1  ;;  %15889 = vst [vmem:[#allocation24_spill] sm:$0xff] %v12598_v45  ;;  %15891 = vst [vmem:[#allocation8_spill] sm:$0xff] %v12603_v26  ;;  %v12605_v13 = vsel %vm3223_vm12, %v3207_v28, %v3239_v33  ;;  %v3160_v55 = vadd.f32 %v3159_v56, %v12542_v3  ;;  %v9505_v52 = vpop.f32.mrb[118].mxu0  ;;  %v3270_v14 = vrot.slane %v12598_v45, 7 }
 0x50d   :  { %15892 = vst [vmem:[#allocation11_spill] sm:$0xff] %v12605_v13  ;;  %v3212_v47 = vadd.f32 %v3168_v8, %v15893_v32  ;;  %v3171_v39 = vadd.f32 %v9505_v52, %v12565_v43  ;;  %v3162_v36 = vpop.f32.mrb[119].mxu0  ;;  %v3271_v2 = vrot.slane %v12605_v13, 7  ;;  %v3273_v0 = vrot.slane %v12603_v26, 7  ;;  %v9844_v52 = vld [vmem:[%s15721_s3 + $0x438] sm:$0xff]  }
 0x50e   :  { %v8855_v37 = vpop.f32.mrb[108].mxu1  ;;  %v3210_v62 = vadd.f32 %v3160_v55, %v15894_v16  ;;  %v3163_v41 = vadd.f32 %v3162_v36, %v12547_v46  ;;  %8943 = vmatprep.subr.bf16.mxu0 %v9844_v52 }
 0x50f   :  { %v8856_v61 = vpop.f32.mrb[109].mxu1  ;;  %v3213_v31 = vadd.f32 %v3171_v39, %v15895_v24  ;;  %v12621_v43 = vsel %vm81_vm0, %v3270_v14, %v3271_v2  ;;  %v3244_v46 = vmul.f32 0.01, %v3212_v47  ;;  %v12628_v22 = vsel %vm81_vm0, %v3271_v2, %v3272_v50 }
 0x510   :  { %v8857_v57 = vadd.f32 %v8856_v61, %v8855_v37  ;;  %v8858_v35 = vpop.f32.mrb[110].mxu1  ;;  %vm3226_vm13 = vcmp.gt.f32.partialorder %v3210_v62, 0.0  ;;  %v3242_v27 = vmul.f32 0.01, %v3210_v62  ;;  %v3211_v18 = vadd.f32 %v3163_v41, %v15896_v30 }
 0x511   :  { %v8859_v15 = vpop.f32.mrb[111].mxu1  ;;  %vm3228_vm15 = vcmp.gt.f32.partialorder %v3212_v47, 0.0  ;;  %v3245_v40 = vmul.f32 0.01, %v3213_v31  ;;  %vm3229_vm3 = vcmp.gt.f32.partialorder %v3213_v31, 0.0 }
 0x512   :  { %v8860_v63 = vadd.f32 %v8859_v15, %v8858_v35  ;;  %v3103_v20 = vadd.f32 %v8857_v57, %v3006_v49  ;;  %v12624_v1 = vsel %vm3226_vm13, %v3210_v62, %v3242_v27  ;;  %vm3227_vm14 = vcmp.gt.f32.partialorder %v3211_v18, 0.0  ;;  %v9508_v29 = vpop.f32.mrb[120].mxu0  ;;  %v15902_v49 = vld [vmem:[#allocation18_spill] sm:$0xff]  ;;  %v15905_v35 = vld [vmem:[#allocation19_spill] sm:$0xff] }
 0x513   :  { %15897 = vst [vmem:[#allocation10_spill] sm:$0xff] %v12624_v1  ;;  %v3243_v4 = vmul.f32 0.01, %v3211_v18  ;;  %v3184_v23 = vadd.f32 %v9508_v29, %v12578_v58  ;;  %v3175_v44 = vpop.f32.mrb[121].mxu0  ;;  %v3274_v38 = vrot.slane %v12624_v1, 7  ;;  %v12639_v25 = vsel %vm3228_vm15, %v3212_v47, %v3244_v46  ;;  %v15900_v58 = vld [vmem:[#allocation16_spill] sm:$0xff] }
 0x514   :  { %v3106_v3 = vadd.f32 %v8860_v63, %v3009_v34  ;;  %v3176_v5 = vadd.f32 %v3175_v44, %v12572_v60  ;;  %v9509_v21 = vpop.f32.mrb[122].mxu0  ;;  %15899 = vst [vmem:[#allocation12_spill] sm:$0xff] %v12639_v25  ;;  %v12647_v37 = vsel %vm3229_vm3, %v3213_v31, %v3245_v40  ;;  %v12651_v60 = vsel %vm81_vm0, %v3272_v50, %v3273_v0  ;;  %v9845_v31 = vld [vmem:[%s15721_s3 + $0x3f8] sm:$0xff]   ;;  %v15906_v50 = vld [vmem:[#allocation20_spill] sm:$0xff] }
 0x515   :  { %v12633_v9 = vsel %vm3227_vm14, %v3211_v18, %v3243_v4  ;;  %v3187_v54 = vadd.f32 %v9509_v21, %v12580_v19  ;;  %v3178_v53 = vpop.f32.mrb[123].mxu0  ;;  %v12645_v6 = vsel %vm81_vm0, %v3273_v0, %v3274_v38  ;;  %15901 = vst [vmem:[#allocation14_spill] sm:$0xff] %v12647_v37  ;;  %v3216_v34 = vadd.f32 %v3184_v23, %v15903_v12  ;;  %v15908_v0 = vld [vmem:[#allocation21_spill] sm:$0xff]  ;;  %v9846_v29 = vld [vmem:[%s15721_s3 + $0x440] sm:$0xff]   ;;  %v15909_v23 = vld [vmem:[#allocation22_spill] sm:$0xff] }
 0x516   :  { %15898 = vst [vmem:[#allocation13_spill] sm:$0xff] %v12633_v9  ;;  %v3275_v17 = vrot.slane %v12633_v9, 7  ;;  %v3214_v42 = vadd.f32 %v3176_v5, %v15900_v58  ;;  %v3179_v28 = vadd.f32 %v3178_v53, %v12574_v10  ;;  %v3276_v57 = vrot.slane %v12639_v25, 7  ;;  %8944 = vmatpush3.bf16.msra.mxu0 %v9845_v31 }
 0x517   :  { %v3217_v56 = vadd.f32 %v3187_v54, %v15905_v35  ;;  %v3277_v63 = vrot.slane %v12647_v37, 7  ;;  %vm3232_vm6 = vcmp.gt.f32.partialorder %v3216_v34, 0.0  ;;  %v3248_v2 = vmul.f32 0.01, %v3216_v34  ;;  %8945 = vmatprep.subr.bf16.mxu0 %v9846_v29 }
 0x518   :  { %vm3230_vm4 = vcmp.gt.f32.partialorder %v3214_v42, 0.0  ;;  %v3246_v19 = vmul.f32 0.01, %v3214_v42  ;;  %v3215_v33 = vadd.f32 %v3179_v28, %v15902_v49  ;;  %v12659_v10 = vsel %vm81_vm0, %v3274_v38, %v3275_v17  ;;  %v15910_v38 = vld [vmem:[#allocation23_spill] sm:$0xff] }
 0x519   :  { %v12671_v39 = vsel %vm81_vm0, %v3275_v17, %v3276_v57  ;;  %vm3233_vm7 = vcmp.gt.f32.partialorder %v3217_v56, 0.0  ;;  %v3249_v18 = vmul.f32 0.01, %v3217_v56  ;;  %v3303_v21 = vrot.slane %v12605_v13, 1  ;;  %v9848_v17 = vld [vmem:[%s15721_s3 + $0x400] sm:$0xff]  }
 0x51a   :  { %v12662_v8 = vsel %vm3230_vm4, %v3214_v42, %v3246_v19  ;;  %v3247_v55 = vmul.f32 0.01, %v3215_v33  ;;  %v9512_v15 = vpop.f32.mrb[124].mxu0  ;;  %vm3231_vm5 = vcmp.gt.f32.partialorder %v3215_v33, 0.0  ;;  %v3304_v28 = vrot.slane %v12601_v48, 1  ;;  %8946 = vmatpush3.bf16.msra.mxu0 %v9848_v17 }
 0x51b   :  { %15904 = vst [vmem:[#allocation15_spill] sm:$0xff] %v12662_v8  ;;  %v3200_v32 = vadd.f32 %v9512_v15, %v3103_v20  ;;  %v3191_v47 = vpop.f32.mrb[125].mxu0  ;;  %v3278_v36 = vrot.slane %v12662_v8, 7  ;;  %v12713_v19 = vsel %vm3232_vm6, %v3216_v34, %v3248_v2  ;;  %v12716_v49 = vsel %vm3233_vm7, %v3217_v56, %v3249_v18 }
 0x51c   :  { %v3192_v16 = vadd.f32 %v3191_v47, %v12588_v7  ;;  %v9513_v62 = vpop.f32.mrb[126].mxu0  ;;  %v12686_v46 = vsel %vm3231_vm5, %v3215_v33, %v3247_v55  ;;  %15911 = vst [vmem:[#allocation18_spill] sm:$0xff] %v12713_v19  ;;  %15912 = vst [vmem:[#allocation17_spill] sm:$0xff] %v12716_v49  ;;  %v3305_v12 = vrot.slane %v12603_v26, 1  ;;  %v12734_v56 = vsel %vm114_vm1, %v3303_v21, %v3304_v28  ;;  %v9850_v47 = vld [vmem:[%s15721_s3 + $0x408] sm:$0xff]  }
 0x51d   :  { %v3203_v20 = vadd.f32 %v9513_v62, %v3106_v3  ;;  %v3194_v24 = vpop.f32.mrb[127].mxu0  ;;  %v12684_v7 = vsel %vm81_vm0, %v3277_v63, %v3278_v36  ;;  %15907 = vst [vmem:[#allocation16_spill] sm:$0xff] %v12686_v46  ;;  %v12691_v3 = vsel %vm81_vm0, %v3276_v57, %v3277_v63  ;;  %v3220_v54 = vadd.f32 %v3200_v32, %v15910_v38  ;;  %v9849_v57 = vld [vmem:[%s15721_s3 + $0x448] sm:$0xff]  }
 0x51e   :  { %v3218_v27 = vadd.f32 %v3192_v16, %v15906_v50  ;;  %v3195_v30 = vadd.f32 %v3194_v24, %v12593_v59  ;;  %v12699_v59 = vld [vmem:[%s15721_s3 + $0x460] sm:$0xff]   ;;  %v3279_v42 = vrot.slane %v12686_v46, 7  ;;  %v12741_v32 = vsel %vm114_vm1, %v3304_v28, %v3305_v12  ;;  %8947 = vmatprep.subr.bf16.mxu0 %v9849_v57 }
 0x51f   :  { %v3221_v4 = vadd.f32 %v3203_v20, %v15908_v0  ;;  %9514 = vmatprep.subr.bf16.mxu1 %v12699_v59  ;;  %vm3236_vm11 = vcmp.gt.f32.partialorder %v3220_v54, 0.0  ;;  %v3252_v15 = vmul.f32 0.01, %v3220_v54  ;;  %v3306_v62 = vrot.slane %v12624_v1, 1  ;;  %v9851_v20 = vld [vmem:[%s15721_s3 + $0x450] sm:$0xff]   ;;  %8948 = vmatpush3.bf16.msra.mxu0 %v9850_v47 }
 0x520   :  { %v3250_v40 = vmul.f32 0.01, %v3218_v27  ;;  %v3219_v44 = vadd.f32 %v3195_v30, %v15909_v23  ;;  %vm3234_vm8 = vcmp.gt.f32.partialorder %v3218_v27, 0.0  ;;  %v12755_v16 = vsel %vm81_vm0, %v3278_v36, %v3279_v42  ;;  %8949 = vmatprep.subr.bf16.mxu0 %v9851_v20  ;;  %v9852_v23 = vld [vmem:[%s15721_s3 + $0x410] sm:$0xff]  }
 0x521   :  { %vm3237_vm9 = vcmp.gt.f32.partialorder %v3221_v4, 0.0  ;;  %v3253_v53 = vmul.f32 0.01, %v3221_v4  ;;  %15916 = vst [vmem:[#allocation22_spill] sm:$0xff] %v12755_v16  ;;  %v12760_v2 = vpack.c.bf16 %v12741_v32, %v12734_v56  ;;  %v3281_v31 = vrot.slane %v12716_v49, 7 }
 0x522   :  { %vm3235_vm10 = vcmp.gt.f32.partialorder %v3219_v44, 0.0  ;;  %v3251_v58 = vmul.f32 0.01, %v3219_v44  ;;  %v12725_v35 = vsel %vm3234_vm8, %v3218_v27, %v3250_v40  ;;  %v3343_v50 = vpack.c.bf16 %v12601_v48, %v12605_v13 }
 0x523   :  { %v12718_v33 = vsel %vm3237_vm9, %v3221_v4, %v3253_v53  ;;  %15914 = vst [vmem:[#allocation20_spill] sm:$0xff] %v12725_v35  ;;  %v3282_v36 = vrot.slane %v12725_v35, 7  ;;  %v3307_v30 = vrot.slane %v12633_v9, 1  ;;  %v3309_v18 = vrot.slane %v12647_v37, 1  ;;  %8950 = vmatpush3.bf16.msra.mxu0 %v9852_v23 }
 0x524   :  { %15913 = vst [vmem:[#allocation19_spill] sm:$0xff] %v12718_v33  ;;  %v3342_v55 = vpack.c.bf16 %v12598_v45, %v12718_v33  ;;  %v3285_v34 = vrot.slane %v12718_v33, 7  ;;  %v12737_v52 = vsel %vm3235_vm10, %v3219_v44, %v3251_v58  ;;  %v3308_v40 = vrot.slane %v12639_v25, 1  ;;  %v9853_v58 = vld [vmem:[%s15721_s3 + $0x458] sm:$0xff]  }
 0x525   :  { %15915 = vst [vmem:[#allocation21_spill] sm:$0xff] %v12737_v52  ;;  %v3283_v27 = vrot.slane %v12737_v52, 7  ;;  %v12786_v29 = vsel %vm81_vm0, %v3281_v31, %v3282_v36  ;;  %v12793_v44 = vsel %vm3236_vm11, %v3220_v54, %v3252_v15  ;;  %v3310_v17 = vrot.slane %v12662_v8, 1  ;;  %8951 = vmatprep.subr.bf16.mxu0 %v9853_v58 }
 0x526   :  { %3390 = vrot.lane.b32.xlu1 %v3342_v55, %s10249_s19  ;;  %v12751_v63 = vsel %vm81_vm0, %v3285_v34, %v3270_v14  ;;  %v3280_v14 = vrot.slane %v12713_v19, 7  ;;  %15917 = vst [vmem:[#allocation23_spill] sm:$0xff] %v12793_v44  ;;  %v3329_v54 = vsel %vm114_vm1, %v3305_v12, %v3306_v62  ;;  %v12810_v28 = vsel %vm114_vm1, %v3307_v30, %v3308_v40 }
 0x527   :  { %v3358_v24 = vpack.c.bf16 %v12621_v43, %v12751_v63  ;;  %v3328_v57 = vsel %vm114_vm1, %v3306_v62, %v3307_v30  ;;  %v3344_v55 = vpack.c.bf16 %v12624_v1, %v12603_v26  ;;  %v3326_v47 = vsel %vm114_vm1, %v3308_v40, %v3309_v18 }
 0x528   :  { %v12778_v0 = vsel %vm81_vm0, %v3280_v14, %v3281_v31  ;;  %v12782_v4 = vsel %vm81_vm0, %v3279_v42, %v3280_v14  ;;  %v3359_v42 = vpack.c.bf16 %v12651_v60, %v12628_v22  ;;  %v12816_v15 = vpack.c.bf16 %v3328_v57, %v3329_v54  ;;  %v9854_v14 = vld [vmem:[%s15721_s3 + $0x418] sm:$0xff]  }
 0x529   :  { %3414 = vrot.lane.b32.xlu0 %v3358_v24, %s10249_s19  ;;  %v3302_v12 = vrot.slane %v12598_v45, 1  ;;  %v12824_v20 = vsel %vm81_vm0, %v3282_v36, %v3283_v27  ;;  %v12827_v62 = vpack.c.bf16 %v3326_v47, %v12810_v28  ;;  %v3284_v24 = vrot.slane %v12793_v44, 7  ;;  %8952 = vmatpush3.bf16.msra.mxu0 %v9854_v14 }
 0x52a   :  { %3392 = vrot.lane.b32.xlu1 %v3343_v50, %s10249_s19  ;;  %v3360_v31 = vpack.c.bf16 %v12659_v10, %v12645_v6  ;;  %v3345_v50 = vpack.c.bf16 %v12639_v25, %v12633_v9  ;;  %v3325_v36 = vsel %vm114_vm1, %v3309_v18, %v3310_v17  ;;  %v3313_v30 = vrot.slane %v12716_v49, 1 }
 0x52b   :  { %v12843_v40 = vsel %vm81_vm0, %v3284_v24, %v3285_v34  ;;  %v12847_v23 = vsel %vm81_vm0, %v3283_v27, %v3284_v24  ;;  %v3312_v58 = vrot.slane %v12713_v19, 1  ;;  %v3314_v53 = vrot.slane %v12725_v35, 1 }
 0x52c   :  { %v3316_v34 = vrot.slane %v12793_v44, 1  ;;  %v3361_v18 = vpack.c.bf16 %v12691_v3, %v12671_v39 }
 0x52d   :  { %3416 = vrot.lane.b32.xlu0 %v3359_v42, %s10249_s19  ;;  %v3311_v42 = vrot.slane %v12686_v46, 1  ;;  %v3322_v27 = vsel %vm114_vm1, %v3312_v58, %v3313_v30  ;;  %v3321_v61 = vsel %vm114_vm1, %v3313_v30, %v3314_v53  ;;  %v3346_v30 = vpack.c.bf16 %v12662_v8, %v12647_v37 }
 0x52e   :  { %3394 = vrot.lane.b32.xlu1 %v3344_v55, %s10249_s19  ;;  %v3334_v55 = vpack.c.bf16 %v12751_v63, %v12843_v40  ;;  %v3317_v63 = vrot.slane %v12718_v33, 1 }
 0x52f   :  { %v3323_v24 = vsel %vm114_vm1, %v3311_v42, %v3312_v58  ;;  %v3324_v14 = vsel %vm114_vm1, %v3310_v17, %v3311_v42  ;;  %v3362_v42 = vpack.c.bf16 %v12755_v16, %v12684_v7  ;;  %v3375_v16 = vpack.c.bf16 %v3329_v54, %v12741_v32 }
 0x530   :  { %v12868_v38 = vpack.c.bf16 %v3324_v14, %v3325_v36  ;;  %v12870_v5 = vpack.c.bf16 %v3322_v27, %v3323_v24  ;;  %v3318_v58 = vsel %vm114_vm1, %v3316_v34, %v3317_v63  ;;  %v3333_v17 = vsel %vm114_vm1, %v3317_v63, %v3302_v12 }
 0x531   :  { %3418 = vrot.lane.b32.xlu0 %v3360_v31, %s10249_s19  ;;  %v3332_v31 = vsel %vm114_vm1, %v3302_v12, %v3303_v21  ;;  %v3377_v32 = vpack.c.bf16 %v3325_v36, %v3326_v47  ;;  %v3349_v54 = vpack.c.bf16 %v12793_v44, %v12737_v52 }
 0x532   :  { %3396 = vrot.lane.b32.xlu1 %v3345_v50, %s10249_s19  ;;  %v3315_v50 = vrot.slane %v12737_v52, 1  ;;  %v12883_v41 = vpack.c.bf16 %v3332_v31, %v3333_v17  ;;  %v3374_v33 = vpack.c.bf16 %v12734_v56, %v3332_v31  ;;  %v3364_v56 = vpack.c.bf16 %v12824_v20, %v12786_v29 }
 0x533   :  { %v3379_v31 = vpack.c.bf16 %v3321_v61, %v3322_v27  ;;  %v10050_v27 = vld [vmem:[%s15720_s2 + $0x4] ss:$20 sps:$4 sm:$0xff]  }
 0x534   :  { %v3319_v21 = vsel %vm114_vm1, %v3315_v50, %v3316_v34  ;;  %v3320_v51 = vsel %vm114_vm1, %v3314_v53, %v3315_v50  ;;  %v3347_v53 = vpack.c.bf16 %v12713_v19, %v12686_v46  ;;  %v3365_v34 = vpack.c.bf16 %v12843_v40, %v12847_v23 }
 0x535   :  { %3420 = vrot.lane.b32.xlu0 %v3361_v18, %s10249_s19  ;;  %v12893_v12 = vpack.c.bf16 %v3320_v51, %v3321_v61  ;;  %v12895_v63 = vpack.c.bf16 %v3318_v58, %v3319_v21  ;;  %v3363_v18 = vpack.c.bf16 %v12778_v0, %v12782_v4  ;;  %v3380_v47 = vpack.c.bf16 %v3319_v21, %v3320_v51 }
 0x536   :  { %3422 = vrot.lane.b32.xlu1 %v3362_v42, %s10249_s19 }
 0x539   :  { %3438 = vrot.lane.b32.xlu0 %v3374_v33, %s10249_s19  ;;  %v3376_v33 = vpack.c.bf16 %v12810_v28, %v3328_v57  ;;  %v3378_v28 = vpack.c.bf16 %v3323_v24, %v3324_v14  ;;  %v3381_v57 = vpack.c.bf16 %v3333_v17, %v3318_v58  ;;  %v15918_v14 = vpack.c.bf16 %v12628_v22, %v12621_v43  ;;  %v10052_v17 = vld [vmem:[%s15720_s2 + $0xc] ss:$20 sps:$4 sm:$0xff]  }
 0x53a   :  { %3440 = vrot.lane.b32.xlu1 %v3375_v16, %s10249_s19  ;;  %v3348_v16 = vpack.c.bf16 %v12725_v35, %v12716_v49 }
 0x53d   :  { %3398 = vrot.lane.b32.xlu0 %v3346_v30, %s10249_s19  ;;  %v9855_v30 = vld [vmem:[%s15721_s3 + $0x468] sm:$0xff]  }
 0x53e   :  { %3400 = vrot.lane.b32.xlu1 %v3347_v53, %s10249_s19 }
 0x541   :  { %3424 = vrot.lane.b32.xlu0 %v3363_v18, %s10249_s19  ;;  %v10053_v18 = vld [vmem:[%s15720_s2 + $0x2c] ss:$20 sps:$4 sm:$0xff]  }
 0x542   :  { %3426 = vrot.lane.b32.xlu1 %v3364_v56, %s10249_s19 }
 0x545   :  { %3442 = vrot.lane.b32.xlu0 %v3376_v33, %s10249_s19  ;;  %v9856_v33 = vld [vmem:[%s15721_s3 + $0x470] sm:$0xff]  }
 0x546   :  { %3444 = vrot.lane.b32.xlu1 %v3377_v32, %s10249_s19 }
 0x549   :  { %3402 = vrot.lane.b32.xlu0 %v3348_v16, %s10249_s19 }
 0x54a   :  { %3404 = vrot.lane.b32.xlu1 %v3349_v54, %s10249_s19 }
 0x54d   :  { %3428 = vrot.lane.b32.xlu0 %v3365_v34, %s10249_s19  ;;  %v10054_v34 = vld [vmem:[%s15720_s2 + $0x28] ss:$20 sps:$4 sm:$0xff]  }
 0x54e   :  { %3448 = vrot.lane.b32.xlu1 %v3379_v31, %s10249_s19 }
 0x551   :  { %3446 = vrot.lane.b32.xlu0 %v3378_v28, %s10249_s19  ;;  %v10055_v28 = vld [vmem:[%s15720_s2 + $0x54] ss:$20 sps:$4 sm:$0xff]  }
 0x552   :  { %3452 = vrot.lane.b32.xlu1 %v3381_v57, %s10249_s19 }
 0x555   :  { %3450 = vrot.lane.b32.xlu0 %v3380_v47, %s10249_s19 }
 0x598   :  { %v3391_v36 = vpop.permute.xlu1 %3390 }
 0x599   :  { %v12930_v50 = vsel %vm251_vm2, %v3334_v55, %v3391_v36  ;;  %v10051_v55 = vld [vmem:[%s15720_s2] ss:$20 sps:$4 sm:$0xff]  }
 0x59a   :  { %v3550_v58 = vmul.bf16 %v10051_v55, %v12930_v50 }
 0x59b   :  { %v3415_v42 = vpop.permute.xlu0 %3414 }
 0x59c   :  { %v3488_v61 = vsel %vm251_vm2, %v12883_v41, %v3415_v42  ;;  %v3393_v40 = vpop.permute.xlu1 %3392  ;;  %v3366_v42 = vpack.c.bf16 %v12605_v13, %v12598_v45 }
 0x59d   :  { %v3551_v24 = vmul.bf16 %v10050_v27, %v3488_v61  ;;  %v3460_v51 = vsel %vm251_vm2, %v15918_v14, %v3393_v40  ;;  %v15919_v61 = vpack.c.bf16 %v12645_v6, %v12651_v60  ;;  %v10058_v60 = vld [vmem:[%s15720_s2 + $0x50] ss:$20 sps:$4 sm:$0xff]  }
 0x59e   :  { %v3553_v21 = vmul.bf16 %v10052_v17, %v3460_v51  ;;  %v3555_v31 = vmul.bf16 %v10054_v34, %v3460_v51  ;;  %v10056_v51 = vld [vmem:[%s15720_s2 + $0x8] ss:$20 sps:$4 sm:$0xff]  }
 0x59f   :  { %3940 = vmatprep.mubr.bf16.mxu1 %v3551_v24  ;;  %v3417_v53 = vpop.permute.xlu0 %3416  ;;  %v10057_v17 = vld [vmem:[%s15720_s2 + $0x34] ss:$20 sps:$4 sm:$0xff]  }
 0x5a0   :  { %v3492_v43 = vsel %vm251_vm2, %v12760_v2, %v3417_v53  ;;  %v3395_v22 = vpop.permute.xlu1 %3394  ;;  %3941 = vmatmul.mubr.bf16.vlgmr.msra.gmra.mrb[112].mxu1 %v3550_v58  ;;  %4037 = vmatprep.mubr.bf16.mxu0 %v3553_v21 }
 0x5a1   :  { %v3556_v56 = vmul.bf16 %v10053_v18, %v3492_v43  ;;  %9515 = vmatpush3.bf16.msra.mxu1 %v12699_v59  ;;  %v9857_v59 = vld [vmem:[%s15721_s3 + $0x478] sm:$0xff]   ;;  %v3464_v40 = vsel %vm251_vm2, %v15919_v61, %v3395_v22  ;;  %v3367_v22 = vpack.c.bf16 %v12603_v26, %v12601_v48 }
 0x5a2   :  { %9516 = vmatprep.subr.bf16.mxu1 %v9855_v30  ;;  %v3558_v6 = vmul.bf16 %v10057_v17, %v3464_v40  ;;  %v3560_v21 = vmul.bf16 %v10058_v60, %v3464_v40  ;;  %v10065_v17 = vld [vmem:[%s15720_s2 + $0x84] ss:$20 sps:$4 sm:$0xff]   ;;  %v10067_v60 = vld [vmem:[%s15720_s2 + $0xcc] ss:$20 sps:$4 sm:$0xff]  }
 0x5a3   :  { %3948 = vmatprep.mubr.bf16.mxu1 %v3556_v56  ;;  %v3419_v32 = vpop.permute.xlu0 %3418  ;;  %v15920_v56 = vpack.c.bf16 %v12671_v39, %v12659_v10  ;;  %v10062_v10 = vld [vmem:[%s15720_s2 + $0x78] ss:$20 sps:$4 sm:$0xff]  }
 0x5a4   :  { %v3496_v16 = vsel %vm251_vm2, %v12816_v15, %v3419_v32  ;;  %v3397_v54 = vpop.permute.xlu1 %3396 }
 0x5a5   :  { %9517 = vmatpush3.bf16.msra.mxu1 %v9855_v30  ;;  %v3561_v57 = vmul.bf16 %v10055_v28, %v3496_v16  ;;  %v10059_v30 = vld [vmem:[%s15720_s2 + $0x7c] ss:$20 sps:$4 sm:$0xff]  }
 0x5a6   :  { %9518 = vmatprep.subr.bf16.mxu1 %v9856_v33  ;;  %v10061_v28 = vld [vmem:[%s15720_s2 + $0x5c] ss:$20 sps:$4 sm:$0xff]  }
 0x5a7   :  { %v3421_v47 = vpop.permute.xlu0 %3420 }
 0x5a8   :  { %v3423_v36 = vpop.permute.xlu1 %3422  ;;  %3949 = vmatmul.mubr.bf16.gmra.mrb[116].mxu1 %v3555_v31  ;;  %v3500_v24 = vsel %vm251_vm2, %v12827_v62, %v3421_v47  ;;  %v10060_v31 = vld [vmem:[%s15720_s2 + $0x30] ss:$20 sps:$4 sm:$0xff]  }
 0x5a9   :  { %3956 = vmatprep.mubr.bf16.mxu1 %v3561_v57  ;;  %9519 = vmatpush3.bf16.msra.mxu1 %v9856_v33  ;;  %v3566_v53 = vmul.bf16 %v10059_v30, %v3500_v24  ;;  %v3468_v33 = vsel %vm251_vm2, %v15920_v56, %v3397_v54  ;;  %v3504_v34 = vsel %vm251_vm2, %v12868_v38, %v3423_v36  ;;  %v10063_v54 = vld [vmem:[%s15720_s2 + $0xa4] ss:$20 sps:$4 sm:$0xff]  }
 0x5aa   :  { %9520 = vmatprep.subr.bf16.mxu1 %v9857_v59  ;;  %v3563_v57 = vmul.bf16 %v10061_v28, %v3468_v33  ;;  %v3565_v39 = vmul.bf16 %v10062_v10, %v3468_v33  ;;  %v3571_v47 = vmul.bf16 %v10063_v54, %v3504_v34  ;;  %v10068_v34 = vld [vmem:[%s15720_s2 + $0x80] ss:$20 sps:$4 sm:$0xff]   ;;  %v3370_v54 = vpack.c.bf16 %v12686_v46, %v12662_v8 }
 0x5ab   :  { %v3439_v27 = vpop.permute.xlu0 %3438 }
 0x5ac   :  { %v3520_v14 = vsel %vm251_vm2, %v3366_v42, %v3439_v27  ;;  %v3441_v58 = vpop.permute.xlu1 %3440  ;;  %v3368_v42 = vpack.c.bf16 %v12633_v9, %v12624_v1  ;;  %v15921_v27 = vpack.c.bf16 %v12684_v7, %v12691_v3  ;;  %v10066_v7 = vld [vmem:[%s15720_s2 + $0xa0] ss:$20 sps:$4 sm:$0xff]  }
 0x5ad   :  { %v3552_v55 = vmul.bf16 %v10056_v51, %v3520_v14  ;;  %9521 = vmatpush3.bf16.msra.mxu1 %v9857_v59  ;;  %v3524_v18 = vsel %vm251_vm2, %v3367_v22, %v3441_v58 }
 0x5ae   :  { %v3557_v59 = vmul.bf16 %v10060_v31, %v3524_v18  ;;  %v15922_v18 = vld [vmem:[#allocation22_spill] sm:$0xff] }
 0x5af   :  { %v3399_v43 = vpop.permute.xlu0 %3398  ;;  %4038 = vmatmul.mubr.bf16.vlgmr.msra.gmra.mrb[128].mxu0 %v3552_v55  ;;  %v10064_v55 = vld [vmem:[%s15720_s2 + $0x58] ss:$20 sps:$4 sm:$0xff]   ;;  %v15923_v56 = vpack.c.bf16 %v12782_v4, %v15922_v18 }
 0x5b0   :  { %3957 = vmatmul.mubr.bf16.gmra.mrb[120].mxu1 %v3560_v21  ;;  %4045 = vmatprep.mubr.bf16.mxu0 %v3558_v6  ;;  %v3401_v32 = vpop.permute.xlu1 %3400  ;;  %v3472_v24 = vsel %vm251_vm2, %v15921_v27, %v3399_v43  ;;  %v10072_v27 = vld [vmem:[%s15720_s2 + $0xa8] ss:$20 sps:$4 sm:$0xff]  }
 0x5b1   :  { %3964 = vmatprep.mubr.bf16.mxu1 %v3566_v53  ;;  %v3568_v6 = vmul.bf16 %v10065_v17, %v3472_v24  ;;  %v3570_v3 = vmul.bf16 %v10066_v7, %v3472_v24  ;;  %v3369_v53 = vpack.c.bf16 %v12647_v37, %v12639_v25  ;;  %v3476_v33 = vsel %vm251_vm2, %v15923_v56, %v3401_v32  ;;  %v10071_v32 = vld [vmem:[%s15720_s2 + $0xf4] ss:$20 sps:$4 sm:$0xff]  }
 0x5b3   :  { %v3425_v16 = vpop.permute.xlu0 %3424 }
 0x5b4   :  { %v3427_v61 = vpop.permute.xlu1 %3426  ;;  %v3508_v51 = vsel %vm251_vm2, %v12870_v5, %v3425_v16 }
 0x5b5   :  { %v3576_v21 = vmul.bf16 %v10067_v60, %v3508_v51  ;;  %v3512_v16 = vsel %vm251_vm2, %v12893_v12, %v3427_v61  ;;  %v10073_v51 = vld [vmem:[%s15720_s2 + $0xd4] ss:$20 sps:$4 sm:$0xff]  }
 0x5b6   :  { %v3581_v10 = vmul.bf16 %v10071_v32, %v3512_v16  ;;  %v10083_v32 = vld [vmem:[%s15720_s2 + $0x60] ss:$20 sps:$4 sm:$0xff]  }
 0x5b7   :  { %v3443_v36 = vpop.permute.xlu0 %3442  ;;  %4046 = vmatmul.mubr.bf16.gmra.mrb[132].mxu0 %v3557_v59  ;;  %v10069_v59 = vld [vmem:[%s15720_s2 + $0xac] ss:$20 sps:$4 sm:$0xff]  }
 0x5b8   :  { %3965 = vmatmul.mubr.bf16.gmra.mrb[124].mxu1 %v3565_v39  ;;  %4053 = vmatprep.mubr.bf16.mxu0 %v3563_v57  ;;  %v3528_v40 = vsel %vm251_vm2, %v3368_v42, %v3443_v36  ;;  %v3445_v30 = vpop.permute.xlu1 %3444  ;;  %v3573_v28 = vmul.bf16 %v10069_v59, %v3476_v33  ;;  %v10070_v57 = vld [vmem:[%s15720_s2 + $0xc8] ss:$20 sps:$4 sm:$0xff]   ;;  %v15924_v42 = vpack.c.bf16 %v12786_v29, %v12778_v0  ;;  %v10081_v59 = vld [vmem:[%s15720_s2 + $0x38] ss:$20 sps:$4 sm:$0xff]  }
 0x5b9   :  { %3972 = vmatprep.mubr.bf16.mxu1 %v3571_v47  ;;  %v3562_v58 = vmul.bf16 %v10064_v55, %v3528_v40  ;;  %v3532_v22 = vsel %vm251_vm2, %v3369_v53, %v3445_v30  ;;  %v3575_v4 = vmul.bf16 %v10070_v57, %v3476_v33  ;;  %v10075_v29 = vld [vmem:[%s15720_s2 + $0x11c] ss:$20 sps:$4 sm:$0xff]   ;;  %v3372_v33 = vpack.c.bf16 %v12737_v52, %v12725_v35 }
 0x5ba   :  { %v3567_v31 = vmul.bf16 %v10068_v34, %v3532_v22  ;;  %v10077_v53 = vld [vmem:[%s15720_s2 + $0xfc] ss:$20 sps:$4 sm:$0xff]   ;;  %v10078_v22 = vld [vmem:[%s15720_s2 + $0x118] ss:$20 sps:$4 sm:$0xff]  }
 0x5bb   :  { %v3403_v14 = vpop.permute.xlu0 %3402  ;;  %v10080_v34 = vld [vmem:[%s15720_s2 + $0xf8] ss:$20 sps:$4 sm:$0xff]  }
 0x5bc   :  { %v3405_v47 = vpop.permute.xlu1 %3404  ;;  %v3480_v61 = vsel %vm251_vm2, %v15924_v42, %v3403_v14  ;;  %v10086_v42 = vld [vmem:[%s15720_s2 + $0xb0] ss:$20 sps:$4 sm:$0xff]  }
 0x5bd   :  { %v3578_v55 = vmul.bf16 %v10073_v51, %v3480_v61 }
 0x5bf   :  { %4054 = vmatmul.mubr.bf16.gmra.mrb[136].mxu0 %v3562_v58  ;;  %v3429_v43 = vpop.permute.xlu0 %3428  ;;  %v10074_v58 = vld [vmem:[%s15720_s2 + $0xf0] ss:$20 sps:$4 sm:$0xff]  }
 0x5c0   :  { %3973 = vmatmul.mubr.bf16.gmra.mrb[128].mxu1 %v3570_v3  ;;  %4061 = vmatprep.mubr.bf16.mxu0 %v3568_v6  ;;  %v3516_v40 = vsel %vm251_vm2, %v12895_v63, %v3429_v43  ;;  %v3580_v0 = vmul.bf16 %v10074_v58, %v3480_v61  ;;  %v3449_v17 = vpop.permute.xlu1 %3448  ;;  %v3371_v6 = vpack.c.bf16 %v12716_v49, %v12713_v19  ;;  %v9889_v19 = vld [vmem:[%s15721_s3 + $0x578] sm:$0xff]  }
 0x5c1   :  { %3980 = vmatprep.mubr.bf16.mxu1 %v3576_v21  ;;  %v3586_v14 = vmul.bf16 %v10075_v29, %v3516_v40  ;;  %v15925_v3 = vpack.c.bf16 %v12847_v23, %v12824_v20  ;;  %v10076_v21 = vld [vmem:[%s15720_s2 + $0xd0] ss:$20 sps:$4 sm:$0xff]   ;;  %v3574_v61 = vmul.bf16 %v10086_v42, %v12870_v5  ;;  %v10087_v40 = vld [vmem:[%s15720_s2 + $0xd8] ss:$20 sps:$4 sm:$0xff]   ;;  %v10089_v5 = vld [vmem:[%s15720_s2 + $0x128] ss:$20 sps:$4 sm:$0xff]  }
 0x5c2   :  { %v3540_v7 = vsel %vm251_vm2, %v3371_v6, %v3449_v17  ;;  %v10079_v20 = vld [vmem:[%s15720_s2 + $0x10] ss:$20 sps:$4 sm:$0xff]   ;;  %v3589_v51 = vmul.bf16 %v10089_v5, %v12883_v41 }
 0x5c3   :  { %v3447_v39 = vpop.permute.xlu0 %3446  ;;  %v3484_v60 = vsel %vm251_vm2, %v15925_v3, %v3405_v47  ;;  %v3577_v30 = vmul.bf16 %v10076_v21, %v3540_v7  ;;  %v3554_v23 = vmul.bf16 %v10079_v20, %v12760_v2  ;;  %v3559_v2 = vmul.bf16 %v10081_v59, %v12816_v15  ;;  %v13151_v21 = vld [vmem:[%s15722_s4 + $0x3] ss:$0 sm:$0xff] }
 0x5c4   :  { %v3536_v36 = vsel %vm251_vm2, %v3370_v54, %v3447_v39  ;;  %v3583_v43 = vmul.bf16 %v10077_v53, %v3484_v60  ;;  %v3585_v18 = vmul.bf16 %v10078_v22, %v3484_v60  ;;  %v15926_v39 = vld [vmem:[#allocation19_spill] sm:$0xff] }
 0x5c5   :  { %v3572_v24 = vmul.bf16 %v10072_v27, %v3536_v36  ;;  %v3373_v54 = vpack.c.bf16 %v15926_v39, %v12793_v44  ;;  %v10085_v36 = vld [vmem:[%s15720_s2 + $0x88] ss:$20 sps:$4 sm:$0xff]   ;;  %v3579_v27 = vmul.bf16 %v10087_v40, %v12893_v12  ;;  %v9858_v20 = vld [vmem:[%s15721_s3 + $0x4c0] sm:$0xff]  }
 0x5c6   :  { %9013 = vmatprep.subr.bf16.mxu0 %v9858_v20  ;;  %v9875_v40 = vld [vmem:[%s15721_s3 + $0x508] sm:$0xff]  }
 0x5c7   :  { %4062 = vmatmul.mubr.bf16.gmra.mrb[140].mxu0 %v3567_v31  ;;  %v3451_v56 = vpop.permute.xlu0 %3450 }
 0x5c8   :  { %3981 = vmatmul.mubr.bf16.gmra.mrb[132].mxu1 %v3575_v4  ;;  %4069 = vmatprep.mubr.bf16.mxu0 %v3573_v28  ;;  %v3544_v16 = vsel %vm251_vm2, %v3372_v33, %v3451_v56  ;;  %v10082_v28 = vld [vmem:[%s15720_s2 + $0x124] ss:$20 sps:$4 sm:$0xff]   ;;  %v3453_v4 = vpop.permute.xlu1 %3452  ;;  %v9860_v33 = vld [vmem:[%s15721_s3 + $0x4c8] sm:$0xff]  }
 0x5c9   :  { %3988 = vmatprep.mubr.bf16.mxu1 %v3581_v10  ;;  %v3582_v31 = vmul.bf16 %v10080_v34, %v3544_v16  ;;  %v3588_v57 = vmul.bf16 %v10082_v28, %v12930_v50  ;;  %v3564_v10 = vmul.bf16 %v10083_v32, %v12827_v62  ;;  %v3548_v15 = vsel %vm251_vm2, %v3373_v54, %v3453_v4  ;;  %v10084_v50 = vld [vmem:[%s15720_s2 + $0x120] ss:$20 sps:$4 sm:$0xff]   ;;  %v9861_v32 = vld [vmem:[%s15721_s3 + $0x488] sm:$0xff]  }
 0x5ca   :  { %v3587_v47 = vmul.bf16 %v10084_v50, %v3548_v15  ;;  %v3569_v62 = vmul.bf16 %v10085_v36, %v12868_v38  ;;  %v10088_v38 = vld [vmem:[%s15720_s2 + $0x100] ss:$20 sps:$4 sm:$0xff]  }
 0x5cb   :  { %v9862_v54 = vld [vmem:[%s15721_s3 + $0x4d0] sm:$0xff]   ;;  %v9871_v15 = vld [vmem:[%s15721_s3 + $0x540] sm:$0xff]  }
 0x5cc   :  { %v9873_v50 = vld [vmem:[%s15721_s3 + $0x500] sm:$0xff]   ;;  %9077 = vmatprep.subr.bf16.mxu1 %v9871_v15 }
 0x5cf   :  { %4070 = vmatmul.mubr.bf16.gmra.mrb[144].mxu0 %v3572_v24  ;;  %v3584_v24 = vmul.bf16 %v10088_v38, %v12895_v63 }
 0x5d0   :  { %3989 = vmatmul.mubr.bf16.gmra.mrb[136].mxu1 %v3580_v0  ;;  %4077 = vmatprep.mubr.bf16.mxu0 %v3578_v55 }
 0x5d1   :  { %3996 = vmatprep.mubr.bf16.mxu1 %v3586_v14 }
 0x5d7   :  { %4078 = vmatmul.mubr.bf16.gmra.mrb[148].mxu0 %v3577_v30 }
 0x5d8   :  { %3997 = vmatmul.mubr.bf16.gmra.mrb[140].mxu1 %v3585_v18  ;;  %4085 = vmatprep.mubr.bf16.mxu0 %v3583_v43 }
 0x5d9   :  { %9522 = vmatprep.mubr.msk.bf16.mxu1 %vm251_vm2, %v3554_v23  ;;  %v9859_v23 = vld [vmem:[%s15721_s3 + $0x480] sm:$0xff]  }
 0x5da   :  { %9014 = vmatpush3.bf16.msra.mxu0 %v9859_v23 }
 0x5db   :  { %9015 = vmatprep.subr.bf16.mxu0 %v9860_v33  ;;  %v9868_v33 = vld [vmem:[%s15721_s3 + $0x4e8] sm:$0xff]  }
 0x5de   :  { %9016 = vmatpush3.bf16.msra.mxu0 %v9861_v32 }
 0x5df   :  { %4086 = vmatmul.mubr.bf16.gmra.mrb[152].mxu0 %v3582_v31  ;;  %9017 = vmatprep.subr.bf16.mxu0 %v9862_v54 }
 0x5e0   :  { %4093 = vmatprep.mubr.bf16.mxu0 %v3588_v57  ;;  %9523 = vmatmul.mubr.msk.bf16.vlgmr.msra.gmra.mrb[144].mxu1 %vm251_vm2, %v3559_v2 }
 0x5e1   :  { %9526 = vmatprep.mubr.msk.bf16.mxu1 %vm251_vm2, %v3564_v10  ;;  %9078 = vmatpush3.bf16.msra.mxu1 %v9873_v50 }
 0x5e7   :  { %4094 = vmatmul.mubr.bf16.gmra.mrb[156].mxu0 %v3587_v47  ;;  %v9874_v47 = vld [vmem:[%s15721_s3 + $0x548] sm:$0xff]  }
 0x5e8   :  { %9527 = vmatmul.mubr.msk.bf16.gmra.mrb[148].mxu1 %vm251_vm2, %v3569_v62  ;;  %9079 = vmatprep.subr.bf16.mxu1 %v9874_v47  ;;  %v9870_v47 = vld [vmem:[%s15721_s3 + $0x4f0] sm:$0xff]  }
 0x5e9   :  { %9530 = vmatprep.mubr.msk.bf16.mxu1 %vm251_vm2, %v3574_v61  ;;  %v9863_v61 = vld [vmem:[%s15721_s3 + $0x490] sm:$0xff]   ;;  %9080 = vmatpush3.bf16.msra.mxu1 %v9875_v40 }
 0x5ea   :  { %9018 = vmatpush3.bf16.msra.mxu0 %v9863_v61 }
 0x5f0   :  { %9531 = vmatmul.mubr.msk.bf16.gmra.mrb[152].mxu1 %vm251_vm2, %v3579_v27 }
 0x5f1   :  { %9534 = vmatprep.mubr.msk.bf16.mxu1 %vm251_vm2, %v3584_v24 }
 0x5f8   :  { %9535 = vmatmul.mubr.msk.bf16.gmra.mrb[156].mxu1 %vm251_vm2, %v3589_v51  ;;  %v9864_v51 = vld [vmem:[%s15721_s3 + $0x4d8] sm:$0xff]  }
 0x5f9   :  { %9019 = vmatprep.subr.bf16.mxu0 %v9864_v51 }
 0x673   :  { %v8889_v55 = vpop.f32.mrb[112].mxu1 }
 0x674   :  { %v8890_v12 = vpop.f32.mrb[113].mxu1 }
 0x675   :  { %v8891_v58 = vadd.f32 %v8890_v12, %v8889_v55  ;;  %v8892_v0 = vpop.f32.mrb[114].mxu1  ;;  %v9877_v55 = vld [vmem:[%s15721_s3 + $0x550] sm:$0xff]  }
 0x676   :  { %v8893_v29 = vpop.f32.mrb[115].mxu1  ;;  %9081 = vmatprep.subr.bf16.mxu1 %v9877_v55 }
 0x677   :  { %v8894_v14 = vadd.f32 %v8893_v29, %v8892_v0  ;;  %v3943_v43 = vadd.f32 %v8891_v58, %v13151_v21 }
 0x679   :  { %v3946_v59 = vadd.f32 %v8894_v14, %v13151_v21 }
 0x67b   :  { %v8895_v17 = vpop.f32.mrb[116].mxu1 }
 0x67c   :  { %v8896_v63 = vpop.f32.mrb[117].mxu1 }
 0x67d   :  { %v8897_v6 = vadd.f32 %v8896_v63, %v8895_v17  ;;  %v8898_v7 = vpop.f32.mrb[118].mxu1 }
 0x67e   :  { %v8899_v3 = vpop.f32.mrb[119].mxu1 }
 0x67f   :  { %v8900_v60 = vadd.f32 %v8899_v3, %v8898_v7  ;;  %v3951_v27 = vadd.f32 %v8897_v6, %v13151_v21  ;;  %v9865_v7 = vld [vmem:[%s15721_s3 + $0x498] sm:$0xff]   ;;  %v9879_v3 = vld [vmem:[%s15721_s3 + $0x510] sm:$0xff]  }
 0x680   :  { %9020 = vmatpush3.bf16.msra.mxu0 %v9865_v7  ;;  %9082 = vmatpush3.bf16.msra.mxu1 %v9879_v3 }
 0x681   :  { %v3954_v29 = vadd.f32 %v8900_v60, %v13151_v21  ;;  %v9866_v60 = vld [vmem:[%s15721_s3 + $0x4e0] sm:$0xff]  }
 0x682   :  { %v8953_v41 = vpop.f32.mrb[128].mxu0  ;;  %9021 = vmatprep.subr.bf16.mxu0 %v9866_v60 }
 0x683   :  { %v8901_v30 = vpop.f32.mrb[120].mxu1  ;;  %v8954_v53 = vpop.f32.mrb[129].mxu0 }
 0x684   :  { %v8955_v22 = vadd.f32 %v8954_v53, %v8953_v41  ;;  %v8902_v18 = vpop.f32.mrb[121].mxu1  ;;  %v8956_v56 = vpop.f32.mrb[130].mxu0 }
 0x685   :  { %v8903_v16 = vadd.f32 %v8902_v18, %v8901_v30  ;;  %v8904_v34 = vpop.f32.mrb[122].mxu1  ;;  %v8957_v31 = vpop.f32.mrb[131].mxu0 }
 0x686   :  { %v8958_v2 = vadd.f32 %v8957_v31, %v8956_v56  ;;  %v8905_v28 = vpop.f32.mrb[123].mxu1  ;;  %v13164_v57 = vadd.f32 %v8955_v22, %v3943_v43  ;;  %v9867_v22 = vld [vmem:[%s15721_s3 + $0x4a0] sm:$0xff]  }
 0x687   :  { %v8906_v4 = vadd.f32 %v8905_v28, %v8904_v34  ;;  %v3959_v18 = vadd.f32 %v8903_v16, %v13151_v21  ;;  %9022 = vmatpush3.bf16.msra.mxu0 %v9867_v22  ;;  %v9869_v16 = vld [vmem:[%s15721_s3 + $0x4a8] sm:$0xff]  }
 0x688   :  { %v13169_v10 = vadd.f32 %v8958_v2, %v3946_v59  ;;  %9023 = vmatprep.subr.bf16.mxu0 %v9868_v33 }
 0x689   :  { %v3962_v2 = vadd.f32 %v8906_v4, %v13151_v21 }
 0x68a   :  { %v8959_v36 = vpop.f32.mrb[132].mxu0 }
 0x68b   :  { %v8907_v62 = vpop.f32.mrb[124].mxu1  ;;  %v8960_v42 = vpop.f32.mrb[133].mxu0  ;;  %9024 = vmatpush3.bf16.msra.mxu0 %v9869_v16 }
 0x68c   :  { %v8961_v38 = vadd.f32 %v8960_v42, %v8959_v36  ;;  %v8908_v24 = vpop.f32.mrb[125].mxu1  ;;  %v8962_v5 = vpop.f32.mrb[134].mxu0  ;;  %v9872_v42 = vld [vmem:[%s15721_s3 + $0x4b0] sm:$0xff]   ;;  %9025 = vmatprep.subr.bf16.mxu0 %v9870_v47 }
 0x68d   :  { %v8909_v12 = vadd.f32 %v8908_v24, %v8907_v62  ;;  %v8910_v58 = vpop.f32.mrb[126].mxu1  ;;  %v8963_v0 = vpop.f32.mrb[135].mxu0  ;;  %v9876_v24 = vld [vmem:[%s15721_s3 + $0x4f8] sm:$0xff]  }
 0x68e   :  { %v8964_v14 = vadd.f32 %v8963_v0, %v8962_v5  ;;  %v8911_v17 = vpop.f32.mrb[127].mxu1  ;;  %v13197_v63 = vadd.f32 %v8961_v38, %v3951_v27 }
 0x68f   :  { %v8912_v6 = vadd.f32 %v8911_v17, %v8910_v58  ;;  %v3967_v61 = vadd.f32 %v8909_v12, %v13151_v21  ;;  %9026 = vmatpush3.bf16.msra.mxu0 %v9872_v42  ;;  %v9878_v12 = vld [vmem:[%s15721_s3 + $0x4b8] sm:$0xff]  }
 0x690   :  { %v13205_v41 = vadd.f32 %v8964_v14, %v3954_v29  ;;  %9027 = vmatprep.subr.bf16.mxu0 %v9876_v24 }
 0x691   :  { %v3970_v58 = vadd.f32 %v8912_v6, %v13151_v21 }
 0x692   :  { %v8965_v30 = vpop.f32.mrb[136].mxu0 }
 0x693   :  { %v8913_v53 = vpop.f32.mrb[128].mxu1  ;;  %v8966_v43 = vpop.f32.mrb[137].mxu0  ;;  %9028 = vmatpush3.bf16.msra.mxu0 %v9878_v12 }
 0x694   :  { %v8967_v56 = vadd.f32 %v8966_v43, %v8965_v30  ;;  %v8914_v20 = vpop.f32.mrb[129].mxu1  ;;  %v8968_v23 = vpop.f32.mrb[138].mxu0 }
 0x695   :  { %v8915_v34 = vadd.f32 %v8914_v20, %v8913_v53  ;;  %v8916_v31 = vpop.f32.mrb[130].mxu1  ;;  %v8969_v59 = vpop.f32.mrb[139].mxu0 }
 0x696   :  { %v8970_v28 = vadd.f32 %v8969_v59, %v8968_v23  ;;  %v8917_v32 = vpop.f32.mrb[131].mxu1  ;;  %v13218_v54 = vadd.f32 %v8967_v56, %v3959_v18 }
 0x697   :  { %v8918_v15 = vadd.f32 %v8917_v32, %v8916_v31  ;;  %v3975_v53 = vadd.f32 %v8915_v34, %v13151_v21 }
 0x698   :  { %v13223_v50 = vadd.f32 %v8970_v28, %v3962_v2 }
 0x699   :  { %v3978_v23 = vadd.f32 %v8918_v15, %v13151_v21 }
 0x69a   :  { %v8971_v36 = vpop.f32.mrb[140].mxu0 }
 0x69b   :  { %v8919_v62 = vpop.f32.mrb[132].mxu1  ;;  %v8972_v4 = vpop.f32.mrb[141].mxu0 }
 0x69c   :  { %v8973_v40 = vadd.f32 %v8972_v4, %v8971_v36  ;;  %v8920_v27 = vpop.f32.mrb[133].mxu1  ;;  %v8974_v38 = vpop.f32.mrb[142].mxu0 }
 0x69d   :  { %v8921_v5 = vadd.f32 %v8920_v27, %v8919_v62  ;;  %v8922_v51 = vpop.f32.mrb[134].mxu1  ;;  %v8975_v55 = vpop.f32.mrb[143].mxu0 }
 0x69e   :  { %v8976_v0 = vadd.f32 %v8975_v55, %v8974_v38  ;;  %v8923_v29 = vpop.f32.mrb[135].mxu1  ;;  %v13236_v14 = vadd.f32 %v8973_v40, %v3967_v61 }
 0x69f   :  { %v8924_v17 = vadd.f32 %v8923_v29, %v8922_v51  ;;  %v3983_v34 = vadd.f32 %v8921_v5, %v13151_v21 }
 0x6a0   :  { %v13241_v7 = vadd.f32 %v8976_v0, %v3970_v58 }
 0x6a1   :  { %v3986_v15 = vadd.f32 %v8924_v17, %v13151_v21 }
 0x6a2   :  { %v8977_v3 = vpop.f32.mrb[144].mxu0 }
 0x6a3   :  { %v8925_v60 = vpop.f32.mrb[136].mxu1  ;;  %v8978_v30 = vpop.f32.mrb[145].mxu0 }
 0x6a4   :  { %v8979_v6 = vadd.f32 %v8978_v30, %v8977_v3  ;;  %v8926_v43 = vpop.f32.mrb[137].mxu1  ;;  %v8980_v22 = vpop.f32.mrb[146].mxu0 }
 0x6a5   :  { %v8927_v18 = vadd.f32 %v8926_v43, %v8925_v60  ;;  %v8928_v56 = vpop.f32.mrb[138].mxu1  ;;  %v8981_v20 = vpop.f32.mrb[147].mxu0 }
 0x6a6   :  { %v8982_v33 = vadd.f32 %v8981_v20, %v8980_v22  ;;  %v8929_v31 = vpop.f32.mrb[139].mxu1  ;;  %v13245_v59 = vadd.f32 %v8979_v6, %v3975_v53 }
 0x6a7   :  { %v8930_v2 = vadd.f32 %v8929_v31, %v8928_v56  ;;  %v3991_v30 = vadd.f32 %v8927_v18, %v13151_v21 }
 0x6a8   :  { %v13247_v28 = vadd.f32 %v8982_v33, %v3978_v23 }
 0x6a9   :  { %v3994_v53 = vadd.f32 %v8930_v2, %v13151_v21 }
 0x6aa   :  { %v8983_v32 = vpop.f32.mrb[148].mxu0 }
 0x6ab   :  { %v8931_v16 = vpop.f32.mrb[140].mxu1  ;;  %v8984_v47 = vpop.f32.mrb[149].mxu0 }
 0x6ac   :  { %v8985_v36 = vadd.f32 %v8984_v47, %v8983_v32  ;;  %v8932_v62 = vpop.f32.mrb[141].mxu1  ;;  %v8986_v4 = vpop.f32.mrb[150].mxu0 }
 0x6ad   :  { %v8933_v42 = vadd.f32 %v8932_v62, %v8931_v16  ;;  %v8934_v61 = vpop.f32.mrb[142].mxu1  ;;  %v8987_v40 = vpop.f32.mrb[151].mxu0 }
 0x6ae   :  { %v8988_v27 = vadd.f32 %v8987_v40, %v8986_v4  ;;  %v8935_v38 = vpop.f32.mrb[143].mxu1  ;;  %v13251_v24 = vadd.f32 %v8985_v36, %v3983_v34 }
 0x6af   :  { %v8936_v51 = vadd.f32 %v8935_v38, %v8934_v61 }
 0x6b0   :  { %v13253_v55 = vadd.f32 %v8988_v27, %v3986_v15 }
 0x6b1   :  { %v4002_v16 = vadd.f32 %v8936_v51, %v13151_v21 }
 0x6b2   :  { %v8989_v58 = vpop.f32.mrb[152].mxu0 }
 0x6b3   :  { %v8990_v0 = vpop.f32.mrb[153].mxu0  ;;  %v9524_v29 = vpop.f32.mrb[144].mxu1 }
 0x6b4   :  { %v8991_v12 = vadd.f32 %v8990_v0, %v8989_v58  ;;  %v4145_v5 = vadd.f32 %v9524_v29, %v13197_v63  ;;  %v8992_v3 = vpop.f32.mrb[154].mxu0  ;;  %v4136_v60 = vpop.f32.mrb[145].mxu1 }
 0x6b5   :  { %v4137_v17 = vadd.f32 %v4136_v60, %v13164_v57  ;;  %v8993_v6 = vpop.f32.mrb[155].mxu0  ;;  %v9525_v43 = vpop.f32.mrb[146].mxu1  ;;  %v3999_v57 = vadd.f32 %v8933_v42, %v13151_v21 }
 0x6b6   :  { %vm4201_vm12 = vcmp.gt.f32.partialorder %v4145_v5, 0.0  ;;  %v4217_v22 = vmul.f32 0.01, %v4145_v5  ;;  %v8994_v56 = vadd.f32 %v8993_v6, %v8992_v3  ;;  %v4148_v20 = vadd.f32 %v9525_v43, %v13205_v41  ;;  %v4139_v23 = vpop.f32.mrb[147].mxu1 }
 0x6b7   :  { %vm4199_vm13 = vcmp.gt.f32.partialorder %v4137_v17, 0.0  ;;  %v4215_v33 = vmul.f32 0.01, %v4137_v17  ;;  %v4140_v63 = vadd.f32 %v4139_v23, %v13169_v10  ;;  %v13261_v31 = vadd.f32 %v8991_v12, %v3991_v30 }
 0x6b8   :  { %v13263_v32 = vsel %vm4201_vm12, %v4145_v5, %v4217_v22  ;;  %vm4202_vm14 = vcmp.gt.f32.partialorder %v4148_v20, 0.0  ;;  %v4218_v18 = vmul.f32 0.01, %v4148_v20  ;;  %v13265_v2 = vadd.f32 %v8994_v56, %v3994_v53 }
 0x6b9   :  { %15927 = vst [vmem:[#allocation22_spill] sm:$0xff] %v13263_v32  ;;  %v13269_v47 = vsel %vm4199_vm13, %v4137_v17, %v4215_v33  ;;  %vm4200_vm15 = vcmp.gt.f32.partialorder %v4140_v63, 0.0  ;;  %v4249_v41 = vrot.slane %v13263_v32, 7  ;;  %v4281_v34 = vrot.slane %v13263_v32, 1 }
 0x6ba   :  { %v13273_v10 = vsel %vm4202_vm14, %v4148_v20, %v4218_v18  ;;  %v4216_v36 = vmul.f32 0.01, %v4140_v63  ;;  %v8995_v62 = vpop.f32.mrb[156].mxu0  ;;  %v4247_v4 = vrot.slane %v13269_v47, 7  ;;  %v15752_v61 = vrot.slane %v13269_v47, 1 }
 0x6bb   :  { %15928 = vst [vmem:[#allocation25_spill] sm:$0xff] %v13273_v10  ;;  %v4250_v40 = vrot.slane %v13273_v10, 7  ;;  %v8996_v42 = vpop.f32.mrb[157].mxu0  ;;  %v9528_v15 = vpop.f32.mrb[148].mxu1  ;;  %v4282_v27 = vrot.slane %v13273_v10, 1  ;;  %v15953_v26 = vrot.slane %v13269_v47, 1 }
 0x6bc   :  { %v13281_v38 = vsel %vm4200_vm15, %v4140_v63, %v4216_v36  ;;  %v8997_v51 = vadd.f32 %v8996_v42, %v8995_v62  ;;  %v4161_v58 = vadd.f32 %v9528_v15, %v13236_v14  ;;  %v8998_v0 = vpop.f32.mrb[158].mxu0  ;;  %v4152_v29 = vpop.f32.mrb[149].mxu1 }
 0x6bd   :  { %v4248_v12 = vrot.slane %v13281_v38, 7  ;;  %v4280_v5 = vrot.slane %v13281_v38, 1  ;;  %v4153_v3 = vadd.f32 %v4152_v29, %v13218_v54  ;;  %v8999_v60 = vpop.f32.mrb[159].mxu0  ;;  %v9529_v30 = vpop.f32.mrb[150].mxu1 }
 0x6be   :  { %vm4205_vm3 = vcmp.gt.f32.partialorder %v4161_v58, 0.0  ;;  %v4221_v17 = vmul.f32 0.01, %v4161_v58  ;;  %v9000_v6 = vadd.f32 %v8999_v60, %v8998_v0  ;;  %v4164_v43 = vadd.f32 %v9529_v30, %v13241_v7  ;;  %v4155_v22 = vpop.f32.mrb[151].mxu1 }
 0x6bf   :  { %vm4203_vm4 = vcmp.gt.f32.partialorder %v4153_v3, 0.0  ;;  %v4219_v14 = vmul.f32 0.01, %v4153_v3  ;;  %v4156_v56 = vadd.f32 %v4155_v22, %v13223_v50  ;;  %v4096_v20 = vadd.f32 %v8997_v51, %v3999_v57 }
 0x6c0   :  { %v13291_v23 = vsel %vm4205_vm3, %v4161_v58, %v4221_v17  ;;  %vm4206_vm5 = vcmp.gt.f32.partialorder %v4164_v43, 0.0  ;;  %v4222_v54 = vmul.f32 0.01, %v4164_v43  ;;  %v13293_v33 = vadd.f32 %v9000_v6, %v4002_v16 }
 0x6c1   :  { %v4253_v63 = vrot.slane %v13291_v23, 7  ;;  %v13297_v36 = vsel %vm4203_vm4, %v4153_v3, %v4219_v14  ;;  %vm4204_vm6 = vcmp.gt.f32.partialorder %v4156_v56, 0.0  ;;  %v4220_v50 = vmul.f32 0.01, %v4156_v56 }
 0x6c2   :  { %v4251_v7 = vrot.slane %v13297_v36, 7  ;;  %v15753_v62 = vrot.slane %v13297_v36, 1  ;;  %v13301_v42 = vsel %vm4206_vm5, %v4164_v43, %v4222_v54  ;;  %v13307_v51 = vsel %vm81_vm0, %v4248_v12, %v4249_v41 }
 0x6c3   :  { %v4254_v57 = vrot.slane %v13301_v42, 7  ;;  %v9532_v16 = vpop.f32.mrb[152].mxu1  ;;  %v13313_v58 = vsel %vm81_vm0, %v4247_v4, %v4248_v12  ;;  %v13315_v0 = vsel %vm4204_vm6, %v4156_v56, %v4220_v50  ;;  %v13324_v30 = vsel %vm81_vm0, %v4249_v41, %v4250_v40 }
 0x6c4   :  { %15929 = vst [vmem:[#allocation26_spill] sm:$0xff] %v13313_v58  ;;  %v4177_v29 = vadd.f32 %v9532_v16, %v13251_v24  ;;  %v4168_v3 = vpop.f32.mrb[153].mxu1  ;;  %v4252_v17 = vrot.slane %v13315_v0, 7  ;;  %v15939_v39 = vrot.slane %v13301_v42, 1 }
 0x6c5   :  { %v4169_v12 = vadd.f32 %v4168_v3, %v13245_v59  ;;  %v9533_v43 = vpop.f32.mrb[154].mxu1 }
 0x6c6   :  { %vm4209_vm7 = vcmp.gt.f32.partialorder %v4177_v29, 0.0  ;;  %v4225_v22 = vmul.f32 0.01, %v4177_v29  ;;  %v4180_v14 = vadd.f32 %v9533_v43, %v13253_v55  ;;  %v4171_v56 = vpop.f32.mrb[155].mxu1  ;;  %v13337_v16 = vsel %vm81_vm0, %v4251_v7, %v4252_v17 }
 0x6c7   :  { %vm4207_vm8 = vcmp.gt.f32.partialorder %v4169_v12, 0.0  ;;  %v4223_v41 = vmul.f32 0.01, %v4169_v12  ;;  %v4172_v50 = vadd.f32 %v4171_v56, %v13247_v28  ;;  %v13345_v55 = vsel %vm81_vm0, %v4250_v40, %v4251_v7  ;;  %v9880_v28 = vld [vmem:[%s15721_s3 + $0x558] sm:$0xff]  }
 0x6c8   :  { %v13339_v59 = vsel %vm4209_vm7, %v4177_v29, %v4225_v22  ;;  %vm4210_vm9 = vcmp.gt.f32.partialorder %v4180_v14, 0.0  ;;  %v4226_v3 = vmul.f32 0.01, %v4180_v14  ;;  %9083 = vmatprep.subr.bf16.mxu1 %v9880_v28  ;;  %v9882_v28 = vld [vmem:[%s15721_s3 + $0x560] sm:$0xff]   ;;  %v15940_v35 = vmov %v15939_v39 }
 0x6c9   :  { %v13349_v60 = vsel %vm4207_vm8, %v4169_v12, %v4223_v41  ;;  %vm4208_vm10 = vcmp.gt.f32.partialorder %v4172_v50, 0.0  ;;  %v4224_v54 = vmul.f32 0.01, %v4172_v50  ;;  %v9881_v12 = vld [vmem:[%s15721_s3 + $0x518] sm:$0xff]   ;;  %v9884_v22 = vld [vmem:[%s15721_s3 + $0x520] sm:$0xff]   ;;  %v15945_v9 = vrot.slane %v13339_v59, 1 }
 0x6ca   :  { %v4255_v29 = vrot.slane %v13349_v60, 7  ;;  %v13356_v56 = vsel %vm4210_vm9, %v4180_v14, %v4226_v3  ;;  %v13368_v14 = vsel %vm81_vm0, %v4253_v63, %v4254_v57  ;;  %v13372_v3 = vsel %vm81_vm0, %v4252_v17, %v4253_v63  ;;  %9084 = vmatpush3.bf16.msra.mxu1 %v9881_v12 }
 0x6cb   :  { %v4258_v40 = vrot.slane %v13356_v56, 7  ;;  %v9536_v24 = vpop.f32.mrb[156].mxu1  ;;  %v13364_v21 = vsel %vm4208_vm10, %v4172_v50, %v4224_v54  ;;  %9085 = vmatprep.subr.bf16.mxu1 %v9882_v28 }
 0x6cc   :  { %v4193_v15 = vadd.f32 %v9536_v24, %v4096_v20  ;;  %v4184_v53 = vpop.f32.mrb[157].mxu1  ;;  %v4256_v7 = vrot.slane %v13364_v21, 7  ;;  %v13385_v17 = vsel %vm81_vm0, %v4254_v57, %v4255_v29  ;;  %v15947_v1 = vrot.slane %v13364_v21, 1 }
 0x6cd   :  { %v4185_v54 = vadd.f32 %v4184_v53, %v13261_v31  ;;  %v9537_v20 = vpop.f32.mrb[158].mxu1  ;;  %v13393_v31 = vld [vmem:[%s15721_s3 + $0x580] sm:$0xff]  }
 0x6ce   :  { %vm4213_vm11 = vcmp.gt.f32.partialorder %v4193_v15, 0.0  ;;  %v4229_v50 = vmul.f32 0.01, %v4193_v15  ;;  %v4196_v41 = vadd.f32 %v9537_v20, %v13293_v33  ;;  %v4187_v63 = vpop.f32.mrb[159].mxu1  ;;  %15930 = vst [vmem:[#allocation27_spill] sm:$0xff] %v13393_v31  ;;  %v13398_v33 = vsel %vm81_vm0, %v4255_v29, %v4256_v7  ;;  %9538 = vmatprep.subr.bf16.mxu0 %v13393_v31  ;;  %9086 = vmatpush3.bf16.msra.mxu1 %v9884_v22  ;;  %v9885_v20 = vld [vmem:[%s15721_s3 + $0x568] sm:$0xff]  }
 0x6cf   :  { %vm4211_vm12 = vcmp.gt.f32.partialorder %v4185_v54, 0.0  ;;  %v4227_v53 = vmul.f32 0.01, %v4185_v54  ;;  %v4188_v24 = vadd.f32 %v4187_v63, %v13265_v2  ;;  %9087 = vmatprep.subr.bf16.mxu1 %v9885_v20  ;;  %v15931_v20 = vrot.slane %v13339_v59, 7 }
 0x6d0   :  { %v13400_v57 = vsel %vm4213_vm11, %v4193_v15, %v4229_v50  ;;  %vm4214_vm13 = vcmp.gt.f32.partialorder %v4196_v41, 0.0  ;;  %v4230_v12 = vmul.f32 0.01, %v4196_v41  ;;  %v15949_v45 = vmov %v15947_v1 }
 0x6d1   :  { %v4261_v2 = vrot.slane %v13400_v57, 7  ;;  %v13410_v29 = vsel %vm4211_vm12, %v4185_v54, %v4227_v53  ;;  %vm4212_vm14 = vcmp.gt.f32.partialorder %v4188_v24, 0.0  ;;  %v4228_v28 = vmul.f32 0.01, %v4188_v24 }
 0x6d2   :  { %v4259_v15 = vrot.slane %v13410_v29, 7  ;;  %v13414_v6 = vsel %vm4214_vm13, %v4196_v41, %v4230_v12  ;;  %v13429_v41 = vsel %vm114_vm1, %v4280_v5, %v4281_v34  ;;  %v13439_v53 = vsel %vm114_vm1, %v15752_v61, %v4280_v5  ;;  %v9886_v5 = vld [vmem:[%s15721_s3 + $0x528] sm:$0xff]  }
 0x6d3   :  { %v4262_v18 = vrot.slane %v13414_v6, 7  ;;  %v4294_v43 = vrot.slane %v13414_v6, 1  ;;  %v4319_v54 = vpack.c.bf16 %v13269_v47, %v13414_v6  ;;  %v13431_v22 = vsel %vm4212_vm14, %v4188_v24, %v4228_v28  ;;  %9088 = vmatpush3.bf16.msra.mxu1 %v9886_v5 }
 0x6d4   :  { %v13447_v12 = vsel %vm114_vm1, %v4282_v27, %v15753_v62  ;;  %v13455_v24 = vsel %vm114_vm1, %v4281_v34, %v4282_v27  ;;  %v4260_v28 = vrot.slane %v13431_v22, 7  ;;  %v4292_v61 = vrot.slane %v13431_v22, 1  ;;  %v9887_v27 = vld [vmem:[%s15721_s3 + $0x570] sm:$0xff]  }
 0x6d5   :  { %4367 = vrot.lane.b32.xlu1 %v4319_v54, %s10249_s19  ;;  %v13465_v63 = vsel %vm81_vm0, %v4261_v2, %v4262_v18  ;;  %v13471_v34 = vsel %vm81_vm0, %v4262_v18, %v4247_v4  ;;  %v13494_v52 = vsel %vm81_vm0, %v15931_v20, %v4258_v40  ;;  %v15932_v50 = vmov %v15931_v20 }
 0x6d6   :  { %v4335_v54 = vpack.c.bf16 %v13313_v58, %v13471_v34  ;;  %v13500_v62 = vsel %vm81_vm0, %v4256_v7, %v15932_v50  ;;  %9089 = vmatprep.subr.bf16.mxu1 %v9887_v27  ;;  %v13507_v18 = vsel %vm81_vm0, %v4259_v15, %v4260_v28  ;;  %v13513_v20 = vsel %vm81_vm0, %v4258_v40, %v4259_v15  ;;  %v9888_v27 = vld [vmem:[%s15721_s3 + $0x530] sm:$0xff]  }
 0x6d7   :  { %v15933_v4 = vrot.slane %v13291_v23, 1  ;;  %v15934_v7 = vrot.slane %v13315_v0, 1  ;;  %v4341_v40 = vpack.c.bf16 %v13507_v18, %v13513_v20  ;;  %v15937_v5 = vrot.slane %v13297_v36, 1  ;;  %9090 = vmatpush3.bf16.msra.mxu1 %v9888_v27 }
 0x6d8   :  { %4391 = vrot.lane.b32.xlu0 %v4335_v54, %s10249_s19  ;;  %v15935_v54 = vpack.c.bf16 %v13263_v32, %v13281_v38  ;;  %v4325_v46 = vpack.c.bf16 %v13410_v29, %v13356_v56  ;;  %v15946_v27 = vmov %v15945_v9  ;;  %9091 = vmatprep.subr.bf16.mxu1 %v9889_v19  ;;  %v15951_v13 = vrot.slane %v13400_v57, 1  ;;  %v9890_v19 = vld [vmem:[%s15721_s3 + $0x538] sm:$0xff]  }
 0x6d9   :  { %v13521_v50 = vsel %vm114_vm1, %v15934_v7, %v15933_v4  ;;  %v15936_v15 = vmov %v15934_v7  ;;  %v15938_v7 = vrot.slane %v13349_v60, 1  ;;  %v15955_v48 = vrot.slane %v13410_v29, 1 }
 0x6da   :  { %4369 = vrot.lane.b32.xlu1 %v15935_v54, %s10249_s19  ;;  %v4305_v4 = vsel %vm114_vm1, %v15937_v5, %v15936_v15  ;;  %v15941_v54 = vrot.slane %v13291_v23, 1 }
 0x6db   :  { %v4302_v44 = vsel %vm114_vm1, %v15939_v39, %v15938_v7  ;;  %v4353_v5 = vpack.c.bf16 %v13521_v50, %v4305_v4  ;;  %v4326_v39 = vpack.c.bf16 %v13400_v57, %v13431_v22  ;;  %v13560_v7 = vsel %vm81_vm0, %v4260_v28, %v4261_v2  ;;  %9092 = vmatpush3.bf16.msra.mxu1 %v9890_v19 }
 0x6dc   :  { %v4303_v49 = vsel %vm114_vm1, %v15941_v54, %v15940_v35  ;;  %v15942_v35 = vrot.slane %v13410_v29, 1  ;;  %v15943_v54 = vrot.slane %v13356_v56, 1  ;;  %v4300_v2 = vsel %vm114_vm1, %v15947_v1, %v15946_v27 }
 0x6dd   :  { %v4354_v15 = vpack.c.bf16 %v4302_v44, %v4303_v49  ;;  %v15948_v28 = vpack.c.bf16 %v13324_v30, %v13307_v51  ;;  %v4295_v1 = vsel %vm114_vm1, %v15951_v13, %v4294_v43  ;;  %v15952_v27 = vpack.c.bf16 %v13297_v36, %v13273_v10 }
 0x6de   :  { %v4298_v8 = vsel %vm114_vm1, %v15943_v54, %v15942_v35  ;;  %v15944_v37 = vmov %v15943_v54  ;;  %v4342_v35 = vpack.c.bf16 %v13465_v63, %v13560_v7  ;;  %v4297_v32 = vsel %vm114_vm1, %v15955_v48, %v4292_v61 }
 0x6df   :  { %v4299_v25 = vsel %vm114_vm1, %v15945_v9, %v15944_v37  ;;  %4393 = vrot.lane.b32.xlu0 %v15948_v28, %s10249_s19  ;;  %v15950_v9 = vrot.slane %v13349_v60, 1  ;;  %4371 = vrot.lane.b32.xlu1 %v15952_v27, %s10249_s19  ;;  %v13620_v10 = vpack.c.bf16 %v13455_v24, %v13429_v41  ;;  %v13630_v48 = vpack.c.bf16 %v4303_v49, %v13521_v50 }
 0x6e0   :  { %v4356_v54 = vpack.c.bf16 %v4298_v8, %v4299_v25  ;;  %v4343_v19 = vpack.c.bf16 %v13281_v38, %v13269_v47  ;;  %v15957_v49 = vpack.c.bf16 %v13291_v23, %v13315_v0  ;;  %v13648_v50 = vpack.c.bf16 %v4299_v25, %v4300_v2  ;;  %v10099_v47 = vld [vmem:[%s15720_s2 + $0x7c] ss:$20 sps:$4 sm:$0xff]  }
 0x6e1   :  { %v4301_v37 = vsel %vm114_vm1, %v15950_v9, %v15949_v45  ;;  %v4310_v45 = vsel %vm114_vm1, %v4294_v43, %v15953_v26  ;;  %v15954_v9 = vmov %v15951_v13  ;;  %v13625_v43 = vpack.c.bf16 %v4305_v4, %v13447_v12 }
 0x6e2   :  { %v4355_v28 = vpack.c.bf16 %v4300_v2, %v4301_v37  ;;  %v4296_v13 = vsel %vm114_vm1, %v4292_v61, %v15954_v9  ;;  %v4358_v31 = vpack.c.bf16 %v4310_v45, %v4295_v1  ;;  %v13616_v27 = vpack.c.bf16 %v13439_v53, %v4310_v45 }
 0x6e3   :  { %v4357_v58 = vpack.c.bf16 %v4296_v13, %v4297_v32  ;;  %v15956_v61 = vpack.c.bf16 %v13337_v16, %v13345_v55  ;;  %v13636_v45 = vpack.c.bf16 %v4301_v37, %v4302_v44  ;;  %4373 = vrot.lane.b32.xlu1 %v15957_v49, %s10249_s19  ;;  %v13650_v9 = vpack.c.bf16 %v4297_v32, %v4298_v8 }
 0x6e4   :  { %v4345_v44 = vpack.c.bf16 %v13315_v0, %v13297_v36  ;;  %v4346_v37 = vpack.c.bf16 %v13301_v42, %v13291_v23  ;;  %v4318_v26 = vpack.c.bf16 %v13560_v7, %v13507_v18  ;;  %v13660_v4 = vpack.c.bf16 %v4295_v1, %v4296_v13  ;;  %v10105_v36 = vld [vmem:[%s15720_s2 + $0x84] ss:$20 sps:$4 sm:$0xff]  }
 0x6e5   :  { %4395 = vrot.lane.b32.xlu0 %v15956_v61, %s10249_s19  ;;  %v4317_v61 = vpack.c.bf16 %v13513_v20, %v13494_v52  ;;  %v4348_v25 = vpack.c.bf16 %v13356_v56, %v13339_v59  ;;  %v4347_v8 = vpack.c.bf16 %v13364_v21, %v13349_v60  ;;  %v15958_v49 = vpack.c.bf16 %v13368_v14, %v13372_v3  ;;  %v10115_v20 = vld [vmem:[%s15720_s2 + $0x11c] ss:$20 sps:$4 sm:$0xff]  }
 0x6e6   :  { %v15959_v1 = vpack.c.bf16 %v13398_v33, %v13385_v17  ;;  %v15960_v13 = vpack.c.bf16 %v13429_v41, %v13439_v53  ;;  %v15961_v32 = vpack.c.bf16 %v13447_v12, %v13455_v24  ;;  %v15962_v2 = vpack.c.bf16 %v13349_v60, %v13301_v42  ;;  %v10110_v42 = vld [vmem:[%s15720_s2 + $0xc8] ss:$20 sps:$4 sm:$0xff]   ;;  %v10114_v60 = vld [vmem:[%s15720_s2 + $0xf0] ss:$20 sps:$4 sm:$0xff]  }
 0x6e7   :  { %v15964_v41 = vpack.c.bf16 %v13494_v52, %v13500_v62  ;;  %v15965_v12 = vpack.c.bf16 %v13471_v34, %v13465_v63  ;;  %v10091_v63 = vld [vmem:[%s15720_s2] ss:$20 sps:$4 sm:$0xff]   ;;  %v10119_v18 = vld [vmem:[%s15720_s2 + $0x10] ss:$20 sps:$4 sm:$0xff]  }
 0x6e8   :  { %4399 = vrot.lane.b32.xlu1 %v15959_v1, %s10249_s19  ;;  %v4531_v7 = vmul.bf16 %v10119_v18, %v13620_v10 }
 0x6e9   :  { %4397 = vrot.lane.b32.xlu0 %v15958_v49, %s10249_s19  ;;  %v15963_v49 = vpack.c.bf16 %v13339_v59, %v13364_v21  ;;  %v10118_v59 = vld [vmem:[%s15720_s2 + $0x118] ss:$20 sps:$4 sm:$0xff]  }
 0x6ec   :  { %4417 = vrot.lane.b32.xlu1 %v15961_v32, %s10249_s19  ;;  %v9891_v32 = vld [vmem:[%s15721_s3 + $0x588] sm:$0xff]  }
 0x6ed   :  { %4415 = vrot.lane.b32.xlu0 %v15960_v13, %s10249_s19  ;;  %v10093_v13 = vld [vmem:[%s15720_s2 + $0x2c] ss:$20 sps:$4 sm:$0xff]  }
 0x6f0   :  { %4377 = vrot.lane.b32.xlu1 %v15963_v49, %s10249_s19 }
 0x6f1   :  { %4375 = vrot.lane.b32.xlu0 %v15962_v2, %s10249_s19 }
 0x6f4   :  { %4403 = vrot.lane.b32.xlu1 %v4341_v40, %s10249_s19 }
 0x6f5   :  { %4401 = vrot.lane.b32.xlu0 %v15964_v41, %s10249_s19  ;;  %v15968_v41 = vld [vmem:[#allocation27_spill] sm:$0xff] }
 0x6f8   :  { %4421 = vrot.lane.b32.xlu1 %v4354_v15, %s10249_s19  ;;  %v10090_v15 = vld [vmem:[%s15720_s2 + $0x4] ss:$20 sps:$4 sm:$0xff]  }
 0x6f9   :  { %4419 = vrot.lane.b32.xlu0 %v4353_v5, %s10249_s19 }
 0x6fc   :  { %4381 = vrot.lane.b32.xlu1 %v4326_v39, %s10249_s19 }
 0x6fd   :  { %4379 = vrot.lane.b32.xlu0 %v4325_v46, %s10249_s19 }
 0x700   :  { %4425 = vrot.lane.b32.xlu1 %v4356_v54, %s10249_s19  ;;  %v10092_v54 = vld [vmem:[%s15720_s2 + $0xc] ss:$20 sps:$4 sm:$0xff]  }
 0x701   :  { %4405 = vrot.lane.b32.xlu0 %v4342_v35, %s10249_s19 }
 0x704   :  { %4429 = vrot.lane.b32.xlu1 %v4358_v31, %s10249_s19  ;;  %v15966_v31 = vld [vmem:[#allocation26_spill] sm:$0xff] }
 0x705   :  { %4423 = vrot.lane.b32.xlu0 %v4355_v28, %s10249_s19 }
 0x709   :  { %4427 = vrot.lane.b32.xlu0 %v4357_v58, %s10249_s19  ;;  %v15967_v58 = vpack.c.bf16 %v13307_v51, %v15966_v31  ;;  %v10095_v31 = vld [vmem:[%s15720_s2 + $0x54] ss:$20 sps:$4 sm:$0xff]  }
 0x747   :  { %v4368_v53 = vpop.permute.xlu1 %4367 }
 0x748   :  { %v13712_v24 = vsel %vm251_vm2, %v15965_v12, %v4368_v53  ;;  %v9892_v53 = vld [vmem:[%s15721_s3 + $0x590] sm:$0xff]  }
 0x749   :  { %v4527_v34 = vmul.bf16 %v10091_v63, %v13712_v24 }
 0x74a   :  { %v4392_v46 = vpop.permute.xlu0 %4391 }
 0x74b   :  { %v4465_v40 = vsel %vm251_vm2, %v13616_v27, %v4392_v46 }
 0x74c   :  { %v4370_v5 = vpop.permute.xlu1 %4369  ;;  %v4528_v39 = vmul.bf16 %v10090_v15, %v4465_v40 }
 0x74d   :  { %v4437_v35 = vsel %vm251_vm2, %v15967_v58, %v4370_v5  ;;  %v10094_v5 = vld [vmem:[%s15720_s2 + $0x28] ss:$20 sps:$4 sm:$0xff]  }
 0x74e   :  { %v4530_v28 = vmul.bf16 %v10092_v54, %v4437_v35  ;;  %4917 = vmatprep.mubr.bf16.mxu0 %v4528_v39  ;;  %v4532_v15 = vmul.bf16 %v10094_v5, %v4437_v35  ;;  %v9893_v39 = vld [vmem:[%s15721_s3 + $0x598] sm:$0xff]   ;;  %v15969_v54 = vpack.c.bf16 %v13345_v55, %v13324_v30  ;;  %v10097_v30 = vld [vmem:[%s15720_s2 + $0x34] ss:$20 sps:$4 sm:$0xff]  }
 0x74f   :  { %4918 = vmatmul.mubr.bf16.vlgmr.msra.gmra.mrb[160].mxu0 %v4527_v34 }
 0x750   :  { %5014 = vmatprep.mubr.bf16.mxu1 %v4530_v28  ;;  %9539 = vmatpush3.bf16.msra.mxu0 %v15968_v41 }
 0x751   :  { %v4394_v2 = vpop.permute.xlu0 %4393  ;;  %v4372_v1 = vpop.permute.xlu1 %4371  ;;  %9540 = vmatprep.subr.bf16.mxu0 %v9891_v32 }
 0x752   :  { %v4469_v51 = vsel %vm251_vm2, %v13620_v10, %v4394_v2  ;;  %v4441_v35 = vsel %vm251_vm2, %v15969_v54, %v4372_v1  ;;  %v10098_v1 = vld [vmem:[%s15720_s2 + $0x50] ss:$20 sps:$4 sm:$0xff]  }
 0x753   :  { %v4533_v49 = vmul.bf16 %v10093_v13, %v4469_v51  ;;  %v10096_v51 = vld [vmem:[%s15720_s2 + $0x8] ss:$20 sps:$4 sm:$0xff]   ;;  %v4535_v55 = vmul.bf16 %v10097_v30, %v4441_v35  ;;  %v4537_v41 = vmul.bf16 %v10098_v1, %v4441_v35  ;;  %v10100_v54 = vld [vmem:[%s15720_s2 + $0x30] ss:$20 sps:$4 sm:$0xff]  }
 0x754   :  { %9541 = vmatpush3.bf16.msra.mxu0 %v9891_v32 }
 0x755   :  { %4925 = vmatprep.mubr.bf16.mxu0 %v4533_v49  ;;  %v4374_v40 = vpop.permute.xlu1 %4373  ;;  %9542 = vmatprep.subr.bf16.mxu0 %v9892_v53 }
 0x757   :  { %v4396_v12 = vpop.permute.xlu0 %4395  ;;  %4926 = vmatmul.mubr.bf16.gmra.mrb[164].mxu0 %v4532_v15  ;;  %v15973_v15 = vpack.c.bf16 %v13372_v3, %v13337_v16  ;;  %v10102_v16 = vld [vmem:[%s15720_s2 + $0x78] ss:$20 sps:$4 sm:$0xff]  }
 0x758   :  { %v4473_v46 = vsel %vm251_vm2, %v13625_v43, %v4396_v12  ;;  %9543 = vmatpush3.bf16.msra.mxu0 %v9892_v53  ;;  %v15970_v53 = vld [vmem:[#allocation25_spill] sm:$0xff]  ;;  %v15971_v12 = vld [vmem:[#allocation22_spill] sm:$0xff] }
 0x759   :  { %v4538_v58 = vmul.bf16 %v10095_v31, %v4473_v46  ;;  %9544 = vmatprep.subr.bf16.mxu0 %v9893_v39  ;;  %v15972_v46 = vpack.c.bf16 %v15970_v53, %v15971_v12 }
 0x75a   :  { %v4400_v34 = vpop.permute.xlu1 %4399 }
 0x75b   :  { %v4398_v63 = vpop.permute.xlu0 %4397  ;;  %4933 = vmatprep.mubr.bf16.mxu0 %v4538_v58 }
 0x75c   :  { %v4477_v32 = vsel %vm251_vm2, %v13630_v48, %v4398_v63  ;;  %9545 = vmatpush3.bf16.msra.mxu0 %v9893_v39  ;;  %v4445_v39 = vsel %vm251_vm2, %v15973_v15, %v4374_v40  ;;  %v4481_v63 = vsel %vm251_vm2, %v13636_v45, %v4400_v34  ;;  %v10103_v40 = vld [vmem:[%s15720_s2 + $0xa4] ss:$20 sps:$4 sm:$0xff]  }
 0x75d   :  { %v4543_v38 = vmul.bf16 %v10099_v47, %v4477_v32  ;;  %v4542_v3 = vmul.bf16 %v10102_v16, %v4445_v39  ;;  %v4548_v34 = vmul.bf16 %v10103_v40, %v4481_v63  ;;  %v10109_v63 = vld [vmem:[%s15720_s2 + $0xac] ss:$20 sps:$4 sm:$0xff]   ;;  %v10112_v16 = vld [vmem:[%s15720_s2 + $0xa8] ss:$20 sps:$4 sm:$0xff]  }
 0x75e   :  { %v4418_v49 = vpop.permute.xlu1 %4417  ;;  %v10113_v40 = vld [vmem:[%s15720_s2 + $0xd4] ss:$20 sps:$4 sm:$0xff]  }
 0x75f   :  { %v4416_v28 = vpop.permute.xlu0 %4415  ;;  %4934 = vmatmul.mubr.bf16.gmra.mrb[168].mxu0 %v4537_v41  ;;  %v4501_v5 = vsel %vm251_vm2, %v15972_v46, %v4418_v49  ;;  %v15974_v49 = vpack.c.bf16 %v13385_v17, %v13368_v14  ;;  %v10104_v41 = vld [vmem:[%s15720_s2 + $0x58] ss:$20 sps:$4 sm:$0xff]   ;;  %v10106_v14 = vld [vmem:[%s15720_s2 + $0xa0] ss:$20 sps:$4 sm:$0xff]   ;;  %v15975_v46 = vpack.c.bf16 %v13500_v62, %v13398_v33 }
 0x760   :  { %v4497_v2 = vsel %vm251_vm2, %v4343_v19, %v4416_v28  ;;  %4941 = vmatprep.mubr.bf16.mxu0 %v4543_v38  ;;  %v4534_v35 = vmul.bf16 %v10100_v54, %v4501_v5  ;;  %v10101_v28 = vld [vmem:[%s15720_s2 + $0x5c] ss:$20 sps:$4 sm:$0xff]   ;;  %v10111_v33 = vld [vmem:[%s15720_s2 + $0xf4] ss:$20 sps:$4 sm:$0xff]  }
 0x761   :  { %v4529_v13 = vmul.bf16 %v10096_v51, %v4497_v2  ;;  %v4540_v32 = vmul.bf16 %v10101_v28, %v4445_v39  ;;  %v10108_v39 = vld [vmem:[%s15720_s2 + $0x80] ss:$20 sps:$4 sm:$0xff]  }
 0x762   :  { %v4378_v31 = vpop.permute.xlu1 %4377 }
 0x763   :  { %v4376_v19 = vpop.permute.xlu0 %4375  ;;  %5015 = vmatmul.mubr.bf16.vlgmr.msra.gmra.mrb[160].mxu1 %v4529_v13  ;;  %v4453_v5 = vsel %vm251_vm2, %v15975_v46, %v4378_v31 }
 0x764   :  { %5022 = vmatprep.mubr.bf16.mxu1 %v4535_v55  ;;  %v4449_v30 = vsel %vm251_vm2, %v15974_v49, %v4376_v19  ;;  %v4550_v23 = vmul.bf16 %v10109_v63, %v4453_v5  ;;  %v4552_v62 = vmul.bf16 %v10110_v42, %v4453_v5  ;;  %v10117_v49 = vld [vmem:[%s15720_s2 + $0xfc] ss:$20 sps:$4 sm:$0xff]  }
 0x765   :  { %v4545_v0 = vmul.bf16 %v10105_v36, %v4449_v30  ;;  %v4547_v17 = vmul.bf16 %v10106_v14, %v4449_v30  ;;  %v10122_v36 = vld [vmem:[%s15720_s2 + $0x38] ss:$20 sps:$4 sm:$0xff]  }
 0x766   :  { %v4404_v51 = vpop.permute.xlu1 %4403 }
 0x767   :  { %v4402_v58 = vpop.permute.xlu0 %4401  ;;  %4942 = vmatmul.mubr.bf16.gmra.mrb[172].mxu0 %v4542_v3  ;;  %v4489_v15 = vsel %vm251_vm2, %v13650_v9, %v4404_v51  ;;  %v10116_v51 = vld [vmem:[%s15720_s2 + $0xd0] ss:$20 sps:$4 sm:$0xff]  }
 0x768   :  { %4949 = vmatprep.mubr.bf16.mxu0 %v4548_v34  ;;  %v4485_v1 = vsel %vm251_vm2, %v13648_v50, %v4402_v58 }
 0x76a   :  { %v4422_v19 = vpop.permute.xlu1 %4421 }
 0x76b   :  { %v4420_v2 = vpop.permute.xlu0 %4419  ;;  %5023 = vmatmul.mubr.bf16.gmra.mrb[164].mxu1 %v4534_v35  ;;  %v4509_v12 = vsel %vm251_vm2, %v4346_v37, %v4422_v19  ;;  %v4558_v37 = vmul.bf16 %v10111_v33, %v4489_v15  ;;  %v10126_v19 = vld [vmem:[%s15720_s2 + $0xb0] ss:$20 sps:$4 sm:$0xff]  }
 0x76c   :  { %5030 = vmatprep.mubr.bf16.mxu1 %v4540_v32  ;;  %v4505_v13 = vsel %vm251_vm2, %v4345_v44, %v4420_v2  ;;  %v10107_v44 = vld [vmem:[%s15720_s2 + $0xcc] ss:$20 sps:$4 sm:$0xff]   ;;  %v4544_v58 = vmul.bf16 %v10108_v39, %v4509_v12 }
 0x76d   :  { %v4539_v47 = vmul.bf16 %v10104_v41, %v4505_v13  ;;  %v4553_v38 = vmul.bf16 %v10107_v44, %v4485_v1  ;;  %v10120_v1 = vld [vmem:[%s15720_s2 + $0xf8] ss:$20 sps:$4 sm:$0xff]  }
 0x76e   :  { %v4382_v54 = vpop.permute.xlu1 %4381 }
 0x76f   :  { %v4380_v55 = vpop.permute.xlu0 %4379  ;;  %4950 = vmatmul.mubr.bf16.gmra.mrb[176].mxu0 %v4547_v17  ;;  %v4461_v2 = vsel %vm251_vm2, %v4318_v26, %v4382_v54  ;;  %v15976_v26 = vpack.c.bf16 %v13431_v22, %v13410_v29  ;;  %v10123_v22 = vld [vmem:[%s15720_s2 + $0x60] ss:$20 sps:$4 sm:$0xff]  }
 0x770   :  { %4957 = vmatprep.mubr.bf16.mxu0 %v4553_v38  ;;  %v4457_v28 = vsel %vm251_vm2, %v4317_v61, %v4380_v55  ;;  %v4560_v30 = vmul.bf16 %v10117_v49, %v4461_v2  ;;  %v4562_v56 = vmul.bf16 %v10118_v59, %v4461_v2  ;;  %v4541_v14 = vmul.bf16 %v10123_v22, %v13630_v48  ;;  %v10125_v38 = vld [vmem:[%s15720_s2 + $0x88] ss:$20 sps:$4 sm:$0xff]   ;;  %v9895_v2 = vld [vmem:[%s15721_s3 + $0x5a0] sm:$0xff]   ;;  %v9899_v22 = vld [vmem:[%s15721_s3 + $0x5b0] sm:$0xff]  }
 0x771   :  { %v4555_v21 = vmul.bf16 %v10113_v40, %v4457_v28  ;;  %v4557_v52 = vmul.bf16 %v10114_v60, %v4457_v28  ;;  %v4546_v48 = vmul.bf16 %v10125_v38, %v13636_v45  ;;  %v10128_v45 = vld [vmem:[%s15720_s2 + $0x100] ss:$20 sps:$4 sm:$0xff]   ;;  %v9900_v38 = vld [vmem:[%s15721_s3 + $0x5f8] sm:$0xff]  }
 0x772   :  { %v4561_v12 = vmul.bf16 %v10128_v45, %v13660_v4 }
 0x773   :  { %5031 = vmatmul.mubr.bf16.gmra.mrb[168].mxu1 %v4539_v47  ;;  %v4406_v53 = vpop.permute.xlu0 %4405  ;;  %v10121_v47 = vld [vmem:[%s15720_s2 + $0x124] ss:$20 sps:$4 sm:$0xff]  }
 0x774   :  { %5038 = vmatprep.mubr.bf16.mxu1 %v4545_v0  ;;  %v4493_v32 = vsel %vm251_vm2, %v13660_v4, %v4406_v53  ;;  %v4565_v10 = vmul.bf16 %v10121_v47, %v13712_v24  ;;  %v4536_v0 = vmul.bf16 %v10122_v36, %v13625_v43  ;;  %v15977_v24 = vpack.c.bf16 %v13414_v6, %v13400_v57  ;;  %v10124_v43 = vld [vmem:[%s15720_s2 + $0x120] ss:$20 sps:$4 sm:$0xff]   ;;  %v10127_v57 = vld [vmem:[%s15720_s2 + $0xd8] ss:$20 sps:$4 sm:$0xff]  }
 0x775   :  { %v4563_v61 = vmul.bf16 %v10115_v20, %v4493_v32  ;;  %v4551_v6 = vmul.bf16 %v10126_v19, %v13648_v50  ;;  %v4556_v53 = vmul.bf16 %v10127_v57, %v13650_v9  ;;  %v10129_v50 = vld [vmem:[%s15720_s2 + $0x128] ss:$20 sps:$4 sm:$0xff]  }
 0x776   :  { %v4566_v46 = vmul.bf16 %v10129_v50, %v13616_v27  ;;  %v9901_v57 = vld [vmem:[%s15721_s3 + $0x5b8] sm:$0xff]  }
 0x777   :  { %v4424_v31 = vpop.permute.xlu0 %4423  ;;  %4958 = vmatmul.mubr.bf16.gmra.mrb[180].mxu0 %v4552_v62 }
 0x778   :  { %4965 = vmatprep.mubr.bf16.mxu0 %v4558_v37  ;;  %v4513_v35 = vsel %vm251_vm2, %v4347_v8, %v4424_v31  ;;  %v4426_v8 = vpop.permute.xlu1 %4425  ;;  %v13941_v31 = vld [vmem:[%s15722_s4 + $0x4] ss:$0 sm:$0xff] }
 0x779   :  { %v4549_v3 = vmul.bf16 %v10112_v16, %v4513_v35  ;;  %v4517_v34 = vsel %vm251_vm2, %v4348_v25, %v4426_v8 }
 0x77a   :  { %v4554_v13 = vmul.bf16 %v10116_v51, %v4517_v34  ;;  %v9894_v34 = vld [vmem:[%s15721_s3 + $0x5e0] sm:$0xff]   ;;  %v9896_v51 = vld [vmem:[%s15721_s3 + $0x5e8] sm:$0xff]  }
 0x77b   :  { %5039 = vmatmul.mubr.bf16.gmra.mrb[172].mxu1 %v4544_v58  ;;  %v4428_v25 = vpop.permute.xlu0 %4427  ;;  %9153 = vmatprep.subr.bf16.mxu1 %v9894_v34 }
 0x77c   :  { %5046 = vmatprep.mubr.bf16.mxu1 %v4550_v23  ;;  %v4521_v55 = vsel %vm251_vm2, %v15976_v26, %v4428_v25  ;;  %v4430_v29 = vpop.permute.xlu1 %4429  ;;  %9154 = vmatpush3.bf16.msra.mxu1 %v9895_v2  ;;  %v9907_v25 = vld [vmem:[%s15721_s3 + $0x660] sm:$0xff]  }
 0x77d   :  { %v4559_v41 = vmul.bf16 %v10120_v1, %v4521_v55  ;;  %v4525_v17 = vsel %vm251_vm2, %v15977_v24, %v4430_v29  ;;  %9155 = vmatprep.subr.bf16.mxu1 %v9896_v51  ;;  %v9909_v26 = vld [vmem:[%s15721_s3 + $0x620] sm:$0xff]   ;;  %v9910_v55 = vld [vmem:[%s15721_s3 + $0x668] sm:$0xff]   ;;  %9217 = vmatprep.subr.bf16.mxu0 %v9907_v25  ;;  %v9908_v51 = vld [vmem:[%s15721_s3 + $0x5d0] sm:$0xff]  }
 0x77e   :  { %v4564_v44 = vmul.bf16 %v10124_v43, %v4525_v17  ;;  %v9912_v25 = vld [vmem:[%s15721_s3 + $0x618] sm:$0xff]  }
 0x77f   :  { %4966 = vmatmul.mubr.bf16.gmra.mrb[184].mxu0 %v4557_v52 }
 0x780   :  { %4973 = vmatprep.mubr.bf16.mxu0 %v4563_v61 }
 0x783   :  { %5047 = vmatmul.mubr.bf16.gmra.mrb[176].mxu1 %v4549_v3 }
 0x784   :  { %5054 = vmatprep.mubr.bf16.mxu1 %v4555_v21 }
 0x787   :  { %4974 = vmatmul.mubr.bf16.gmra.mrb[188].mxu0 %v4562_v56  ;;  %v9898_v56 = vld [vmem:[%s15721_s3 + $0x5f0] sm:$0xff]  }
 0x788   :  { %9546 = vmatprep.mubr.msk.bf16.mxu0 %vm251_vm2, %v4531_v7 }
 0x78b   :  { %5055 = vmatmul.mubr.bf16.gmra.mrb[180].mxu1 %v4554_v13 }
 0x78c   :  { %5062 = vmatprep.mubr.bf16.mxu1 %v4560_v30  ;;  %v9897_v30 = vld [vmem:[%s15721_s3 + $0x5a8] sm:$0xff]  }
 0x78d   :  { %9156 = vmatpush3.bf16.msra.mxu1 %v9897_v30 }
 0x78e   :  { %9157 = vmatprep.subr.bf16.mxu1 %v9898_v56 }
 0x78f   :  { %9547 = vmatmul.mubr.msk.bf16.vlgmr.msra.gmra.mrb[192].mxu0 %vm251_vm2, %v4536_v0 }
 0x790   :  { %9550 = vmatprep.mubr.msk.bf16.mxu0 %vm251_vm2, %v4541_v14  ;;  %9218 = vmatpush3.bf16.msra.mxu0 %v9909_v26  ;;  %v9911_v14 = vld [vmem:[%s15721_s3 + $0x628] sm:$0xff]   ;;  %v9914_v26 = vld [vmem:[%s15721_s3 + $0x5d8] sm:$0xff]  }
 0x791   :  { %9219 = vmatprep.subr.bf16.mxu0 %v9910_v55  ;;  %9158 = vmatpush3.bf16.msra.mxu1 %v9899_v22 }
 0x792   :  { %9159 = vmatprep.subr.bf16.mxu1 %v9900_v38 }
 0x793   :  { %5063 = vmatmul.mubr.bf16.gmra.mrb[184].mxu1 %v4559_v41 }
 0x794   :  { %5070 = vmatprep.mubr.bf16.mxu1 %v4565_v10  ;;  %9220 = vmatpush3.bf16.msra.mxu0 %v9911_v14 }
 0x795   :  { %9160 = vmatpush3.bf16.msra.mxu1 %v9901_v57 }
 0x797   :  { %9551 = vmatmul.mubr.msk.bf16.gmra.mrb[196].mxu0 %vm251_vm2, %v4546_v48  ;;  %v9913_v48 = vld [vmem:[%s15721_s3 + $0x670] sm:$0xff]  }
 0x798   :  { %9554 = vmatprep.mubr.msk.bf16.mxu0 %vm251_vm2, %v4551_v6  ;;  %9221 = vmatprep.subr.bf16.mxu0 %v9913_v48 }
 0x79b   :  { %5071 = vmatmul.mubr.bf16.gmra.mrb[188].mxu1 %v4564_v44 }
 0x79f   :  { %9555 = vmatmul.mubr.msk.bf16.gmra.mrb[200].mxu0 %vm251_vm2, %v4556_v53  ;;  %v9915_v53 = vld [vmem:[%s15721_s3 + $0x630] sm:$0xff]  }
 0x7a0   :  { %9558 = vmatprep.mubr.msk.bf16.mxu0 %vm251_vm2, %v4561_v12  ;;  %v9902_v12 = vld [vmem:[%s15721_s3 + $0x600] sm:$0xff]   ;;  %9222 = vmatpush3.bf16.msra.mxu0 %v9915_v53 }
 0x7a1   :  { %9161 = vmatprep.subr.bf16.mxu1 %v9902_v12 }
 0x7a7   :  { %9559 = vmatmul.mubr.msk.bf16.gmra.mrb[204].mxu0 %vm251_vm2, %v4566_v46 }
 0x822   :  { %v9029_v5 = vpop.f32.mrb[160].mxu0 }
 0x823   :  { %v9030_v9 = vpop.f32.mrb[161].mxu0 }
 0x824   :  { %v9031_v15 = vadd.f32 %v9030_v9, %v9029_v5  ;;  %v9032_v39 = vpop.f32.mrb[162].mxu0 }
 0x825   :  { %v9033_v58 = vpop.f32.mrb[163].mxu0 }
 0x826   :  { %v9034_v63 = vadd.f32 %v9033_v58, %v9032_v39  ;;  %v4920_v28 = vadd.f32 %v9031_v15, %v13941_v31 }
 0x828   :  { %v4923_v52 = vadd.f32 %v9034_v63, %v13941_v31 }
 0x82a   :  { %v9035_v23 = vpop.f32.mrb[164].mxu0 }
 0x82b   :  { %v9036_v4 = vpop.f32.mrb[165].mxu0 }
 0x82c   :  { %v9037_v42 = vadd.f32 %v9036_v4, %v9035_v23  ;;  %v9038_v62 = vpop.f32.mrb[166].mxu0  ;;  %v9903_v4 = vld [vmem:[%s15721_s3 + $0x5c0] sm:$0xff]  }
 0x82d   :  { %v9039_v33 = vpop.f32.mrb[167].mxu0  ;;  %9162 = vmatpush3.bf16.msra.mxu1 %v9903_v4 }
 0x82e   :  { %v9040_v37 = vadd.f32 %v9039_v33, %v9038_v62  ;;  %v4928_v1 = vadd.f32 %v9037_v42, %v13941_v31 }
 0x830   :  { %v4931_v24 = vadd.f32 %v9040_v37, %v13941_v31 }
 0x832   :  { %v9041_v54 = vpop.f32.mrb[168].mxu0 }
 0x833   :  { %v9042_v16 = vpop.f32.mrb[169].mxu0 }
 0x834   :  { %v9043_v40 = vadd.f32 %v9042_v16, %v9041_v54  ;;  %v9044_v21 = vpop.f32.mrb[170].mxu0  ;;  %v9906_v16 = vld [vmem:[%s15721_s3 + $0x610] sm:$0xff]  }
 0x835   :  { %v9045_v61 = vpop.f32.mrb[171].mxu0 }
 0x836   :  { %v9093_v27 = vpop.f32.mrb[160].mxu1  ;;  %v9046_v13 = vadd.f32 %v9045_v61, %v9044_v21  ;;  %v4936_v5 = vadd.f32 %v9043_v40, %v13941_v31 }
 0x837   :  { %v9094_v35 = vpop.f32.mrb[161].mxu1 }
 0x838   :  { %v9095_v32 = vadd.f32 %v9094_v35, %v9093_v27  ;;  %v9096_v3 = vpop.f32.mrb[162].mxu1  ;;  %v4939_v42 = vadd.f32 %v9046_v13, %v13941_v31  ;;  %v9904_v27 = vld [vmem:[%s15721_s3 + $0x608] sm:$0xff]  }
 0x839   :  { %v9097_v60 = vpop.f32.mrb[163].mxu1  ;;  %9163 = vmatprep.subr.bf16.mxu1 %v9904_v27 }
 0x83a   :  { %v9098_v20 = vadd.f32 %v9097_v60, %v9096_v3  ;;  %v13945_v8 = vadd.f32 %v9095_v32, %v4920_v28  ;;  %v9047_v18 = vpop.f32.mrb[172].mxu0  ;;  %v9905_v28 = vld [vmem:[%s15721_s3 + $0x5c8] sm:$0xff]  }
 0x83b   :  { %v9048_v47 = vpop.f32.mrb[173].mxu0  ;;  %9164 = vmatpush3.bf16.msra.mxu1 %v9905_v28 }
 0x83c   :  { %v13956_v49 = vadd.f32 %v9098_v20, %v4923_v52  ;;  %v9049_v36 = vadd.f32 %v9048_v47, %v9047_v18  ;;  %v9050_v0 = vpop.f32.mrb[174].mxu0  ;;  %9165 = vmatprep.subr.bf16.mxu1 %v9906_v16 }
 0x83d   :  { %v9051_v43 = vpop.f32.mrb[175].mxu0 }
 0x83e   :  { %v9099_v59 = vpop.f32.mrb[164].mxu1  ;;  %v9052_v19 = vadd.f32 %v9051_v43, %v9050_v0  ;;  %v4944_v21 = vadd.f32 %v9049_v36, %v13941_v31 }
 0x83f   :  { %v9100_v7 = vpop.f32.mrb[165].mxu1  ;;  %9166 = vmatpush3.bf16.msra.mxu1 %v9908_v51 }
 0x840   :  { %v9101_v41 = vadd.f32 %v9100_v7, %v9099_v59  ;;  %v9102_v10 = vpop.f32.mrb[166].mxu1  ;;  %v4947_v13 = vadd.f32 %v9052_v19, %v13941_v31  ;;  %9167 = vmatprep.subr.bf16.mxu1 %v9912_v25  ;;  %v15979_v25 = vld [vmem:[#allocation8_spill] sm:$0xff] }
 0x841   :  { %v9103_v29 = vpop.f32.mrb[167].mxu1 }
 0x842   :  { %v9104_v17 = vadd.f32 %v9103_v29, %v9102_v10  ;;  %v13981_v44 = vadd.f32 %v9101_v41, %v4928_v1  ;;  %v9053_v50 = vpop.f32.mrb[176].mxu0 }
 0x843   :  { %v9054_v15 = vpop.f32.mrb[177].mxu0  ;;  %9168 = vmatpush3.bf16.msra.mxu1 %v9914_v26  ;;  %v15980_v26 = vld [vmem:[#allocation11_spill] sm:$0xff] }
 0x844   :  { %v13989_v6 = vadd.f32 %v9104_v17, %v4931_v24  ;;  %v9055_v58 = vadd.f32 %v9054_v15, %v9053_v50  ;;  %v9056_v63 = vpop.f32.mrb[178].mxu0 }
 0x845   :  { %v9057_v33 = vpop.f32.mrb[179].mxu0 }
 0x846   :  { %v9105_v45 = vpop.f32.mrb[168].mxu1  ;;  %v9058_v54 = vadd.f32 %v9057_v33, %v9056_v63  ;;  %v4952_v47 = vadd.f32 %v9055_v58, %v13941_v31 }
 0x847   :  { %v9106_v46 = vpop.f32.mrb[169].mxu1 }
 0x848   :  { %v9107_v9 = vadd.f32 %v9106_v46, %v9105_v45  ;;  %v9108_v39 = vpop.f32.mrb[170].mxu1  ;;  %v4955_v24 = vadd.f32 %v9058_v54, %v13941_v31 }
 0x849   :  { %v9109_v23 = vpop.f32.mrb[171].mxu1 }
 0x84a   :  { %v9110_v62 = vadd.f32 %v9109_v23, %v9108_v39  ;;  %v14005_v37 = vadd.f32 %v9107_v9, %v4936_v5  ;;  %v9059_v3 = vpop.f32.mrb[180].mxu0 }
 0x84b   :  { %v9060_v52 = vpop.f32.mrb[181].mxu0 }
 0x84c   :  { %v14010_v35 = vadd.f32 %v9110_v62, %v4939_v42  ;;  %v9061_v61 = vadd.f32 %v9060_v52, %v9059_v3  ;;  %v9062_v34 = vpop.f32.mrb[182].mxu0 }
 0x84d   :  { %v9063_v59 = vpop.f32.mrb[183].mxu0 }
 0x84e   :  { %v9111_v32 = vpop.f32.mrb[172].mxu1  ;;  %v9064_v18 = vadd.f32 %v9063_v59, %v9062_v34  ;;  %v4960_v12 = vadd.f32 %v9061_v61, %v13941_v31 }
 0x84f   :  { %v9112_v40 = vpop.f32.mrb[173].mxu1 }
 0x850   :  { %v9113_v60 = vadd.f32 %v9112_v40, %v9111_v32  ;;  %v9114_v20 = vpop.f32.mrb[174].mxu1  ;;  %v4963_v58 = vadd.f32 %v9064_v18, %v13941_v31 }
 0x851   :  { %v9115_v2 = vpop.f32.mrb[175].mxu1 }
 0x852   :  { %v9116_v30 = vadd.f32 %v9115_v2, %v9114_v20  ;;  %v14023_v56 = vadd.f32 %v9113_v60, %v4944_v21  ;;  %v9065_v1 = vpop.f32.mrb[184].mxu0 }
 0x853   :  { %v9066_v36 = vpop.f32.mrb[185].mxu0 }
 0x854   :  { %v14028_v7 = vadd.f32 %v9116_v30, %v4947_v13  ;;  %v9067_v29 = vadd.f32 %v9066_v36, %v9065_v1  ;;  %v9068_v22 = vpop.f32.mrb[186].mxu0  ;;  %v15978_v30 = vld [vmem:[#allocation9_spill] sm:$0xff] }
 0x855   :  { %v9069_v43 = vpop.f32.mrb[187].mxu0 }
 0x856   :  { %v9117_v55 = vpop.f32.mrb[176].mxu1  ;;  %v9070_v48 = vadd.f32 %v9069_v43, %v9068_v22  ;;  %v4968_v28 = vadd.f32 %v9067_v29, %v13941_v31 }
 0x857   :  { %v9118_v41 = vpop.f32.mrb[177].mxu1 }
 0x858   :  { %v9119_v10 = vadd.f32 %v9118_v41, %v9117_v55  ;;  %v9120_v0 = vpop.f32.mrb[178].mxu1  ;;  %v4971_v20 = vadd.f32 %v9070_v48, %v13941_v31  ;;  %v15981_v41 = vld [vmem:[#allocation24_spill] sm:$0xff] }
 0x859   :  { %v9121_v14 = vpop.f32.mrb[179].mxu1 }
 0x85a   :  { %v9122_v17 = vadd.f32 %v9121_v14, %v9120_v0  ;;  %v14035_v38 = vadd.f32 %v9119_v10, %v4952_v47  ;;  %v9071_v53 = vpop.f32.mrb[188].mxu0 }
 0x85b   :  { %v9072_v46 = vpop.f32.mrb[189].mxu0 }
 0x85c   :  { %v14037_v19 = vadd.f32 %v9122_v17, %v4955_v24  ;;  %v9073_v9 = vadd.f32 %v9072_v46, %v9071_v53  ;;  %v9074_v15 = vpop.f32.mrb[190].mxu0 }
 0x85d   :  { %v9075_v23 = vpop.f32.mrb[191].mxu0 }
 0x85e   :  { %v9123_v57 = vpop.f32.mrb[180].mxu1  ;;  %v9076_v42 = vadd.f32 %v9075_v23, %v9074_v15  ;;  %v4976_v1 = vadd.f32 %v9073_v9, %v13941_v31 }
 0x85f   :  { %v9124_v45 = vpop.f32.mrb[181].mxu1 }
 0x860   :  { %v9125_v50 = vadd.f32 %v9124_v45, %v9123_v57  ;;  %v9126_v5 = vpop.f32.mrb[182].mxu1  ;;  %v4979_v14 = vadd.f32 %v9076_v42, %v13941_v31 }
 0x861   :  { %v9127_v39 = vpop.f32.mrb[183].mxu1 }
 0x862   :  { %v9128_v63 = vadd.f32 %v9127_v39, %v9126_v5  ;;  %v14041_v4 = vadd.f32 %v9125_v50, %v4960_v12  ;;  %v9548_v54 = vpop.f32.mrb[192].mxu0  ;;  %v15982_v5 = vld [vmem:[#allocation10_spill] sm:$0xff]  ;;  %v15985_v39 = vld [vmem:[#allocation12_spill] sm:$0xff] }
 0x863   :  { %v5122_v16 = vadd.f32 %v9548_v54, %v13981_v44  ;;  %v5113_v40 = vpop.f32.mrb[193].mxu0 }
 0x864   :  { %v14043_v62 = vadd.f32 %v9128_v63, %v4963_v58  ;;  %v5114_v21 = vadd.f32 %v5113_v40, %v13945_v8  ;;  %v9549_v52 = vpop.f32.mrb[194].mxu0  ;;  %v15986_v63 = vld [vmem:[#allocation13_spill] sm:$0xff] }
 0x865   :  { %v5125_v34 = vadd.f32 %v9549_v52, %v13989_v6  ;;  %v5116_v2 = vpop.f32.mrb[195].mxu0  ;;  %v5178_v59 = vadd.f32 %v5122_v16, %v15978_v30 }
 0x866   :  { %v9129_v33 = vpop.f32.mrb[184].mxu1  ;;  %v5117_v13 = vadd.f32 %v5116_v2, %v13956_v49  ;;  %v5176_v47 = vadd.f32 %v5114_v21, %v15981_v41  ;;  %v15995_v41 = vld [vmem:[#allocation18_spill] sm:$0xff] }
 0x867   :  { %v9130_v27 = vpop.f32.mrb[185].mxu1  ;;  %v5179_v44 = vadd.f32 %v5125_v34, %v15979_v25  ;;  %v5210_v36 = vmul.f32 0.01, %v5178_v59  ;;  %vm5194_vm4 = vcmp.gt.f32.partialorder %v5178_v59, 0.0  ;;  %v15992_v25 = vld [vmem:[#allocation15_spill] sm:$0xff] }
 0x868   :  { %v9131_v32 = vadd.f32 %v9130_v27, %v9129_v33  ;;  %v9132_v3 = vpop.f32.mrb[186].mxu1  ;;  %v5177_v8 = vadd.f32 %v5117_v13, %v15980_v26  ;;  %v5208_v46 = vmul.f32 0.01, %v5176_v47  ;;  %vm5192_vm5 = vcmp.gt.f32.partialorder %v5176_v47, 0.0  ;;  %v15989_v27 = vld [vmem:[#allocation14_spill] sm:$0xff] }
 0x869   :  { %v9133_v60 = vpop.f32.mrb[187].mxu1  ;;  %vm5195_vm15 = vcmp.gt.f32.partialorder %v5179_v44, 0.0  ;;  %v5211_v24 = vmul.f32 0.01, %v5179_v44 }
 0x86a   :  { %v9134_v61 = vadd.f32 %v9133_v60, %v9132_v3  ;;  %v14050_v51 = vadd.f32 %v9131_v32, %v4968_v28  ;;  %v9552_v6 = vpop.f32.mrb[196].mxu0  ;;  %v5209_v17 = vmul.f32 0.01, %v5177_v8  ;;  %vm5193_vm3 = vcmp.gt.f32.partialorder %v5177_v8, 0.0 }
 0x86b   :  { %v5138_v49 = vadd.f32 %v9552_v6, %v14023_v56  ;;  %v5129_v22 = vpop.f32.mrb[197].mxu0  ;;  %v14067_v15 = vsel %vm5195_vm15, %v5179_v44, %v5211_v24  ;;  %v14075_v33 = vsel %vm5192_vm5, %v5176_v47, %v5208_v46 }
 0x86c   :  { %v14055_v18 = vadd.f32 %v9134_v61, %v4971_v20  ;;  %v5130_v43 = vadd.f32 %v5129_v22, %v14005_v37  ;;  %v9553_v57 = vpop.f32.mrb[198].mxu0  ;;  %15983 = vst [vmem:[#allocation26_spill] sm:$0xff] %v14067_v15  ;;  %v14069_v37 = vsel %vm5193_vm3, %v5177_v8, %v5209_v17  ;;  %15988 = vst [vmem:[#allocation22_spill] sm:$0xff] %v14075_v33  ;;  %v5243_v40 = vrot.slane %v14067_v15, 7  ;;  %v15994_v8 = vld [vmem:[#allocation16_spill] sm:$0xff]  ;;  %v9916_v17 = vld [vmem:[%s15721_s3 + $0x678] sm:$0xff]  }
 0x86d   :  { %v5141_v45 = vadd.f32 %v9553_v57, %v14028_v7  ;;  %v5132_v12 = vpop.f32.mrb[199].mxu0  ;;  %15984 = vst [vmem:[#allocation27_spill] sm:$0xff] %v14069_v37  ;;  %v5182_v58 = vadd.f32 %v5138_v49, %v15985_v39  ;;  %v14073_v7 = vsel %vm5194_vm4, %v5178_v59, %v5210_v36  ;;  %v5241_v3 = vrot.slane %v14069_v37, 7  ;;  %v15997_v49 = vld [vmem:[#allocation17_spill] sm:$0xff]  ;;  %9223 = vmatprep.subr.bf16.mxu0 %v9916_v17 }
 0x86e   :  { %v9135_v55 = vpop.f32.mrb[188].mxu1  ;;  %v5180_v56 = vadd.f32 %v5130_v43, %v15982_v5  ;;  %v5133_v9 = vadd.f32 %v5132_v12, %v14010_v35  ;;  %15987 = vst [vmem:[#allocation25_spill] sm:$0xff] %v14073_v7  ;;  %v5242_v2 = vrot.slane %v14073_v7, 7  ;;  %v5240_v59 = vrot.slane %v14075_v33, 7 }
 0x86f   :  { %v9136_v10 = vpop.f32.mrb[189].mxu1  ;;  %v5183_v54 = vadd.f32 %v5141_v45, %v15989_v27  ;;  %v5214_v21 = vmul.f32 0.01, %v5182_v58  ;;  %vm5198_vm8 = vcmp.gt.f32.partialorder %v5182_v58, 0.0  ;;  %v5313_v6 = vpack.c.bf16 %v14073_v7, %v14069_v37 }
 0x870   :  { %v9137_v0 = vadd.f32 %v9136_v10, %v9135_v55  ;;  %v9138_v29 = vpop.f32.mrb[190].mxu1  ;;  %v5181_v23 = vadd.f32 %v5133_v9, %v15986_v63  ;;  %v5212_v42 = vmul.f32 0.01, %v5180_v56  ;;  %vm5196_vm6 = vcmp.gt.f32.partialorder %v5180_v56, 0.0 }
 0x871   :  { %v9139_v48 = vpop.f32.mrb[191].mxu1  ;;  %v5215_v13 = vmul.f32 0.01, %v5183_v54  ;;  %vm5199_vm9 = vcmp.gt.f32.partialorder %v5183_v54, 0.0  ;;  %v14099_v26 = vsel %vm5198_vm8, %v5182_v58, %v5214_v21  ;;  %v14109_v10 = vsel %vm81_vm0, %v5240_v59, %v5241_v3 }
 0x872   :  { %v9140_v53 = vadd.f32 %v9139_v48, %v9138_v29  ;;  %v5073_v50 = vadd.f32 %v9137_v0, %v4976_v1  ;;  %v5213_v35 = vmul.f32 0.01, %v5181_v23  ;;  %v9556_v28 = vpop.f32.mrb[200].mxu0  ;;  %vm5197_vm7 = vcmp.gt.f32.partialorder %v5181_v23, 0.0  ;;  %15993 = vst [vmem:[#allocation11_spill] sm:$0xff] %v14099_v26 }
 0x873   :  { %v5154_v32 = vadd.f32 %v9556_v28, %v14041_v4  ;;  %v5145_v16 = vpop.f32.mrb[201].mxu0  ;;  %v14082_v20 = vsel %vm5196_vm6, %v5180_v56, %v5212_v42  ;;  %v14114_v0 = vsel %vm5199_vm9, %v5183_v54, %v5215_v13  ;;  %v5246_v45 = vrot.slane %v14099_v26, 7  ;;  %v16001_v28 = vld [vmem:[#allocation19_spill] sm:$0xff] }
 0x874   :  { %v5076_v31 = vadd.f32 %v9140_v53, %v4979_v14  ;;  %v5146_v60 = vadd.f32 %v5145_v16, %v14035_v38  ;;  %v9557_v52 = vpop.f32.mrb[202].mxu0  ;;  %15990 = vst [vmem:[#allocation9_spill] sm:$0xff] %v14082_v20  ;;  %v14086_v30 = vsel %vm5197_vm7, %v5181_v23, %v5213_v35  ;;  %v14093_v38 = vsel %vm81_vm0, %v5242_v2, %v5243_v40  ;;  %v15998_v23 = vld [vmem:[#allocation20_spill] sm:$0xff] }
 0x875   :  { %v5157_v61 = vadd.f32 %v9557_v52, %v14043_v62  ;;  %v5148_v34 = vpop.f32.mrb[203].mxu0  ;;  %15991 = vst [vmem:[#allocation8_spill] sm:$0xff] %v14086_v30  ;;  %v14097_v62 = vsel %vm81_vm0, %v5241_v3, %v5242_v2  ;;  %v5244_v1 = vrot.slane %v14082_v20, 7  ;;  %v5186_v47 = vadd.f32 %v5154_v32, %v15995_v41  ;;  %15996 = vst [vmem:[#allocation24_spill] sm:$0xff] %v14114_v0  ;;  %v9918_v16 = vld [vmem:[%s15721_s3 + $0x680] sm:$0xff]   ;;  %v9921_v41 = vld [vmem:[%s15721_s3 + $0x688] sm:$0xff]  }
 0x876   :  { %v5149_v4 = vadd.f32 %v5148_v34, %v14037_v19  ;;  %v5184_v44 = vadd.f32 %v5146_v60, %v15992_v25  ;;  %v5272_v19 = vrot.slane %v14075_v33, 1  ;;  %v5245_v36 = vrot.slane %v14086_v30, 7  ;;  %v14154_v3 = vld [vmem:[%s15721_s3 + $0x6a0] sm:$0xff]  }
 0x877   :  { %v5187_v29 = vadd.f32 %v5157_v61, %v15997_v49  ;;  %v5329_v14 = vpack.c.bf16 %v14093_v38, %v14097_v62  ;;  %v5314_v24 = vpack.c.bf16 %v14082_v20, %v14067_v15  ;;  %v5315_v53 = vpack.c.bf16 %v14099_v26, %v14086_v30  ;;  %9562 = vmatprep.subr.bf16.mxu1 %v14154_v3  ;;  %v9920_v13 = vld [vmem:[%s15721_s3 + $0x640] sm:$0xff]  }
 0x878   :  { %v5185_v55 = vadd.f32 %v5149_v4, %v15994_v8  ;;  %v5216_v43 = vmul.f32 0.01, %v5184_v44  ;;  %vm5200_vm10 = vcmp.gt.f32.partialorder %v5184_v44, 0.0  ;;  %v14130_v56 = vsel %vm81_vm0, %v5243_v40, %v5244_v1  ;;  %v16003_v40 = vld [vmem:[#allocation21_spill] sm:$0xff] }
 0x879   :  { %v5218_v9 = vmul.f32 0.01, %v5186_v47  ;;  %v14136_v58 = vsel %vm81_vm0, %v5244_v1, %v5245_v36  ;;  %vm5202_vm12 = vcmp.gt.f32.partialorder %v5186_v47, 0.0  ;;  %v5219_v63 = vmul.f32 0.01, %v5187_v29 }
 0x87a   :  { %v9560_v22 = vpop.f32.mrb[204].mxu0  ;;  %v5217_v12 = vmul.f32 0.01, %v5185_v55  ;;  %vm5201_vm11 = vcmp.gt.f32.partialorder %v5185_v55, 0.0  ;;  %v14144_v54 = vsel %vm5200_vm10, %v5184_v44, %v5216_v43  ;;  %vm5203_vm13 = vcmp.gt.f32.partialorder %v5187_v29, 0.0 }
 0x87b   :  { %v5170_v48 = vadd.f32 %v9560_v22, %v5073_v50  ;;  %v5161_v57 = vpop.f32.mrb[205].mxu0  ;;  %15999 = vst [vmem:[#allocation10_spill] sm:$0xff] %v14144_v54  ;;  %v5330_v60 = vpack.c.bf16 %v14136_v58, %v14130_v56  ;;  %v5247_v52 = vrot.slane %v14114_v0, 7  ;;  %v14163_v61 = vsel %vm5202_vm12, %v5186_v47, %v5218_v9 }
 0x87c   :  { %v5162_v46 = vadd.f32 %v5161_v57, %v14050_v51  ;;  %v9561_v5 = vpop.f32.mrb[206].mxu0  ;;  %v9917_v51 = vld [vmem:[%s15721_s3 + $0x638] sm:$0xff]   ;;  %16004 = vst [vmem:[#allocation13_spill] sm:$0xff] %v14163_v61  ;;  %v14170_v4 = vsel %vm5203_vm13, %v5187_v29, %v5219_v63  ;;  %v5248_v44 = vrot.slane %v14144_v54, 7  ;;  %v5273_v29 = vrot.slane %v14069_v37, 1  ;;  %v9922_v57 = vld [vmem:[%s15721_s3 + $0x648] sm:$0xff]  }
 0x87d   :  { %v5173_v39 = vadd.f32 %v9561_v5, %v5076_v31  ;;  %v5164_v50 = vpop.f32.mrb[207].mxu0  ;;  %v16000_v31 = vld [vmem:[#allocation23_spill] sm:$0xff]  ;;  %9224 = vmatpush3.bf16.msra.mxu0 %v9917_v51  ;;  %16005 = vst [vmem:[#allocation14_spill] sm:$0xff] %v14170_v4  ;;  %v14187_v17 = vsel %vm81_vm0, %v5246_v45, %v5247_v52  ;;  %v14193_v43 = vsel %vm81_vm0, %v5245_v36, %v5246_v45  ;;  %v5275_v36 = vrot.slane %v14067_v15, 1  ;;  %v9923_v5 = vld [vmem:[%s15721_s3 + $0x690] sm:$0xff]  }
 0x87e   :  { %v5188_v42 = vadd.f32 %v5162_v46, %v15998_v23  ;;  %v5165_v27 = vadd.f32 %v5164_v50, %v14055_v18  ;;  %v5190_v35 = vadd.f32 %v5170_v48, %v16000_v31  ;;  %v14157_v18 = vsel %vm5201_vm11, %v5185_v55, %v5217_v12  ;;  %9225 = vmatprep.subr.bf16.mxu0 %v9918_v16 }
 0x87f   :  { %v5191_v32 = vadd.f32 %v5173_v39, %v16001_v28  ;;  %16002 = vst [vmem:[#allocation12_spill] sm:$0xff] %v14157_v18  ;;  %v5249_v1 = vrot.slane %v14157_v18, 7  ;;  %v5274_v48 = vrot.slane %v14073_v7, 1  ;;  %v5276_v45 = vrot.slane %v14082_v20, 1 }
 0x880   :  { %v5189_v21 = vadd.f32 %v5165_v27, %v16003_v40  ;;  %v5220_v34 = vmul.f32 0.01, %v5188_v42  ;;  %vm5204_vm15 = vcmp.gt.f32.partialorder %v5188_v42, 0.0  ;;  %v5222_v8 = vmul.f32 0.01, %v5190_v35 }
 0x881   :  { %vm5207_vm14 = vcmp.gt.f32.partialorder %v5191_v32, 0.0  ;;  %v5223_v2 = vmul.f32 0.01, %v5191_v32  ;;  %9226 = vmatpush3.bf16.msra.mxu0 %v9920_v13  ;;  %vm5206_vm4 = vcmp.gt.f32.partialorder %v5190_v35, 0.0  ;;  %v14220_v50 = vsel %vm81_vm0, %v5248_v44, %v5249_v1 }
 0x882   :  { %v5221_v25 = vmul.f32 0.01, %v5189_v21  ;;  %vm5205_vm3 = vcmp.gt.f32.partialorder %v5189_v21, 0.0  ;;  %v14183_v22 = vsel %vm5204_vm15, %v5188_v42, %v5220_v34  ;;  %9227 = vmatprep.subr.bf16.mxu0 %v9921_v41  ;;  %v14214_v9 = vsel %vm5206_vm4, %v5190_v35, %v5222_v8  ;;  %v9925_v34 = vld [vmem:[%s15721_s3 + $0x698] sm:$0xff]  }
 0x883   :  { %v14173_v55 = vsel %vm5207_vm14, %v5191_v32, %v5223_v2  ;;  %16007 = vst [vmem:[#allocation16_spill] sm:$0xff] %v14183_v22  ;;  %16009 = vst [vmem:[#allocation17_spill] sm:$0xff] %v14214_v9  ;;  %v14227_v63 = vsel %vm81_vm0, %v5247_v52, %v5248_v44  ;;  %v14231_v23 = vsel %vm114_vm1, %v5273_v29, %v5274_v48  ;;  %v5252_v42 = vrot.slane %v14183_v22, 7  ;;  %v9924_v32 = vld [vmem:[%s15721_s3 + $0x650] sm:$0xff]  }
 0x884   :  { %16006 = vst [vmem:[#allocation15_spill] sm:$0xff] %v14173_v55  ;;  %v5312_v47 = vpack.c.bf16 %v14075_v33, %v14173_v55  ;;  %v5255_v49 = vrot.slane %v14173_v55, 7  ;;  %v14199_v12 = vsel %vm5205_vm3, %v5189_v21, %v5221_v25  ;;  %v14239_v27 = vsel %vm114_vm1, %v5272_v19, %v5273_v29 }
 0x885   :  { %16008 = vst [vmem:[#allocation18_spill] sm:$0xff] %v14199_v12  ;;  %9228 = vmatpush3.bf16.msra.mxu0 %v9922_v57  ;;  %v5250_v31 = vrot.slane %v14163_v61, 7  ;;  %v5253_v35 = vrot.slane %v14199_v12, 7  ;;  %v5277_v28 = vrot.slane %v14086_v30, 1  ;;  %v5332_v16 = vpack.c.bf16 %v14220_v50, %v14227_v63  ;;  %v9926_v57 = vld [vmem:[%s15721_s3 + $0x658] sm:$0xff]  }
 0x886   :  { %5360 = vrot.lane.b32.xlu1 %v5312_v47, %s10249_s19  ;;  %v14206_v46 = vsel %vm81_vm0, %v5255_v49, %v5240_v59  ;;  %v5251_v59 = vrot.slane %v14170_v4, 7  ;;  %9229 = vmatprep.subr.bf16.mxu0 %v9923_v5  ;;  %v5299_v40 = vsel %vm114_vm1, %v5275_v36, %v5276_v45  ;;  %v5300_v21 = vsel %vm114_vm1, %v5274_v48, %v5275_v36 }
 0x887   :  { %v5328_v39 = vpack.c.bf16 %v14109_v10, %v14206_v46  ;;  %v5254_v52 = vrot.slane %v14214_v9, 7  ;;  %v5279_v13 = vrot.slane %v14114_v0, 1  ;;  %v5280_v25 = vrot.slane %v14144_v54, 1 }
 0x888   :  { %v14263_v2 = vsel %vm81_vm0, %v5250_v31, %v5251_v59  ;;  %v14270_v44 = vsel %vm81_vm0, %v5249_v1, %v5250_v31  ;;  %v14274_v8 = vsel %vm81_vm0, %v5251_v59, %v5252_v42  ;;  %v5283_v47 = vrot.slane %v14170_v4, 1 }
 0x889   :  { %5384 = vrot.lane.b32.xlu0 %v5328_v39, %s10249_s19  ;;  %9230 = vmatpush3.bf16.msra.mxu0 %v9924_v32  ;;  %v14278_v41 = vsel %vm81_vm0, %v5254_v52, %v5255_v49  ;;  %v14287_v1 = vsel %vm81_vm0, %v5252_v42, %v5253_v35  ;;  %v5298_v48 = vsel %vm114_vm1, %v5276_v45, %v5277_v28  ;;  %v5281_v49 = vrot.slane %v14157_v18, 1 }
 0x88a   :  { %5362 = vrot.lane.b32.xlu1 %v5313_v6, %s10249_s19  ;;  %v5278_v6 = vrot.slane %v14099_v26, 1  ;;  %9231 = vmatprep.subr.bf16.mxu0 %v9925_v34  ;;  %v5287_v36 = vrot.slane %v14173_v55, 1  ;;  %v5285_v5 = vrot.slane %v14199_v12, 1  ;;  %v5295_v39 = vsel %vm114_vm1, %v5279_v13, %v5280_v25 }
 0x88b   :  { %v14312_v42 = vsel %vm81_vm0, %v5253_v35, %v5254_v52  ;;  %v5284_v31 = vrot.slane %v14183_v22, 1  ;;  %v5294_v32 = vsel %vm114_vm1, %v5280_v25, %v5281_v49  ;;  %v5286_v52 = vrot.slane %v14214_v9, 1 }
 0x88c   :  { %v5297_v29 = vsel %vm114_vm1, %v5277_v28, %v5278_v6  ;;  %v5296_v59 = vsel %vm114_vm1, %v5278_v6, %v5279_v13  ;;  %v5303_v34 = vsel %vm114_vm1, %v5287_v36, %v5272_v19  ;;  %v14336_v13 = vpack.c.bf16 %v5300_v21, %v14231_v23 }
 0x88d   :  { %5386 = vrot.lane.b32.xlu0 %v5329_v14, %s10249_s19  ;;  %v5282_v14 = vrot.slane %v14163_v61, 1  ;;  %9232 = vmatpush3.bf16.msra.mxu0 %v9926_v57  ;;  %v14333_v6 = vpack.c.bf16 %v14239_v27, %v5303_v34  ;;  %v5290_v19 = vsel %vm114_vm1, %v5284_v31, %v5285_v5  ;;  %v14346_v25 = vpack.c.bf16 %v5298_v48, %v5299_v40 }
 0x88e   :  { %5364 = vrot.lane.b32.xlu1 %v5314_v24, %s10249_s19  ;;  %v5288_v57 = vsel %vm114_vm1, %v5286_v52, %v5287_v36  ;;  %v14354_v24 = vpack.c.bf16 %v5296_v59, %v5297_v29  ;;  %v5291_v45 = vsel %vm114_vm1, %v5283_v47, %v5284_v31  ;;  %v16010_v36 = vpack.c.bf16 %v14187_v17, %v14193_v43 }
 0x88f   :  { %v5292_v28 = vsel %vm114_vm1, %v5282_v14, %v5283_v47  ;;  %v5293_v35 = vsel %vm114_vm1, %v5281_v49, %v5282_v14  ;;  %v5289_v14 = vsel %vm114_vm1, %v5285_v5, %v5286_v52  ;;  %v14370_v5 = vpack.c.bf16 %v5290_v19, %v5291_v45 }
 0x890   :  { %v14364_v49 = vpack.c.bf16 %v5292_v28, %v5293_v35  ;;  %v5311_v47 = vpack.c.bf16 %v14312_v42, %v14287_v1  ;;  %v14377_v31 = vpack.c.bf16 %v5288_v57, %v5289_v14  ;;  %v5344_v51 = vpack.c.bf16 %v14231_v23, %v14239_v27 }
 0x891   :  { %5388 = vrot.lane.b32.xlu0 %v5330_v60, %s10249_s19  ;;  %v5345_v60 = vpack.c.bf16 %v5299_v40, %v5300_v21  ;;  %v5317_v52 = vpack.c.bf16 %v14163_v61, %v14157_v18  ;;  %v5334_v23 = vpack.c.bf16 %v14287_v1, %v14274_v8  ;;  %v5347_v27 = vpack.c.bf16 %v5295_v39, %v5296_v59  ;;  %v10159_v1 = vld [vmem:[%s15720_s2 + $0x10] ss:$20 sps:$4 sm:$0xff]  }
 0x892   :  { %5366 = vrot.lane.b32.xlu1 %v5315_v53, %s10249_s19  ;;  %v14356_v53 = vpack.c.bf16 %v5294_v32, %v5295_v39  ;;  %v5318_v40 = vpack.c.bf16 %v14183_v22, %v14170_v4  ;;  %v5319_v21 = vpack.c.bf16 %v14214_v9, %v14199_v12  ;;  %v5350_v39 = vpack.c.bf16 %v5289_v14, %v5290_v19  ;;  %v10132_v14 = vld [vmem:[%s15720_s2 + $0xc] ss:$20 sps:$4 sm:$0xff]  }
 0x893   :  { %v16012_v19 = vpack.c.bf16 %v14097_v62, %v14109_v10 }
 0x895   :  { %5390 = vrot.lane.b32.xlu0 %v16010_v36, %s10249_s19  ;;  %v5316_v36 = vpack.c.bf16 %v14144_v54, %v14114_v0 }
 0x896   :  { %5392 = vrot.lane.b32.xlu1 %v5332_v16, %s10249_s19  ;;  %v5333_v16 = vpack.c.bf16 %v14263_v2, %v14270_v44 }
 0x899   :  { %5408 = vrot.lane.b32.xlu0 %v5344_v51, %s10249_s19  ;;  %v5346_v51 = vpack.c.bf16 %v5297_v29, %v5298_v48  ;;  %v5348_v29 = vpack.c.bf16 %v5293_v35, %v5294_v32  ;;  %v5351_v48 = vpack.c.bf16 %v5303_v34, %v5288_v57  ;;  %v10130_v34 = vld [vmem:[%s15720_s2 + $0x4] ss:$20 sps:$4 sm:$0xff]  }
 0x89a   :  { %5410 = vrot.lane.b32.xlu1 %v5345_v60, %s10249_s19  ;;  %v5335_v60 = vpack.c.bf16 %v14278_v41, %v14312_v42  ;;  %v5524_v42 = vmul.bf16 %v10159_v1, %v14336_v13  ;;  %v9930_v1 = vld [vmem:[%s15721_s3 + $0x700] sm:$0xff]  }
 0x89b   :  { %9293 = vmatprep.subr.bf16.mxu0 %v9930_v1 }
 0x89d   :  { %5368 = vrot.lane.b32.xlu0 %v5316_v36, %s10249_s19  ;;  %v16011_v36 = vpack.c.bf16 %v14206_v46, %v14278_v41  ;;  %v10131_v46 = vld [vmem:[%s15720_s2] ss:$20 sps:$4 sm:$0xff]  }
 0x89e   :  { %5370 = vrot.lane.b32.xlu1 %v5317_v52, %s10249_s19  ;;  %v5349_v52 = vpack.c.bf16 %v5291_v45, %v5292_v28 }
 0x8a1   :  { %5394 = vrot.lane.b32.xlu0 %v5333_v16, %s10249_s19 }
 0x8a2   :  { %5396 = vrot.lane.b32.xlu1 %v5334_v23, %s10249_s19 }
 0x8a5   :  { %5412 = vrot.lane.b32.xlu0 %v5346_v51, %s10249_s19  ;;  %v9927_v51 = vld [vmem:[%s15721_s3 + $0x6a8] sm:$0xff]  }
 0x8a6   :  { %5414 = vrot.lane.b32.xlu1 %v5347_v27, %s10249_s19 }
 0x8a9   :  { %5372 = vrot.lane.b32.xlu0 %v5318_v40, %s10249_s19  ;;  %v10133_v40 = vld [vmem:[%s15720_s2 + $0x2c] ss:$20 sps:$4 sm:$0xff]  }
 0x8aa   :  { %5374 = vrot.lane.b32.xlu1 %v5319_v21, %s10249_s19 }
 0x8ad   :  { %5398 = vrot.lane.b32.xlu0 %v5335_v60, %s10249_s19  ;;  %v9928_v60 = vld [vmem:[%s15721_s3 + $0x6b0] sm:$0xff]  }
 0x8ae   :  { %5418 = vrot.lane.b32.xlu1 %v5349_v52, %s10249_s19 }
 0x8b1   :  { %5416 = vrot.lane.b32.xlu0 %v5348_v29, %s10249_s19 }
 0x8b2   :  { %5422 = vrot.lane.b32.xlu1 %v5351_v48, %s10249_s19 }
 0x8b5   :  { %5420 = vrot.lane.b32.xlu0 %v5350_v39, %s10249_s19  ;;  %v10134_v39 = vld [vmem:[%s15720_s2 + $0x28] ss:$20 sps:$4 sm:$0xff]  }
 0x8f8   :  { %v5361_v59 = vpop.permute.xlu1 %5360 }
 0x8f9   :  { %v14414_v16 = vsel %vm251_vm2, %v16011_v36, %v5361_v59  ;;  %v10135_v36 = vld [vmem:[%s15720_s2 + $0x54] ss:$20 sps:$4 sm:$0xff]  }
 0x8fa   :  { %v5520_v41 = vmul.bf16 %v10131_v46, %v14414_v16 }
 0x8fb   :  { %v5385_v45 = vpop.permute.xlu0 %5384 }
 0x8fc   :  { %v5458_v28 = vsel %vm251_vm2, %v14333_v6, %v5385_v45  ;;  %v5363_v32 = vpop.permute.xlu1 %5362 }
 0x8fd   :  { %v5521_v35 = vmul.bf16 %v10130_v34, %v5458_v28  ;;  %v5430_v57 = vsel %vm251_vm2, %v16012_v19, %v5363_v32  ;;  %v5336_v34 = vpack.c.bf16 %v14069_v37, %v14075_v33 }
 0x8fe   :  { %v5523_v23 = vmul.bf16 %v10132_v14, %v5430_v57  ;;  %v5525_v59 = vmul.bf16 %v10134_v39, %v5430_v57  ;;  %v10136_v14 = vld [vmem:[%s15720_s2 + $0x8] ss:$20 sps:$4 sm:$0xff]  }
 0x8ff   :  { %5910 = vmatprep.mubr.bf16.mxu1 %v5521_v35  ;;  %v5387_v27 = vpop.permute.xlu0 %5386  ;;  %v16013_v35 = vpack.c.bf16 %v14130_v56, %v14093_v38  ;;  %v10138_v56 = vld [vmem:[%s15720_s2 + $0x50] ss:$20 sps:$4 sm:$0xff]  }
 0x900   :  { %v5462_v62 = vsel %vm251_vm2, %v14336_v13, %v5387_v27  ;;  %v5365_v10 = vpop.permute.xlu1 %5364  ;;  %5911 = vmatmul.mubr.bf16.vlgmr.msra.gmra.mrb[192].mxu1 %v5520_v41  ;;  %6007 = vmatprep.mubr.bf16.mxu0 %v5523_v23  ;;  %v10137_v27 = vld [vmem:[%s15720_s2 + $0x34] ss:$20 sps:$4 sm:$0xff]  }
 0x901   :  { %v5526_v21 = vmul.bf16 %v10133_v40, %v5462_v62  ;;  %9563 = vmatpush3.bf16.msra.mxu1 %v14154_v3  ;;  %v9929_v3 = vld [vmem:[%s15721_s3 + $0x6b8] sm:$0xff]   ;;  %v5434_v19 = vsel %vm251_vm2, %v16013_v35, %v5365_v10 }
 0x902   :  { %9564 = vmatprep.subr.bf16.mxu1 %v9927_v51  ;;  %v5528_v38 = vmul.bf16 %v10137_v27, %v5434_v19  ;;  %v5530_v62 = vmul.bf16 %v10138_v56, %v5434_v19  ;;  %v10139_v10 = vld [vmem:[%s15720_s2 + $0x7c] ss:$20 sps:$4 sm:$0xff]  }
 0x903   :  { %5918 = vmatprep.mubr.bf16.mxu1 %v5526_v21  ;;  %v5389_v52 = vpop.permute.xlu0 %5388 }
 0x904   :  { %v5466_v29 = vsel %vm251_vm2, %v14346_v25, %v5389_v52  ;;  %v5367_v48 = vpop.permute.xlu1 %5366 }
 0x905   :  { %9565 = vmatpush3.bf16.msra.mxu1 %v9927_v51  ;;  %v5531_v45 = vmul.bf16 %v10135_v36, %v5466_v29  ;;  %v16014_v29 = vpack.c.bf16 %v14193_v43, %v14136_v58  ;;  %v10142_v58 = vld [vmem:[%s15720_s2 + $0x78] ss:$20 sps:$4 sm:$0xff]  }
 0x906   :  { %9566 = vmatprep.subr.bf16.mxu1 %v9928_v60 }
 0x907   :  { %v5391_v28 = vpop.permute.xlu0 %5390  ;;  %v5438_v39 = vsel %vm251_vm2, %v16014_v29, %v5367_v48  ;;  %v10143_v48 = vld [vmem:[%s15720_s2 + $0xa4] ss:$20 sps:$4 sm:$0xff]  }
 0x908   :  { %v5393_v32 = vpop.permute.xlu1 %5392  ;;  %5919 = vmatmul.mubr.bf16.gmra.mrb[196].mxu1 %v5525_v59  ;;  %v5470_v46 = vsel %vm251_vm2, %v14354_v24, %v5391_v28  ;;  %v5535_v43 = vmul.bf16 %v10142_v58, %v5438_v39 }
 0x909   :  { %5926 = vmatprep.mubr.bf16.mxu1 %v5531_v45  ;;  %9567 = vmatpush3.bf16.msra.mxu1 %v9928_v60  ;;  %v5536_v40 = vmul.bf16 %v10139_v10, %v5470_v46  ;;  %v5337_v60 = vpack.c.bf16 %v14067_v15, %v14073_v7  ;;  %v5474_v36 = vsel %vm251_vm2, %v14356_v53, %v5393_v32  ;;  %v10140_v45 = vld [vmem:[%s15720_s2 + $0x30] ss:$20 sps:$4 sm:$0xff]  }
 0x90a   :  { %9568 = vmatprep.subr.bf16.mxu1 %v9929_v3  ;;  %v5541_v32 = vmul.bf16 %v10143_v48, %v5474_v36 }
 0x90b   :  { %v5409_v57 = vpop.permute.xlu0 %5408 }
 0x90c   :  { %v5490_v41 = vsel %vm251_vm2, %v5336_v34, %v5409_v57  ;;  %v5411_v51 = vpop.permute.xlu1 %5410  ;;  %v10141_v34 = vld [vmem:[%s15720_s2 + $0x5c] ss:$20 sps:$4 sm:$0xff]   ;;  %v5338_v57 = vpack.c.bf16 %v14086_v30, %v14082_v20 }
 0x90d   :  { %v5522_v23 = vmul.bf16 %v10136_v14, %v5490_v41  ;;  %9569 = vmatpush3.bf16.msra.mxu1 %v9929_v3  ;;  %v5494_v52 = vsel %vm251_vm2, %v5337_v60, %v5411_v51  ;;  %v5533_v35 = vmul.bf16 %v10141_v34, %v5438_v39  ;;  %v16015_v14 = vpack.c.bf16 %v14227_v63, %v14187_v17  ;;  %v10146_v17 = vld [vmem:[%s15720_s2 + $0xa0] ss:$20 sps:$4 sm:$0xff]  }
 0x90e   :  { %v5527_v28 = vmul.bf16 %v10140_v45, %v5494_v52  ;;  %v5339_v52 = vpack.c.bf16 %v14114_v0, %v14099_v26 }
 0x90f   :  { %v5369_v21 = vpop.permute.xlu0 %5368  ;;  %6008 = vmatmul.mubr.bf16.vlgmr.msra.gmra.mrb[208].mxu0 %v5522_v23 }
 0x910   :  { %5927 = vmatmul.mubr.bf16.gmra.mrb[200].mxu1 %v5530_v62  ;;  %6015 = vmatprep.mubr.bf16.mxu0 %v5528_v38  ;;  %v5371_v59 = vpop.permute.xlu1 %5370  ;;  %v5442_v23 = vsel %vm251_vm2, %v16015_v14, %v5369_v21  ;;  %v10144_v38 = vld [vmem:[%s15720_s2 + $0x58] ss:$20 sps:$4 sm:$0xff]  }
 0x911   :  { %5934 = vmatprep.mubr.bf16.mxu1 %v5536_v40  ;;  %v10145_v62 = vld [vmem:[%s15720_s2 + $0x84] ss:$20 sps:$4 sm:$0xff]   ;;  %v5540_v63 = vmul.bf16 %v10146_v17, %v5442_v23  ;;  %v10147_v40 = vld [vmem:[%s15720_s2 + $0xcc] ss:$20 sps:$4 sm:$0xff]   ;;  %v5341_v17 = vpack.c.bf16 %v14170_v4, %v14163_v61 }
 0x912   :  { %v5538_v10 = vmul.bf16 %v10145_v62, %v5442_v23  ;;  %v10152_v23 = vld [vmem:[%s15720_s2 + $0xa8] ss:$20 sps:$4 sm:$0xff]   ;;  %v10154_v62 = vld [vmem:[%s15720_s2 + $0xf0] ss:$20 sps:$4 sm:$0xff]  }
 0x913   :  { %v5395_v3 = vpop.permute.xlu0 %5394 }
 0x914   :  { %v5397_v46 = vpop.permute.xlu1 %5396  ;;  %v5478_v27 = vsel %vm251_vm2, %v14364_v49, %v5395_v3  ;;  %v16016_v3 = vpack.c.bf16 %v14270_v44, %v14220_v50  ;;  %v10151_v44 = vld [vmem:[%s15720_s2 + $0xf4] ss:$20 sps:$4 sm:$0xff]  }
 0x915   :  { %v5546_v21 = vmul.bf16 %v10147_v40, %v5478_v27  ;;  %v5482_v45 = vsel %vm251_vm2, %v14370_v5, %v5397_v46  ;;  %v16017_v46 = vpack.c.bf16 %v14274_v8, %v14263_v2  ;;  %v10155_v8 = vld [vmem:[%s15720_s2 + $0x11c] ss:$20 sps:$4 sm:$0xff]  }
 0x916   :  { %v5446_v36 = vsel %vm251_vm2, %v16016_v3, %v5371_v59  ;;  %v5551_v59 = vmul.bf16 %v10151_v44, %v5482_v45  ;;  %v10163_v44 = vld [vmem:[%s15720_s2 + $0x60] ss:$20 sps:$4 sm:$0xff]  }
 0x917   :  { %v5413_v19 = vpop.permute.xlu0 %5412  ;;  %6016 = vmatmul.mubr.bf16.gmra.mrb[212].mxu0 %v5527_v28  ;;  %v10148_v28 = vld [vmem:[%s15720_s2 + $0x80] ss:$20 sps:$4 sm:$0xff]  }
 0x918   :  { %5935 = vmatmul.mubr.bf16.gmra.mrb[204].mxu1 %v5535_v43  ;;  %6023 = vmatprep.mubr.bf16.mxu0 %v5533_v35  ;;  %v5498_v41 = vsel %vm251_vm2, %v5338_v57, %v5413_v19  ;;  %v5415_v60 = vpop.permute.xlu1 %5414  ;;  %v10149_v35 = vld [vmem:[%s15720_s2 + $0xac] ss:$20 sps:$4 sm:$0xff]   ;;  %v10150_v43 = vld [vmem:[%s15720_s2 + $0xc8] ss:$20 sps:$4 sm:$0xff]  }
 0x919   :  { %5942 = vmatprep.mubr.bf16.mxu1 %v5541_v32  ;;  %v5532_v56 = vmul.bf16 %v10144_v38, %v5498_v41  ;;  %v5502_v39 = vsel %vm251_vm2, %v5339_v52, %v5415_v60  ;;  %v5543_v58 = vmul.bf16 %v10149_v35, %v5446_v36  ;;  %v5545_v50 = vmul.bf16 %v10150_v43, %v5446_v36  ;;  %v10153_v38 = vld [vmem:[%s15720_s2 + $0xd4] ss:$20 sps:$4 sm:$0xff]   ;;  %v10157_v52 = vld [vmem:[%s15720_s2 + $0xfc] ss:$20 sps:$4 sm:$0xff]   ;;  %v10161_v35 = vld [vmem:[%s15720_s2 + $0x124] ss:$20 sps:$4 sm:$0xff]  }
 0x91a   :  { %v5537_v34 = vmul.bf16 %v10148_v28, %v5502_v39  ;;  %v5340_v32 = vpack.c.bf16 %v14157_v18, %v14144_v54  ;;  %v10158_v39 = vld [vmem:[%s15720_s2 + $0x118] ss:$20 sps:$4 sm:$0xff]   ;;  %v5558_v13 = vmul.bf16 %v10161_v35, %v14414_v16 }
 0x91b   :  { %v5373_v51 = vpop.permute.xlu0 %5372  ;;  %v10160_v28 = vld [vmem:[%s15720_s2 + $0xf8] ss:$20 sps:$4 sm:$0xff]  }
 0x91c   :  { %v5375_v19 = vpop.permute.xlu1 %5374  ;;  %v5450_v41 = vsel %vm251_vm2, %v16017_v46, %v5373_v51 }
 0x91d   :  { %v5550_v2 = vmul.bf16 %v10154_v62, %v5450_v41  ;;  %v5454_v40 = vsel %vm251_vm2, %v5311_v47, %v5375_v19  ;;  %v5342_v47 = vpack.c.bf16 %v14199_v12, %v14183_v22  ;;  %v10165_v19 = vld [vmem:[%s15720_s2 + $0x88] ss:$20 sps:$4 sm:$0xff]  }
 0x91e   :  { %v5555_v3 = vmul.bf16 %v10158_v39, %v5454_v40 }
 0x91f   :  { %6024 = vmatmul.mubr.bf16.gmra.mrb[216].mxu0 %v5532_v56  ;;  %v5399_v29 = vpop.permute.xlu0 %5398  ;;  %v5548_v56 = vmul.bf16 %v10153_v38, %v5450_v41  ;;  %v10167_v41 = vld [vmem:[%s15720_s2 + $0xd8] ss:$20 sps:$4 sm:$0xff]  }
 0x920   :  { %5943 = vmatmul.mubr.bf16.gmra.mrb[208].mxu1 %v5540_v63  ;;  %6031 = vmatprep.mubr.bf16.mxu0 %v5538_v10  ;;  %v5486_v14 = vsel %vm251_vm2, %v14377_v31, %v5399_v29  ;;  %v5419_v10 = vpop.permute.xlu1 %5418  ;;  %v5553_v29 = vmul.bf16 %v10157_v52, %v5454_v40 }
 0x921   :  { %5950 = vmatprep.mubr.bf16.mxu1 %v5546_v21  ;;  %v5556_v51 = vmul.bf16 %v10155_v8, %v5486_v14  ;;  %v5510_v63 = vsel %vm251_vm2, %v5341_v17, %v5419_v10  ;;  %v10156_v21 = vld [vmem:[%s15720_s2 + $0xd0] ss:$20 sps:$4 sm:$0xff]   ;;  %v5549_v14 = vmul.bf16 %v10167_v41, %v14370_v5 }
 0x922   :  { %v5547_v60 = vmul.bf16 %v10156_v21, %v5510_v63  ;;  %v14635_v21 = vld [vmem:[%s15722_s4 + $0x5] ss:$0 sm:$0xff] }
 0x923   :  { %v5417_v48 = vpop.permute.xlu0 %5416 }
 0x924   :  { %v5506_v57 = vsel %vm251_vm2, %v5340_v32, %v5417_v48  ;;  %v5343_v48 = vpack.c.bf16 %v14173_v55, %v14214_v9 }
 0x925   :  { %v5542_v27 = vmul.bf16 %v10152_v23, %v5506_v57  ;;  %v10166_v57 = vld [vmem:[%s15720_s2 + $0xb0] ss:$20 sps:$4 sm:$0xff]  }
 0x926   :  { %v5544_v46 = vmul.bf16 %v10166_v57, %v14364_v49  ;;  %v10169_v49 = vld [vmem:[%s15720_s2 + $0x128] ss:$20 sps:$4 sm:$0xff]  }
 0x927   :  { %6032 = vmatmul.mubr.bf16.gmra.mrb[220].mxu0 %v5537_v34  ;;  %v5421_v36 = vpop.permute.xlu0 %5420 }
 0x928   :  { %5951 = vmatmul.mubr.bf16.gmra.mrb[212].mxu1 %v5545_v50  ;;  %6039 = vmatprep.mubr.bf16.mxu0 %v5543_v58  ;;  %v5514_v45 = vsel %vm251_vm2, %v5342_v47, %v5421_v36  ;;  %v10162_v58 = vld [vmem:[%s15720_s2 + $0x38] ss:$20 sps:$4 sm:$0xff]   ;;  %v5423_v50 = vpop.permute.xlu1 %5422 }
 0x929   :  { %5958 = vmatprep.mubr.bf16.mxu1 %v5551_v59  ;;  %v5552_v34 = vmul.bf16 %v10160_v28, %v5514_v45  ;;  %v5529_v43 = vmul.bf16 %v10162_v58, %v14346_v25  ;;  %v5534_v59 = vmul.bf16 %v10163_v44, %v14354_v24  ;;  %v5518_v16 = vsel %vm251_vm2, %v5343_v48, %v5423_v50  ;;  %v10164_v25 = vld [vmem:[%s15720_s2 + $0x120] ss:$20 sps:$4 sm:$0xff]   ;;  %v9932_v47 = vld [vmem:[%s15721_s3 + $0x708] sm:$0xff]  }
 0x92a   :  { %v5557_v32 = vmul.bf16 %v10164_v25, %v5518_v16  ;;  %v5539_v24 = vmul.bf16 %v10165_v19, %v14356_v53  ;;  %v10168_v53 = vld [vmem:[%s15720_s2 + $0x100] ss:$20 sps:$4 sm:$0xff]   ;;  %v9933_v44 = vld [vmem:[%s15721_s3 + $0x6c8] sm:$0xff]  }
 0x92b   :  { %v5554_v23 = vmul.bf16 %v10168_v53, %v14377_v31  ;;  %v9934_v48 = vld [vmem:[%s15721_s3 + $0x710] sm:$0xff]  }
 0x92c   :  { %v9935_v19 = vld [vmem:[%s15721_s3 + $0x6d0] sm:$0xff]  }
 0x92f   :  { %6040 = vmatmul.mubr.bf16.gmra.mrb[224].mxu0 %v5542_v27  ;;  %v5559_v27 = vmul.bf16 %v10169_v49, %v14333_v6 }
 0x930   :  { %5959 = vmatmul.mubr.bf16.gmra.mrb[216].mxu1 %v5550_v2  ;;  %6047 = vmatprep.mubr.bf16.mxu0 %v5548_v56 }
 0x931   :  { %5966 = vmatprep.mubr.bf16.mxu1 %v5556_v51 }
 0x937   :  { %6048 = vmatmul.mubr.bf16.gmra.mrb[228].mxu0 %v5547_v60 }
 0x938   :  { %5967 = vmatmul.mubr.bf16.gmra.mrb[220].mxu1 %v5555_v3  ;;  %6055 = vmatprep.mubr.bf16.mxu0 %v5553_v29 }
 0x939   :  { %9570 = vmatprep.mubr.msk.bf16.mxu1 %vm251_vm2, %v5524_v42  ;;  %v9931_v42 = vld [vmem:[%s15721_s3 + $0x6c0] sm:$0xff]  }
 0x93a   :  { %9294 = vmatpush3.bf16.msra.mxu0 %v9931_v42 }
 0x93b   :  { %9295 = vmatprep.subr.bf16.mxu0 %v9932_v47 }
 0x93e   :  { %9296 = vmatpush3.bf16.msra.mxu0 %v9933_v44 }
 0x93f   :  { %6056 = vmatmul.mubr.bf16.gmra.mrb[232].mxu0 %v5552_v34  ;;  %9297 = vmatprep.subr.bf16.mxu0 %v9934_v48 }
 0x940   :  { %6063 = vmatprep.mubr.bf16.mxu0 %v5558_v13  ;;  %9571 = vmatmul.mubr.msk.bf16.vlgmr.msra.gmra.mrb[224].mxu1 %vm251_vm2, %v5529_v43 }
 0x941   :  { %9574 = vmatprep.mubr.msk.bf16.mxu1 %vm251_vm2, %v5534_v59 }
 0x942   :  { %9298 = vmatpush3.bf16.msra.mxu0 %v9935_v19 }
 0x947   :  { %6064 = vmatmul.mubr.bf16.gmra.mrb[236].mxu0 %v5557_v32 }
 0x948   :  { %9575 = vmatmul.mubr.msk.bf16.gmra.mrb[228].mxu1 %vm251_vm2, %v5539_v24 }
 0x949   :  { %9578 = vmatprep.mubr.msk.bf16.mxu1 %vm251_vm2, %v5544_v46 }
 0x950   :  { %9579 = vmatmul.mubr.msk.bf16.gmra.mrb[232].mxu1 %vm251_vm2, %v5549_v14  ;;  %v9936_v14 = vld [vmem:[%s15721_s3 + $0x718] sm:$0xff]  }
 0x951   :  { %9582 = vmatprep.mubr.msk.bf16.mxu1 %vm251_vm2, %v5554_v23  ;;  %9299 = vmatprep.subr.bf16.mxu0 %v9936_v14 }
 0x958   :  { %9583 = vmatmul.mubr.msk.bf16.gmra.mrb[236].mxu1 %vm251_vm2, %v5559_v27 }
 0x9d3   :  { %v9169_v38 = vpop.f32.mrb[192].mxu1 }
 0x9d4   :  { %v9170_v5 = vpop.f32.mrb[193].mxu1 }
 0x9d5   :  { %v9171_v56 = vadd.f32 %v9170_v5, %v9169_v38  ;;  %v9172_v62 = vpop.f32.mrb[194].mxu1 }
 0x9d6   :  { %v9173_v2 = vpop.f32.mrb[195].mxu1 }
 0x9d7   :  { %v9174_v8 = vadd.f32 %v9173_v2, %v9172_v62  ;;  %v5913_v29 = vadd.f32 %v9171_v56, %v14635_v21  ;;  %v9937_v2 = vld [vmem:[%s15721_s3 + $0x6d8] sm:$0xff]  }
 0x9d8   :  { %9300 = vmatpush3.bf16.msra.mxu0 %v9937_v2 }
 0x9d9   :  { %v5916_v35 = vadd.f32 %v9174_v8, %v14635_v21 }
 0x9db   :  { %v9175_v51 = vpop.f32.mrb[196].mxu1 }
 0x9dc   :  { %v9176_v31 = vpop.f32.mrb[197].mxu1 }
 0x9dd   :  { %v9177_v10 = vadd.f32 %v9176_v31, %v9175_v51  ;;  %v9178_v17 = vpop.f32.mrb[198].mxu1 }
 0x9de   :  { %v9179_v63 = vpop.f32.mrb[199].mxu1 }
 0x9df   :  { %v9180_v40 = vadd.f32 %v9179_v63, %v9178_v17  ;;  %v5921_v24 = vadd.f32 %v9177_v10, %v14635_v21 }
 0x9e1   :  { %v5924_v27 = vadd.f32 %v9180_v40, %v14635_v21 }
 0x9e2   :  { %v9233_v6 = vpop.f32.mrb[208].mxu0 }
 0x9e3   :  { %v9181_v60 = vpop.f32.mrb[200].mxu1  ;;  %v9234_v52 = vpop.f32.mrb[209].mxu0 }
 0x9e4   :  { %v9235_v39 = vadd.f32 %v9234_v52, %v9233_v6  ;;  %v9182_v3 = vpop.f32.mrb[201].mxu1  ;;  %v9236_v36 = vpop.f32.mrb[210].mxu0 }
 0x9e5   :  { %v9183_v45 = vadd.f32 %v9182_v3, %v9181_v60  ;;  %v9184_v28 = vpop.f32.mrb[202].mxu1  ;;  %v9237_v34 = vpop.f32.mrb[211].mxu0 }
 0x9e6   :  { %v9238_v13 = vadd.f32 %v9237_v34, %v9236_v36  ;;  %v9185_v58 = vpop.f32.mrb[203].mxu1  ;;  %v14648_v43 = vadd.f32 %v9235_v39, %v5913_v29 }
 0x9e7   :  { %v9186_v50 = vadd.f32 %v9185_v58, %v9184_v28  ;;  %v5929_v17 = vadd.f32 %v9183_v45, %v14635_v21 }
 0x9e8   :  { %v14653_v59 = vadd.f32 %v9238_v13, %v5916_v35 }
 0x9e9   :  { %v5932_v39 = vadd.f32 %v9186_v50, %v14635_v21 }
 0x9ea   :  { %v9239_v16 = vpop.f32.mrb[212].mxu0 }
 0x9eb   :  { %v9187_v25 = vpop.f32.mrb[204].mxu1  ;;  %v9240_v32 = vpop.f32.mrb[213].mxu0 }
 0x9ec   :  { %v9241_v57 = vadd.f32 %v9240_v32, %v9239_v16  ;;  %v9188_v46 = vpop.f32.mrb[205].mxu1  ;;  %v9242_v41 = vpop.f32.mrb[214].mxu0 }
 0x9ed   :  { %v9189_v53 = vadd.f32 %v9188_v46, %v9187_v25  ;;  %v9190_v23 = vpop.f32.mrb[206].mxu1  ;;  %v9243_v49 = vpop.f32.mrb[215].mxu0 }
 0x9ee   :  { %v9244_v38 = vadd.f32 %v9243_v49, %v9242_v41  ;;  %v9191_v5 = vpop.f32.mrb[207].mxu1  ;;  %v14666_v56 = vadd.f32 %v9241_v57, %v5921_v24 }
 0x9ef   :  { %v9192_v62 = vadd.f32 %v9191_v5, %v9190_v23  ;;  %v5937_v45 = vadd.f32 %v9189_v53, %v14635_v21 }
 0x9f0   :  { %v14671_v8 = vadd.f32 %v9244_v38, %v5924_v27 }
 0x9f1   :  { %v5940_v50 = vadd.f32 %v9192_v62, %v14635_v21 }
 0x9f2   :  { %v9245_v51 = vpop.f32.mrb[216].mxu0 }
 0x9f3   :  { %v9193_v31 = vpop.f32.mrb[208].mxu1  ;;  %v9246_v10 = vpop.f32.mrb[217].mxu0 }
 0x9f4   :  { %v9247_v63 = vadd.f32 %v9246_v10, %v9245_v51  ;;  %v9194_v40 = vpop.f32.mrb[209].mxu1  ;;  %v9248_v6 = vpop.f32.mrb[218].mxu0 }
 0x9f5   :  { %v9195_v60 = vadd.f32 %v9194_v40, %v9193_v31  ;;  %v9196_v52 = vpop.f32.mrb[210].mxu1  ;;  %v9249_v29 = vpop.f32.mrb[219].mxu0 }
 0x9f6   :  { %v9250_v3 = vadd.f32 %v9249_v29, %v9248_v6  ;;  %v9197_v36 = vpop.f32.mrb[211].mxu1  ;;  %v14675_v1 = vadd.f32 %v9247_v63, %v5929_v17 }
 0x9f7   :  { %v9198_v42 = vadd.f32 %v9197_v36, %v9196_v52  ;;  %v5945_v53 = vadd.f32 %v9195_v60, %v14635_v21 }
 0x9f8   :  { %v14677_v47 = vadd.f32 %v9250_v3, %v5932_v39 }
 0x9f9   :  { %v5948_v62 = vadd.f32 %v9198_v42, %v14635_v21 }
 0x9fa   :  { %v9251_v28 = vpop.f32.mrb[220].mxu0 }
 0x9fb   :  { %v9199_v34 = vpop.f32.mrb[212].mxu1  ;;  %v9252_v35 = vpop.f32.mrb[221].mxu0 }
 0x9fc   :  { %v9253_v13 = vadd.f32 %v9252_v35, %v9251_v28  ;;  %v9200_v58 = vpop.f32.mrb[213].mxu1  ;;  %v9254_v44 = vpop.f32.mrb[222].mxu0 }
 0x9fd   :  { %v9201_v48 = vadd.f32 %v9200_v58, %v9199_v34  ;;  %v9202_v16 = vpop.f32.mrb[214].mxu1  ;;  %v9255_v25 = vpop.f32.mrb[223].mxu0 }
 0x9fe   :  { %v9256_v32 = vadd.f32 %v9255_v25, %v9254_v44  ;;  %v9203_v19 = vpop.f32.mrb[215].mxu1  ;;  %v14681_v24 = vadd.f32 %v9253_v13, %v5937_v45 }
 0x9ff   :  { %v9204_v57 = vadd.f32 %v9203_v19, %v9202_v16  ;;  %v5953_v60 = vadd.f32 %v9201_v48, %v14635_v21  ;;  %v9938_v48 = vld [vmem:[%s15721_s3 + $0x720] sm:$0xff]  }
 0xa00   :  { %v14683_v46 = vadd.f32 %v9256_v32, %v5940_v50  ;;  %v9939_v19 = vld [vmem:[%s15721_s3 + $0x780] sm:$0xff]   ;;  %9301 = vmatprep.subr.bf16.mxu0 %v9938_v48 }
 0xa01   :  { %v5956_v42 = vadd.f32 %v9204_v57, %v14635_v21  ;;  %v9940_v57 = vld [vmem:[%s15721_s3 + $0x6e0] sm:$0xff]   ;;  %9357 = vmatprep.subr.bf16.mxu1 %v9939_v19 }
 0xa02   :  { %v9257_v41 = vpop.f32.mrb[224].mxu0  ;;  %9302 = vmatpush3.bf16.msra.mxu0 %v9940_v57 }
 0xa03   :  { %v9205_v14 = vpop.f32.mrb[216].mxu1  ;;  %v9258_v23 = vpop.f32.mrb[225].mxu0 }
 0xa04   :  { %v9259_v49 = vadd.f32 %v9258_v23, %v9257_v41  ;;  %v9206_v27 = vpop.f32.mrb[217].mxu1  ;;  %v9260_v38 = vpop.f32.mrb[226].mxu0 }
 0xa05   :  { %v9207_v5 = vadd.f32 %v9206_v27, %v9205_v14  ;;  %v9208_v2 = vpop.f32.mrb[218].mxu1  ;;  %v9261_v51 = vpop.f32.mrb[227].mxu0 }
 0xa06   :  { %v9262_v31 = vadd.f32 %v9261_v51, %v9260_v38  ;;  %v9209_v10 = vpop.f32.mrb[219].mxu1  ;;  %v14687_v17 = vadd.f32 %v9259_v49, %v5945_v53  ;;  %v9941_v49 = vld [vmem:[%s15721_s3 + $0x740] sm:$0xff]  }
 0xa07   :  { %v9210_v63 = vadd.f32 %v9209_v10, %v9208_v2  ;;  %v5961_v27 = vadd.f32 %v9207_v5, %v14635_v21  ;;  %9358 = vmatpush3.bf16.msra.mxu1 %v9941_v49 }
 0xa08   :  { %v14689_v40 = vadd.f32 %v9262_v31, %v5948_v62  ;;  %v9944_v31 = vld [vmem:[%s15721_s3 + $0x728] sm:$0xff]  }
 0xa09   :  { %v5964_v38 = vadd.f32 %v9210_v63, %v14635_v21  ;;  %9303 = vmatprep.subr.bf16.mxu0 %v9944_v31 }
 0xa0a   :  { %v9263_v6 = vpop.f32.mrb[228].mxu0 }
 0xa0b   :  { %v9211_v52 = vpop.f32.mrb[220].mxu1  ;;  %v9264_v29 = vpop.f32.mrb[229].mxu0 }
 0xa0c   :  { %v9265_v39 = vadd.f32 %v9264_v29, %v9263_v6  ;;  %v9212_v3 = vpop.f32.mrb[221].mxu1  ;;  %v9266_v36 = vpop.f32.mrb[230].mxu0 }
 0xa0d   :  { %v9213_v28 = vadd.f32 %v9212_v3, %v9211_v52  ;;  %v9214_v34 = vpop.f32.mrb[222].mxu1  ;;  %v9267_v35 = vpop.f32.mrb[231].mxu0  ;;  %v9946_v52 = vld [vmem:[%s15721_s3 + $0x6e8] sm:$0xff]  }
 0xa0e   :  { %v9268_v45 = vadd.f32 %v9267_v35, %v9266_v36  ;;  %v9215_v13 = vpop.f32.mrb[223].mxu1  ;;  %v14693_v58 = vadd.f32 %v9265_v39, %v5953_v60  ;;  %v9950_v35 = vld [vmem:[%s15721_s3 + $0x730] sm:$0xff]   ;;  %9304 = vmatpush3.bf16.msra.mxu0 %v9946_v52 }
 0xa0f   :  { %v9216_v44 = vadd.f32 %v9215_v13, %v9214_v34  ;;  %v9947_v13 = vld [vmem:[%s15721_s3 + $0x750] sm:$0xff]   ;;  %9305 = vmatprep.subr.bf16.mxu0 %v9950_v35 }
 0xa10   :  { %v14695_v16 = vadd.f32 %v9268_v45, %v5956_v42 }
 0xa11   :  { %v5972_v42 = vadd.f32 %v9216_v44, %v14635_v21 }
 0xa12   :  { %v9269_v25 = vpop.f32.mrb[232].mxu0 }
 0xa13   :  { %v9270_v50 = vpop.f32.mrb[233].mxu0  ;;  %v9572_v32 = vpop.f32.mrb[224].mxu1 }
 0xa14   :  { %v9271_v41 = vadd.f32 %v9270_v50, %v9269_v25  ;;  %v6115_v14 = vadd.f32 %v9572_v32, %v14666_v56  ;;  %v9272_v23 = vpop.f32.mrb[234].mxu0  ;;  %v6106_v53 = vpop.f32.mrb[225].mxu1  ;;  %v9942_v56 = vld [vmem:[%s15721_s3 + $0x788] sm:$0xff]  }
 0xa15   :  { %v6107_v2 = vadd.f32 %v6106_v53, %v14648_v43  ;;  %v9273_v51 = vpop.f32.mrb[235].mxu0  ;;  %v9573_v62 = vpop.f32.mrb[226].mxu1  ;;  %v9943_v43 = vld [vmem:[%s15721_s3 + $0x748] sm:$0xff]   ;;  %9359 = vmatprep.subr.bf16.mxu1 %v9942_v56 }
 0xa16   :  { %vm6171_vm5 = vcmp.gt.f32.partialorder %v6115_v14, 0.0  ;;  %v6187_v10 = vmul.f32 0.01, %v6115_v14  ;;  %v9274_v6 = vadd.f32 %v9273_v51, %v9272_v23  ;;  %v6118_v5 = vadd.f32 %v9573_v62, %v14671_v8  ;;  %v6109_v63 = vpop.f32.mrb[227].mxu1  ;;  %v9945_v8 = vld [vmem:[%s15721_s3 + $0x790] sm:$0xff]   ;;  %9360 = vmatpush3.bf16.msra.mxu1 %v9943_v43  ;;  %v9948_v23 = vld [vmem:[%s15721_s3 + $0x798] sm:$0xff]  }
 0xa17   :  { %vm6169_vm6 = vcmp.gt.f32.partialorder %v6107_v2, 0.0  ;;  %v6185_v29 = vmul.f32 0.01, %v6107_v2  ;;  %v6110_v60 = vadd.f32 %v6109_v63, %v14653_v59  ;;  %v14727_v39 = vadd.f32 %v9271_v41, %v5961_v27  ;;  %9361 = vmatprep.subr.bf16.mxu1 %v9945_v8 }
 0xa18   :  { %v14733_v3 = vsel %vm6171_vm5, %v6115_v14, %v6187_v10  ;;  %vm6172_vm7 = vcmp.gt.f32.partialorder %v6118_v5, 0.0  ;;  %v6188_v36 = vmul.f32 0.01, %v6118_v5  ;;  %v14735_v34 = vadd.f32 %v9274_v6, %v5964_v38 }
 0xa19   :  { %16018 = vst [vmem:[#allocation20_spill] sm:$0xff] %v14733_v3  ;;  %v5969_v59 = vadd.f32 %v9213_v28, %v14635_v21  ;;  %v14742_v45 = vsel %vm6169_vm6, %v6107_v2, %v6185_v29  ;;  %vm6170_vm8 = vcmp.gt.f32.partialorder %v6110_v60, 0.0  ;;  %v6219_v25 = vrot.slane %v14733_v3, 7  ;;  %v9952_v21 = vld [vmem:[%s15721_s3 + $0x6f0] sm:$0xff]  }
 0xa1a   :  { %v6251_v50 = vrot.slane %v14733_v3, 1  ;;  %v14749_v32 = vsel %vm6172_vm7, %v6118_v5, %v6188_v36  ;;  %v6186_v48 = vmul.f32 0.01, %v6110_v60  ;;  %v9275_v19 = vpop.f32.mrb[236].mxu0  ;;  %v6217_v28 = vrot.slane %v14742_v45, 7  ;;  %9362 = vmatpush3.bf16.msra.mxu1 %v9947_v13  ;;  %9306 = vmatpush3.bf16.msra.mxu0 %v9952_v21 }
 0xa1b   :  { %16019 = vst [vmem:[#allocation23_spill] sm:$0xff] %v14749_v32  ;;  %v15773_v44 = vrot.slane %v14742_v45, 1  ;;  %v6220_v57 = vrot.slane %v14749_v32, 7  ;;  %v9276_v41 = vpop.f32.mrb[237].mxu0  ;;  %v9576_v14 = vpop.f32.mrb[228].mxu1  ;;  %v6252_v49 = vrot.slane %v14749_v32, 1  ;;  %9363 = vmatprep.subr.bf16.mxu1 %v9948_v23 }
 0xa1c   :  { %v14764_v27 = vsel %vm6170_vm8, %v6110_v60, %v6186_v48  ;;  %v9277_v38 = vadd.f32 %v9276_v41, %v9275_v19  ;;  %v6131_v2 = vadd.f32 %v9576_v14, %v14681_v24  ;;  %v9278_v51 = vpop.f32.mrb[238].mxu0  ;;  %v6122_v62 = vpop.f32.mrb[229].mxu1  ;;  %v9949_v24 = vld [vmem:[%s15721_s3 + $0x758] sm:$0xff]  }
 0xa1d   :  { %v6218_v56 = vrot.slane %v14764_v27, 7  ;;  %v6250_v31 = vrot.slane %v14764_v27, 1  ;;  %v6123_v10 = vadd.f32 %v6122_v62, %v14675_v1  ;;  %v9279_v6 = vpop.f32.mrb[239].mxu0  ;;  %v9577_v5 = vpop.f32.mrb[230].mxu1  ;;  %v6290_v63 = vpack.c.bf16 %v14733_v3, %v14764_v27 }
 0xa1e   :  { %vm6175_vm9 = vcmp.gt.f32.partialorder %v6131_v2, 0.0  ;;  %v6191_v43 = vmul.f32 0.01, %v6131_v2  ;;  %v9280_v52 = vadd.f32 %v9279_v6, %v9278_v51  ;;  %v6134_v29 = vadd.f32 %v9577_v5, %v14683_v46  ;;  %v6125_v60 = vpop.f32.mrb[231].mxu1  ;;  %v9951_v46 = vld [vmem:[%s15721_s3 + $0x7a0] sm:$0xff]   ;;  %9364 = vmatpush3.bf16.msra.mxu1 %v9949_v24  ;;  %v9954_v6 = vld [vmem:[%s15721_s3 + $0x7a8] sm:$0xff]  }
 0xa1f   :  { %vm6173_vm10 = vcmp.gt.f32.partialorder %v6123_v10, 0.0  ;;  %v6189_v8 = vmul.f32 0.01, %v6123_v10  ;;  %v6126_v1 = vadd.f32 %v6125_v60, %v14677_v47  ;;  %6339 = vrot.lane.b32.xlu0 %v6290_v63, %s10249_s19  ;;  %v14778_v36 = vadd.f32 %v9277_v38, %v5969_v59  ;;  %9365 = vmatprep.subr.bf16.mxu1 %v9951_v46 }
 0xa20   :  { %v14783_v35 = vsel %vm6175_vm9, %v6131_v2, %v6191_v43  ;;  %vm6176_vm11 = vcmp.gt.f32.partialorder %v6134_v29, 0.0  ;;  %v6192_v13 = vmul.f32 0.01, %v6134_v29  ;;  %v14785_v48 = vadd.f32 %v9280_v52, %v5972_v42  ;;  %v9953_v42 = vld [vmem:[%s15721_s3 + $0x760] sm:$0xff]  }
 0xa21   :  { %v6255_v21 = vrot.slane %v14783_v35, 1  ;;  %v14789_v47 = vsel %vm6173_vm10, %v6123_v10, %v6189_v8  ;;  %vm6174_vm12 = vcmp.gt.f32.partialorder %v6126_v1, 0.0  ;;  %v6190_v23 = vmul.f32 0.01, %v6126_v1 }
 0xa22   :  { %v6221_v59 = vrot.slane %v14789_v47, 7  ;;  %v6253_v41 = vrot.slane %v14789_v47, 1  ;;  %v14793_v14 = vsel %vm6176_vm11, %v6134_v29, %v6192_v13  ;;  %v14806_v62 = vsel %vm81_vm0, %v6217_v28, %v6218_v56  ;;  %9366 = vmatpush3.bf16.msra.mxu1 %v9953_v42 }
 0xa23   :  { %v6224_v38 = vrot.slane %v14793_v14, 7  ;;  %v6256_v2 = vrot.slane %v14793_v14, 1  ;;  %v9580_v51 = vpop.f32.mrb[232].mxu1  ;;  %v14813_v5 = vsel %vm6174_vm12, %v6126_v1, %v6190_v23  ;;  %v14820_v52 = vsel %vm114_vm1, %v6250_v31, %v6251_v50  ;;  %9367 = vmatprep.subr.bf16.mxu1 %v9954_v6  ;;  %v9958_v6 = vld [vmem:[%s15721_s3 + $0x6f8] sm:$0xff]  }
 0xa24   :  { %v6147_v63 = vadd.f32 %v9580_v51, %v14693_v58  ;;  %v6138_v43 = vpop.f32.mrb[233].mxu1  ;;  %v14826_v29 = vsel %vm114_vm1, %v15773_v44, %v6250_v31  ;;  %v15774_v60 = vrot.slane %v14813_v5, 7  ;;  %v6254_v24 = vrot.slane %v14813_v5, 1 }
 0xa25   :  { %v6139_v8 = vadd.f32 %v6138_v43, %v14687_v17  ;;  %v9581_v58 = vpop.f32.mrb[234].mxu1  ;;  %v14840_v31 = vsel %vm114_vm1, %v6252_v49, %v6253_v41  ;;  %v9955_v17 = vld [vmem:[%s15721_s3 + $0x768] sm:$0xff]   ;;  %v16027_v12 = vrot.slane %v14813_v5, 7  ;;  %v16041_v3 = vpack.c.bf16 %v14820_v52, %v14826_v29 }
 0xa26   :  { %vm6179_vm13 = vcmp.gt.f32.partialorder %v6147_v63, 0.0  ;;  %v6195_v46 = vmul.f32 0.01, %v6147_v63  ;;  %v6150_v13 = vadd.f32 %v9581_v58, %v14695_v16  ;;  %v6141_v23 = vpop.f32.mrb[235].mxu1  ;;  %v14852_v16 = vsel %vm114_vm1, %v6251_v50, %v6252_v49  ;;  %v9956_v50 = vld [vmem:[%s15721_s3 + $0x738] sm:$0xff]   ;;  %v9957_v49 = vld [vmem:[%s15721_s3 + $0x7b0] sm:$0xff]   ;;  %9368 = vmatpush3.bf16.msra.mxu1 %v9955_v17 }
 0xa27   :  { %vm6177_vm14 = vcmp.gt.f32.partialorder %v6139_v8, 0.0  ;;  %v6193_v51 = vmul.f32 0.01, %v6139_v8  ;;  %v6142_v43 = vadd.f32 %v6141_v23, %v14689_v40  ;;  %v14886_v40 = vsel %vm81_vm0, %v6219_v25, %v6220_v57  ;;  %9307 = vmatprep.subr.bf16.mxu0 %v9956_v50  ;;  %9369 = vmatprep.subr.bf16.mxu1 %v9957_v49  ;;  %v9960_v50 = vld [vmem:[%s15721_s3 + $0x7b8] sm:$0xff]  }
 0xa28   :  { %v14854_v58 = vsel %vm6179_vm13, %v6147_v63, %v6195_v46  ;;  %vm6180_vm15 = vcmp.gt.f32.partialorder %v6150_v13, 0.0  ;;  %v6196_v42 = vmul.f32 0.01, %v6150_v13  ;;  %v14908_v63 = vsel %vm81_vm0, %v6221_v59, %v15774_v60  ;;  %9308 = vmatpush3.bf16.msra.mxu0 %v9958_v6 }
 0xa29   :  { %v14860_v23 = vsel %vm6177_vm14, %v6139_v8, %v6193_v51  ;;  %vm6178_vm3 = vcmp.gt.f32.partialorder %v6142_v43, 0.0  ;;  %v6194_v8 = vmul.f32 0.01, %v6142_v43  ;;  %v9959_v51 = vld [vmem:[%s15721_s3 + $0x770] sm:$0xff]  }
 0xa2a   :  { %v15775_v46 = vrot.slane %v14860_v23, 1  ;;  %v14873_v53 = vsel %vm6180_vm15, %v6150_v13, %v6196_v42  ;;  %v14894_v13 = vsel %vm81_vm0, %v6218_v56, %v6219_v25  ;;  %9370 = vmatpush3.bf16.msra.mxu1 %v9959_v51  ;;  %v16029_v9 = vrot.slane %v14860_v23, 7 }
 0xa2b   :  { %v9584_v10 = vpop.f32.mrb[236].mxu1  ;;  %v14897_v17 = vsel %vm6178_vm3, %v6142_v43, %v6194_v8  ;;  %9371 = vmatprep.subr.bf16.mxu1 %v9960_v50  ;;  %v16032_v18 = vrot.slane %v14860_v23, 1  ;;  %v16034_v26 = vrot.slane %v14873_v53, 1 }
 0xa2c   :  { %v6163_v42 = vadd.f32 %v9584_v10, %v14778_v36  ;;  %v6154_v1 = vpop.f32.mrb[237].mxu1  ;;  %v6258_v56 = vrot.slane %v14897_v17, 1  ;;  %v14919_v10 = vsel %vm81_vm0, %v6220_v57, %v6221_v59  ;;  %v16028_v22 = vrot.slane %v14897_v17, 7 }
 0xa2d   :  { %v6155_v43 = vadd.f32 %v6154_v1, %v14727_v39  ;;  %v9585_v36 = vpop.f32.mrb[238].mxu1  ;;  %v9961_v1 = vld [vmem:[%s15721_s3 + $0x778] sm:$0xff]   ;;  %v16035_v54 = vmov %v16034_v26 }
 0xa2e   :  { %vm6183_vm4 = vcmp.gt.f32.partialorder %v6163_v42, 0.0  ;;  %v6199_v49 = vmul.f32 0.01, %v6163_v42  ;;  %v6166_v6 = vadd.f32 %v9585_v36, %v14785_v48  ;;  %v6157_v8 = vpop.f32.mrb[239].mxu1  ;;  %9372 = vmatpush3.bf16.msra.mxu1 %v9961_v1  ;;  %v14972_v1 = vsel %vm114_vm1, %v6253_v41, %v6254_v24 }
 0xa2f   :  { %vm6181_vm5 = vcmp.gt.f32.partialorder %v6155_v43, 0.0  ;;  %v6197_v57 = vmul.f32 0.01, %v6155_v43  ;;  %v6158_v59 = vadd.f32 %v6157_v8, %v14735_v34  ;;  %v14944_v34 = vld [vmem:[%s15721_s3 + $0x7c0] sm:$0xff]   ;;  %v15029_v30 = vsel %vm81_vm0, %v16029_v9, %v16028_v22 }
 0xa30   :  { %v14933_v25 = vsel %vm6183_vm4, %v6163_v42, %v6199_v49  ;;  %vm6184_vm6 = vcmp.gt.f32.partialorder %v6166_v6, 0.0  ;;  %v6200_v48 = vmul.f32 0.01, %v6166_v6  ;;  %16022 = vst [vmem:[#allocation28_spill] sm:$0xff] %v14944_v34  ;;  %9586 = vmatprep.subr.bf16.mxu0 %v14944_v34  ;;  %9641 = vmatprep.subr.bf16.mxu1 %v14944_v34 }
 0xa31   :  { %16020 = vst [vmem:[#allocation19_spill] sm:$0xff] %v14933_v25  ;;  %v6231_v51 = vrot.slane %v14933_v25, 7  ;;  %v6263_v39 = vrot.slane %v14933_v25, 1  ;;  %v14939_v60 = vsel %vm6181_vm5, %v6155_v43, %v6197_v57  ;;  %vm6182_vm7 = vcmp.gt.f32.partialorder %v6158_v59, 0.0 }
 0xa32   :  { %16021 = vst [vmem:[#allocation21_spill] sm:$0xff] %v14939_v60  ;;  %v6229_v42 = vrot.slane %v14939_v60, 7  ;;  %v6261_v50 = vrot.slane %v14939_v60, 1  ;;  %v14948_v49 = vsel %vm6184_vm6, %v6166_v6, %v6200_v48  ;;  %v6198_v8 = vmul.f32 0.01, %v6158_v59 }
 0xa33   :  { %16023 = vst [vmem:[#allocation29_spill] sm:$0xff] %v14948_v49  ;;  %v6232_v36 = vrot.slane %v14948_v49, 7  ;;  %v6264_v44 = vrot.slane %v14948_v49, 1  ;;  %v6289_v43 = vpack.c.bf16 %v14742_v45, %v14948_v49  ;;  %v14960_v57 = vsel %vm114_vm1, %v6254_v24, %v6255_v21 }
 0xa34   :  { %v14964_v6 = vsel %vm6182_vm7, %v6158_v59, %v6198_v8  ;;  %v14980_v48 = vsel %vm114_vm1, %v6256_v2, %v15775_v46  ;;  %v14988_v59 = vsel %vm114_vm1, %v6255_v21, %v6256_v2  ;;  %v16025_v2 = vrot.slane %v14783_v35, 7 }
 0xa35   :  { %16024 = vst [vmem:[#allocation30_spill] sm:$0xff] %v14964_v6  ;;  %v6230_v8 = vrot.slane %v14964_v6, 7  ;;  %v6262_v41 = vrot.slane %v14964_v6, 1  ;;  %6337 = vrot.lane.b32.xlu0 %v6289_v43, %s10249_s19  ;;  %v14997_v24 = vsel %vm81_vm0, %v6232_v36, %v6217_v28  ;;  %v6324_v21 = vpack.c.bf16 %v14980_v48, %v14988_v59 }
 0xa36   :  { %v6305_v19 = vpack.c.bf16 %v14806_v62, %v14997_v24  ;;  %v15011_v43 = vsel %vm81_vm0, %v16025_v2, %v6224_v38  ;;  %v16026_v28 = vmov %v16025_v2  ;;  %v16030_v2 = vmov %v16029_v9 }
 0xa37   :  { %v15019_v46 = vsel %vm81_vm0, %v16027_v12, %v16026_v28  ;;  %v15037_v0 = vsel %vm81_vm0, %v6224_v38, %v16030_v2  ;;  %v6294_v12 = vpack.c.bf16 %v14854_v58, %v14897_v17  ;;  %v6295_v22 = vpack.c.bf16 %v14939_v60, %v14873_v53 }
 0xa38   :  { %v6308_v55 = vpack.c.bf16 %v15011_v43, %v15019_v46  ;;  %6361 = vrot.lane.b32.xlu1 %v6305_v19, %s10249_s19  ;;  %v6309_v28 = vpack.c.bf16 %v15029_v30, %v15037_v0  ;;  %v16031_v9 = vrot.slane %v14854_v58, 1  ;;  %v6271_v38 = vsel %vm114_vm1, %v16032_v18, %v6258_v56 }
 0xa39   :  { %v16033_v19 = vpack.c.bf16 %v14789_v47, %v14749_v32  ;;  %v6268_v4 = vsel %vm114_vm1, %v16034_v26, %v6261_v50  ;;  %v16036_v18 = vrot.slane %v14873_v53, 7  ;;  %v16039_v26 = vrot.slane %v14897_v17, 7 }
 0xa3a   :  { %v6270_v20 = vsel %vm114_vm1, %v6258_v56, %v16031_v9  ;;  %v6269_v61 = vsel %vm114_vm1, %v16031_v9, %v16035_v54  ;;  %v16037_v56 = vrot.slane %v14854_v58, 7  ;;  %v15086_v54 = vsel %vm81_vm0, %v6229_v42, %v6230_v8 }
 0xa3b   :  { %6341 = vrot.lane.b32.xlu0 %v16033_v19, %s10249_s19  ;;  %v6325_v2 = vpack.c.bf16 %v6270_v20, %v6271_v38  ;;  %v6326_v37 = vpack.c.bf16 %v6268_v4, %v6269_v61  ;;  %v16040_v9 = vmov %v16036_v18  ;;  %v6267_v32 = vsel %vm114_vm1, %v6261_v50, %v6262_v41 }
 0xa3c   :  { %v15074_v19 = vsel %vm81_vm0, %v16037_v56, %v16036_v18  ;;  %v16038_v15 = vmov %v16037_v56  ;;  %v15092_v7 = vsel %vm81_vm0, %v16040_v9, %v6229_v42  ;;  %6385 = vrot.lane.b32.xlu1 %v16041_v3, %s10249_s19  ;;  %v15108_v42 = vsel %vm81_vm0, %v6230_v8, %v6231_v51 }
 0xa3d   :  { %v15082_v33 = vsel %vm81_vm0, %v16039_v26, %v16038_v15  ;;  %v6311_v56 = vpack.c.bf16 %v15086_v54, %v15092_v7  ;;  %v6296_v15 = vpack.c.bf16 %v14933_v25, %v14964_v6  ;;  %v6233_v26 = vsel %vm81_vm0, %v6231_v51, %v6232_v36 }
 0xa3e   :  { %v6310_v18 = vpack.c.bf16 %v15074_v19, %v15082_v33  ;;  %v6266_v9 = vsel %vm114_vm1, %v6262_v41, %v6263_v39  ;;  %v6265_v34 = vsel %vm114_vm1, %v6263_v39, %v6264_v44  ;;  %v16042_v36 = vpack.c.bf16 %v14840_v31, %v14852_v16 }
 0xa3f   :  { %v6312_v3 = vpack.c.bf16 %v6233_v26, %v15108_v42  ;;  %v6327_v49 = vpack.c.bf16 %v6266_v9, %v6267_v32  ;;  %v16043_v51 = vrot.slane %v14742_v45, 1  ;;  %v6282_v25 = vpack.c.bf16 %v14894_v13, %v14806_v62 }
 0xa40   :  { %6387 = vrot.lane.b32.xlu0 %v16042_v36, %s10249_s19  ;;  %v6281_v41 = vpack.c.bf16 %v14997_v24, %v6233_v26  ;;  %v6283_v36 = vpack.c.bf16 %v14919_v10, %v14886_v40  ;;  %v6313_v6 = vpack.c.bf16 %v14764_v27, %v14742_v45  ;;  %v15137_v60 = vpack.c.bf16 %v14852_v16, %v14820_v52  ;;  %v16049_v26 = vld [vmem:[#allocation19_spill] sm:$0xff] }
 0xa41   :  { %v6280_v8 = vsel %vm114_vm1, %v6264_v44, %v16043_v51  ;;  %v15141_v44 = vpack.c.bf16 %v14972_v1, %v14840_v31  ;;  %v6284_v62 = vpack.c.bf16 %v15019_v46, %v14908_v63  ;;  %v6285_v24 = vpack.c.bf16 %v15037_v0, %v15011_v43  ;;  %v10180_v46 = vld [vmem:[%s15720_s2 + $0x50] ss:$20 sps:$4 sm:$0xff]  }
 0xa42   :  { %v6328_v50 = vpack.c.bf16 %v6280_v8, %v6265_v34  ;;  %v15129_v39 = vpack.c.bf16 %v14826_v29, %v6280_v8  ;;  %v16044_v29 = vpack.c.bf16 %v14886_v40, %v14894_v13  ;;  %v6315_v45 = vpack.c.bf16 %v14813_v5, %v14789_v47  ;;  %v16050_v40 = vld [vmem:[#allocation29_spill] sm:$0xff]  ;;  %v10183_v0 = vld [vmem:[%s15720_s2 + $0x84] ss:$20 sps:$4 sm:$0xff]  }
 0xa43   :  { %v6316_v27 = vpack.c.bf16 %v14793_v14, %v14783_v35  ;;  %v16045_v52 = vpack.c.bf16 %v14908_v63, %v14919_v10  ;;  %v15161_v31 = vpack.c.bf16 %v14988_v59, %v14960_v57  ;;  %v15164_v16 = vpack.c.bf16 %v6271_v38, %v14980_v48 }
 0xa44   :  { %6363 = vrot.lane.b32.xlu1 %v16044_v29, %s10249_s19  ;;  %v15174_v51 = vpack.c.bf16 %v6269_v61, %v6270_v20  ;;  %v15176_v8 = vpack.c.bf16 %v6267_v32, %v6268_v4  ;;  %v6288_v48 = vpack.c.bf16 %v15108_v42, %v15086_v54  ;;  %v15180_v59 = vpack.c.bf16 %v6265_v34, %v6266_v9  ;;  %v16047_v29 = vld [vmem:[#allocation21_spill] sm:$0xff] }
 0xa45   :  { %6365 = vrot.lane.b32.xlu0 %v16045_v52, %s10249_s19  ;;  %v16046_v38 = vpack.c.bf16 %v14783_v35, %v14813_v5  ;;  %v16048_v52 = vld [vmem:[#allocation30_spill] sm:$0xff]  ;;  %v6320_v10 = vpack.c.bf16 %v16050_v40, %v16049_v26  ;;  %v16051_v20 = vpack.c.bf16 %v14860_v23, %v14793_v14  ;;  %v16052_v61 = vpack.c.bf16 %v14960_v57, %v14972_v1  ;;  %v10170_v32 = vld [vmem:[%s15720_s2 + $0xc] ss:$20 sps:$4 sm:$0xff]  }
 0xa46   :  { %v6319_v13 = vpack.c.bf16 %v16048_v52, %v16047_v29  ;;  %v10182_v5 = vld [vmem:[%s15720_s2 + $0x7c] ss:$20 sps:$4 sm:$0xff]   ;;  %v10187_v35 = vld [vmem:[%s15720_s2 + $0xac] ss:$20 sps:$4 sm:$0xff]   ;;  %vm10251_vm0 = vmmov 0  }
 0xa47   :  { %v10196_v42 = vld [vmem:[%s15720_s2 + $0xf0] ss:$20 sps:$4 sm:$0xff]  }
 0xa48   :  { %6343 = vrot.lane.b32.xlu1 %v16046_v38, %s10249_s19  ;;  %v10174_v38 = vld [vmem:[%s15720_s2 + $0x34] ss:$20 sps:$4 sm:$0xff]   ;;  %v10203_v40 = vld [vmem:[%s15720_s2 + $0xb0] ss:$20 sps:$4 sm:$0xff]  }
 0xa49   :  { %6345 = vrot.lane.b32.xlu0 %v16051_v20, %s10249_s19  ;;  %v6521_v26 = vmul.bf16 %v10203_v40, %v15174_v51 }
 0xa4c   :  { %6389 = vrot.lane.b32.xlu1 %v16052_v61, %s10249_s19 }
 0xa4d   :  { %6391 = vrot.lane.b32.xlu0 %v6324_v21, %s10249_s19 }
 0xa50   :  { %6367 = vrot.lane.b32.xlu1 %v6308_v55, %s10249_s19 }
 0xa51   :  { %6369 = vrot.lane.b32.xlu0 %v6309_v28, %s10249_s19  ;;  %v10172_v28 = vld [vmem:[%s15720_s2] ss:$20 sps:$4 sm:$0xff]  }
 0xa54   :  { %6347 = vrot.lane.b32.xlu1 %v6294_v12, %s10249_s19  ;;  %v10171_v12 = vld [vmem:[%s15720_s2 + $0x4] ss:$20 sps:$4 sm:$0xff]  }
 0xa55   :  { %6349 = vrot.lane.b32.xlu0 %v6295_v22, %s10249_s19 }
 0xa58   :  { %6393 = vrot.lane.b32.xlu1 %v6325_v2, %s10249_s19  ;;  %v9963_v2 = vld [vmem:[%s15721_s3 + $0x7c8] sm:$0xff]  }
 0xa59   :  { %6395 = vrot.lane.b32.xlu0 %v6326_v37, %s10249_s19 }
 0xa5c   :  { %6371 = vrot.lane.b32.xlu1 %v6310_v18, %s10249_s19 }
 0xa5d   :  { %6373 = vrot.lane.b32.xlu0 %v6311_v56, %s10249_s19 }
 0xa60   :  { %6351 = vrot.lane.b32.xlu1 %v6296_v15, %s10249_s19 }
 0xa61   :  { %6375 = vrot.lane.b32.xlu0 %v6312_v3, %s10249_s19  ;;  %v10173_v3 = vld [vmem:[%s15720_s2 + $0x8] ss:$20 sps:$4 sm:$0xff]  }
 0xa64   :  { %6397 = vrot.lane.b32.xlu1 %v6327_v49, %s10249_s19 }
 0xa68   :  { %6399 = vrot.lane.b32.xlu1 %v6328_v50, %s10249_s19 }
 0xa91   :  { %v6340_v4 = vpop.permute.xlu0 %6339 }
 0xa92   :  { %v6407_v55 = vsel %vm251_vm2, %v6282_v25, %v6340_v4 }
 0xa93   :  { %v6500_v37 = vmul.bf16 %v10170_v32, %v6407_v55  ;;  %v10175_v32 = vld [vmem:[%s15720_s2 + $0x2c] ss:$20 sps:$4 sm:$0xff]  }
 0xa95   :  { %6984 = vmatprep.mubr.bf16.mxu1 %v6500_v37 }
 0xaa7   :  { %v6338_v34 = vpop.permute.xlu0 %6337 }
 0xaa8   :  { %v15216_v57 = vsel %vm251_vm2, %v6281_v41, %v6338_v34  ;;  %v16053_v41 = vld [vmem:[#allocation28_spill] sm:$0xff] }
 0xaa9   :  { %v6497_v22 = vmul.bf16 %v10172_v28, %v15216_v57 }
 0xaaa   :  { %v6362_v1 = vpop.permute.xlu1 %6361 }
 0xaab   :  { %v6435_v21 = vsel %vm251_vm2, %v15129_v39, %v6362_v1  ;;  %v10176_v1 = vld [vmem:[%s15720_s2 + $0x28] ss:$20 sps:$4 sm:$0xff]  }
 0xaac   :  { %v6498_v25 = vmul.bf16 %v10171_v12, %v6435_v21  ;;  %v6502_v21 = vmul.bf16 %v10176_v1, %v6407_v55  ;;  %v16055_v12 = vld [vmem:[#allocation20_spill] sm:$0xff]  ;;  %v10184_v1 = vld [vmem:[%s15720_s2 + $0x78] ss:$20 sps:$4 sm:$0xff]  }
 0xaad   :  { %v6342_v49 = vpop.permute.xlu0 %6341 }
 0xaae   :  { %v6411_v18 = vsel %vm251_vm2, %v6283_v36, %v6342_v49  ;;  %6887 = vmatprep.mubr.bf16.mxu0 %v6498_v25  ;;  %v6386_v56 = vpop.permute.xlu1 %6385  ;;  %v9964_v36 = vld [vmem:[%s15721_s3 + $0x7d0] sm:$0xff]   ;;  %v16054_v49 = vld [vmem:[#allocation23_spill] sm:$0xff] }
 0xaaf   :  { %v6467_v15 = vsel %vm251_vm2, %v6313_v6, %v6386_v56  ;;  %6888 = vmatmul.mubr.bf16.vlgmr.msra.gmra.mrb[240].mxu0 %v6497_v22  ;;  %v6505_v20 = vmul.bf16 %v10174_v38, %v6411_v18  ;;  %v16056_v25 = vpack.c.bf16 %v16054_v49, %v16055_v12  ;;  %v10177_v22 = vld [vmem:[%s15720_s2 + $0x54] ss:$20 sps:$4 sm:$0xff]   ;;  %v10179_v38 = vld [vmem:[%s15720_s2 + $0x5c] ss:$20 sps:$4 sm:$0xff]   ;;  %v10185_v12 = vld [vmem:[%s15720_s2 + $0xa4] ss:$20 sps:$4 sm:$0xff]  }
 0xab0   :  { %v6499_v50 = vmul.bf16 %v10173_v3, %v6467_v15  ;;  %9587 = vmatpush3.bf16.msra.mxu0 %v16053_v41  ;;  %v9965_v3 = vld [vmem:[%s15721_s3 + $0x7d8] sm:$0xff]  }
 0xab1   :  { %9588 = vmatprep.subr.bf16.mxu0 %v9963_v2 }
 0xab2   :  { %v6388_v9 = vpop.permute.xlu0 %6387  ;;  %6985 = vmatmul.mubr.bf16.vlgmr.msra.gmra.mrb[240].mxu1 %v6499_v50 }
 0xab3   :  { %9645 = vmatpush3.bf16.msra.mxu1 %v16053_v41  ;;  %6992 = vmatprep.mubr.bf16.mxu1 %v6505_v20  ;;  %v6471_v28 = vsel %vm251_vm2, %v16056_v25, %v6388_v9  ;;  %v10178_v9 = vld [vmem:[%s15720_s2 + $0x30] ss:$20 sps:$4 sm:$0xff]  }
 0xab4   :  { %9642 = vmatprep.subr.bf16.mxu1 %v9963_v2  ;;  %9589 = vmatpush3.bf16.msra.mxu0 %v9963_v2  ;;  %v6504_v41 = vmul.bf16 %v10178_v9, %v6471_v28  ;;  %v16057_v28 = vpack.c.bf16 %v15082_v33, %v15029_v30  ;;  %v10188_v30 = vld [vmem:[%s15720_s2 + $0xa0] ss:$20 sps:$4 sm:$0xff]   ;;  %v16058_v9 = vpack.c.bf16 %v14897_v17, %v14860_v23 }
 0xab5   :  { %9590 = vmatprep.subr.bf16.mxu0 %v9964_v36  ;;  %v10191_v23 = vld [vmem:[%s15720_s2 + $0xd4] ss:$20 sps:$4 sm:$0xff]  }
 0xab6   :  { %v6364_v6 = vpop.permute.xlu1 %6363 }
 0xab7   :  { %v6439_v61 = vsel %vm251_vm2, %v15137_v60, %v6364_v6  ;;  %v6366_v4 = vpop.permute.xlu0 %6365  ;;  %9646 = vmatpush3.bf16.msra.mxu1 %v9963_v2 }
 0xab8   :  { %v6503_v37 = vmul.bf16 %v10175_v32, %v6439_v61  ;;  %v6443_v34 = vsel %vm251_vm2, %v15141_v44, %v6366_v4  ;;  %9643 = vmatprep.subr.bf16.mxu1 %v9964_v36  ;;  %9591 = vmatpush3.bf16.msra.mxu0 %v9964_v36 }
 0xab9   :  { %v6508_v56 = vmul.bf16 %v10177_v22, %v6443_v34  ;;  %9592 = vmatprep.subr.bf16.mxu0 %v9965_v3 }
 0xaba   :  { %6895 = vmatprep.mubr.bf16.mxu0 %v6503_v37  ;;  %v6344_v15 = vpop.permute.xlu1 %6343  ;;  %6993 = vmatmul.mubr.bf16.gmra.mrb[244].mxu1 %v6504_v41 }
 0xabb   :  { %v6415_v55 = vsel %vm251_vm2, %v6284_v62, %v6344_v15  ;;  %v6346_v50 = vpop.permute.xlu0 %6345  ;;  %6896 = vmatmul.mubr.bf16.gmra.mrb[244].mxu0 %v6502_v21  ;;  %9647 = vmatpush3.bf16.msra.mxu1 %v9964_v36  ;;  %v6507_v62 = vmul.bf16 %v10180_v46, %v6411_v18  ;;  %v10181_v18 = vld [vmem:[%s15720_s2 + $0x58] ss:$20 sps:$4 sm:$0xff]   ;;  %v10186_v15 = vld [vmem:[%s15720_s2 + $0x80] ss:$20 sps:$4 sm:$0xff]   ;;  %v10190_v46 = vld [vmem:[%s15720_s2 + $0xa8] ss:$20 sps:$4 sm:$0xff]  }
 0xabc   :  { %v6510_v20 = vmul.bf16 %v10179_v38, %v6415_v55  ;;  %6903 = vmatprep.mubr.bf16.mxu0 %v6508_v56  ;;  %9644 = vmatprep.subr.bf16.mxu1 %v9965_v3  ;;  %v6419_v61 = vsel %vm251_vm2, %v6285_v24, %v6346_v50  ;;  %v6512_v21 = vmul.bf16 %v10184_v1, %v6415_v55 }
 0xabd   :  { %9593 = vmatpush3.bf16.msra.mxu0 %v9965_v3  ;;  %v6515_v43 = vmul.bf16 %v10183_v0, %v6419_v61  ;;  %v6517_v50 = vmul.bf16 %v10188_v30, %v6419_v61  ;;  %v16059_v38 = vpack.c.bf16 %v15092_v7, %v15074_v19  ;;  %v10192_v61 = vld [vmem:[%s15720_s2 + $0xc8] ss:$20 sps:$4 sm:$0xff]   ;;  %v7252_v30 = vld [vmem:[%s15723_s5] sm:$0xff] }
 0xabe   :  { %v6390_v6 = vpop.permute.xlu1 %6389  ;;  %7000 = vmatprep.mubr.bf16.mxu1 %v6510_v20 }
 0xabf   :  { %v6392_v63 = vpop.permute.xlu0 %6391  ;;  %v6475_v2 = vsel %vm251_vm2, %v6315_v45, %v6390_v6  ;;  %9648 = vmatpush3.bf16.msra.mxu1 %v9965_v3  ;;  %v10189_v6 = vld [vmem:[%s15720_s2 + $0xcc] ss:$20 sps:$4 sm:$0xff]  }
 0xac0   :  { %v6509_v47 = vmul.bf16 %v10181_v18, %v6475_v2  ;;  %v6479_v49 = vsel %vm251_vm2, %v6316_v27, %v6392_v63  ;;  %v10193_v18 = vld [vmem:[%s15720_s2 + $0xf4] ss:$20 sps:$4 sm:$0xff]  }
 0xac1   :  { %v6514_v3 = vmul.bf16 %v10186_v15, %v6479_v49 }
 0xac2   :  { %v6368_v4 = vpop.permute.xlu1 %6367  ;;  %7001 = vmatmul.mubr.bf16.gmra.mrb[248].mxu1 %v6509_v47 }
 0xac3   :  { %v6447_v36 = vsel %vm251_vm2, %v15161_v31, %v6368_v4  ;;  %v6370_v32 = vpop.permute.xlu0 %6369  ;;  %6904 = vmatmul.mubr.bf16.gmra.mrb[248].mxu0 %v6507_v62  ;;  %7008 = vmatprep.mubr.bf16.mxu1 %v6515_v43 }
 0xac4   :  { %v6513_v45 = vmul.bf16 %v10182_v5, %v6447_v36  ;;  %v6451_v37 = vsel %vm251_vm2, %v15164_v16, %v6370_v32  ;;  %v16060_v36 = vpack.c.bf16 %v14873_v53, %v14854_v58  ;;  %v10195_v53 = vld [vmem:[%s15720_s2 + $0xfc] ss:$20 sps:$4 sm:$0xff]  }
 0xac5   :  { %v6518_v25 = vmul.bf16 %v10185_v12, %v6451_v37  ;;  %v10199_v12 = vld [vmem:[%s15720_s2 + $0x124] ss:$20 sps:$4 sm:$0xff]  }
 0xac6   :  { %v6348_v24 = vpop.permute.xlu1 %6347  ;;  %6911 = vmatprep.mubr.bf16.mxu0 %v6513_v45  ;;  %v10194_v45 = vld [vmem:[%s15720_s2 + $0xd0] ss:$20 sps:$4 sm:$0xff]   ;;  %v6535_v29 = vmul.bf16 %v10199_v12, %v15216_v57  ;;  %v10202_v57 = vld [vmem:[%s15720_s2 + $0x120] ss:$20 sps:$4 sm:$0xff]  }
 0xac7   :  { %v6350_v34 = vpop.permute.xlu0 %6349  ;;  %v6423_v22 = vsel %vm251_vm2, %v16057_v28, %v6348_v24 }
 0xac8   :  { %v6520_v14 = vmul.bf16 %v10187_v35, %v6423_v22  ;;  %v6427_v20 = vsel %vm251_vm2, %v16059_v38, %v6350_v34  ;;  %v6522_v4 = vmul.bf16 %v10192_v61, %v6423_v22  ;;  %v10197_v34 = vld [vmem:[%s15720_s2 + $0x11c] ss:$20 sps:$4 sm:$0xff]   ;;  %v7256_v38 = vld [vmem:[%s15723_s5 + $0x20] sm:$0xff] }
 0xac9   :  { %v6525_v7 = vmul.bf16 %v10191_v23, %v6427_v20  ;;  %v10201_v22 = vld [vmem:[%s15720_s2 + $0x10] ss:$20 sps:$4 sm:$0xff]  }
 0xaca   :  { %v6394_v56 = vpop.permute.xlu1 %6393  ;;  %7009 = vmatmul.mubr.bf16.gmra.mrb[252].mxu1 %v6514_v3  ;;  %v10205_v3 = vld [vmem:[%s15720_s2 + $0x60] ss:$20 sps:$4 sm:$0xff]  }
 0xacb   :  { %6912 = vmatmul.mubr.bf16.gmra.mrb[252].mxu0 %v6512_v21  ;;  %v6396_v27 = vpop.permute.xlu0 %6395  ;;  %7016 = vmatprep.mubr.bf16.mxu1 %v6520_v14  ;;  %v6483_v41 = vsel %vm251_vm2, %v16058_v9, %v6394_v56  ;;  %v10198_v21 = vld [vmem:[%s15720_s2 + $0xf8] ss:$20 sps:$4 sm:$0xff]   ;;  %v6501_v56 = vmul.bf16 %v10201_v22, %v15137_v60  ;;  %v6511_v35 = vmul.bf16 %v10205_v3, %v15161_v31  ;;  %v10208_v31 = vld [vmem:[%s15720_s2 + $0x88] ss:$20 sps:$4 sm:$0xff]   ;;  %v7254_v9 = vld [vmem:[%s15723_s5 + $0x10] sm:$0xff] }
 0xacc   :  { %6919 = vmatprep.mubr.bf16.mxu0 %v6518_v25  ;;  %v6519_v62 = vmul.bf16 %v10190_v46, %v6483_v41  ;;  %v6487_v32 = vsel %vm251_vm2, %v16060_v36, %v6396_v27  ;;  %v10204_v60 = vld [vmem:[%s15720_s2 + $0x38] ss:$20 sps:$4 sm:$0xff]  }
 0xacd   :  { %v6524_v0 = vmul.bf16 %v10194_v45, %v6487_v32  ;;  %v7259_v46 = vld [vmem:[%s15723_s5 + $0x38] sm:$0xff] }
 0xace   :  { %v6372_v55 = vpop.permute.xlu1 %6371 }
 0xacf   :  { %v6455_v33 = vsel %vm251_vm2, %v15174_v51, %v6372_v55  ;;  %v6374_v2 = vpop.permute.xlu0 %6373  ;;  %v10206_v51 = vld [vmem:[%s15720_s2 + $0xd8] ss:$20 sps:$4 sm:$0xff]   ;;  %v6516_v55 = vmul.bf16 %v10208_v31, %v15164_v16 }
 0xad0   :  { %v6523_v63 = vmul.bf16 %v10189_v6, %v6455_v33  ;;  %v6459_v17 = vsel %vm251_vm2, %v15176_v8, %v6374_v2  ;;  %v6526_v14 = vmul.bf16 %v10206_v51, %v15176_v8  ;;  %v10209_v8 = vld [vmem:[%s15720_s2 + $0x128] ss:$20 sps:$4 sm:$0xff]   ;;  %v7258_v6 = vld [vmem:[%s15723_s5 + $0x30] sm:$0xff] }
 0xad1   :  { %v6528_v47 = vmul.bf16 %v10193_v18, %v6459_v17  ;;  %v6536_v33 = vmul.bf16 %v10209_v8, %v15129_v39  ;;  %v7253_v16 = vld [vmem:[%s15723_s5 + $0x8] sm:$0xff]  ;;  %v7255_v39 = vld [vmem:[%s15723_s5 + $0x18] sm:$0xff]  ;;  %v9639_v2 = vpack.c.bf16 %v7259_v46, %v7258_v6 }
 0xad2   :  { %7017 = vmatmul.mubr.bf16.gmra.mrb[0].mxu1 %v6519_v62  ;;  %v6352_v19 = vpop.permute.xlu1 %6351  ;;  %v9633_v41 = vpack.c.bf16 %v7255_v39, %v7254_v9  ;;  %v10252_v62 = vmov 0.0  }
 0xad3   :  { %6920 = vmatmul.mubr.bf16.gmra.mrb[0].mxu0 %v6517_v50  ;;  %7024 = vmatprep.mubr.bf16.mxu1 %v6525_v7  ;;  %v6431_v5 = vsel %vm251_vm2, %v6288_v48, %v6352_v19  ;;  %v6376_v43 = vpop.permute.xlu0 %6375  ;;  %v6527_v48 = vmul.bf16 %v10196_v42, %v6427_v20  ;;  %v9630_v50 = vpack.c.bf16 %v7253_v16, %v7252_v30  ;;  %v7257_v20 = vld [vmem:[%s15723_s5 + $0x28] sm:$0xff]  ;;  %v15458_v7 = vld [vmem:[%s15722_s4 + $0x6] ss:$0 sm:$0xff] }
 0xad4   :  { %6927 = vmatprep.mubr.bf16.mxu0 %v6523_v63  ;;  %v6530_v58 = vmul.bf16 %v10195_v53, %v6431_v5  ;;  %v6463_v54 = vsel %vm251_vm2, %v15180_v59, %v6376_v43  ;;  %v9636_v63 = vpack.c.bf16 %v7257_v20, %v7256_v38 }
 0xad5   :  { %v6533_v1 = vmul.bf16 %v10197_v34, %v6463_v54 }
 0xad6   :  { %v6398_v24 = vpop.permute.xlu1 %6397 }
 0xad7   :  { %v6491_v37 = vsel %vm251_vm2, %v6319_v13, %v6398_v24  ;;  %v10200_v13 = vld [vmem:[%s15720_s2 + $0x118] ss:$20 sps:$4 sm:$0xff]  }
 0xad8   :  { %v6529_v49 = vmul.bf16 %v10198_v21, %v6491_v37  ;;  %v6532_v25 = vmul.bf16 %v10200_v13, %v6431_v5 }
 0xada   :  { %7025 = vmatmul.mubr.bf16.gmra.mrb[4].mxu1 %v6524_v0  ;;  %v6400_v52 = vpop.permute.xlu1 %6399 }
 0xadb   :  { %6928 = vmatmul.mubr.bf16.gmra.mrb[4].mxu0 %v6522_v4  ;;  %7032 = vmatprep.mubr.bf16.mxu1 %v6530_v58  ;;  %v6495_v28 = vsel %vm251_vm2, %v6320_v10, %v6400_v52  ;;  %v6506_v10 = vmul.bf16 %v10204_v60, %v15141_v44  ;;  %v10207_v44 = vld [vmem:[%s15720_s2 + $0x100] ss:$20 sps:$4 sm:$0xff]  }
 0xadc   :  { %6935 = vmatprep.mubr.bf16.mxu0 %v6528_v47  ;;  %v6534_v15 = vmul.bf16 %v10202_v57, %v6495_v28  ;;  %v6531_v27 = vmul.bf16 %v10207_v44, %v15180_v59  ;;  %v10250_v59 = vmov 0.0|0.0  }
 0xadd   :  { %9629 = vmatprep.subr.bf16.mxu1 %v10250_v59 }
 0xae2   :  { %7033 = vmatmul.mubr.bf16.gmra.mrb[8].mxu1 %v6529_v49 }
 0xae3   :  { %6936 = vmatmul.mubr.bf16.gmra.mrb[8].mxu0 %v6527_v48  ;;  %7040 = vmatprep.mubr.bf16.mxu1 %v6535_v29 }
 0xae4   :  { %6943 = vmatprep.mubr.bf16.mxu0 %v6533_v1 }
 0xaea   :  { %7041 = vmatmul.mubr.bf16.gmra.mrb[12].mxu1 %v6534_v15 }
 0xaeb   :  { %6944 = vmatmul.mubr.bf16.gmra.mrb[12].mxu0 %v6532_v25  ;;  %9602 = vmatprep.mubr.msk.bf16.mxu1 %vm251_vm2, %v6521_v26 }
 0xaec   :  { %9594 = vmatprep.mubr.msk.bf16.mxu0 %vm251_vm2, %v6501_v56 }
 0xaf2   :  { %9603 = vmatmul.mubr.msk.bf16.vlgmr.msra.gmra.mrb[16].mxu1 %vm251_vm2, %v6526_v14 }
 0xaf3   :  { %9595 = vmatmul.mubr.msk.bf16.vlgmr.msra.gmra.mrb[16].mxu0 %vm251_vm2, %v6506_v10  ;;  %9606 = vmatprep.mubr.msk.bf16.mxu1 %vm251_vm2, %v6531_v27 }
 0xaf4   :  { %9598 = vmatprep.mubr.msk.bf16.mxu0 %vm251_vm2, %v6511_v35  ;;  %9631 = vmatpush3.bf16.msra.mxu1 %v9630_v50 }
 0xaf5   :  { %9632 = vmatprep.subr.bf16.mxu1 %v10250_v59 }
 0xaf8   :  { %9634 = vmatpush3.bf16.msra.mxu1 %v9633_v41 }
 0xaf9   :  { %9635 = vmatprep.subr.bf16.mxu1 %v10250_v59 }
 0xafa   :  { %9607 = vmatmul.mubr.msk.bf16.gmra.mrb[20].mxu1 %vm251_vm2, %v6536_v33 }
 0xafb   :  { %9599 = vmatmul.mubr.msk.bf16.gmra.mrb[20].mxu0 %vm251_vm2, %v6516_v55  ;;  %9626 = vmatprep.mubr.msk.f32.mxu1 %vm10251_vm0, %v10252_v62 }
 0xafc   :  { %9637 = vmatpush3.bf16.msra.mxu1 %v9636_v63 }
 0xafd   :  { %9638 = vmatprep.subr.bf16.mxu1 %v10250_v59 }
 0xb00   :  { %9640 = vmatpush3.bf16.msra.mxu1 %v9639_v2 }
 0xb82   :  { %v9309_v23 = vpop.f32.mrb[240].mxu0 }
 0xb83   :  { %v9310_v17 = vpop.f32.mrb[241].mxu0 }
 0xb84   :  { %v9311_v19 = vadd.f32 %v9310_v17, %v9309_v23  ;;  %v9312_v61 = vpop.f32.mrb[242].mxu0 }
 0xb85   :  { %v9313_v4 = vpop.f32.mrb[243].mxu0  ;;  %v9373_v36 = vpop.f32.mrb[240].mxu1 }
 0xb86   :  { %v6890_v32 = vadd.f32 %v9311_v19, %v15458_v7  ;;  %v9314_v18 = vadd.f32 %v9313_v4, %v9312_v61  ;;  %v9374_v47 = vpop.f32.mrb[241].mxu1 }
 0xb87   :  { %v9375_v5 = vadd.f32 %v9374_v47, %v9373_v36  ;;  %v9376_v45 = vpop.f32.mrb[242].mxu1 }
 0xb88   :  { %v6893_v0 = vadd.f32 %v9314_v18, %v15458_v7  ;;  %v9377_v43 = vpop.f32.mrb[243].mxu1 }
 0xb89   :  { %v9378_v53 = vadd.f32 %v9377_v43, %v9376_v45  ;;  %v15462_v58 = vadd.f32 %v9375_v5, %v6890_v32 }
 0xb8b   :  { %v15464_v42 = vadd.f32 %v9378_v53, %v6893_v0 }
 0xb8d   :  { %v9379_v1 = vpop.f32.mrb[244].mxu1 }
 0xb8e   :  { %v9315_v24 = vpop.f32.mrb[244].mxu0  ;;  %v9380_v12 = vpop.f32.mrb[245].mxu1 }
 0xb8f   :  { %v9316_v54 = vpop.f32.mrb[245].mxu0  ;;  %v9381_v29 = vadd.f32 %v9380_v12, %v9379_v1  ;;  %v9382_v52 = vpop.f32.mrb[246].mxu1 }
 0xb90   :  { %v9317_v48 = vadd.f32 %v9316_v54, %v9315_v24  ;;  %v9318_v37 = vpop.f32.mrb[246].mxu0  ;;  %v9383_v25 = vpop.f32.mrb[247].mxu1 }
 0xb91   :  { %v9319_v34 = vpop.f32.mrb[247].mxu0  ;;  %v9384_v28 = vadd.f32 %v9383_v25, %v9382_v52 }
 0xb92   :  { %v6898_v21 = vadd.f32 %v9317_v48, %v15458_v7  ;;  %v9320_v49 = vadd.f32 %v9319_v34, %v9318_v37 }
 0xb94   :  { %v6901_v13 = vadd.f32 %v9320_v49, %v15458_v7  ;;  %v15468_v22 = vadd.f32 %v9381_v29, %v6898_v21 }
 0xb95   :  { %v9385_v10 = vpop.f32.mrb[248].mxu1 }
 0xb96   :  { %v9321_v56 = vpop.f32.mrb[248].mxu0  ;;  %v15470_v15 = vadd.f32 %v9384_v28, %v6901_v13  ;;  %v9386_v51 = vpop.f32.mrb[249].mxu1 }
 0xb97   :  { %v9322_v57 = vpop.f32.mrb[249].mxu0  ;;  %v9387_v14 = vadd.f32 %v9386_v51, %v9385_v10  ;;  %v9388_v44 = vpop.f32.mrb[250].mxu1 }
 0xb98   :  { %v9323_v40 = vadd.f32 %v9322_v57, %v9321_v56  ;;  %v9324_v26 = vpop.f32.mrb[250].mxu0  ;;  %v9389_v31 = vpop.f32.mrb[251].mxu1 }
 0xb99   :  { %v9325_v60 = vpop.f32.mrb[251].mxu0  ;;  %v9390_v55 = vadd.f32 %v9389_v31, %v9388_v44 }
 0xb9a   :  { %v6906_v3 = vadd.f32 %v9323_v40, %v15458_v7  ;;  %v9326_v35 = vadd.f32 %v9325_v60, %v9324_v26 }
 0xb9c   :  { %v6909_v27 = vadd.f32 %v9326_v35, %v15458_v7  ;;  %v15474_v8 = vadd.f32 %v9387_v14, %v6906_v3 }
 0xb9d   :  { %v9391_v39 = vpop.f32.mrb[252].mxu1 }
 0xb9e   :  { %v9327_v33 = vpop.f32.mrb[252].mxu0  ;;  %v15476_v30 = vadd.f32 %v9390_v55, %v6909_v27  ;;  %v9392_v20 = vpop.f32.mrb[253].mxu1 }
 0xb9f   :  { %v9328_v59 = vpop.f32.mrb[253].mxu0  ;;  %v9393_v6 = vadd.f32 %v9392_v20, %v9391_v39  ;;  %v9394_v63 = vpop.f32.mrb[254].mxu1 }
 0xba0   :  { %v9329_v16 = vadd.f32 %v9328_v59, %v9327_v33  ;;  %v9330_v50 = vpop.f32.mrb[254].mxu0  ;;  %v9395_v2 = vpop.f32.mrb[255].mxu1 }
 0xba1   :  { %v9331_v9 = vpop.f32.mrb[255].mxu0  ;;  %v9396_v23 = vadd.f32 %v9395_v2, %v9394_v63 }
 0xba2   :  { %v6914_v41 = vadd.f32 %v9329_v16, %v15458_v7  ;;  %v9332_v38 = vadd.f32 %v9331_v9, %v9330_v50 }
 0xba4   :  { %v6917_v46 = vadd.f32 %v9332_v38, %v15458_v7  ;;  %v15480_v17 = vadd.f32 %v9393_v6, %v6914_v41 }
 0xba5   :  { %v9397_v47 = vpop.f32.mrb[0].mxu1 }
 0xba6   :  { %v9333_v19 = vpop.f32.mrb[0].mxu0  ;;  %v15482_v4 = vadd.f32 %v9396_v23, %v6917_v46  ;;  %v9398_v0 = vpop.f32.mrb[1].mxu1 }
 0xba7   :  { %v9334_v61 = vpop.f32.mrb[1].mxu0  ;;  %v9399_v43 = vadd.f32 %v9398_v0, %v9397_v47  ;;  %v9400_v53 = vpop.f32.mrb[2].mxu1 }
 0xba8   :  { %v9335_v36 = vadd.f32 %v9334_v61, %v9333_v19  ;;  %v9336_v32 = vpop.f32.mrb[2].mxu0  ;;  %v9401_v54 = vpop.f32.mrb[3].mxu1 }
 0xba9   :  { %v9337_v18 = vpop.f32.mrb[3].mxu0  ;;  %v9402_v48 = vadd.f32 %v9401_v54, %v9400_v53 }
 0xbaa   :  { %v6922_v5 = vadd.f32 %v9335_v36, %v15458_v7  ;;  %v9338_v45 = vadd.f32 %v9337_v18, %v9336_v32 }
 0xbac   :  { %v6925_v24 = vadd.f32 %v9338_v45, %v15458_v7  ;;  %v15486_v37 = vadd.f32 %v9399_v43, %v6922_v5 }
 0xbad   :  { %v9403_v52 = vpop.f32.mrb[4].mxu1 }
 0xbae   :  { %v9339_v34 = vpop.f32.mrb[4].mxu0  ;;  %v15488_v21 = vadd.f32 %v9402_v48, %v6925_v24  ;;  %v9404_v28 = vpop.f32.mrb[5].mxu1 }
 0xbaf   :  { %v9340_v1 = vpop.f32.mrb[5].mxu0  ;;  %v9405_v56 = vadd.f32 %v9404_v28, %v9403_v52  ;;  %v9406_v57 = vpop.f32.mrb[6].mxu1 }
 0xbb0   :  { %v9341_v49 = vadd.f32 %v9340_v1, %v9339_v34  ;;  %v9342_v12 = vpop.f32.mrb[6].mxu0  ;;  %v9407_v26 = vpop.f32.mrb[7].mxu1 }
 0xbb1   :  { %v9343_v29 = vpop.f32.mrb[7].mxu0  ;;  %v9408_v60 = vadd.f32 %v9407_v26, %v9406_v57 }
 0xbb2   :  { %v6930_v13 = vadd.f32 %v9341_v49, %v15458_v7  ;;  %v9344_v25 = vadd.f32 %v9343_v29, %v9342_v12  ;;  %v16061_v49 = vld [vmem:[#allocation25_spill] sm:$0xff] }
 0xbb4   :  { %v6933_v40 = vadd.f32 %v9344_v25, %v15458_v7  ;;  %v7027_v10 = vadd.f32 %v9405_v56, %v6930_v13  ;;  %v16062_v25 = vld [vmem:[#allocation22_spill] sm:$0xff] }
 0xbb5   :  { %v9409_v31 = vpop.f32.mrb[8].mxu1 }
 0xbb6   :  { %v9345_v3 = vpop.f32.mrb[8].mxu0  ;;  %v7030_v51 = vadd.f32 %v9408_v60, %v6933_v40  ;;  %v9410_v59 = vpop.f32.mrb[9].mxu1 }
 0xbb7   :  { %v9346_v35 = vpop.f32.mrb[9].mxu0  ;;  %v9411_v16 = vadd.f32 %v9410_v59, %v9409_v31  ;;  %v9412_v50 = vpop.f32.mrb[10].mxu1  ;;  %v16066_v31 = vld [vmem:[#allocation10_spill] sm:$0xff] }
 0xbb8   :  { %v9347_v14 = vadd.f32 %v9346_v35, %v9345_v3  ;;  %v9348_v44 = vpop.f32.mrb[10].mxu0  ;;  %v9413_v39 = vpop.f32.mrb[11].mxu1  ;;  %v16064_v3 = vld [vmem:[#allocation27_spill] sm:$0xff] }
 0xbb9   :  { %v9349_v27 = vpop.f32.mrb[11].mxu0  ;;  %v9414_v41 = vadd.f32 %v9413_v39, %v9412_v50 }
 0xbba   :  { %v6938_v55 = vadd.f32 %v9347_v14, %v15458_v7  ;;  %v9350_v33 = vadd.f32 %v9349_v27, %v9348_v44 }
 0xbbc   :  { %v6941_v9 = vadd.f32 %v9350_v33, %v15458_v7  ;;  %v15494_v38 = vadd.f32 %v9411_v16, %v6938_v55  ;;  %v16067_v33 = vld [vmem:[#allocation14_spill] sm:$0xff]  ;;  %v15529_v16 = vld [vmem:[%s15725_s7 + $0x1] ss:$0 sm:$0xff] }
 0xbbd   :  { %v9415_v19 = vpop.f32.mrb[12].mxu1 }
 0xbbe   :  { %v9351_v20 = vpop.f32.mrb[12].mxu0  ;;  %v15496_v63 = vadd.f32 %v9414_v41, %v6941_v9  ;;  %v9416_v32 = vpop.f32.mrb[13].mxu1 }
 0xbbf   :  { %v9352_v6 = vpop.f32.mrb[13].mxu0  ;;  %v9417_v18 = vadd.f32 %v9416_v32, %v9415_v19  ;;  %v9418_v47 = vpop.f32.mrb[14].mxu1 }
 0xbc0   :  { %v9353_v46 = vadd.f32 %v9352_v6, %v9351_v20  ;;  %v9354_v2 = vpop.f32.mrb[14].mxu0  ;;  %v9419_v45 = vpop.f32.mrb[15].mxu1 }
 0xbc1   :  { %v9355_v23 = vpop.f32.mrb[15].mxu0  ;;  %v9420_v0 = vadd.f32 %v9419_v45, %v9418_v47  ;;  %v16069_v47 = vld [vmem:[#allocation12_spill] sm:$0xff] }
 0xbc2   :  { %v6946_v61 = vadd.f32 %v9353_v46, %v15458_v7  ;;  %v9356_v36 = vadd.f32 %v9355_v23, %v9354_v2  ;;  %v16068_v2 = vld [vmem:[#allocation11_spill] sm:$0xff] }
 0xbc4   :  { %v6949_v5 = vadd.f32 %v9356_v36, %v15458_v7  ;;  %v7043_v43 = vadd.f32 %v9417_v18, %v6946_v61 }
 0xbc5   :  { %v9604_v13 = vpop.f32.mrb[16].mxu1 }
 0xbc6   :  { %v9596_v53 = vpop.f32.mrb[16].mxu0  ;;  %v7046_v48 = vadd.f32 %v9420_v0, %v6949_v5  ;;  %v7124_v56 = vadd.f32 %v9604_v13, %v7027_v10  ;;  %v7115_v57 = vpop.f32.mrb[17].mxu1 }
 0xbc7   :  { %v7092_v24 = vadd.f32 %v9596_v53, %v15468_v22  ;;  %v7083_v54 = vpop.f32.mrb[17].mxu0  ;;  %v16063_v22 = vld [vmem:[#allocation26_spill] sm:$0xff]  ;;  %v9605_v60 = vpop.f32.mrb[18].mxu1 }
 0xbc8   :  { %v7084_v34 = vadd.f32 %v7083_v54, %v15462_v58  ;;  %v9597_v1 = vpop.f32.mrb[18].mxu0  ;;  %v7116_v58 = vadd.f32 %v7115_v57, %v15486_v37  ;;  %v7127_v44 = vadd.f32 %v9605_v60, %v7030_v51  ;;  %v7118_v27 = vpop.f32.mrb[19].mxu1  ;;  %v16071_v54 = vld [vmem:[#allocation24_spill] sm:$0xff] }
 0xbc9   :  { %v7148_v12 = vadd.f32 %v7092_v24, %v16061_v49  ;;  %v7095_v29 = vadd.f32 %v9597_v1, %v15470_v15  ;;  %v7086_v52 = vpop.f32.mrb[19].mxu0  ;;  %v16065_v15 = vld [vmem:[#allocation13_spill] sm:$0xff]  ;;  %v7119_v10 = vadd.f32 %v7118_v27, %v15488_v21 }
 0xbca   :  { %v15505_v28 = vadd.f32 %v7084_v34, %v16062_v25  ;;  %v7087_v7 = vadd.f32 %v7086_v52, %v15464_v42  ;;  %v15516_v14 = vadd.f32 %v7124_v56, %v16065_v15  ;;  %v7154_v42 = vadd.f32 %v7116_v58, %v16066_v31  ;;  %v16070_v24 = vld [vmem:[#allocation9_spill] sm:$0xff]  ;;  %v16074_v56 = vld [vmem:[#allocation16_spill] sm:$0xff] }
 0xbcb   :  { %v7180_v40 = vmul.f32 0.01, %v7148_v12  ;;  %v15509_v26 = vadd.f32 %v7095_v29, %v16063_v22  ;;  %vm7164_vm1 = vcmp.gt.f32.partialorder %v7148_v12, 0.0  ;;  %v15524_v59 = vadd.f32 %v7127_v44, %v16067_v33  ;;  %v16072_v29 = vld [vmem:[#allocation8_spill] sm:$0xff] }
 0xbcc   :  { %v15513_v35 = vadd.f32 %v7087_v7, %v16064_v3  ;;  %v15521_v55 = vmul.f32 0.01, %v15505_v28  ;;  %v7186_v9 = vmul.f32 0.01, %v7154_v42  ;;  %vm7170_vm8 = vcmp.gt.f32.partialorder %v7154_v42, 0.0  ;;  %v16075_v3 = vld [vmem:[#allocation15_spill] sm:$0xff] }
 0xbcd   :  { %v7196_v50 = vsel %vm7164_vm1, %v7148_v12, %v7180_v40  ;;  %v15532_v51 = vmul.f32 0.01, %v15509_v26  ;;  %v7188_v20 = vmul.f32 0.01, %v15516_v14  ;;  %v9608_v36 = vpop.f32.mrb[20].mxu1  ;;  %v7155_v5 = vadd.f32 %v7119_v10, %v16069_v47 }
 0xbce   :  { %v9600_v37 = vpop.f32.mrb[20].mxu0  ;;  %v15536_v41 = vmul.f32 0.01, %v15513_v35  ;;  %v7202_v32 = vsel %vm7170_vm8, %v7154_v42, %v7186_v9  ;;  %v7376_v18 = vmul.f32 %v15529_v16, %v7196_v50  ;;  %v7140_v0 = vadd.f32 %v9608_v36, %v7043_v43  ;;  %v7131_v53 = vpop.f32.mrb[21].mxu1  ;;  %v16073_v43 = vld [vmem:[#allocation17_spill] sm:$0xff] }
 0xbcf   :  { %v7108_v39 = vadd.f32 %v9600_v37, %v15480_v17  ;;  %v7099_v21 = vpop.f32.mrb[21].mxu0  ;;  %v7189_v17 = vmul.f32 0.01, %v15524_v59  ;;  %v9609_v1 = vpop.f32.mrb[22].mxu1  ;;  %v7382_v49 = vmul.f32 %v15529_v16, %v7202_v32  ;;  %v15559_v22 = vsel %vm251_vm2, %v7196_v50, -inf }
 0xbd0   :  { %v7100_v6 = vadd.f32 %v7099_v21, %v15474_v8  ;;  %v9601_v46 = vpop.f32.mrb[22].mxu0  ;;  %v7143_v13 = vadd.f32 %v9609_v1, %v7046_v48  ;;  %v7134_v25 = vpop.f32.mrb[23].mxu1  ;;  %v15554_v7 = vadd.f32 %v7140_v0, %v16073_v43  ;;  %v7187_v58 = vmul.f32 0.01, %v7155_v5 }
 0xbd1   :  { %v7152_v23 = vadd.f32 %v7108_v39, %v16068_v2  ;;  %v7111_v19 = vadd.f32 %v9601_v46, %v15482_v4  ;;  %v7102_v61 = vpop.f32.mrb[23].mxu0  ;;  %v7132_v4 = vadd.f32 %v7131_v53, %v15494_v38  ;;  %v7396_v38 = vsel %vm251_vm2, %v7376_v18, 0.0 }
 0xbd2   :  { %v7103_v45 = vadd.f32 %v7102_v61, %v15476_v30  ;;  %v15547_v8 = vadd.f32 %v7100_v6, %v16070_v24  ;;  %v7161_v48 = vadd.f32 %v7143_v13, %v16075_v3  ;;  %v7135_v15 = vadd.f32 %v7134_v25, %v15496_v63 }
 0xbd3   :  { %v7153_v34 = vadd.f32 %v7111_v19, %v16071_v54  ;;  %vm7168_vm9 = vcmp.gt.f32.partialorder %v7152_v23, 0.0  ;;  %v7184_v12 = vmul.f32 0.01, %v7152_v23  ;;  %v7158_v57 = vadd.f32 %v7132_v4, %v16074_v56 }
 0xbd4   :  { %v7151_v52 = vadd.f32 %v7103_v45, %v16072_v29  ;;  %v7182_v27 = vmul.f32 0.01, %v15547_v8  ;;  %v7414_v42 = vsel %vm251_vm2, %v7382_v49, 0.0  ;;  %v15577_v33 = vmul.f32 0.01, %v15554_v7 }
 0xbd5   :  { %vm7169_vm10 = vcmp.gt.f32.partialorder %v7153_v34, 0.0  ;;  %v7185_v30 = vmul.f32 0.01, %v7153_v34  ;;  %v15566_v44 = vsel %vm7168_vm9, %v7152_v23, %v7184_v12  ;;  %v7190_v37 = vmul.f32 0.01, %v7158_v57  ;;  %7415 = vadd.xlane.f32.xlu0 %v7414_v42  ;;  %v16076_v23 = vld [vmem:[#allocation18_spill] sm:$0xff] }
 0xbd6   :  { %vm7167_vm11 = vcmp.gt.f32.partialorder %v7151_v52, 0.0  ;;  %v7183_v40 = vmul.f32 0.01, %v7151_v52  ;;  %v7231_v63 = vsel %vm251_vm2, %v7202_v32, -inf  ;;  %vm7171_vm12 = vcmp.gt.f32.partialorder %v7155_v5, 0.0 }
 0xbd7   :  { %v15561_v60 = vsel %vm7169_vm10, %v7153_v34, %v7185_v30  ;;  %vm7172_vm13 = vcmp.gt.f32.partialorder %v15516_v14, 0.0  ;;  %vm7165_vm14 = vcmp.gt.f32.partialorder %v15509_v26, 0.0  ;;  %vm7173_vm15 = vcmp.gt.f32.partialorder %v15524_v59, 0.0 }
 0xbd8   :  { %v15569_v31 = vsel %vm7167_vm11, %v7151_v52, %v7183_v40  ;;  %v15574_v10 = vsel %vm251_vm2, %v15561_v60, -inf  ;;  %vm7177_vm3 = vcmp.gt.f32.partialorder %v7161_v48, 0.0  ;;  %v7203_v9 = vsel %vm7171_vm12, %v7155_v5, %v7187_v58 }
 0xbd9   :  { %v7218_v50 = vsel %vm251_vm2, %v15569_v31, -inf  ;;  %v7204_v39 = vsel %vm7172_vm13, %v15516_v14, %v7188_v20  ;;  %v7193_v21 = vmul.f32 0.01, %v7161_v48  ;;  %v7383_v6 = vmul.f32 %v15529_v16, %v7203_v9  ;;  %7397 = vadd.xlane.f32.xlu0 %v7396_v38 }
 0xbda   :  { %v7232_v46 = vsel %vm251_vm2, %v7203_v9, -inf  ;;  %v7233_v2 = vsel %vm251_vm2, %v7204_v39, -inf  ;;  %v7159_v19 = vadd.f32 %v7135_v15, %v16076_v23  ;;  %v7197_v36 = vsel %vm7165_vm14, %v15509_v26, %v15532_v51 }
 0xbdb   :  { %v7234_v61 = vmax.f32 %v7231_v63, %v7233_v2  ;;  %v7205_v32 = vsel %vm7173_vm15, %v15524_v59, %v7189_v17  ;;  %v7417_v18 = vsel %vm251_vm2, %v7383_v6, 0.0  ;;  %v7384_v14 = vmul.f32 %v15529_v16, %v7204_v39 }
 0xbdc   :  { %v7377_v20 = vmul.f32 %v15529_v16, %v7197_v36  ;;  %v7235_v47 = vsel %vm251_vm2, %v7205_v32, -inf  ;;  %7418 = vadd.xlane.f32.xlu1 %v7417_v18  ;;  %v7214_v5 = vsel %vm251_vm2, %v7197_v36, -inf  ;;  %v7385_v45 = vmul.f32 %v15529_v16, %v7205_v32 }
 0xbdd   :  { %v7236_v0 = vmax.f32 %v7232_v46, %v7235_v47  ;;  %vm7163_vm4 = vcmp.gt.f32.partialorder %v15513_v35, 0.0  ;;  %vm7174_vm5 = vcmp.gt.f32.partialorder %v7158_v57, 0.0  ;;  %vm7166_vm6 = vcmp.gt.f32.partialorder %v15547_v8, 0.0 }
 0xbde   :  { %v7399_v26 = vsel %vm251_vm2, %v7377_v20, 0.0  ;;  %v7195_v59 = vsel %vm7163_vm4, %v15513_v35, %v15536_v41  ;;  %v7191_v51 = vmul.f32 0.01, %v7159_v19  ;;  %v7206_v24 = vsel %vm7174_vm5, %v7158_v57, %v7190_v37 }
 0xbdf   :  { %7400 = vadd.xlane.f32.xlu0 %v7399_v26  ;;  %v7375_v17 = vmul.f32 %v15529_v16, %v7195_v59  ;;  %v7211_v53 = vsel %vm251_vm2, %v7195_v59, -inf  ;;  %v7420_v54 = vsel %vm251_vm2, %v7384_v14, 0.0  ;;  %v7237_v4 = vsel %vm251_vm2, %v7206_v24, -inf  ;;  %v8446_v26 = vld [vmem:[%s15724_s6] ss:$0 sm:$0xff]  ;;  %s8448_s6 = sld [smem:[#allocation2 + $0x1]] }
 0xbe0   :  { %v7215_v34 = vmax.f32 %v7211_v53, %v7214_v5  ;;  %v7198_v1 = vsel %vm7166_vm6, %v15547_v8, %v7182_v27  ;;  %v7209_v49 = vsel %vm7177_vm3, %v7161_v48, %v7193_v21  ;;  %7421 = vadd.xlane.f32.xlu1 %v7420_v54  ;;  %v7423_v35 = vsel %vm251_vm2, %v7385_v45, 0.0 }
 0xbe1   :  { %v7393_v41 = vsel %vm251_vm2, %v7375_v17, 0.0  ;;  %v7238_v12 = vmax.f32 %v7234_v61, %v7237_v4  ;;  %v7378_v52 = vmul.f32 %v15529_v16, %v7198_v1  ;;  %vm7162_vm7 = vcmp.gt.f32.partialorder %v15505_v28, 0.0  ;;  %v8450_v17 = vld [vmem:[%s15725_s7 + $0x2] ss:$0 sm:$0xff] }
 0xbe2   :  { %v7219_v29 = vmax.f32 %v7215_v34, %v7218_v50  ;;  %vm7175_vm0 = vcmp.gt.f32.partialorder %v7159_v19, 0.0  ;;  %v7386_v13 = vmul.f32 %v15529_v16, %v7206_v24  ;;  %v7194_v8 = vsel %vm7162_vm7, %v15505_v28, %v15521_v55 }
 0xbe3   :  { %7394 = vadd.xlane.f32.xlu0 %v7393_v41  ;;  %v7207_v25 = vsel %vm7175_vm0, %v7159_v19, %v7191_v51  ;;  %vm7176_vm1 = vcmp.gt.f32.partialorder %v15554_v7, 0.0  ;;  %v7216_v43 = vsel %vm251_vm2, %v7198_v1, -inf  ;;  %v7210_v56 = vsel %vm251_vm2, %v7194_v8, -inf }
 0xbe4   :  { %v7223_v30 = vmax.f32 %v7219_v29, %v15574_v10  ;;  %v7239_v57 = vsel %vm251_vm2, %v7207_v25, -inf  ;;  %7424 = vadd.xlane.f32.xlu1 %v7423_v35  ;;  %v7213_v40 = vmax.f32 %v7210_v56, %v15559_v22  ;;  %v7208_v58 = vsel %vm7176_vm1, %v15554_v7, %v15577_v33 }
 0xbe5   :  { %v7240_v38 = vmax.f32 %v7236_v0, %v7239_v57  ;;  %v7243_v28 = vsel %vm251_vm2, %v7209_v49, -inf  ;;  %v7402_v55 = vsel %vm251_vm2, %v7378_v52, 0.0  ;;  %v7241_v3 = vsel %vm251_vm2, %v7208_v58, -inf }
 0xbe6   :  { %v7220_v48 = vsel %vm251_vm2, %v15566_v44, -inf  ;;  %v7217_v15 = vmax.f32 %v7213_v40, %v7216_v43  ;;  %v7242_v42 = vmax.f32 %v7238_v12, %v7241_v3  ;;  %v7426_v10 = vsel %vm251_vm2, %v7386_v13, 0.0 }
 0xbe7   :  { %7403 = vadd.xlane.f32.xlu0 %v7402_v55  ;;  %v7244_v27 = vmax.f32 %v7240_v38, %v7243_v28  ;;  %v7374_v22 = vmul.f32 %v15529_v16, %v7194_v8  ;;  %v7379_v7 = vmul.f32 %v15529_v16, %v15569_v31  ;;  %v7380_v33 = vmul.f32 %v15529_v16, %v15566_v44 }
 0xbe8   :  { %7427 = vadd.xlane.f32.xlu1 %v7426_v10  ;;  %v7221_v37 = vmax.f32 %v7217_v15, %v7220_v48  ;;  %v7381_v50 = vmul.f32 %v15529_v16, %v15561_v60  ;;  %v7387_v6 = vmul.f32 %v15529_v16, %v7207_v25  ;;  %v7388_v44 = vmul.f32 %v15529_v16, %v7208_v58 }
 0xbe9   :  { %v7245_v63 = vmax.f32 %v7242_v42, %v7244_v27  ;;  %v7390_v21 = vsel %vm251_vm2, %v7374_v22, 0.0  ;;  %v7389_v14 = vmul.f32 %v15529_v16, %v7209_v49  ;;  %vm7269_vm8 = vcmask 1041409  }
 0xbea   :  { %v7224_v9 = vmax.f32 %v7221_v37, %v7223_v30  ;;  %v7429_v19 = vsel %vm251_vm2, %v7387_v6, 0.0  ;;  %v7432_v18 = vsel %vm251_vm2, %v7388_v44, 0.0  ;;  %vm7354_vm9 = vcmask 517120  }
 0xbeb   :  { %v7246_v39 = vrot.slane %v7245_v63, 4  ;;  %v7435_v45 = vsel %vm251_vm2, %v7389_v14, 0.0  ;;  %v7405_v34 = vsel %vm251_vm2, %v7379_v7, 0.0  ;;  %v7408_v4 = vsel %vm251_vm2, %v7380_v33, 0.0 }
 0xbec   :  { %7391 = vadd.xlane.f32.xlu1 %v7390_v21  ;;  %v7225_v46 = vrot.slane %v7224_v9, 4  ;;  %v7411_v1 = vsel %vm251_vm2, %v7381_v50, 0.0  ;;  %v10253_v49 = vmov 0   ;;  %v7368_v43 = vstv %s8448_s6 }
 0xbed   :  { %v7247_v2 = vmax.f32 %v7245_v63, %v7246_v39  ;;  %9657 = vset.pattern.permute.xlu1 %v10253_v49  ;;  %9656 = vset.pattern.permute.xlu0 %v10253_v49  ;;  %v7441_v56 = vsub.s32 0, %v10343_v11  ;;  %v7445_v40 = vsub.s32 1, %v10343_v11  ;;  %vm7542_vm10 = vcmask 130112  }
 0xbee   :  { %v7226_v23 = vmax.f32 %v7224_v9, %v7225_v46  ;;  %vm7549_vm11 = vcmask 195712   ;;  %vm7556_vm12 = vcmask 261312   ;;  %vm7563_vm13 = vcmask 326912  }
 0xbef   :  { %v7248_v31 = vrot.slane %v7247_v2, 2  ;;  %vm7570_vm14 = vcmask 392512   ;;  %vm7577_vm15 = vcmask 458112   ;;  %vm7584_vm3 = vcmask 523712  }
 0xbf0   :  { %v7227_v61 = vrot.slane %v7226_v23, 2  ;;  %7430 = vadd.xlane.f32.xlu1 %v7429_v19 }
 0xbf1   :  { %v7249_v36 = vmax.f32 %v7247_v2, %v7248_v31 }
 0xbf2   :  { %v7228_v32 = vmax.f32 %v7226_v23, %v7227_v61  ;;  %v8449_v61 = vld [vmem:[%s15725_s7] ss:$0 sm:$0xff]  ;;  %s10254_s7 = smov [#allocation5]  }
 0xbf3   :  { %v7250_v60 = vrot.slane %v7249_v36, 1  ;;  %s7650_s16 = sshll.u32 %s10254_s7, 4  ;;  %s7651_s16 = int_to_ptr.vmem [resolvable:$true] %s7650_s16 }
 0xbf4   :  { %v7229_v20 = vrot.slane %v7228_v32, 1  ;;  %7433 = vadd.xlane.f32.xlu1 %v7432_v18  ;;  %s10222_s8 = scalar_lea.vmem %s7651_s16, 32  ;;  %p10227_p6 = scmp.lt.s32.totalorder %s7651_s16, %s7651_s16 }
 0xbf5   :  { %v7251_v47 = vmax.f32 %v7249_v36, %v7250_v60  ;;  %v15673_v60 = vld [vmem:[%s15719_s1] sm:$0x3]  ;;  %s7347_s1 = sld [smem:[#allocation2]]  ;;  %p10223_p5 = scmp.ne.s32.totalorder %s7651_s16, %s10222_s8 }
 0xbf6   :  { %v7230_v5 = vmax.f32 %v7228_v32, %v7229_v20  ;;  %p10228_p7 = scmp.lt.s32.totalorder %s10222_s8, %s10222_s8 }
 0xbf8   :  { %v7270_v0 = vsel %vm7269_vm8, %v7251_v47, %v7230_v5  ;;  %7436 = vadd.xlane.f32.xlu1 %v7435_v45  ;;  %p10229_p8 = por %p10228_p7, %p10227_p6 }
 0xbf9   :  { %9627 = vmatmul.mubr.msk.f32.vlgmr.msra.gmra.mrb[24].mxu1 %vm251_vm2, %v7270_v0  ;;  %vm7466_vm2 = vcmp.eq.f32.partialorder %v15673_v60, 0.0 }
 0xbfa   :  { %v8452_v18 = vsel %vm7466_vm2, 1.0, %v10252_v62  ;;  %p10230_p9 = pnand %p10229_p8, %p10223_p5 }
 0xbfb   :  { %v7630_v14 = vsel %vm7354_vm9, %v8452_v18, 0.0 }
 0xc62   :  { %v7416_v35 = vpop.xlane.xlu0 %7415 }
 0xc66   :  { %v7398_v12 = vpop.xlane.xlu0 %7397 }
 0xc69   :  { %v7419_v41 = vpop.xlane.xlu1 %7418 }
 0xc6c   :  { %v7401_v52 = vpop.xlane.xlu0 %7400 }
 0xc6d   :  { %v7422_v29 = vpop.xlane.xlu1 %7421 }
 0xc70   :  { %v7395_v8 = vpop.xlane.xlu0 %7394 }
 0xc71   :  { %v7425_v13 = vpop.xlane.xlu1 %7424 }
 0xc74   :  { %v7404_v30 = vpop.xlane.xlu0 %7403 }
 0xc75   :  { %v7428_v25 = vpop.xlane.xlu1 %7427 }
 0xc79   :  { %v7392_v58 = vpop.xlane.xlu1 %7391 }
 0xc7d   :  { %v7431_v15 = vpop.xlane.xlu1 %7430 }
 0xc81   :  { %v7434_v7 = vpop.xlane.xlu1 %7433 }
 0xc85   :  { %v7437_v63 = vpop.xlane.xlu1 %7436 }
 0xccc   :  { %v7339_v59 = vpop.f32.mrb[24].mxu1 }
 0xccd   :  { %v15650_v51 = vadd.f32 %v8446_v26, %v7339_v59  ;;  %v9628_v16 = vpop.f32.mrb[25].mxu1  ;;  %v16077_v26 = vlaneseq }
 0xccf   :  { %v7343_v53 = vmax.f32 %v15650_v51, 0.0  ;;  %v7532_v59 = vand.u32 127, %v16077_v26 }
 0xcd1   :  { %v7364_v24 = vmul.f32 %v8450_v17, %v7343_v53  ;;  %v7353_v36 = vmul.f32 %v8449_v61, %v7343_v53  ;;  %v7537_v16 = vadd.s32 4294967288, %v7532_v59  ;;  %v7544_v53 = vadd.s32 4294967280, %v7532_v59 }
 0xcd2   :  { %v7535_v49 = vsub.s32 %v7532_v59, %v10343_v11 }
 0xcd3   :  { %v7365_v54 = vsel %vm7354_vm9, %v7364_v24, 0.0  ;;  %v7355_v32 = vsel %vm7354_vm9, %v7353_v36, 0.0  ;;  %v7547_v62 = vsub.s32 %v7544_v53, %v10343_v11 }
 0xcd4   :  { %7366 = vadd.xlane.f32.xlu0 %v7365_v54  ;;  %v7551_v54 = vadd.s32 4294967272, %v7532_v59 }
 0xcd8   :  { %7406 = vadd.xlane.f32.xlu0 %v7405_v34  ;;  %v7540_v34 = vsub.s32 %v7537_v16, %v10343_v11 }
 0xcdc   :  { %7409 = vadd.xlane.f32.xlu0 %v7408_v4  ;;  %v7558_v4 = vadd.s32 4294967264, %v7532_v59 }
 0xce0   :  { %7412 = vadd.xlane.f32.xlu0 %v7411_v1 }
 0xd61   :  { %v7367_v57 = vpop.xlane.xlu0 %7366 }
 0xd62   :  { %v7369_v38 = vadd.f32 %v7368_v43, %v7367_v57 }
 0xd64   :  { %v7442_v28 = vrot.slane %v7369_v38, %v7441_v56  ;;  %v7446_v55 = vrot.slane %v7369_v38, %v7445_v40  ;;  %v7572_v56 = vadd.s32 4294967248, %v7532_v59 }
 0xd65   :  { %v7407_v6 = vpop.xlane.xlu0 %7406 }
 0xd66   :  { %v7450_v3 = vadd.f32 %v7442_v28, %v7395_v8  ;;  %v7449_v48 = vadd.f32 %v7442_v28, %v7392_v58  ;;  %v7457_v27 = vadd.f32 %v7446_v55, %v7416_v35  ;;  %v7461_v42 = vadd.f32 %v7446_v55, %v7428_v25 }
 0xd67   :  { %v7458_v10 = vadd.f32 %v7446_v55, %v7419_v41  ;;  %v7462_v22 = vadd.f32 %v7446_v55, %v7431_v15  ;;  %v7451_v33 = vadd.f32 %v7442_v28, %v7398_v12  ;;  %v7463_v37 = vadd.f32 %v7446_v55, %v7434_v7 }
 0xd68   :  { %7487 = vperm.xlu1 %9657, %v7450_v3   ;;  %7484 = vperm.xlu0 %9656, %v7449_v48   ;;  %v7459_v50 = vadd.f32 %v7446_v55, %v7422_v29  ;;  %v7464_v9 = vadd.f32 %v7446_v55, %v7437_v63  ;;  %v7452_v39 = vadd.f32 %v7442_v28, %v7401_v52 }
 0xd69   :  { %v7460_v21 = vadd.f32 %v7446_v55, %v7425_v13  ;;  %v7453_v46 = vadd.f32 %v7442_v28, %v7404_v30  ;;  %v7410_v2 = vpop.xlane.xlu0 %7409  ;;  %v7454_v23 = vadd.f32 %v7442_v28, %v7407_v6  ;;  %v7554_v41 = vsub.s32 %v7551_v54, %v10343_v11 }
 0xd6a   :  { %v7455_v31 = vadd.f32 %v7442_v28, %v7410_v2  ;;  %v7565_v13 = vadd.s32 4294967256, %v7532_v59  ;;  %v7561_v25 = vsub.s32 %v7558_v4, %v10343_v11  ;;  %v7579_v55 = vadd.s32 4294967240, %v7532_v59 }
 0xd6c   :  { %7508 = vperm.xlu1 %9657, %v7457_v27   ;;  %7520 = vperm.xlu0 %9656, %v7461_v42   ;;  %v7568_v40 = vsub.s32 %v7565_v13, %v10343_v11  ;;  %v7575_v42 = vsub.s32 %v7572_v56, %v10343_v11 }
 0xd6d   :  { %v7413_v19 = vpop.xlane.xlu0 %7412 }
 0xd6e   :  { %v7456_v44 = vadd.f32 %v7442_v28, %v7413_v19 }
 0xd70   :  { %7511 = vperm.xlu1 %9657, %v7458_v10   ;;  %7523 = vperm.xlu0 %9656, %v7462_v22  }
 0xd74   :  { %7490 = vperm.xlu1 %9657, %v7451_v33   ;;  %7526 = vperm.xlu0 %9656, %v7463_v37   ;;  %v7582_v33 = vsub.s32 %v7579_v55, %v10343_v11 }
 0xd78   :  { %7514 = vperm.xlu1 %9657, %v7459_v50   ;;  %7529 = vperm.xlu0 %9656, %v7464_v9  }
 0xd7c   :  { %7493 = vperm.xlu1 %9657, %v7452_v39  }
 0xd80   :  { %7517 = vperm.xlu1 %9657, %v7460_v21  }
 0xd84   :  { %7496 = vperm.xlu1 %9657, %v7453_v46  }
 0xd88   :  { %7499 = vperm.xlu1 %9657, %v7454_v23  }
 0xd8c   :  { %7502 = vperm.xlu1 %9657, %v7455_v31  }
 0xd90   :  { %7505 = vperm.xlu1 %9657, %v7456_v44  }
 0xd97   :  { %7356 = vadd.xlane.f32.xlu0 %v7355_v32 }
 0xdb4   :  { %7631 = vadd.xlane.f32.xlu1 %v7630_v14 }
 0xde7   :  { %v7488_v20 = vpop.permute.xlu1 %7487  ;;  %v7485_v0 = vpop.permute.xlu0 %7484 }
 0xde8   :  { %v7541_v48 = vrot.slane %v7488_v20, %v7540_v34  ;;  %v7536_v15 = vrot.slane %v7485_v0, %v7535_v49 }
 0xdea   :  { %v7543_v50 = vsel %vm7542_vm10, %v7541_v48, %v7536_v15 }
 0xdeb   :  { %v7509_v47 = vpop.permute.xlu1 %7508  ;;  %v7521_v17 = vpop.permute.xlu0 %7520 }
 0xdec   :  { %v7589_v52 = vrot.slane %v7509_v47, %v7535_v49  ;;  %v7608_v58 = vrot.slane %v7521_v17, %v7561_v25 }
 0xdef   :  { %v7512_v5 = vpop.permute.xlu1 %7511  ;;  %v7524_v12 = vpop.permute.xlu0 %7523 }
 0xdf0   :  { %v7593_v35 = vrot.slane %v7512_v5, %v7540_v34  ;;  %v7613_v22 = vrot.slane %v7524_v12, %v7568_v40 }
 0xdf2   :  { %v7594_v43 = vsel %vm7542_vm10, %v7593_v35, %v7589_v52 }
 0xdf3   :  { %v7491_v45 = vpop.permute.xlu1 %7490  ;;  %v7527_v28 = vpop.permute.xlu0 %7526 }
 0xdf4   :  { %v7548_v27 = vrot.slane %v7491_v45, %v7547_v62  ;;  %v7618_v6 = vrot.slane %v7527_v28, %v7575_v42 }
 0xdf6   :  { %v7550_v21 = vsel %vm7549_vm11, %v7548_v27, %v7543_v50 }
 0xdf7   :  { %v7515_v51 = vpop.permute.xlu1 %7514  ;;  %v7530_v46 = vpop.permute.xlu0 %7529 }
 0xdf8   :  { %v7598_v29 = vrot.slane %v7515_v51, %v7547_v62  ;;  %v7623_v44 = vrot.slane %v7530_v46, %v7582_v33  ;;  %v7358_v51 = vstv %s7347_s1 }
 0xdfa   :  { %v7599_v57 = vsel %vm7549_vm11, %v7598_v29, %v7594_v43 }
 0xdfb   :  { %v7494_v24 = vpop.permute.xlu1 %7493 }
 0xdfc   :  { %v7555_v7 = vrot.slane %v7494_v24, %v7554_v41 }
 0xdfe   :  { %v7557_v23 = vsel %vm7556_vm12, %v7555_v7, %v7550_v21 }
 0xdff   :  { %v7518_v1 = vpop.permute.xlu1 %7517 }
 0xe00   :  { %v7603_v8 = vrot.slane %v7518_v1, %v7554_v41 }
 0xe02   :  { %v7604_v38 = vsel %vm7556_vm12, %v7603_v8, %v7599_v57 }
 0xe03   :  { %v7497_v30 = vpop.permute.xlu1 %7496  ;;  %v7609_v10 = vsel %vm7563_vm13, %v7608_v58, %v7604_v38 }
 0xe04   :  { %v7562_v37 = vrot.slane %v7497_v30, %v7561_v25  ;;  %v7614_v39 = vsel %vm7570_vm14, %v7613_v22, %v7609_v10 }
 0xe05   :  { %v7619_v11 = vsel %vm7577_vm15, %v7618_v6, %v7614_v39 }
 0xe06   :  { %v7564_v31 = vsel %vm7563_vm13, %v7562_v37, %v7557_v23  ;;  %v7624_v14 = vsel %vm7584_vm3, %v7623_v44, %v7619_v11 }
 0xe07   :  { %v7500_v3 = vpop.permute.xlu1 %7499 }
 0xe08   :  { %v7569_v9 = vrot.slane %v7500_v3, %v7568_v40 }
 0xe0a   :  { %v7571_v61 = vsel %vm7570_vm14, %v7569_v9, %v7564_v31 }
 0xe0b   :  { %v7503_v63 = vpop.permute.xlu1 %7502 }
 0xe0c   :  { %v7576_v2 = vrot.slane %v7503_v63, %v7575_v42 }
 0xe0e   :  { %v7578_v32 = vsel %vm7577_vm15, %v7576_v2, %v7571_v61 }
 0xe0f   :  { %v7506_v19 = vpop.permute.xlu1 %7505 }
 0xe10   :  { %v7583_v36 = vrot.slane %v7506_v19, %v7582_v33 }
 0xe12   :  { %v7585_v18 = vsel %vm7584_vm3, %v7583_v36, %v7578_v32 }
 0xe13   :  { %v7625_v20 = vsel %vm7269_vm8, %v7624_v14, %v7585_v18 }
 0xe14   :  { %v7627_v47 = vsel %vm7466_vm2, %v7625_v20, 0.0 }
 0xe15   :  { %v7633_v5 = vsel %vm7354_vm9, %v7627_v47, 0.0 }
 0xe16   :  { %7634 = vadd.xlane.f32.xlu0 %v7633_v5 }
 0xe24   :  { %v7357_v26 = vpop.xlane.xlu0 %7356 }
 0xe25   :  { %v7359_v17 = vadd.f32 %v7358_v51, %v7357_v26 }
 0xe41   :  { %v7632_v45 = vpop.xlane.xlu1 %7631 }
 0xe42   :  { %v7636_v0 = vmax.f32 %v7632_v45, 1.0 }
 0xe44   :  { %9966 = vrcp.f32 %v7636_v0 }
 0xe4e   :  { %v9967_v59 = vpop.eup %9966 }
 0xea3   :  { %v7635_v16 = vpop.xlane.xlu0 %7634 }
 0xea4   :  { %v7638_v53 = vmul.f32 %v9967_v59, %v7635_v16 }
 0xea6   :  { %v7639_v24 = vsub.f32 %v7359_v17, %v7638_v53 }
 0xea8   :  { %v7640_v54 = vadd.f32 %v7639_v24, %v7627_v47 }
 0xeaa   :  { %9968 = vtanh.f32 %v7640_v54 }
 0xeb4   :  { %v9969_v34 = vpop.eup %9968 }
 0xeb5   :  { %v7642_v4 = vsel %vm7466_vm2, %v9969_v34, -inf }
 0xeb6   :  { %7643 = vst.msk [vmem:[#allocation5] sm:$0x3] %vm7354_vm9, %v7642_v4 }
 0xeb7   :  { %10233 = shalt.err (!%p10230_p9)
}
 0xeb8   :  { %s10234_s20 = scalar_lea.hbm %s15727_s9, 32 }
 0xeb9   :  { %p10235_p10 = scmp.ne.s32.totalorder %s15727_s9, %s10234_s20  ;;  %p10238_p11 = scmp.lt.u32.totalorder %s10234_s20, %s15727_s9 }
 0xebb   :  { %p10240_p12 = pnand %p10238_p11, %p10235_p10 }
 0xebd   :  { %10243 = shalt.err (!%p10240_p12)
}
 0xebe   :  { %7653 = dma.vmem_to_hbm [thread:$0]  %s7651_s16, 32, %s15727_s9, [#allocation3]  }
 0xebf   :  { %10246 = dma.done.wait [#allocation3], 32  }
 0xec0   :  { %10247 = vsyncadd [#allocation3], 4294967264 }
 0xec1   :  { %7657 = vsyncpa [#allocation3], 1 }
 0xec2   :  { %7658 = vsyncpa [#allocation4], 1 }

</bundles_post_ra>
